<compile_context>
chip_gen: v5e
topology: v5e:2x2
jax: 0.10.0
libtpu: 0.0.40
codegen_flags: <defaults>
</compile_context>

<pallas_src>
import functools

import jax
import jax.numpy as jnp
from jax.experimental import pallas as pl
from jax.experimental.pallas import tpu as pltpu


def conv_bn_relu_pool_kernel(x_ref, w_ref, g_ref, beta_ref, o_ref,
                             xp_scratch, pool_scratch,
                             *, N, H, W, Cin, Cout, KH, KW, P, eps):
    """Single-invocation fused kernel (everything fits in VMEM at these shapes).

    x_ref        : (N, H, W, Cin)              unpadded NHWC input, f32
    w_ref        : (KH*KW*Cin, Cout)           im2col-reshaped conv weights
    g_ref        : (1, Cout)                   BN gamma
    beta_ref     : (1, Cout)                   BN beta
    o_ref        : (N, H//P, W//P, Cout)       pooled output
    xp_scratch   : (N, H+2ph, W+2pw, Cin) VMEM zero-padded staging buffer
    pool_scratch : (N, H//P, W, Cout)     VMEM H-pooled activations (strided W-pool reads)
    """
    M = N * H * W
    Hh, Wh = H // P, W // P
    ph, pw = KH // 2, KW // 2

    # ---- 'same' padding staged in VMEM (no jnp.pad / extra HBM copy in the wrapper) ----
    xp_scratch[...] = jnp.zeros_like(xp_scratch)
    xp_scratch[:, ph:ph + H, pw:pw + W, :] = x_ref[...]

    # ---- Convolution as ONE MXU contraction: (M, KH*KW*Cin) x (KH*KW*Cin, Cout) ----
    taps = []
    for kh in range(KH):
        for kw in range(KW):
            taps.append(xp_scratch[:, kh:kh + H, kw:kw + W, :].reshape(M, Cin))
    xcol = jnp.concatenate(taps, axis=-1)                       # (M, KH*KW*Cin)
    acc = jnp.dot(xcol, w_ref[...],
                  preferred_element_type=jnp.float32)           # (M, Cout)
    # conv bias intentionally omitted: BN's batch-mean subtraction cancels it exactly.

    # ---- BatchNorm2d (training-mode batch stats), one pass, folded into an affine ----
    inv_m = 1.0 / float(M)
    s1 = jnp.sum(acc, axis=0, keepdims=True)                    # (1, Cout)
    s2 = jnp.sum(acc * acc, axis=0, keepdims=True)              # (1, Cout)
    mean = s1 * inv_m
    var = s2 * inv_m - mean * mean                              # biased variance
    scale = jax.lax.rsqrt(var + eps) * g_ref[...]
    shift = beta_ref[...] - mean * scale

    # ---- BN affine + ReLU fused in one VPU pass ----
    y = jnp.maximum(acc * scale + shift, 0.0)                   # (M, Cout)

    # ---- MaxPool2d(P): pool H first (major-axis reshape is free; pure vreg max) ----
    yr = y.reshape(N, Hh, P, W, Cout)
    hm = yr[:, :, 0]
    for i in range(1, P):
        hm = jnp.maximum(hm, yr[:, :, i])                       # (N, Hh, W, Cout)

    # ---- then pool W on the P-times smaller tensor via strided sublane reads ----
    pool_scratch[...] = hm
    pm = pool_scratch[:, :, pl.ds(0, Wh, stride=P), :]
    for j in range(1, P):
        pm = jnp.maximum(pm, pool_scratch[:, :, pl.ds(j, Wh, stride=P), :])

    o_ref[...] = pm.astype(o_ref.dtype)                         # (N, Hh, Wh, Cout)


def conv2d_block(x_nchw, weight, bias, gamma, beta, *,
                 stride=1, pooling=2, eps=1e-5):
    """Equivalent of Conv2d.forward: mp(relu(bn(conv(x)))).

    x_nchw : (N, Cin, H, W)      -- PyTorch NCHW
    weight : (Cout, Cin, KH, KW) -- PyTorch OIHW
    bias, gamma, beta : (Cout,)
    returns (N, Cout, H//pooling, W//pooling)
    """
    assert stride == 1, "module is instantiated with stride=1"
    N, Cin, H, W = x_nchw.shape
    Cout, _, KH, KW = weight.shape
    P = pooling
    assert H % P == 0 and W % P == 0, (
        "MaxPool2d floor-mode remainder handling not implemented")
    ph, pw = KH // 2, KW // 2
    Hh, Wh = H // P, W // P

    # glue: layout conversion + parameter packing (bias is dropped — cancelled by BN)
    x = jnp.transpose(x_nchw, (0, 2, 3, 1)).astype(jnp.float32)      # NHWC, unpadded
    w = (jnp.transpose(weight, (2, 3, 1, 0))                         # (KH,KW,Cin,Cout)
         .astype(jnp.float32).reshape(KH * KW * Cin, Cout))          # im2col weights
    g2 = gamma.reshape(1, Cout).astype(jnp.float32)
    beta2 = beta.reshape(1, Cout).astype(jnp.float32)
    del bias  # mathematically cancelled by training-mode BN mean subtraction

    kernel = functools.partial(
        conv_bn_relu_pool_kernel,
        N=N, H=H, W=W, Cin=Cin, Cout=Cout, KH=KH, KW=KW, P=P, eps=eps)

    out_nhwc = pl.pallas_call(
        kernel,
        out_shape=jax.ShapeDtypeStruct((N, Hh, Wh, Cout), jnp.float32),
        in_specs=[pl.BlockSpec(memory_space=pltpu.MemorySpace.VMEM)] * 4,
        out_specs=pl.BlockSpec(memory_space=pltpu.MemorySpace.VMEM),
        scratch_shapes=[
            pltpu.VMEM((N, H + 2 * ph, W + 2 * pw, Cin), jnp.float32),  # padded input
            pltpu.VMEM((N, Hh, W, Cout), jnp.float32),                  # H-pooled acts
        ],
        compiler_params=pltpu.CompilerParams(vmem_limit_bytes=32 * 1024 * 1024),
    )(x, w, g2, beta2)

    return jnp.transpose(out_nhwc, (0, 3, 1, 2))                     # back to NCHW


def _reference(x, weight, bias, gamma, beta, eps=1e-5, pooling=2):
    """Pure-JAX reference of the PyTorch forward (training-mode BN, with conv bias)."""
    conv = jax.lax.conv_general_dilated(
        x, weight, window_strides=(1, 1), padding="SAME",
        dimension_numbers=("NCHW", "OIHW", "NCHW"))
    conv = conv + bias.reshape(1, -1, 1, 1)
    mean = conv.mean(axis=(0, 2, 3), keepdims=True)
    var = ((conv - mean) ** 2).mean(axis=(0, 2, 3), keepdims=True)   # biased
    bn = (conv - mean) * jax.lax.rsqrt(var + eps)
    bn = bn * gamma.reshape(1, -1, 1, 1) + beta.reshape(1, -1, 1, 1)
    relu = jnp.maximum(bn, 0.0)
    pooled = jax.lax.reduce_window(
        relu, -jnp.inf, jax.lax.max,
        (1, 1, pooling, pooling), (1, 1, pooling, pooling), "VALID")
    return pooled


if __name__ == "__main__":
    # Module config: Conv2d(input_channels=4, output_channels=8, shape=3,
    #                       stride=1, pooling=2)
    N, Cin, H, W = 2, 4, 16, 16
    Cout, K, P = 8, 3, 2

    key = jax.random.PRNGKey(0)
    kx, kw, kb, kg, kbeta = jax.random.split(key, 5)
    x = jax.random.normal(kx, (N, Cin, H, W), jnp.float32)
    weight = 0.1 * jax.random.normal(kw, (Cout, Cin, K, K), jnp.float32)
    bias = 0.1 * jax.random.normal(kb, (Cout,), jnp.float32)
    gamma = 1.0 + 0.1 * jax.random.normal(kg, (Cout,), jnp.float32)
    beta = 0.1 * jax.random.normal(kbeta, (Cout,), jnp.float32)

    out = conv2d_block(x, weight, bias, gamma, beta, stride=1, pooling=P)
    out = jax.block_until_ready(out)

    ref = _reference(x, weight, bias, gamma, beta, pooling=P)
    assert out.shape == (N, Cout, H // P, W // P), out.shape
    max_err = float(jnp.max(jnp.abs(out - ref)))
    assert jnp.allclose(out, ref, atol=2e-4, rtol=2e-4), max_err

    print("KERNEL_OK")
</pallas_src>

<mosaic_0001>
module attributes {stable_mosaic.version = 11 : i64} {
  func.func @conv_bn_relu_pool_kernel(%arg0: memref<2x16x16x4xf32, #tpu.memory_space<vmem>>, %arg1: memref<36x8xf32, #tpu.memory_space<vmem>>, %arg2: memref<1x8xf32, #tpu.memory_space<vmem>>, %arg3: memref<1x8xf32, #tpu.memory_space<vmem>>, %arg4: memref<2x8x8x8xf32, #tpu.memory_space<vmem>>, %arg5: memref<2x18x18x4xf32, #tpu.memory_space<vmem>>, %arg6: memref<2x8x16x8xf32, #tpu.memory_space<vmem>>) attributes {dimension_semantics = [], scalar_prefetch = 0 : i64, scratch_operands = 2 : i64, tpu.core_type = #tpu.core_type<tc>} {
    %cst = arith.constant 0.000000e+00 : f32
    %0 = vector.broadcast %cst : f32 to vector<2x18x18x4xf32>
    %c0 = arith.constant 0 : index
    %c0_0 = arith.constant 0 : index
    %c0_1 = arith.constant 0 : index
    %c0_2 = arith.constant 0 : index
    %1 = vector.load %arg5[%c0, %c0_0, %c0_1, %c0_2] : memref<2x18x18x4xf32, #tpu.memory_space<vmem>>, vector<2x18x18x4xf32>
    tpu.vector_store %arg5[%c0, %c0_0, %c0_1, %c0_2], %0 {strides = array<i32>} : memref<2x18x18x4xf32, #tpu.memory_space<vmem>>, vector<2x18x18x4xf32>,
    %c0_3 = arith.constant 0 : index
    %c0_4 = arith.constant 0 : index
    %c0_5 = arith.constant 0 : index
    %c0_6 = arith.constant 0 : index
    %2 = vector.load %arg0[%c0_3, %c0_4, %c0_5, %c0_6] : memref<2x16x16x4xf32, #tpu.memory_space<vmem>>, vector<2x16x16x4xf32>
    %c0_7 = arith.constant 0 : index
    %c1 = arith.constant 1 : index
    %c1_8 = arith.constant 1 : index
    %c0_9 = arith.constant 0 : index
    %3 = vector.load %arg5[%c0_7, %c1, %c1_8, %c0_9] : memref<2x18x18x4xf32, #tpu.memory_space<vmem>>, vector<2x16x16x4xf32>
    tpu.vector_store %arg5[%c0_7, %c1, %c1_8, %c0_9], %2 {strides = array<i32>} : memref<2x18x18x4xf32, #tpu.memory_space<vmem>>, vector<2x16x16x4xf32>,
    %c0_10 = arith.constant 0 : index
    %c0_11 = arith.constant 0 : index
    %c0_12 = arith.constant 0 : index
    %c0_13 = arith.constant 0 : index
    %4 = vector.load %arg5[%c0_10, %c0_11, %c0_12, %c0_13] : memref<2x18x18x4xf32, #tpu.memory_space<vmem>>, vector<2x16x16x4xf32>
    %5 = vector.shape_cast %4 : vector<2x16x16x4xf32> to vector<512x4xf32>
    %c0_14 = arith.constant 0 : index
    %c0_15 = arith.constant 0 : index
    %c1_16 = arith.constant 1 : index
    %c0_17 = arith.constant 0 : index
    %6 = vector.load %arg5[%c0_14, %c0_15, %c1_16, %c0_17] : memref<2x18x18x4xf32, #tpu.memory_space<vmem>>, vector<2x16x16x4xf32>
    %7 = vector.shape_cast %6 : vector<2x16x16x4xf32> to vector<512x4xf32>
    %c0_18 = arith.constant 0 : index
    %c0_19 = arith.constant 0 : index
    %c2 = arith.constant 2 : index
    %c0_20 = arith.constant 0 : index
    %8 = vector.load %arg5[%c0_18, %c0_19, %c2, %c0_20] : memref<2x18x18x4xf32, #tpu.memory_space<vmem>>, vector<2x16x16x4xf32>
    %9 = vector.shape_cast %8 : vector<2x16x16x4xf32> to vector<512x4xf32>
    %c0_21 = arith.constant 0 : index
    %c1_22 = arith.constant 1 : index
    %c0_23 = arith.constant 0 : index
    %c0_24 = arith.constant 0 : index
    %10 = vector.load %arg5[%c0_21, %c1_22, %c0_23, %c0_24] : memref<2x18x18x4xf32, #tpu.memory_space<vmem>>, vector<2x16x16x4xf32>
    %11 = vector.shape_cast %10 : vector<2x16x16x4xf32> to vector<512x4xf32>
    %c0_25 = arith.constant 0 : index
    %c1_26 = arith.constant 1 : index
    %c1_27 = arith.constant 1 : index
    %c0_28 = arith.constant 0 : index
    %12 = vector.load %arg5[%c0_25, %c1_26, %c1_27, %c0_28] : memref<2x18x18x4xf32, #tpu.memory_space<vmem>>, vector<2x16x16x4xf32>
    %13 = vector.shape_cast %12 : vector<2x16x16x4xf32> to vector<512x4xf32>
    %c0_29 = arith.constant 0 : index
    %c1_30 = arith.constant 1 : index
    %c2_31 = arith.constant 2 : index
    %c0_32 = arith.constant 0 : index
    %14 = vector.load %arg5[%c0_29, %c1_30, %c2_31, %c0_32] : memref<2x18x18x4xf32, #tpu.memory_space<vmem>>, vector<2x16x16x4xf32>
    %15 = vector.shape_cast %14 : vector<2x16x16x4xf32> to vector<512x4xf32>
    %c0_33 = arith.constant 0 : index
    %c2_34 = arith.constant 2 : index
    %c0_35 = arith.constant 0 : index
    %c0_36 = arith.constant 0 : index
    %16 = vector.load %arg5[%c0_33, %c2_34, %c0_35, %c0_36] : memref<2x18x18x4xf32, #tpu.memory_space<vmem>>, vector<2x16x16x4xf32>
    %17 = vector.shape_cast %16 : vector<2x16x16x4xf32> to vector<512x4xf32>
    %c0_37 = arith.constant 0 : index
    %c2_38 = arith.constant 2 : index
    %c1_39 = arith.constant 1 : index
    %c0_40 = arith.constant 0 : index
    %18 = vector.load %arg5[%c0_37, %c2_38, %c1_39, %c0_40] : memref<2x18x18x4xf32, #tpu.memory_space<vmem>>, vector<2x16x16x4xf32>
    %19 = vector.shape_cast %18 : vector<2x16x16x4xf32> to vector<512x4xf32>
    %c0_41 = arith.constant 0 : index
    %c2_42 = arith.constant 2 : index
    %c2_43 = arith.constant 2 : index
    %c0_44 = arith.constant 0 : index
    %20 = vector.load %arg5[%c0_41, %c2_42, %c2_43, %c0_44] : memref<2x18x18x4xf32, #tpu.memory_space<vmem>>, vector<2x16x16x4xf32>
    %21 = vector.shape_cast %20 : vector<2x16x16x4xf32> to vector<512x4xf32>
    %22 = tpu.concatenate %5, %7, %9, %11, %13, %15, %17, %19, %21 in 1 : vector<512x4xf32>, vector<512x4xf32>, vector<512x4xf32>, vector<512x4xf32>, vector<512x4xf32>, vector<512x4xf32>, vector<512x4xf32>, vector<512x4xf32>, vector<512x4xf32> -> vector<512x36xf32>
    %c0_45 = arith.constant 0 : index
    %c0_46 = arith.constant 0 : index
    %23 = vector.load %arg1[%c0_45, %c0_46] : memref<36x8xf32, #tpu.memory_space<vmem>>, vector<36x8xf32>
    %cst_47 = arith.constant dense<0.000000e+00> : vector<512x8xf32>
    %24 = tpu.matmul %22, %23, %cst_47 {dimension_numbers = #tpu.dot_dimension_numbers<[1], [0], [0], [1], [0, 0, 1, 1], [], []>} : vector<512x36xf32>, vector<36x8xf32>, vector<512x8xf32> -> vector<512x8xf32>
    %cst_48 = arith.constant dense<0.000000e+00> : vector<8xf32>
    %25 = vector.multi_reduction <add>, %24, %cst_48 [0] : vector<512x8xf32> to vector<8xf32>
    %26 = vector.shape_cast %25 : vector<8xf32> to vector<1x8xf32>
    %27 = arith.mulf %24, %24 : vector<512x8xf32>
    %cst_49 = arith.constant dense<0.000000e+00> : vector<8xf32>
    %28 = vector.multi_reduction <add>, %27, %cst_49 [0] : vector<512x8xf32> to vector<8xf32>
    %29 = vector.shape_cast %28 : vector<8xf32> to vector<1x8xf32>
    %cst_50 = arith.constant 0.001953125 : f32
    %30 = vector.broadcast %cst_50 : f32 to vector<1x8xf32>
    %31 = arith.mulf %26, %30 : vector<1x8xf32>
    %cst_51 = arith.constant 0.001953125 : f32
    %32 = vector.broadcast %cst_51 : f32 to vector<1x8xf32>
    %33 = arith.mulf %29, %32 : vector<1x8xf32>
    %34 = arith.mulf %31, %31 : vector<1x8xf32>
    %35 = arith.subf %33, %34 : vector<1x8xf32>
    %cst_52 = arith.constant 9.99999974E-6 : f32
    %36 = vector.broadcast %cst_52 : f32 to vector<1x8xf32>
    %37 = arith.addf %35, %36 : vector<1x8xf32>
    %38 = math.rsqrt %37 : vector<1x8xf32>
    %c0_53 = arith.constant 0 : index
    %c0_54 = arith.constant 0 : index
    %39 = vector.load %arg2[%c0_53, %c0_54] : memref<1x8xf32, #tpu.memory_space<vmem>>, vector<1x8xf32>
    %40 = arith.mulf %38, %39 : vector<1x8xf32>
    %c0_55 = arith.constant 0 : index
    %c0_56 = arith.constant 0 : index
    %41 = vector.load %arg3[%c0_55, %c0_56] : memref<1x8xf32, #tpu.memory_space<vmem>>, vector<1x8xf32>
    %42 = arith.mulf %31, %40 : vector<1x8xf32>
    %43 = arith.subf %41, %42 : vector<1x8xf32>
    %44 = vector.broadcast %40 : vector<1x8xf32> to vector<512x8xf32>
    %45 = arith.mulf %24, %44 : vector<512x8xf32>
    %46 = vector.broadcast %43 : vector<1x8xf32> to vector<512x8xf32>
    %47 = arith.addf %45, %46 : vector<512x8xf32>
    %cst_57 = arith.constant 0.000000e+00 : f32
    %48 = vector.broadcast %cst_57 : f32 to vector<512x8xf32>
    %49 = arith.maximumf %47, %48 : vector<512x8xf32>
    %50 = vector.shape_cast %49 : vector<512x8xf32> to vector<2x8x2x16x8xf32>
    %51 = vector.extract_strided_slice %50 {offsets = [0, 0, 0, 0, 0], sizes = [2, 8, 1, 16, 8], strides = [1, 1, 1, 1, 1]} : vector<2x8x2x16x8xf32> to vector<2x8x1x16x8xf32>
    %52 = vector.shape_cast %51 : vector<2x8x1x16x8xf32> to vector<2x8x16x8xf32>
    %53 = vector.extract_strided_slice %50 {offsets = [0, 0, 1, 0, 0], sizes = [2, 8, 1, 16, 8], strides = [1, 1, 1, 1, 1]} : vector<2x8x2x16x8xf32> to vector<2x8x1x16x8xf32>
    %54 = vector.shape_cast %53 : vector<2x8x1x16x8xf32> to vector<2x8x16x8xf32>
    %55 = arith.maximumf %52, %54 : vector<2x8x16x8xf32>
    %c0_58 = arith.constant 0 : index
    %c0_59 = arith.constant 0 : index
    %c0_60 = arith.constant 0 : index
    %c0_61 = arith.constant 0 : index
    %56 = vector.load %arg6[%c0_58, %c0_59, %c0_60, %c0_61] : memref<2x8x16x8xf32, #tpu.memory_space<vmem>>, vector<2x8x16x8xf32>
    tpu.vector_store %arg6[%c0_58, %c0_59, %c0_60, %c0_61], %55 {strides = array<i32>} : memref<2x8x16x8xf32, #tpu.memory_space<vmem>>, vector<2x8x16x8xf32>,
    %c0_62 = arith.constant 0 : index
    %c0_63 = arith.constant 0 : index
    %c0_64 = arith.constant 0 : index
    %c0_65 = arith.constant 0 : index
    %57 = tpu.strided_load %arg6[%c0_62, %c0_63, %c0_64, %c0_65] {strides = array<i32: 1, 1, 2, 1>} : memref<2x8x16x8xf32, #tpu.memory_space<vmem>>, vector<2x8x8x8xf32>
    %c0_66 = arith.constant 0 : index
    %c0_67 = arith.constant 0 : index
    %c1_68 = arith.constant 1 : index
    %c0_69 = arith.constant 0 : index
    %58 = tpu.strided_load %arg6[%c0_66, %c0_67, %c1_68, %c0_69] {strides = array<i32: 1, 1, 2, 1>} : memref<2x8x16x8xf32, #tpu.memory_space<vmem>>, vector<2x8x8x8xf32>
    %59 = arith.maximumf %57, %58 : vector<2x8x8x8xf32>
    %c0_70 = arith.constant 0 : index
    %c0_71 = arith.constant 0 : index
    %c0_72 = arith.constant 0 : index
    %c0_73 = arith.constant 0 : index
    %60 = vector.load %arg4[%c0_70, %c0_71, %c0_72, %c0_73] : memref<2x8x8x8xf32, #tpu.memory_space<vmem>>, vector<2x8x8x8xf32>
    tpu.vector_store %arg4[%c0_70, %c0_71, %c0_72, %c0_73], %59 {strides = array<i32>} : memref<2x8x8x8xf32, #tpu.memory_space<vmem>>, vector<2x8x8x8xf32>,
    return
  }
}

</mosaic_0001>

<bundles_post_ra>
// kernel: tpu_custom_call.1
= control target key start
LH: loop header
LB: loop body
LE: loop exit
PB: predicated region body
PF: predicated region fallthrough
CT: control target
= control target key end

     0   :  { %vm18_vm0 = vcmask 31744   ;;  %s8578_s0 = inlined_call_operand.vmem [shape: f32[2,16,16,4], index: 0, kind: input, shape index: {}]   ;;  %s8579_s1 = inlined_call_operand.vmem [shape: f32[36,8], index: 1, kind: input, shape index: {}]   ;;  %s8580_s2 = inlined_call_operand.vmem [shape: f32[1,8], index: 2, kind: input, shape index: {}]   ;;  %s8581_s3 = inlined_call_operand.vmem [shape: f32[1,8], index: 3, kind: input, shape index: {}]   ;;  %s8582_s4 = inlined_call_operand.hbm [shape: f32[2,8,8,8], index: 4, kind: output, shape index: {}]  }
   0x1   :  { %9 = vsyncpa [#allocation5], 0  ;;  %v4714_v0 = vmov 0.0   ;;  %s4715_s15 = smov 4   ;;  %v130_v2 = vld [vmem:[%s8578_s0 + $0x10] sm:$0xff]  ;;  %v128_v3 = vld [vmem:[%s8578_s0] sm:$0xff] }
   0x2   :  { %19 = vst.msk [vmem:[#allocation2] sm:$0xff] %vm18_vm0, %v4714_v0  ;;  %vm21_vm1 = vcmask 25600   ;;  %v131_v7 = vld [vmem:[%s8578_s0 + $0x18] sm:$0xff]  ;;  %v129_v8 = vld [vmem:[%s8578_s0 + $0x8] sm:$0xff]  ;;  %v132_v9 = vld [vmem:[%s8578_s0 + $0x20] sm:$0xff]  ;;  %s4716_s10 = smov 8  }
   0x3   :  { %20 = vst.msk [vmem:[#allocation2 + $0x8] sm:$0xff] %vm18_vm0, %v4714_v0  ;;  %v134_v10 = vld [vmem:[%s8578_s0 + $0x30] sm:$0xff]  ;;  %v133_v11 = vld [vmem:[%s8578_s0 + $0x28] sm:$0xff]  ;;  %v135_v12 = vld [vmem:[%s8578_s0 + $0x38] sm:$0xff]  ;;  %s4719_s20 = smov 20   ;;  %s4720_s21 = smov 24  }
   0x4   :  { %23 = vst.msk [vmem:[#allocation2 + $0x18] sm:$0xff] %vm18_vm0, %v4714_v0  ;;  %v137_v13 = vld [vmem:[%s8578_s0 + $0x48] sm:$0xff]  ;;  %v136_v14 = vld [vmem:[%s8578_s0 + $0x40] sm:$0xff]  ;;  %v138_v15 = vld [vmem:[%s8578_s0 + $0x50] sm:$0xff]  ;;  %s4721_s22 = smov 28   ;;  %s4722_s23 = smov 32  }
   0x5   :  { %24 = vst.msk [vmem:[#allocation2 + $0x20] sm:$0xff] %vm18_vm0, %v4714_v0  ;;  %v140_v16 = vld [vmem:[%s8578_s0 + $0x60] sm:$0xff]  ;;  %v139_v18 = vld [vmem:[%s8578_s0 + $0x58] sm:$0xff]  ;;  %v141_v20 = vld [vmem:[%s8578_s0 + $0x68] sm:$0xff]  ;;  %vm3599_vm2 = vcmask 1043456   ;;  %vm3011_vm3 = vcmask 97280  }
   0x6   :  { %26 = vst.msk [vmem:[#allocation2 + $0x30] sm:$0xff] %vm18_vm0, %v4714_v0  ;;  %v143_v22 = vld [vmem:[%s8578_s0 + $0x78] sm:$0xff]  ;;  %v142_v23 = vld [vmem:[%s8578_s0 + $0x70] sm:$0xff]  ;;  %v144_v24 = vld [vmem:[%s8578_s0 + $0x80] sm:$0xff]  ;;  %vm2946_vm4 = vcmask 64512   ;;  %vm3076_vm5 = vcmask 130048  }
   0x7   :  { %27 = vst.msk [vmem:[#allocation2 + $0x38] sm:$0xff] %vm18_vm0, %v4714_v0  ;;  %v146_v25 = vld [vmem:[%s8578_s0 + $0x90] sm:$0xff]  ;;  %v145_v27 = vld [vmem:[%s8578_s0 + $0x88] sm:$0xff]  ;;  %v147_v30 = vld [vmem:[%s8578_s0 + $0x98] sm:$0xff]  ;;  %vm3206_vm6 = vcmask 195584   ;;  %vm3141_vm7 = vcmask 162816  }
   0x8   :  { %29 = vst.msk [vmem:[#allocation2 + $0x48] sm:$0xff] %vm18_vm0, %v4714_v0  ;;  %v149_v31 = vld [vmem:[%s8578_s0 + $0xa8] sm:$0xff]  ;;  %v148_v32 = vld [vmem:[%s8578_s0 + $0xa0] sm:$0xff]  ;;  %v150_v36 = vld [vmem:[%s8578_s0 + $0xb0] sm:$0xff]  ;;  %vm3271_vm8 = vcmask 228352   ;;  %vm3336_vm9 = vcmask 261120  }
   0x9   :  { %30 = vst.msk [vmem:[#allocation2 + $0x50] sm:$0xff] %vm18_vm0, %v4714_v0  ;;  %v152_v37 = vld [vmem:[%s8578_s0 + $0xc0] sm:$0xff]  ;;  %v151_v38 = vld [vmem:[%s8578_s0 + $0xb8] sm:$0xff]  ;;  %v153_v42 = vld [vmem:[%s8578_s0 + $0xc8] sm:$0xff]  ;;  %vm3406_vm10 = vcmask 293888   ;;  %s4523_s13 = sshll.u32 %s8582_s4, 4  ;;  %s4524_s13 = int_to_ptr.hbm [resolvable:$true] %s4523_s13 }
   0xa   :  { %v321_v1 = vld [vmem:[#allocation2 + $0x1] sm:$0xff]  ;;  %32 = vst.msk [vmem:[#allocation2 + $0x60] sm:$0xff] %vm18_vm0, %v4714_v0  ;;  %v155_v43 = vld [vmem:[%s8578_s0 + $0xd8] sm:$0xff]  ;;  %v154_v44 = vld [vmem:[%s8578_s0 + $0xd0] sm:$0xff]  ;;  %s4724_s14 = smov 128  }
   0xb   :  { %898 = vrot.lane.b32.xlu0 %v321_v1, %s4715_s15  ;;  %33 = vst.msk [vmem:[#allocation2 + $0x68] sm:$0xff] %vm18_vm0, %v4714_v0  ;;  %v156_v48 = vld [vmem:[%s8578_s0 + $0xe0] sm:$0xff]  ;;  %v157_v49 = vld [vmem:[%s8578_s0 + $0xe8] sm:$0xff]  ;;  %v162_v58 = vld [vmem:[%s8578_s0 + $0x110] sm:$0xff] }
   0xc   :  { %35 = vst.msk [vmem:[#allocation2 + $0x78] sm:$0xff] %vm18_vm0, %v4714_v0  ;;  %v161_v53 = vld [vmem:[%s8578_s0 + $0x108] sm:$0xff]  ;;  %v160_v54 = vld [vmem:[%s8578_s0 + $0x100] sm:$0xff]  ;;  %v163_v60 = vld [vmem:[%s8578_s0 + $0x118] sm:$0xff] }
   0xd   :  { %36 = vst.msk [vmem:[#allocation2 + $0x80] sm:$0xff] %vm18_vm0, %v4714_v0  ;;  %v164_v59 = vld [vmem:[%s8578_s0 + $0x120] sm:$0xff]  ;;  %v167_v1 = vld [vmem:[%s8578_s0 + $0x138] sm:$0xff] }
   0xe   :  { %38 = vst.msk [vmem:[#allocation2 + $0x90] sm:$0xff] %vm18_vm0, %v4714_v0 }
   0xf   :  { %39 = vst.msk [vmem:[#allocation2 + $0x98] sm:$0xff] %vm18_vm0, %v4714_v0 }
  0x10   :  { %41 = vst.msk [vmem:[#allocation2 + $0xa8] sm:$0xff] %vm18_vm0, %v4714_v0 }
  0x11   :  { %42 = vst.msk [vmem:[#allocation2 + $0xb0] sm:$0xff] %vm18_vm0, %v4714_v0 }
  0x12   :  { %44 = vst.msk [vmem:[#allocation2 + $0xc0] sm:$0xff] %vm18_vm0, %v4714_v0 }
  0x13   :  { %45 = vst.msk [vmem:[#allocation2 + $0xc8] sm:$0xff] %vm18_vm0, %v4714_v0 }
  0x14   :  { %47 = vst.msk [vmem:[#allocation2 + $0xd8] sm:$0xff] %vm18_vm0, %v4714_v0 }
  0x15   :  { %48 = vst.msk [vmem:[#allocation2 + $0xe0] sm:$0xff] %vm18_vm0, %v4714_v0 }
  0x16   :  { %50 = vst.msk [vmem:[#allocation2 + $0xf0] sm:$0xff] %vm18_vm0, %v4714_v0 }
  0x17   :  { %51 = vst.msk [vmem:[#allocation2 + $0xf8] sm:$0xff] %vm18_vm0, %v4714_v0 }
  0x18   :  { %53 = vst.msk [vmem:[#allocation2 + $0x108] sm:$0xff] %vm18_vm0, %v4714_v0 }
  0x19   :  { %54 = vst.msk [vmem:[#allocation2 + $0x110] sm:$0xff] %vm18_vm0, %v4714_v0 }
  0x1a   :  { %56 = vst.msk [vmem:[#allocation2 + $0x120] sm:$0xff] %vm18_vm0, %v4714_v0 }
  0x1b   :  { %57 = vst.msk [vmem:[#allocation2 + $0x128] sm:$0xff] %vm18_vm0, %v4714_v0 }
  0x1c   :  { %59 = vst.msk [vmem:[#allocation2 + $0x138] sm:$0xff] %vm18_vm0, %v4714_v0 }
  0x1d   :  { %60 = vst.msk [vmem:[#allocation2 + $0x140] sm:$0xff] %vm18_vm0, %v4714_v0 }
  0x1e   :  { %62 = vst.msk [vmem:[#allocation2 + $0x150] sm:$0xff] %vm18_vm0, %v4714_v0 }
  0x1f   :  { %63 = vst.msk [vmem:[#allocation2 + $0x158] sm:$0xff] %vm18_vm0, %v4714_v0 }
  0x20   :  { %65 = vst.msk [vmem:[#allocation2 + $0x168] sm:$0xff] %vm18_vm0, %v4714_v0 }
  0x21   :  { %66 = vst.msk [vmem:[#allocation2 + $0x170] sm:$0xff] %vm18_vm0, %v4714_v0 }
  0x22   :  { %68 = vst.msk [vmem:[#allocation2 + $0x180] sm:$0xff] %vm18_vm0, %v4714_v0 }
  0x23   :  { %69 = vst.msk [vmem:[#allocation2 + $0x188] sm:$0xff] %vm18_vm0, %v4714_v0 }
  0x24   :  { %71 = vst.msk [vmem:[#allocation2 + $0x198] sm:$0xff] %vm18_vm0, %v4714_v0 }
  0x25   :  { %72 = vst.msk [vmem:[#allocation2 + $0x1a0] sm:$0xff] %vm18_vm0, %v4714_v0 }
  0x26   :  { %74 = vst.msk [vmem:[#allocation2 + $0x1b0] sm:$0xff] %vm18_vm0, %v4714_v0 }
  0x27   :  { %75 = vst.msk [vmem:[#allocation2 + $0x1b8] sm:$0xff] %vm18_vm0, %v4714_v0 }
  0x28   :  { %77 = vst.msk [vmem:[#allocation2 + $0x1c8] sm:$0xff] %vm18_vm0, %v4714_v0 }
  0x29   :  { %78 = vst.msk [vmem:[#allocation2 + $0x1d0] sm:$0xff] %vm18_vm0, %v4714_v0 }
  0x2a   :  { %80 = vst.msk [vmem:[#allocation2 + $0x1e0] sm:$0xff] %vm18_vm0, %v4714_v0 }
  0x2b   :  { %81 = vst.msk [vmem:[#allocation2 + $0x1e8] sm:$0xff] %vm18_vm0, %v4714_v0 }
  0x2c   :  { %83 = vst.msk [vmem:[#allocation2 + $0x1f8] sm:$0xff] %vm18_vm0, %v4714_v0 }
  0x2d   :  { %84 = vst.msk [vmem:[#allocation2 + $0x200] sm:$0xff] %vm18_vm0, %v4714_v0 }
  0x2e   :  { %86 = vst.msk [vmem:[#allocation2 + $0x210] sm:$0xff] %vm18_vm0, %v4714_v0 }
  0x2f   :  { %87 = vst.msk [vmem:[#allocation2 + $0x218] sm:$0xff] %vm18_vm0, %v4714_v0 }
  0x30   :  { %89 = vst.msk [vmem:[#allocation2 + $0x228] sm:$0xff] %vm18_vm0, %v4714_v0 }
  0x31   :  { %90 = vst.msk [vmem:[#allocation2 + $0x230] sm:$0xff] %vm18_vm0, %v4714_v0 }
  0x32   :  { %92 = vst.msk [vmem:[#allocation2 + $0x240] sm:$0xff] %vm18_vm0, %v4714_v0 }
  0x33   :  { %93 = vst.msk [vmem:[#allocation2 + $0x248] sm:$0xff] %vm18_vm0, %v4714_v0 }
  0x34   :  { %95 = vst.msk [vmem:[#allocation2 + $0x258] sm:$0xff] %vm18_vm0, %v4714_v0 }
  0x35   :  { %96 = vst.msk [vmem:[#allocation2 + $0x260] sm:$0xff] %vm18_vm0, %v4714_v0 }
  0x36   :  { %98 = vst.msk [vmem:[#allocation2 + $0x270] sm:$0xff] %vm18_vm0, %v4714_v0 }
  0x37   :  { %99 = vst.msk [vmem:[#allocation2 + $0x278] sm:$0xff] %vm18_vm0, %v4714_v0 }
  0x38   :  { %101 = vst.msk [vmem:[#allocation2 + $0x288] sm:$0xff] %vm18_vm0, %v4714_v0 }
  0x39   :  { %102 = vst.msk [vmem:[#allocation2 + $0x290] sm:$0xff] %vm18_vm0, %v4714_v0 }
  0x3a   :  { %104 = vst.msk [vmem:[#allocation2 + $0x2a0] sm:$0xff] %vm18_vm0, %v4714_v0 }
  0x3b   :  { %105 = vst.msk [vmem:[#allocation2 + $0x2a8] sm:$0xff] %vm18_vm0, %v4714_v0 }
  0x3c   :  { %107 = vst.msk [vmem:[#allocation2 + $0x2b8] sm:$0xff] %vm18_vm0, %v4714_v0 }
  0x3d   :  { %108 = vst.msk [vmem:[#allocation2 + $0x2c0] sm:$0xff] %vm18_vm0, %v4714_v0 }
  0x3e   :  { %110 = vst.msk [vmem:[#allocation2 + $0x2d0] sm:$0xff] %vm18_vm0, %v4714_v0 }
  0x3f   :  { %111 = vst.msk [vmem:[#allocation2 + $0x2d8] sm:$0xff] %vm18_vm0, %v4714_v0 }
  0x40   :  { %113 = vst.msk [vmem:[#allocation2 + $0x2e8] sm:$0xff] %vm18_vm0, %v4714_v0 }
  0x41   :  { %114 = vst.msk [vmem:[#allocation2 + $0x2f0] sm:$0xff] %vm18_vm0, %v4714_v0 }
  0x42   :  { %116 = vst.msk [vmem:[#allocation2 + $0x300] sm:$0xff] %vm18_vm0, %v4714_v0 }
  0x43   :  { %117 = vst.msk [vmem:[#allocation2 + $0x308] sm:$0xff] %vm18_vm0, %v4714_v0 }
  0x44   :  { %119 = vst.msk [vmem:[#allocation2 + $0x318] sm:$0xff] %vm18_vm0, %v4714_v0 }
  0x45   :  { %120 = vst.msk [vmem:[#allocation2 + $0x320] sm:$0xff] %vm18_vm0, %v4714_v0 }
  0x46   :  { %122 = vst.msk [vmem:[#allocation2 + $0x330] sm:$0xff] %vm18_vm0, %v4714_v0 }
  0x47   :  { %123 = vst.msk [vmem:[#allocation2 + $0x338] sm:$0xff] %vm18_vm0, %v4714_v0 }
  0x48   :  { %125 = vst.msk [vmem:[#allocation2 + $0x348] sm:$0xff] %vm18_vm0, %v4714_v0 }
  0x49   :  { %126 = vst.msk [vmem:[#allocation2 + $0x350] sm:$0xff] %vm18_vm0, %v4714_v0 }
  0x4a   :  { %195 = vst.msk [vmem:[#allocation2 + $0x31] sm:$0xff] %vm18_vm0, %v130_v2  ;;  %v166_v2 = vld [vmem:[%s8578_s0 + $0x130] sm:$0xff] }
  0x4b   :  { %193 = vst.msk [vmem:[#allocation2 + $0x19] sm:$0xff] %vm18_vm0, %v128_v3 }
  0x4c   :  { %22 = vst.msk [vmem:[#allocation2 + $0x10] sm:$0x3] %vm21_vm1, %v4714_v0 }
  0x4d   :  { %25 = vst.msk [vmem:[#allocation2 + $0x28] sm:$0x3] %vm21_vm1, %v4714_v0 }
  0x4e   :  { %28 = vst.msk [vmem:[#allocation2 + $0x40] sm:$0x3] %vm21_vm1, %v4714_v0 }
  0x4f   :  { %31 = vst.msk [vmem:[#allocation2 + $0x58] sm:$0x3] %vm21_vm1, %v4714_v0 }
  0x50   :  { %34 = vst.msk [vmem:[#allocation2 + $0x70] sm:$0x3] %vm21_vm1, %v4714_v0 }
  0x51   :  { %v325_v4 = vld [vmem:[#allocation2 + $0x31] sm:$0xff]  ;;  %37 = vst.msk [vmem:[#allocation2 + $0x88] sm:$0x3] %vm21_vm1, %v4714_v0 }
  0x52   :  { %906 = vrot.lane.b32.xlu2 %v325_v4, %s4715_s15  ;;  %v323_v5 = vld [vmem:[#allocation2 + $0x19] sm:$0xff]  ;;  %40 = vst.msk [vmem:[#allocation2 + $0xa0] sm:$0x3] %vm21_vm1, %v4714_v0 }
  0x53   :  { %902 = vrot.lane.b32.xlu1 %v323_v5, %s4715_s15  ;;  %v322_v6 = vld [vmem:[#allocation2 + $0x9] sm:$0xff]  ;;  %43 = vst.msk [vmem:[#allocation2 + $0xb8] sm:$0x3] %vm21_vm1, %v4714_v0 }
  0x54   :  { %900 = vrot.lane.b32.xlu0 %v322_v6, %s4715_s15  ;;  %46 = vst.msk [vmem:[#allocation2 + $0xd0] sm:$0x3] %vm21_vm1, %v4714_v0  ;;  %v168_v6 = vld [vmem:[%s8578_s0 + $0x140] sm:$0xff] }
  0x55   :  { %49 = vst.msk [vmem:[#allocation2 + $0xe8] sm:$0x3] %vm21_vm1, %v4714_v0 }
  0x56   :  { %52 = vst.msk [vmem:[#allocation2 + $0x100] sm:$0x3] %vm21_vm1, %v4714_v0 }
  0x57   :  { %55 = vst.msk [vmem:[#allocation2 + $0x118] sm:$0x3] %vm21_vm1, %v4714_v0 }
  0x58   :  { %58 = vst.msk [vmem:[#allocation2 + $0x130] sm:$0x3] %vm21_vm1, %v4714_v0 }
  0x59   :  { %61 = vst.msk [vmem:[#allocation2 + $0x148] sm:$0x3] %vm21_vm1, %v4714_v0 }
  0x5a   :  { %64 = vst.msk [vmem:[#allocation2 + $0x160] sm:$0x3] %vm21_vm1, %v4714_v0 }
  0x5b   :  { %67 = vst.msk [vmem:[#allocation2 + $0x178] sm:$0x3] %vm21_vm1, %v4714_v0 }
  0x5c   :  { %70 = vst.msk [vmem:[#allocation2 + $0x190] sm:$0x3] %vm21_vm1, %v4714_v0 }
  0x5d   :  { %73 = vst.msk [vmem:[#allocation2 + $0x1a8] sm:$0x3] %vm21_vm1, %v4714_v0 }
  0x5e   :  { %76 = vst.msk [vmem:[#allocation2 + $0x1c0] sm:$0x3] %vm21_vm1, %v4714_v0 }
  0x5f   :  { %79 = vst.msk [vmem:[#allocation2 + $0x1d8] sm:$0x3] %vm21_vm1, %v4714_v0 }
  0x60   :  { %82 = vst.msk [vmem:[#allocation2 + $0x1f0] sm:$0x3] %vm21_vm1, %v4714_v0 }
  0x61   :  { %85 = vst.msk [vmem:[#allocation2 + $0x208] sm:$0x3] %vm21_vm1, %v4714_v0 }
  0x62   :  { %88 = vst.msk [vmem:[#allocation2 + $0x220] sm:$0x3] %vm21_vm1, %v4714_v0 }
  0x63   :  { %91 = vst.msk [vmem:[#allocation2 + $0x238] sm:$0x3] %vm21_vm1, %v4714_v0 }
  0x64   :  { %94 = vst.msk [vmem:[#allocation2 + $0x250] sm:$0x3] %vm21_vm1, %v4714_v0 }
  0x65   :  { %97 = vst.msk [vmem:[#allocation2 + $0x268] sm:$0x3] %vm21_vm1, %v4714_v0 }
  0x66   :  { %100 = vst.msk [vmem:[#allocation2 + $0x280] sm:$0x3] %vm21_vm1, %v4714_v0 }
  0x67   :  { %103 = vst.msk [vmem:[#allocation2 + $0x298] sm:$0x3] %vm21_vm1, %v4714_v0 }
  0x68   :  { %106 = vst.msk [vmem:[#allocation2 + $0x2b0] sm:$0x3] %vm21_vm1, %v4714_v0 }
  0x69   :  { %109 = vst.msk [vmem:[#allocation2 + $0x2c8] sm:$0x3] %vm21_vm1, %v4714_v0 }
  0x6a   :  { %112 = vst.msk [vmem:[#allocation2 + $0x2e0] sm:$0x3] %vm21_vm1, %v4714_v0 }
  0x6b   :  { %115 = vst.msk [vmem:[#allocation2 + $0x2f8] sm:$0x3] %vm21_vm1, %v4714_v0 }
  0x6c   :  { %118 = vst.msk [vmem:[#allocation2 + $0x310] sm:$0x3] %vm21_vm1, %v4714_v0 }
  0x6d   :  { %121 = vst.msk [vmem:[#allocation2 + $0x328] sm:$0x3] %vm21_vm1, %v4714_v0 }
  0x6e   :  { %124 = vst.msk [vmem:[#allocation2 + $0x340] sm:$0x3] %vm21_vm1, %v4714_v0 }
  0x6f   :  { %127 = vst.msk [vmem:[#allocation2 + $0x358] sm:$0x3] %vm21_vm1, %v4714_v0  ;;  %v165_v0 = vld [vmem:[%s8578_s0 + $0x128] sm:$0xff] }
  0x70   :  { %196 = vst.msk [vmem:[#allocation2 + $0x39] sm:$0xff] %vm18_vm0, %v131_v7  ;;  %v170_v7 = vld [vmem:[%s8578_s0 + $0x150] sm:$0xff] }
  0x71   :  { %194 = vst.msk [vmem:[#allocation2 + $0x21] sm:$0xff] %vm18_vm0, %v129_v8  ;;  %v169_v8 = vld [vmem:[%s8578_s0 + $0x148] sm:$0xff] }
  0x72   :  { %197 = vst.msk [vmem:[#allocation2 + $0x49] sm:$0xff] %vm18_vm0, %v132_v9  ;;  %v353_v9 = vld [vmem:[#allocation2 + $0x1b1] sm:$0xff] }
  0x73   :  { %199 = vst.msk [vmem:[#allocation2 + $0x61] sm:$0xff] %vm18_vm0, %v134_v10 }
  0x74   :  { %198 = vst.msk [vmem:[#allocation2 + $0x51] sm:$0xff] %vm18_vm0, %v133_v11  ;;  %v354_v11 = vld [vmem:[#allocation2 + $0x1b9] sm:$0xff] }
  0x75   :  { %200 = vst.msk [vmem:[#allocation2 + $0x69] sm:$0xff] %vm18_vm0, %v135_v12  ;;  %v171_v12 = vld [vmem:[%s8578_s0 + $0x158] sm:$0xff] }
  0x76   :  { %202 = vst.msk [vmem:[#allocation2 + $0x81] sm:$0xff] %vm18_vm0, %v137_v13  ;;  %v173_v13 = vld [vmem:[%s8578_s0 + $0x168] sm:$0xff] }
  0x77   :  { %v326_v17 = vld [vmem:[#allocation2 + $0x39] sm:$0xff]  ;;  %201 = vst.msk [vmem:[#allocation2 + $0x79] sm:$0xff] %vm18_vm0, %v136_v14 }
  0x78   :  { %908 = vrot.lane.b32.xlu2 %v326_v17, %s4715_s15  ;;  %v324_v19 = vld [vmem:[#allocation2 + $0x21] sm:$0xff]  ;;  %203 = vst.msk [vmem:[#allocation2 + $0x91] sm:$0xff] %vm18_vm0, %v138_v15 }
  0x79   :  { %904 = vrot.lane.b32.xlu1 %v324_v19, %s4715_s15  ;;  %v327_v21 = vld [vmem:[#allocation2 + $0x49] sm:$0xff]  ;;  %205 = vst.msk [vmem:[#allocation2 + $0xa9] sm:$0xff] %vm18_vm0, %v140_v16  ;;  %v172_v14 = vld [vmem:[%s8578_s0 + $0x160] sm:$0xff] }
  0x7a   :  { %910 = vrot.lane.b32.xlu0 %v327_v21, %s4715_s15  ;;  %204 = vst.msk [vmem:[#allocation2 + $0x99] sm:$0xff] %vm18_vm0, %v139_v18  ;;  %v329_v26 = vld [vmem:[#allocation2 + $0x61] sm:$0xff]  ;;  %v174_v18 = vld [vmem:[%s8578_s0 + $0x170] sm:$0xff]  ;;  %v175_v21 = vld [vmem:[%s8578_s0 + $0x178] sm:$0xff] }
  0x7b   :  { %206 = vst.msk [vmem:[#allocation2 + $0xb1] sm:$0xff] %vm18_vm0, %v141_v20  ;;  %v328_v28 = vld [vmem:[#allocation2 + $0x51] sm:$0xff]  ;;  %v176_v20 = vld [vmem:[%s8578_s0 + $0x180] sm:$0xff] }
  0x7c   :  { %208 = vst.msk [vmem:[#allocation2 + $0xc9] sm:$0xff] %vm18_vm0, %v143_v22  ;;  %v330_v29 = vld [vmem:[#allocation2 + $0x69] sm:$0xff] }
  0x7d   :  { %207 = vst.msk [vmem:[#allocation2 + $0xc1] sm:$0xff] %vm18_vm0, %v142_v23  ;;  %v332_v33 = vld [vmem:[#allocation2 + $0x81] sm:$0xff] }
  0x7e   :  { %209 = vst.msk [vmem:[#allocation2 + $0xd9] sm:$0xff] %vm18_vm0, %v144_v24  ;;  %v331_v34 = vld [vmem:[#allocation2 + $0x79] sm:$0xff] }
  0x7f   :  { %211 = vst.msk [vmem:[#allocation2 + $0xf1] sm:$0xff] %vm18_vm0, %v146_v25  ;;  %v333_v35 = vld [vmem:[#allocation2 + $0x91] sm:$0xff]  ;;  %v177_v25 = vld [vmem:[%s8578_s0 + $0x188] sm:$0xff] }
  0x80   :  { %914 = vrot.lane.b32.xlu2 %v329_v26, %s4715_s15  ;;  %210 = vst.msk [vmem:[#allocation2 + $0xe1] sm:$0xff] %vm18_vm0, %v145_v27  ;;  %v335_v39 = vld [vmem:[#allocation2 + $0xa9] sm:$0xff]  ;;  %v179_v26 = vld [vmem:[%s8578_s0 + $0x198] sm:$0xff] }
  0x81   :  { %912 = vrot.lane.b32.xlu1 %v328_v28, %s4715_s15  ;;  %212 = vst.msk [vmem:[#allocation2 + $0xf9] sm:$0xff] %vm18_vm0, %v147_v30  ;;  %v334_v40 = vld [vmem:[#allocation2 + $0x99] sm:$0xff]  ;;  %v178_v27 = vld [vmem:[%s8578_s0 + $0x190] sm:$0xff] }
  0x82   :  { %916 = vrot.lane.b32.xlu0 %v330_v29, %s4715_s15  ;;  %214 = vst.msk [vmem:[#allocation2 + $0x111] sm:$0xff] %vm18_vm0, %v149_v31  ;;  %v336_v41 = vld [vmem:[#allocation2 + $0xb1] sm:$0xff] }
  0x83   :  { %213 = vst.msk [vmem:[#allocation2 + $0x109] sm:$0xff] %vm18_vm0, %v148_v32  ;;  %v338_v45 = vld [vmem:[#allocation2 + $0xc9] sm:$0xff]  ;;  %v180_v32 = vld [vmem:[%s8578_s0 + $0x1a0] sm:$0xff] }
  0x84   :  { %215 = vst.msk [vmem:[#allocation2 + $0x121] sm:$0xff] %vm18_vm0, %v150_v36  ;;  %v337_v46 = vld [vmem:[#allocation2 + $0xc1] sm:$0xff] }
  0x85   :  { %217 = vst.msk [vmem:[#allocation2 + $0x139] sm:$0xff] %vm18_vm0, %v152_v37  ;;  %v339_v47 = vld [vmem:[#allocation2 + $0xd9] sm:$0xff] }
  0x86   :  { %216 = vst.msk [vmem:[#allocation2 + $0x129] sm:$0xff] %vm18_vm0, %v151_v38  ;;  %v341_v50 = vld [vmem:[#allocation2 + $0xf1] sm:$0xff] }
  0x87   :  { %218 = vst.msk [vmem:[#allocation2 + $0x141] sm:$0xff] %vm18_vm0, %v153_v42  ;;  %v340_v51 = vld [vmem:[#allocation2 + $0xe1] sm:$0xff] }
  0x88   :  { %920 = vrot.lane.b32.xlu2 %v332_v33, %s4715_s15  ;;  %220 = vst.msk [vmem:[#allocation2 + $0x159] sm:$0xff] %vm18_vm0, %v155_v43  ;;  %v342_v52 = vld [vmem:[#allocation2 + $0xf9] sm:$0xff]  ;;  %v5214_v33 = vpop.permute.xlu0 %898 }
  0x89   :  { %918 = vrot.lane.b32.xlu1 %v331_v34, %s4715_s15  ;;  %219 = vst.msk [vmem:[#allocation2 + $0x151] sm:$0xff] %vm18_vm0, %v154_v44  ;;  %v344_v55 = vld [vmem:[#allocation2 + $0x111] sm:$0xff]  ;;  %v184_v42 = vld [vmem:[%s8578_s0 + $0x1c0] sm:$0xff] }
  0x8a   :  { %922 = vrot.lane.b32.xlu0 %v333_v35, %s4715_s15  ;;  %221 = vst.msk [vmem:[#allocation2 + $0x169] sm:$0xff] %vm18_vm0, %v156_v48  ;;  %v343_v56 = vld [vmem:[#allocation2 + $0x109] sm:$0xff] }
  0x8b   :  { %222 = vst.msk [vmem:[#allocation2 + $0x171] sm:$0xff] %vm18_vm0, %v157_v49  ;;  %v345_v57 = vld [vmem:[#allocation2 + $0x121] sm:$0xff]  ;;  %v182_v34 = vld [vmem:[%s8578_s0 + $0x1b0] sm:$0xff] }
  0x8c   :  { %226 = vst.msk [vmem:[#allocation2 + $0x1d1] sm:$0xff] %vm18_vm0, %v161_v53  ;;  %v347_v61 = vld [vmem:[#allocation2 + $0x139] sm:$0xff]  ;;  %v181_v35 = vld [vmem:[%s8578_s0 + $0x1a8] sm:$0xff]  ;;  %v186_v49 = vld [vmem:[%s8578_s0 + $0x1d0] sm:$0xff] }
  0x8d   :  { %225 = vst.msk [vmem:[#allocation2 + $0x1c9] sm:$0xff] %vm18_vm0, %v160_v54  ;;  %v346_v62 = vld [vmem:[#allocation2 + $0x129] sm:$0xff] }
  0x8e   :  { %227 = vst.msk [vmem:[#allocation2 + $0x1e1] sm:$0xff] %vm18_vm0, %v162_v58  ;;  %v348_v63 = vld [vmem:[#allocation2 + $0x141] sm:$0xff] }
  0x8f   :  { %229 = vst.msk [vmem:[#allocation2 + $0x1f9] sm:$0xff] %vm18_vm0, %v164_v59  ;;  %v350_v3 = vld [vmem:[#allocation2 + $0x159] sm:$0xff]  ;;  %v189_v58 = vld [vmem:[%s8578_s0 + $0x1e8] sm:$0xff] }
  0x90   :  { %926 = vrot.lane.b32.xlu2 %v335_v39, %s4715_s15  ;;  %228 = vst.msk [vmem:[#allocation2 + $0x1e9] sm:$0xff] %vm18_vm0, %v163_v60  ;;  %v349_v4 = vld [vmem:[#allocation2 + $0x151] sm:$0xff] }
  0x91   :  { %924 = vrot.lane.b32.xlu1 %v334_v40, %s4715_s15  ;;  %230 = vst.msk [vmem:[#allocation2 + $0x201] sm:$0xff] %vm18_vm0, %v165_v0  ;;  %v351_v5 = vld [vmem:[#allocation2 + $0x169] sm:$0xff]  ;;  %v183_v40 = vld [vmem:[%s8578_s0 + $0x1b8] sm:$0xff] }
  0x92   :  { %928 = vrot.lane.b32.xlu0 %v336_v41, %s4715_s15  ;;  %232 = vst.msk [vmem:[#allocation2 + $0x219] sm:$0xff] %vm18_vm0, %v167_v1  ;;  %v352_v10 = vld [vmem:[#allocation2 + $0x171] sm:$0xff]  ;;  %v185_v41 = vld [vmem:[%s8578_s0 + $0x1c8] sm:$0xff] }
  0x93   :  { %231 = vst.msk [vmem:[#allocation2 + $0x211] sm:$0xff] %vm18_vm0, %v166_v2  ;;  %v356_v15 = vld [vmem:[#allocation2 + $0x1d1] sm:$0xff] }
  0x94   :  { %233 = vst.msk [vmem:[#allocation2 + $0x229] sm:$0xff] %vm18_vm0, %v168_v6  ;;  %v355_v16 = vld [vmem:[#allocation2 + $0x1c9] sm:$0xff] }
  0x95   :  { %235 = vst.msk [vmem:[#allocation2 + $0x241] sm:$0xff] %vm18_vm0, %v170_v7  ;;  %v357_v17 = vld [vmem:[#allocation2 + $0x1e1] sm:$0xff] }
  0x96   :  { %234 = vst.msk [vmem:[#allocation2 + $0x231] sm:$0xff] %vm18_vm0, %v169_v8  ;;  %v359_v22 = vld [vmem:[#allocation2 + $0x1f9] sm:$0xff] }
  0x97   :  { %236 = vst.msk [vmem:[#allocation2 + $0x249] sm:$0xff] %vm18_vm0, %v171_v12  ;;  %v358_v23 = vld [vmem:[#allocation2 + $0x1e9] sm:$0xff] }
  0x98   :  { %932 = vrot.lane.b32.xlu2 %v338_v45, %s4715_s15  ;;  %238 = vst.msk [vmem:[#allocation2 + $0x261] sm:$0xff] %vm18_vm0, %v173_v13  ;;  %v360_v24 = vld [vmem:[#allocation2 + $0x201] sm:$0xff] }
  0x99   :  { %930 = vrot.lane.b32.xlu1 %v337_v46, %s4715_s15  ;;  %237 = vst.msk [vmem:[#allocation2 + $0x259] sm:$0xff] %vm18_vm0, %v172_v14  ;;  %v362_v29 = vld [vmem:[#allocation2 + $0x219] sm:$0xff] }
  0x9a   :  { %934 = vrot.lane.b32.xlu0 %v339_v47, %s4715_s15  ;;  %239 = vst.msk [vmem:[#allocation2 + $0x271] sm:$0xff] %vm18_vm0, %v174_v18  ;;  %v361_v30 = vld [vmem:[#allocation2 + $0x211] sm:$0xff] }
  0x9b   :  { %241 = vst.msk [vmem:[#allocation2 + $0x289] sm:$0xff] %vm18_vm0, %v176_v20  ;;  %v363_v31 = vld [vmem:[#allocation2 + $0x229] sm:$0xff] }
  0x9c   :  { %240 = vst.msk [vmem:[#allocation2 + $0x279] sm:$0xff] %vm18_vm0, %v175_v21  ;;  %v365_v37 = vld [vmem:[#allocation2 + $0x241] sm:$0xff] }
  0x9d   :  { %242 = vst.msk [vmem:[#allocation2 + $0x291] sm:$0xff] %vm18_vm0, %v177_v25  ;;  %v364_v38 = vld [vmem:[#allocation2 + $0x231] sm:$0xff]  ;;  %v387_v25 = vld [vmem:[#allocation2 + $0x1a] sm:$0xff] }
  0x9e   :  { %244 = vst.msk [vmem:[#allocation2 + $0x2a9] sm:$0xff] %vm18_vm0, %v179_v26  ;;  %v366_v39 = vld [vmem:[#allocation2 + $0x249] sm:$0xff] }
  0x9f   :  { %243 = vst.msk [vmem:[#allocation2 + $0x2a1] sm:$0xff] %vm18_vm0, %v178_v27  ;;  %v368_v46 = vld [vmem:[#allocation2 + $0x261] sm:$0xff] }
  0xa0   :  { %938 = vrot.lane.b32.xlu2 %v341_v50, %s4715_s15  ;;  %245 = vst.msk [vmem:[#allocation2 + $0x2b9] sm:$0xff] %vm18_vm0, %v180_v32  ;;  %v367_v47 = vld [vmem:[#allocation2 + $0x259] sm:$0xff] }
  0xa1   :  { %936 = vrot.lane.b32.xlu1 %v340_v51, %s4715_s15  ;;  %247 = vst.msk [vmem:[#allocation2 + $0x2d1] sm:$0xff] %vm18_vm0, %v182_v34  ;;  %v369_v48 = vld [vmem:[#allocation2 + $0x271] sm:$0xff]  ;;  %v188_v50 = vld [vmem:[%s8578_s0 + $0x1e0] sm:$0xff] }
  0xa2   :  { %940 = vrot.lane.b32.xlu0 %v342_v52, %s4715_s15  ;;  %246 = vst.msk [vmem:[#allocation2 + $0x2c1] sm:$0xff] %vm18_vm0, %v181_v35  ;;  %v187_v51 = vld [vmem:[%s8578_s0 + $0x1d8] sm:$0xff] }
  0xa3   :  { %248 = vst.msk [vmem:[#allocation2 + $0x2d9] sm:$0xff] %vm18_vm0, %v183_v40  ;;  %v390_v32 = vld [vmem:[#allocation2 + $0x3a] sm:$0xff]  ;;  %v393_v40 = vld [vmem:[#allocation2 + $0x62] sm:$0xff] }
  0xa4   :  { %250 = vst.msk [vmem:[#allocation2 + $0x2f1] sm:$0xff] %vm18_vm0, %v185_v41 }
  0xa5   :  { %249 = vst.msk [vmem:[#allocation2 + $0x2e9] sm:$0xff] %vm18_vm0, %v184_v42 }
  0xa6   :  { %251 = vst.msk [vmem:[#allocation2 + $0x301] sm:$0xff] %vm18_vm0, %v186_v49  ;;  %v396_v49 = vld [vmem:[#allocation2 + $0x82] sm:$0xff] }
  0xa7   :  { %253 = vst.msk [vmem:[#allocation2 + $0x319] sm:$0xff] %vm18_vm0, %v188_v50  ;;  %v375_v0 = vld [vmem:[#allocation2 + $0x2b9] sm:$0xff] }
  0xa8   :  { %944 = vrot.lane.b32.xlu2 %v344_v55, %s4715_s15  ;;  %252 = vst.msk [vmem:[#allocation2 + $0x309] sm:$0xff] %vm18_vm0, %v187_v51  ;;  %v371_v55 = vld [vmem:[#allocation2 + $0x289] sm:$0xff] }
  0xa9   :  { %942 = vrot.lane.b32.xlu1 %v343_v56, %s4715_s15  ;;  %v370_v56 = vld [vmem:[#allocation2 + $0x279] sm:$0xff]  ;;  %254 = vst.msk [vmem:[#allocation2 + $0x321] sm:$0xff] %vm18_vm0, %v189_v58  ;;  %v399_v58 = vld [vmem:[#allocation2 + $0xaa] sm:$0xff] }
  0xaa   :  { %946 = vrot.lane.b32.xlu0 %v345_v57, %s4715_s15  ;;  %v372_v57 = vld [vmem:[#allocation2 + $0x291] sm:$0xff]  ;;  %v378_v6 = vld [vmem:[#allocation2 + $0x2d9] sm:$0xff] }
  0xac   :  { %v5180_v19 = vpop.permute.xlu2 %906 }
  0xad   :  { %v381_v12 = vld [vmem:[#allocation2 + $0x301] sm:$0xff] }
  0xb0   :  { %950 = vrot.lane.b32.xlu2 %v347_v61, %s4715_s15  ;;  %v384_v18 = vld [vmem:[#allocation2 + $0x321] sm:$0xff] }
  0xb1   :  { %948 = vrot.lane.b32.xlu1 %v346_v62, %s4715_s15  ;;  %v374_v62 = vld [vmem:[#allocation2 + $0x2a9] sm:$0xff] }
  0xb2   :  { %952 = vrot.lane.b32.xlu0 %v348_v63, %s4715_s15  ;;  %v373_v63 = vld [vmem:[#allocation2 + $0x2a1] sm:$0xff] }
  0xb8   :  { %956 = vrot.lane.b32.xlu2 %v350_v3, %s4715_s15 }
  0xb9   :  { %954 = vrot.lane.b32.xlu1 %v349_v4, %s4715_s15  ;;  %v377_v4 = vld [vmem:[#allocation2 + $0x2d1] sm:$0xff] }
  0xba   :  { %958 = vrot.lane.b32.xlu0 %v351_v5, %s4715_s15  ;;  %v376_v5 = vld [vmem:[#allocation2 + $0x2c1] sm:$0xff] }
  0xc0   :  { %962 = vrot.lane.b32.xlu2 %v353_v9, %s4715_s15 }
  0xc1   :  { %960 = vrot.lane.b32.xlu1 %v352_v10, %s4715_s15  ;;  %v380_v10 = vld [vmem:[#allocation2 + $0x2f1] sm:$0xff] }
  0xc2   :  { %964 = vrot.lane.b32.xlu0 %v354_v11, %s4715_s15  ;;  %v379_v11 = vld [vmem:[#allocation2 + $0x2e9] sm:$0xff] }
  0xc5   :  { %v5241_v43 = vpop.permute.xlu1 %902 }
  0xc6   :  { %v5247_v45 = vpop.permute.xlu0 %900 }
  0xc8   :  { %968 = vrot.lane.b32.xlu2 %v356_v15, %s4715_s15 }
  0xc9   :  { %966 = vrot.lane.b32.xlu1 %v355_v16, %s4715_s15  ;;  %v383_v16 = vld [vmem:[#allocation2 + $0x319] sm:$0xff] }
  0xca   :  { %970 = vrot.lane.b32.xlu0 %v357_v17, %s4715_s15  ;;  %v382_v17 = vld [vmem:[#allocation2 + $0x309] sm:$0xff] }
  0xd0   :  { %974 = vrot.lane.b32.xlu2 %v359_v22, %s4715_s15 }
  0xd1   :  { %972 = vrot.lane.b32.xlu1 %v358_v23, %s4715_s15  ;;  %v386_v23 = vld [vmem:[#allocation2 + $0xa] sm:$0xff] }
  0xd2   :  { %v5206_v28 = vpop.permute.xlu2 %908  ;;  %976 = vrot.lane.b32.xlu0 %v360_v24, %s4715_s15  ;;  %v385_v24 = vld [vmem:[#allocation2 + $0x2] sm:$0xff] }
  0xd3   :  { %8607 = vst [vmem:[#allocation7_spill] sm:$0xff] %v5206_v28 }
  0xd8   :  { %980 = vrot.lane.b32.xlu2 %v362_v29, %s4715_s15 }
  0xd9   :  { %978 = vrot.lane.b32.xlu1 %v361_v30, %s4715_s15  ;;  %v389_v30 = vld [vmem:[#allocation2 + $0x32] sm:$0xff] }
  0xda   :  { %v5225_v36 = vpop.permute.xlu2 %914  ;;  %982 = vrot.lane.b32.xlu0 %v363_v31, %s4715_s15  ;;  %v388_v31 = vld [vmem:[#allocation2 + $0x22] sm:$0xff] }
  0xdb   :  { %8608 = vst [vmem:[#allocation8_spill] sm:$0xff] %v5225_v36  ;;  %v5960_v36 = vld [vmem:[#allocation2 + $0x82] sm:$0xff] }
  0xe0   :  { %986 = vrot.lane.b32.xlu2 %v365_v37, %s4715_s15 }
  0xe1   :  { %984 = vrot.lane.b32.xlu1 %v364_v38, %s4715_s15  ;;  %v392_v38 = vld [vmem:[#allocation2 + $0x52] sm:$0xff] }
  0xe2   :  { %v5244_v44 = vpop.permute.xlu2 %920  ;;  %988 = vrot.lane.b32.xlu0 %v366_v39, %s4715_s15  ;;  %v391_v39 = vld [vmem:[#allocation2 + $0x4a] sm:$0xff] }
  0xe3   :  { %8609 = vst [vmem:[#allocation9_spill] sm:$0xff] %v5244_v44  ;;  %v311_v44 = vld [vmem:[#allocation2 + $0x2b8] sm:$0xff] }
  0xe8   :  { %992 = vrot.lane.b32.xlu2 %v368_v46, %s4715_s15 }
  0xe9   :  { %990 = vrot.lane.b32.xlu1 %v367_v47, %s4715_s15  ;;  %v395_v47 = vld [vmem:[#allocation2 + $0x7a] sm:$0xff] }
  0xea   :  { %v5263_v52 = vpop.permute.xlu2 %926  ;;  %994 = vrot.lane.b32.xlu0 %v369_v48, %s4715_s15  ;;  %v394_v48 = vld [vmem:[#allocation2 + $0x6a] sm:$0xff] }
  0xeb   :  { %8610 = vst [vmem:[#allocation10_spill] sm:$0xff] %v5263_v52  ;;  %v5267_v53 = vpop.permute.xlu1 %904 }
  0xec   :  { %v5269_v54 = vpop.permute.xlu0 %910 }
  0xed   :  { %8611 = vst [vmem:[#allocation11_spill] sm:$0xff] %v5269_v54  ;;  %v6113_v54 = vld [vmem:[#allocation2 + $0x2a2] sm:$0xff] }
  0xf0   :  { %998 = vrot.lane.b32.xlu2 %v371_v55, %s4715_s15 }
  0xf1   :  { %996 = vrot.lane.b32.xlu1 %v370_v56, %s4715_s15  ;;  %v398_v56 = vld [vmem:[#allocation2 + $0x9a] sm:$0xff] }
  0xf2   :  { %v5277_v59 = vpop.permute.xlu2 %932  ;;  %1000 = vrot.lane.b32.xlu0 %v372_v57, %s4715_s15  ;;  %v397_v57 = vld [vmem:[#allocation2 + $0x92] sm:$0xff] }
  0xf3   :  { %v5280_v60 = vpop.permute.xlu1 %912 }
  0xf4   :  { %8612 = vst [vmem:[#allocation12_spill] sm:$0xff] %v5280_v60  ;;  %v5282_v61 = vpop.permute.xlu0 %916  ;;  %v604_v60 = vld [vmem:[#allocation2 + $0x15a] sm:$0xff] }
  0xf5   :  { %8613 = vst [vmem:[#allocation13_spill] sm:$0xff] %v5282_v61 }
  0xf8   :  { %1004 = vrot.lane.b32.xlu2 %v374_v62, %s4715_s15 }
  0xf9   :  { %1002 = vrot.lane.b32.xlu1 %v373_v63, %s4715_s15 }
  0xfa   :  { %v5286_v1 = vpop.permute.xlu2 %938  ;;  %1006 = vrot.lane.b32.xlu0 %v375_v0, %s4715_s15 }
  0xfb   :  { %8614 = vst [vmem:[#allocation14_spill] sm:$0xff] %v5286_v1  ;;  %v5289_v2 = vpop.permute.xlu1 %918  ;;  %v5928_v1 = vld [vmem:[#allocation2 + $0x52] sm:$0xff] }
  0xfc   :  { %8615 = vst [vmem:[#allocation15_spill] sm:$0xff] %v5289_v2  ;;  %v5291_v3 = vpop.permute.xlu0 %922  ;;  %v519_v2 = vld [vmem:[#allocation2 + $0x61] sm:$0xff] }
  0xfd   :  { %8616 = vst [vmem:[#allocation16_spill] sm:$0xff] %v5291_v3  ;;  %v281_v3 = vld [vmem:[#allocation2 + $0x120] sm:$0xff] }
 0x100   :  { %1010 = vrot.lane.b32.xlu2 %v377_v4, %s4715_s15  ;;  %v401_v4 = vld [vmem:[#allocation2 + $0xc2] sm:$0xff] }
 0x101   :  { %1008 = vrot.lane.b32.xlu1 %v376_v5, %s4715_s15  ;;  %v400_v5 = vld [vmem:[#allocation2 + $0xb2] sm:$0xff] }
 0x102   :  { %v5295_v7 = vpop.permute.xlu2 %944  ;;  %1012 = vrot.lane.b32.xlu0 %v378_v6, %s4715_s15  ;;  %v402_v6 = vld [vmem:[#allocation2 + $0xca] sm:$0xff] }
 0x103   :  { %8617 = vst [vmem:[#allocation17_spill] sm:$0xff] %v5295_v7  ;;  %v5298_v8 = vpop.permute.xlu1 %924  ;;  %v315_v7 = vld [vmem:[#allocation2 + $0x2e8] sm:$0xff] }
 0x104   :  { %8618 = vst [vmem:[#allocation18_spill] sm:$0xff] %v5298_v8  ;;  %v5300_v9 = vpop.permute.xlu0 %928  ;;  %v267_v8 = vld [vmem:[#allocation2 + $0x78] sm:$0xff] }
 0x105   :  { %8619 = vst [vmem:[#allocation19_spill] sm:$0xff] %v5300_v9 }
 0x108   :  { %1016 = vrot.lane.b32.xlu2 %v380_v10, %s4715_s15 }
 0x109   :  { %1014 = vrot.lane.b32.xlu1 %v379_v11, %s4715_s15 }
 0x10a   :  { %v5304_v13 = vpop.permute.xlu2 %950  ;;  %1018 = vrot.lane.b32.xlu0 %v381_v12, %s4715_s15 }
 0x10b   :  { %8620 = vst [vmem:[#allocation20_spill] sm:$0xff] %v5304_v13  ;;  %v5307_v14 = vpop.permute.xlu1 %930 }
 0x10c   :  { %v5309_v15 = vpop.permute.xlu0 %934 }
 0x10d   :  { %8621 = vst [vmem:[#allocation21_spill] sm:$0xff] %v5309_v15 }
 0x110   :  { %1022 = vrot.lane.b32.xlu2 %v383_v16, %s4715_s15  ;;  %v404_v16 = vld [vmem:[#allocation2 + $0xe2] sm:$0xff] }
 0x111   :  { %1020 = vrot.lane.b32.xlu1 %v382_v17, %s4715_s15  ;;  %v403_v17 = vld [vmem:[#allocation2 + $0xda] sm:$0xff] }
 0x112   :  { %v5313_v20 = vpop.permute.xlu2 %956  ;;  %1024 = vrot.lane.b32.xlu0 %v384_v18, %s4715_s15  ;;  %v405_v18 = vld [vmem:[#allocation2 + $0xf2] sm:$0xff]  ;;  %s4717_s15 = smov 12  }
 0x113   :  { %8622 = vst [vmem:[#allocation22_spill] sm:$0xff] %v5313_v20  ;;  %v5316_v21 = vpop.permute.xlu1 %936 }
 0x114   :  { %8623 = vst [vmem:[#allocation23_spill] sm:$0xff] %v5316_v21  ;;  %v5318_v22 = vpop.permute.xlu0 %940  ;;  %v603_v21 = vld [vmem:[#allocation2 + $0x152] sm:$0xff] }
 0x115   :  { %8624 = vst [vmem:[#allocation24_spill] sm:$0xff] %v5318_v22  ;;  %v559_v22 = vld [vmem:[#allocation2 + $0x271] sm:$0xff] }
 0x118   :  { %1156 = vrot.lane.b32.xlu2 %v386_v23, %s4716_s10 }
 0x119   :  { %1154 = vrot.lane.b32.xlu1 %v385_v24, %s4716_s10 }
 0x11a   :  { %v5322_v26 = vpop.permute.xlu2 %962  ;;  %1158 = vrot.lane.b32.xlu0 %v387_v25, %s4716_s10 }
 0x11b   :  { %8625 = vst [vmem:[#allocation25_spill] sm:$0xff] %v5322_v26  ;;  %v5325_v27 = vpop.permute.xlu1 %942  ;;  %v601_v26 = vld [vmem:[#allocation2 + $0x13a] sm:$0xff] }
 0x11c   :  { %8626 = vst [vmem:[#allocation26_spill] sm:$0xff] %v5325_v27  ;;  %v5327_v29 = vpop.permute.xlu0 %946 }
 0x11d   :  { %8627 = vst [vmem:[#allocation27_spill] sm:$0xff] %v5327_v29  ;;  %v314_v29 = vld [vmem:[#allocation2 + $0x2d8] sm:$0xff] }
 0x120   :  { %1162 = vrot.lane.b32.xlu2 %v389_v30, %s4716_s10  ;;  %v407_v30 = vld [vmem:[#allocation2 + $0x10a] sm:$0xff] }
 0x121   :  { %1160 = vrot.lane.b32.xlu1 %v388_v31, %s4716_s10  ;;  %v406_v31 = vld [vmem:[#allocation2 + $0xfa] sm:$0xff] }
 0x122   :  { %v5331_v34 = vpop.permute.xlu2 %968  ;;  %1164 = vrot.lane.b32.xlu0 %v390_v32, %s4716_s10  ;;  %v408_v32 = vld [vmem:[#allocation2 + $0x112] sm:$0xff] }
 0x123   :  { %8628 = vst [vmem:[#allocation28_spill] sm:$0xff] %v5331_v34  ;;  %v5334_v35 = vpop.permute.xlu1 %948  ;;  %v318_v34 = vld [vmem:[#allocation2 + $0x308] sm:$0xff] }
 0x124   :  { %8629 = vst [vmem:[#allocation29_spill] sm:$0xff] %v5334_v35  ;;  %v5336_v37 = vpop.permute.xlu0 %952 }
 0x125   :  { %8630 = vst [vmem:[#allocation30_spill] sm:$0xff] %v5336_v37  ;;  %v259_v37 = vld [vmem:[#allocation2 + $0x18] sm:$0xff] }
 0x128   :  { %1168 = vrot.lane.b32.xlu2 %v392_v38, %s4716_s10 }
 0x129   :  { %1166 = vrot.lane.b32.xlu1 %v391_v39, %s4716_s10 }
 0x12a   :  { %v5340_v41 = vpop.permute.xlu2 %974  ;;  %1170 = vrot.lane.b32.xlu0 %v393_v40, %s4716_s10 }
 0x12b   :  { %8631 = vst [vmem:[#allocation31_spill] sm:$0xff] %v5340_v41  ;;  %v5343_v42 = vpop.permute.xlu1 %954 }
 0x12c   :  { %8632 = vst [vmem:[#allocation32_spill] sm:$0xff] %v5343_v42  ;;  %v5345_v46 = vpop.permute.xlu0 %958 }
 0x12d   :  { %8633 = vst [vmem:[#allocation33_spill] sm:$0xff] %v5345_v46 }
 0x130   :  { %1174 = vrot.lane.b32.xlu2 %v395_v47, %s4716_s10  ;;  %v410_v47 = vld [vmem:[#allocation2 + $0x12a] sm:$0xff] }
 0x131   :  { %1172 = vrot.lane.b32.xlu1 %v394_v48, %s4716_s10  ;;  %v409_v48 = vld [vmem:[#allocation2 + $0x122] sm:$0xff] }
 0x132   :  { %v5349_v50 = vpop.permute.xlu2 %980  ;;  %1176 = vrot.lane.b32.xlu0 %v396_v49, %s4716_s10  ;;  %v411_v49 = vld [vmem:[#allocation2 + $0x13a] sm:$0xff] }
 0x133   :  { %8634 = vst [vmem:[#allocation34_spill] sm:$0xff] %v5349_v50  ;;  %v5352_v51 = vpop.permute.xlu1 %960  ;;  %v441_v50 = vld [vmem:[#allocation2 + $0x2d2] sm:$0xff] }
 0x134   :  { %8635 = vst [vmem:[#allocation35_spill] sm:$0xff] %v5352_v51  ;;  %v5354_v55 = vpop.permute.xlu0 %964  ;;  %v430_v51 = vld [vmem:[#allocation2 + $0x24a] sm:$0xff] }
 0x135   :  { %8636 = vst [vmem:[#allocation36_spill] sm:$0xff] %v5354_v55  ;;  %v5912_v55 = vld [vmem:[#allocation2 + $0x32] sm:$0xff] }
 0x138   :  { %1180 = vrot.lane.b32.xlu2 %v398_v56, %s4716_s10 }
 0x139   :  { %1178 = vrot.lane.b32.xlu1 %v397_v57, %s4716_s10 }
 0x13a   :  { %v5358_v62 = vpop.permute.xlu2 %986  ;;  %1182 = vrot.lane.b32.xlu0 %v399_v58, %s4716_s10 }
 0x13b   :  { %8637 = vst [vmem:[#allocation37_spill] sm:$0xff] %v5358_v62  ;;  %v5361_v63 = vpop.permute.xlu1 %966  ;;  %v427_v62 = vld [vmem:[#allocation2 + $0x22a] sm:$0xff] }
 0x13c   :  { %8638 = vst [vmem:[#allocation38_spill] sm:$0xff] %v5361_v63  ;;  %v5363_v0 = vpop.permute.xlu0 %970  ;;  %v556_v63 = vld [vmem:[#allocation2 + $0x249] sm:$0xff] }
 0x13d   :  { %8639 = vst [vmem:[#allocation39_spill] sm:$0xff] %v5363_v0  ;;  %v306_v0 = vld [vmem:[#allocation2 + $0x278] sm:$0xff] }
 0x140   :  { %1186 = vrot.lane.b32.xlu2 %v401_v4, %s4716_s10  ;;  %v413_v4 = vld [vmem:[#allocation2 + $0x152] sm:$0xff] }
 0x141   :  { %1184 = vrot.lane.b32.xlu1 %v400_v5, %s4716_s10  ;;  %v412_v5 = vld [vmem:[#allocation2 + $0x142] sm:$0xff] }
 0x142   :  { %v5367_v10 = vpop.permute.xlu2 %992  ;;  %1188 = vrot.lane.b32.xlu0 %v402_v6, %s4716_s10  ;;  %v414_v6 = vld [vmem:[#allocation2 + $0x15a] sm:$0xff] }
 0x143   :  { %8640 = vst [vmem:[#allocation40_spill] sm:$0xff] %v5367_v10  ;;  %v5370_v11 = vpop.permute.xlu1 %972  ;;  %v423_v10 = vld [vmem:[#allocation2 + $0x1fa] sm:$0xff] }
 0x144   :  { %8641 = vst [vmem:[#allocation41_spill] sm:$0xff] %v5370_v11  ;;  %v5372_v12 = vpop.permute.xlu0 %976  ;;  %v277_v11 = vld [vmem:[#allocation2 + $0xf0] sm:$0xff] }
 0x145   :  { %8642 = vst [vmem:[#allocation42_spill] sm:$0xff] %v5372_v12  ;;  %v447_v12 = vld [vmem:[#allocation2 + $0x31a] sm:$0xff] }
 0x148   :  { %1192 = vrot.lane.b32.xlu2 %v404_v16, %s4716_s10 }
 0x149   :  { %1190 = vrot.lane.b32.xlu1 %v403_v17, %s4716_s10 }
 0x14a   :  { %v5376_v23 = vpop.permute.xlu2 %998  ;;  %1194 = vrot.lane.b32.xlu0 %v405_v18, %s4716_s10 }
 0x14b   :  { %8643 = vst [vmem:[#allocation43_spill] sm:$0xff] %v5376_v23  ;;  %v5379_v24 = vpop.permute.xlu1 %978  ;;  %v263_v23 = vld [vmem:[#allocation2 + $0x48] sm:$0xff] }
 0x14c   :  { %8644 = vst [vmem:[#allocation44_spill] sm:$0xff] %v5379_v24  ;;  %v5381_v25 = vpop.permute.xlu0 %982  ;;  %v444_v24 = vld [vmem:[#allocation2 + $0x2f2] sm:$0xff] }
 0x14d   :  { %8645 = vst [vmem:[#allocation45_spill] sm:$0xff] %v5381_v25  ;;  %v436_v25 = vld [vmem:[#allocation2 + $0x292] sm:$0xff] }
 0x150   :  { %1198 = vrot.lane.b32.xlu2 %v407_v30, %s4716_s10  ;;  %v416_v30 = vld [vmem:[#allocation2 + $0x172] sm:$0xff] }
 0x151   :  { %1196 = vrot.lane.b32.xlu1 %v406_v31, %s4716_s10  ;;  %v415_v31 = vld [vmem:[#allocation2 + $0x16a] sm:$0xff] }
 0x152   :  { %v5385_v38 = vpop.permute.xlu2 %1004  ;;  %1200 = vrot.lane.b32.xlu0 %v408_v32, %s4716_s10  ;;  %v417_v32 = vld [vmem:[#allocation2 + $0x1b2] sm:$0xff] }
 0x153   :  { %8646 = vst [vmem:[#allocation46_spill] sm:$0xff] %v5385_v38  ;;  %v5388_v39 = vpop.permute.xlu1 %984  ;;  %v439_v38 = vld [vmem:[#allocation2 + $0x2ba] sm:$0xff] }
 0x154   :  { %8647 = vst [vmem:[#allocation47_spill] sm:$0xff] %v5388_v39  ;;  %v5390_v40 = vpop.permute.xlu0 %988  ;;  %v435_v39 = vld [vmem:[#allocation2 + $0x28a] sm:$0xff] }
 0x155   :  { %8648 = vst [vmem:[#allocation48_spill] sm:$0xff] %v5390_v40  ;;  %v424_v40 = vld [vmem:[#allocation2 + $0x202] sm:$0xff] }
 0x158   :  { %1204 = vrot.lane.b32.xlu2 %v410_v47, %s4716_s10 }
 0x159   :  { %1202 = vrot.lane.b32.xlu1 %v409_v48, %s4716_s10 }
 0x15a   :  { %v5394_v56 = vpop.permute.xlu2 %1010  ;;  %1206 = vrot.lane.b32.xlu0 %v411_v49, %s4716_s10 }
 0x15b   :  { %8649 = vst [vmem:[#allocation49_spill] sm:$0xff] %v5394_v56  ;;  %v5397_v57 = vpop.permute.xlu1 %990  ;;  %v426_v56 = vld [vmem:[#allocation2 + $0x21a] sm:$0xff] }
 0x15c   :  { %8650 = vst [vmem:[#allocation50_spill] sm:$0xff] %v5397_v57  ;;  %v5399_v58 = vpop.permute.xlu0 %994 }
 0x15d   :  { %8651 = vst [vmem:[#allocation51_spill] sm:$0xff] %v5399_v58  ;;  %v300_v58 = vld [vmem:[#allocation2 + $0x230] sm:$0xff] }
 0x160   :  { %1210 = vrot.lane.b32.xlu2 %v413_v4, %s4716_s10  ;;  %v419_v4 = vld [vmem:[#allocation2 + $0x1ca] sm:$0xff] }
 0x161   :  { %1208 = vrot.lane.b32.xlu1 %v412_v5, %s4716_s10  ;;  %v418_v5 = vld [vmem:[#allocation2 + $0x1ba] sm:$0xff] }
 0x162   :  { %v5403_v16 = vpop.permute.xlu2 %1016  ;;  %1212 = vrot.lane.b32.xlu0 %v414_v6, %s4716_s10  ;;  %v420_v6 = vld [vmem:[#allocation2 + $0x1d2] sm:$0xff] }
 0x163   :  { %8652 = vst [vmem:[#allocation52_spill] sm:$0xff] %v5403_v16  ;;  %v5406_v17 = vpop.permute.xlu1 %996 }
 0x164   :  { %8653 = vst [vmem:[#allocation53_spill] sm:$0xff] %v5406_v17  ;;  %v5408_v18 = vpop.permute.xlu0 %1000 }
 0x165   :  { %8654 = vst [vmem:[#allocation54_spill] sm:$0xff] %v5408_v18  ;;  %v445_v18 = vld [vmem:[#allocation2 + $0x302] sm:$0xff] }
 0x168   :  { %1216 = vrot.lane.b32.xlu2 %v416_v30, %s4716_s10 }
 0x169   :  { %1214 = vrot.lane.b32.xlu1 %v415_v31, %s4716_s10 }
 0x16a   :  { %v5412_v47 = vpop.permute.xlu2 %1022  ;;  %1218 = vrot.lane.b32.xlu0 %v417_v32, %s4716_s10  ;;  %v422_v32 = vld [vmem:[#allocation2 + $0x1ea] sm:$0xff] }
 0x16b   :  { %8655 = vst [vmem:[#allocation55_spill] sm:$0xff] %v5412_v47  ;;  %v5415_v48 = vpop.permute.xlu1 %1002  ;;  %v421_v47 = vld [vmem:[#allocation2 + $0x1e2] sm:$0xff] }
 0x16c   :  { %8656 = vst [vmem:[#allocation56_spill] sm:$0xff] %v5415_v48  ;;  %v5417_v49 = vpop.permute.xlu0 %1006  ;;  %v442_v48 = vld [vmem:[#allocation2 + $0x2da] sm:$0xff] }
 0x16d   :  { %8657 = vst [vmem:[#allocation57_spill] sm:$0xff] %v5417_v49  ;;  %v438_v49 = vld [vmem:[#allocation2 + $0x2aa] sm:$0xff] }
 0x170   :  { %1222 = vrot.lane.b32.xlu2 %v419_v4, %s4716_s10 }
 0x171   :  { %1220 = vrot.lane.b32.xlu1 %v418_v5, %s4716_s10 }
 0x172   :  { %v5421_v16 = vpop.permute.xlu2 %1156  ;;  %1224 = vrot.lane.b32.xlu0 %v420_v6, %s4716_s10  ;;  %v425_v6 = vld [vmem:[#allocation2 + $0x212] sm:$0xff] }
 0x173   :  { %v5424_v30 = vpop.permute.xlu1 %1008 }
 0x174   :  { %8658 = vst [vmem:[#allocation58_spill] sm:$0xff] %v5424_v30  ;;  %v5426_v31 = vpop.permute.xlu0 %1012  ;;  %v433_v30 = vld [vmem:[#allocation2 + $0x272] sm:$0xff] }
 0x175   :  { %8659 = vst [vmem:[#allocation59_spill] sm:$0xff] %v5426_v31 }
 0x178   :  { %1228 = vrot.lane.b32.xlu2 %v422_v32, %s4716_s10 }
 0x179   :  { %1226 = vrot.lane.b32.xlu1 %v421_v47, %s4716_s10 }
 0x17a   :  { %v5430_v57 = vpop.permute.xlu2 %1162  ;;  %1230 = vrot.lane.b32.xlu0 %v423_v10, %s4716_s10  ;;  %v428_v10 = vld [vmem:[#allocation2 + $0x232] sm:$0xff] }
 0x17b   :  { %v5433_v4 = vpop.permute.xlu1 %1014 }
 0x17c   :  { %8660 = vst [vmem:[#allocation60_spill] sm:$0xff] %v5433_v4  ;;  %v5435_v5 = vpop.permute.xlu0 %1018  ;;  %v429_v4 = vld [vmem:[#allocation2 + $0x242] sm:$0xff] }
 0x17d   :  { %8661 = vst [vmem:[#allocation61_spill] sm:$0xff] %v5435_v5 }
 0x180   :  { %1234 = vrot.lane.b32.xlu2 %v425_v6, %s4716_s10 }
 0x181   :  { %1232 = vrot.lane.b32.xlu1 %v424_v40, %s4716_s10 }
 0x182   :  { %v5439_v31 = vpop.permute.xlu2 %1168  ;;  %1236 = vrot.lane.b32.xlu0 %v426_v56, %s4716_s10  ;;  %v431_v56 = vld [vmem:[#allocation2 + $0x25a] sm:$0xff] }
 0x183   :  { %8662 = vst [vmem:[#allocation62_spill] sm:$0xff] %v5439_v31  ;;  %v5442_v47 = vpop.permute.xlu1 %1020  ;;  %v605_v31 = vld [vmem:[#allocation2 + $0x16a] sm:$0xff] }
 0x184   :  { %8663 = vst [vmem:[#allocation63_spill] sm:$0xff] %v5442_v47  ;;  %v5444_v32 = vpop.permute.xlu0 %1024  ;;  %v432_v47 = vld [vmem:[#allocation2 + $0x262] sm:$0xff] }
 0x185   :  { %8664 = vst [vmem:[#allocation64_spill] sm:$0xff] %v5444_v32 }
 0x188   :  { %1240 = vrot.lane.b32.xlu2 %v428_v10, %s4716_s10 }
 0x189   :  { %1238 = vrot.lane.b32.xlu1 %v427_v62, %s4716_s10 }
 0x18a   :  { %v5448_v5 = vpop.permute.xlu2 %1174  ;;  %1242 = vrot.lane.b32.xlu0 %v429_v4, %s4716_s10  ;;  %v434_v4 = vld [vmem:[#allocation2 + $0x27a] sm:$0xff] }
 0x18b   :  { %8665 = vst [vmem:[#allocation65_spill] sm:$0xff] %v5448_v5  ;;  %v5451_v40 = vpop.permute.xlu1 %1154 }
 0x18c   :  { %v5453_v6 = vpop.permute.xlu0 %1158 }
 0x190   :  { %1246 = vrot.lane.b32.xlu2 %v431_v56, %s4716_s10 }
 0x191   :  { %1244 = vrot.lane.b32.xlu1 %v430_v51, %s4716_s10 }
 0x192   :  { %v5457_v32 = vpop.permute.xlu2 %1180  ;;  %1248 = vrot.lane.b32.xlu0 %v432_v47, %s4716_s10  ;;  %v437_v47 = vld [vmem:[#allocation2 + $0x2a2] sm:$0xff] }
 0x193   :  { %8666 = vst [vmem:[#allocation66_spill] sm:$0xff] %v5457_v32  ;;  %v5460_v62 = vpop.permute.xlu1 %1160  ;;  %v266_v32 = vld [vmem:[#allocation2 + $0x68] sm:$0xff] }
 0x194   :  { %v5462_v10 = vpop.permute.xlu0 %1164 }
 0x195   :  { %8667 = vst [vmem:[#allocation67_spill] sm:$0xff] %v5462_v10  ;;  %v631_v10 = vld [vmem:[#allocation2 + $0x2d2] sm:$0xff] }
 0x198   :  { %1252 = vrot.lane.b32.xlu2 %v434_v4, %s4716_s10 }
 0x199   :  { %1250 = vrot.lane.b32.xlu1 %v433_v30, %s4716_s10 }
 0x19a   :  { %v5466_v46 = vpop.permute.xlu2 %1186  ;;  %1254 = vrot.lane.b32.xlu0 %v435_v39, %s4716_s10  ;;  %v440_v39 = vld [vmem:[#allocation2 + $0x2c2] sm:$0xff] }
 0x19b   :  { %v5469_v51 = vpop.permute.xlu1 %1166 }
 0x19c   :  { %8668 = vst [vmem:[#allocation68_spill] sm:$0xff] %v5469_v51  ;;  %v5471_v56 = vpop.permute.xlu0 %1170  ;;  %v619_v51 = vld [vmem:[#allocation2 + $0x242] sm:$0xff] }
 0x19d   :  { %8669 = vst [vmem:[#allocation69_spill] sm:$0xff] %v5471_v56  ;;  %v587_v56 = vld [vmem:[#allocation2 + $0x92] sm:$0xff] }
 0x1a0   :  { %1258 = vrot.lane.b32.xlu2 %v437_v47, %s4716_s10 }
 0x1a1   :  { %1256 = vrot.lane.b32.xlu1 %v436_v25, %s4716_s10 }
 0x1a2   :  { %v5475_v20 = vpop.permute.xlu2 %1192  ;;  %1260 = vrot.lane.b32.xlu0 %v438_v49, %s4716_s10  ;;  %v443_v49 = vld [vmem:[#allocation2 + $0x2ea] sm:$0xff] }
 0x1a3   :  { %8670 = vst [vmem:[#allocation70_spill] sm:$0xff] %v5475_v20  ;;  %v5478_v30 = vpop.permute.xlu1 %1172  ;;  %v592_v20 = vld [vmem:[#allocation2 + $0xca] sm:$0xff] }
 0x1a4   :  { %8671 = vst [vmem:[#allocation71_spill] sm:$0xff] %v5478_v30  ;;  %v5480_v4 = vpop.permute.xlu0 %1176  ;;  %v564_v30 = vld [vmem:[#allocation2 + $0x2a9] sm:$0xff] }
 0x1a5   :  { %8672 = vst [vmem:[#allocation72_spill] sm:$0xff] %v5480_v4  ;;  %v310_v4 = vld [vmem:[#allocation2 + $0x2a8] sm:$0xff] }
 0x1a8   :  { %1264 = vrot.lane.b32.xlu2 %v440_v39, %s4716_s10 }
 0x1a9   :  { %1262 = vrot.lane.b32.xlu1 %v439_v38, %s4716_s10 }
 0x1aa   :  { %v5484_v42 = vpop.permute.xlu2 %1198  ;;  %1266 = vrot.lane.b32.xlu0 %v441_v50, %s4716_s10  ;;  %v446_v50 = vld [vmem:[#allocation2 + $0x30a] sm:$0xff] }
 0x1ab   :  { %8673 = vst [vmem:[#allocation73_spill] sm:$0xff] %v5484_v42  ;;  %v5487_v25 = vpop.permute.xlu1 %1178 }
 0x1ac   :  { %8674 = vst [vmem:[#allocation74_spill] sm:$0xff] %v5487_v25  ;;  %v5489_v47 = vpop.permute.xlu0 %1182  ;;  %v276_v25 = vld [vmem:[#allocation2 + $0xe0] sm:$0xff] }
 0x1ad   :  { %8675 = vst [vmem:[#allocation75_spill] sm:$0xff] %v5489_v47 }
 0x1b0   :  { %1270 = vrot.lane.b32.xlu2 %v443_v49, %s4716_s10 }
 0x1b1   :  { %1268 = vrot.lane.b32.xlu1 %v442_v48, %s4716_s10 }
 0x1b2   :  { %v5493_v9 = vpop.permute.xlu2 %1204  ;;  %1272 = vrot.lane.b32.xlu0 %v444_v24, %s4716_s10  ;;  %v448_v24 = vld [vmem:[#allocation2 + $0x322] sm:$0xff] }
 0x1b3   :  { %8676 = vst [vmem:[#allocation76_spill] sm:$0xff] %v5493_v9  ;;  %v5496_v38 = vpop.permute.xlu1 %1184  ;;  %v279_v9 = vld [vmem:[#allocation2 + $0x108] sm:$0xff] }
 0x1b4   :  { %8677 = vst [vmem:[#allocation77_spill] sm:$0xff] %v5496_v38  ;;  %v5498_v39 = vpop.permute.xlu0 %1188  ;;  %v260_v38 = vld [vmem:[#allocation2 + $0x20] sm:$0xff] }
 0x1b8   :  { %1276 = vrot.lane.b32.xlu2 %v446_v50, %s4716_s10 }
 0x1b9   :  { %1274 = vrot.lane.b32.xlu1 %v445_v18, %s4716_s10 }
 0x1ba   :  { %v5502_v47 = vpop.permute.xlu2 %1210  ;;  %1278 = vrot.lane.b32.xlu0 %v447_v12, %s4716_s10  ;;  %v262_v12 = vld [vmem:[#allocation2 + $0x38] sm:$0xff] }
 0x1bb   :  { %8678 = vst [vmem:[#allocation78_spill] sm:$0xff] %v5502_v47  ;;  %v5505_v48 = vpop.permute.xlu1 %1190  ;;  %v261_v47 = vld [vmem:[#allocation2 + $0x30] sm:$0xff] }
 0x1bc   :  { %8679 = vst [vmem:[#allocation79_spill] sm:$0xff] %v5505_v48  ;;  %v5507_v49 = vpop.permute.xlu0 %1194 }
 0x1bd   :  { %8680 = vst [vmem:[#allocation80_spill] sm:$0xff] %v5507_v49  ;;  %v570_v49 = vld [vmem:[#allocation2 + $0x2f1] sm:$0xff] }
 0x1c0   :  { %1410 = vrot.lane.b32.xlu2 %v259_v37, %s4717_s15 }
 0x1c1   :  { %1280 = vrot.lane.b32.xlu1 %v448_v24, %s4716_s10 }
 0x1c2   :  { %v5511_v52 = vpop.permute.xlu2 %1216  ;;  %1412 = vrot.lane.b32.xlu0 %v260_v38, %s4717_s15  ;;  %v265_v38 = vld [vmem:[#allocation2 + $0x60] sm:$0xff] }
 0x1c3   :  { %8681 = vst [vmem:[#allocation81_spill] sm:$0xff] %v5511_v52  ;;  %v5514_v18 = vpop.permute.xlu1 %1196  ;;  %v264_v52 = vld [vmem:[#allocation2 + $0x50] sm:$0xff] }
 0x1c4   :  { %8682 = vst [vmem:[#allocation82_spill] sm:$0xff] %v5514_v18  ;;  %v5516_v50 = vpop.permute.xlu0 %1200  ;;  %v553_v18 = vld [vmem:[#allocation2 + $0x229] sm:$0xff] }
 0x1c5   :  { %8683 = vst [vmem:[#allocation83_spill] sm:$0xff] %v5516_v50 }
 0x1c8   :  { %1416 = vrot.lane.b32.xlu2 %v262_v12, %s4717_s15 }
 0x1c9   :  { %1414 = vrot.lane.b32.xlu1 %v261_v47, %s4717_s15 }
 0x1ca   :  { %v5520_v41 = vpop.permute.xlu2 %1222  ;;  %1418 = vrot.lane.b32.xlu0 %v263_v23, %s4717_s15  ;;  %v268_v23 = vld [vmem:[#allocation2 + $0x80] sm:$0xff] }
 0x1cb   :  { %8684 = vst [vmem:[#allocation84_spill] sm:$0xff] %v5520_v41  ;;  %v5523_v37 = vpop.permute.xlu1 %1202  ;;  %v531_v41 = vld [vmem:[#allocation2 + $0xf1] sm:$0xff] }
 0x1cc   :  { %8685 = vst [vmem:[#allocation85_spill] sm:$0xff] %v5523_v37  ;;  %v5525_v24 = vpop.permute.xlu0 %1206  ;;  %v309_v37 = vld [vmem:[#allocation2 + $0x2a0] sm:$0xff] }
 0x1cd   :  { %8686 = vst [vmem:[#allocation86_spill] sm:$0xff] %v5525_v24  ;;  %v269_v24 = vld [vmem:[#allocation2 + $0x90] sm:$0xff] }
 0x1d0   :  { %1422 = vrot.lane.b32.xlu2 %v265_v38, %s4717_s15 }
 0x1d1   :  { %1420 = vrot.lane.b32.xlu1 %v264_v52, %s4717_s15 }
 0x1d2   :  { %v5529_v13 = vpop.permute.xlu2 %1228  ;;  %1424 = vrot.lane.b32.xlu0 %v266_v32, %s4717_s15  ;;  %v271_v32 = vld [vmem:[#allocation2 + $0xa8] sm:$0xff] }
 0x1d3   :  { %8687 = vst [vmem:[#allocation87_spill] sm:$0xff] %v5529_v13  ;;  %v5532_v47 = vpop.permute.xlu1 %1208  ;;  %v270_v13 = vld [vmem:[#allocation2 + $0x98] sm:$0xff] }
 0x1d4   :  { %8688 = vst [vmem:[#allocation88_spill] sm:$0xff] %v5532_v47  ;;  %v5534_v12 = vpop.permute.xlu0 %1212 }
 0x1d5   :  { %8689 = vst [vmem:[#allocation89_spill] sm:$0xff] %v5534_v12  ;;  %v272_v12 = vld [vmem:[#allocation2 + $0xb0] sm:$0xff] }
 0x1d8   :  { %1428 = vrot.lane.b32.xlu2 %v268_v23, %s4717_s15 }
 0x1d9   :  { %1426 = vrot.lane.b32.xlu1 %v267_v8, %s4717_s15 }
 0x1da   :  { %v5538_v17 = vpop.permute.xlu2 %1234  ;;  %1430 = vrot.lane.b32.xlu0 %v269_v24, %s4717_s15  ;;  %v274_v24 = vld [vmem:[#allocation2 + $0xc8] sm:$0xff] }
 0x1db   :  { %8690 = vst [vmem:[#allocation90_spill] sm:$0xff] %v5538_v17  ;;  %v5541_v52 = vpop.permute.xlu1 %1214  ;;  %v273_v17 = vld [vmem:[#allocation2 + $0xc0] sm:$0xff] }
 0x1dc   :  { %8691 = vst [vmem:[#allocation91_spill] sm:$0xff] %v5541_v52  ;;  %v5543_v38 = vpop.permute.xlu0 %1218  ;;  %v158_v52 = vld [vmem:[%s8578_s0 + $0xf0] sm:$0xff] }
 0x1dd   :  { %8692 = vst [vmem:[#allocation92_spill] sm:$0xff] %v5543_v38 }
 0x1de   :  { %223 = vst.msk [vmem:[#allocation2 + $0x181] sm:$0xff] %vm18_vm0, %v158_v52 }
 0x1e0   :  { %1434 = vrot.lane.b32.xlu2 %v271_v32, %s4717_s15  ;;  %v275_v32 = vld [vmem:[#allocation2 + $0xd8] sm:$0xff] }
 0x1e1   :  { %1432 = vrot.lane.b32.xlu1 %v270_v13, %s4717_s15 }
 0x1e2   :  { %v5547_v47 = vpop.permute.xlu2 %1240  ;;  %1436 = vrot.lane.b32.xlu0 %v272_v12, %s4717_s15 }
 0x1e3   :  { %8693 = vst [vmem:[#allocation93_spill] sm:$0xff] %v5547_v47  ;;  %v5550_v8 = vpop.permute.xlu1 %1220 }
 0x1e4   :  { %8694 = vst [vmem:[#allocation94_spill] sm:$0xff] %v5550_v8  ;;  %v5552_v23 = vpop.permute.xlu0 %1224  ;;  %v568_v8 = vld [vmem:[#allocation2 + $0x2d9] sm:$0xff] }
 0x1e5   :  { %8695 = vst [vmem:[#allocation95_spill] sm:$0xff] %v5552_v23  ;;  %v317_v23 = vld [vmem:[#allocation2 + $0x300] sm:$0xff] }
 0x1e8   :  { %1440 = vrot.lane.b32.xlu2 %v274_v24, %s4717_s15  ;;  %v159_v24 = vld [vmem:[%s8578_s0 + $0xf8] sm:$0xff] }
 0x1e9   :  { %1438 = vrot.lane.b32.xlu1 %v273_v17, %s4717_s15  ;;  %224 = vst.msk [vmem:[#allocation2 + $0x189] sm:$0xff] %vm18_vm0, %v159_v24  ;;  %v278_v17 = vld [vmem:[#allocation2 + $0xf8] sm:$0xff] }
 0x1ea   :  { %v5560_v13 = vpop.permute.xlu2 %1246  ;;  %1442 = vrot.lane.b32.xlu0 %v275_v32, %s4717_s15 }
 0x1eb   :  { %8696 = vst [vmem:[#allocation96_spill] sm:$0xff] %v5560_v13  ;;  %v5563_v12 = vpop.permute.xlu1 %1226 }
 0x1ec   :  { %8697 = vst [vmem:[#allocation97_spill] sm:$0xff] %v5563_v12  ;;  %v5565_v47 = vpop.permute.xlu0 %1230  ;;  %v303_v12 = vld [vmem:[#allocation2 + $0x258] sm:$0xff] }
 0x1ed   :  { %8698 = vst [vmem:[#allocation98_spill] sm:$0xff] %v5565_v47  ;;  %v280_v47 = vld [vmem:[#allocation2 + $0x110] sm:$0xff] }
 0x1f0   :  { %1446 = vrot.lane.b32.xlu2 %v277_v11, %s4717_s15 }
 0x1f1   :  { %1444 = vrot.lane.b32.xlu1 %v276_v25, %s4717_s15 }
 0x1f2   :  { %v5573_v52 = vpop.permute.xlu2 %1252  ;;  %1448 = vrot.lane.b32.xlu0 %v278_v17, %s4717_s15  ;;  %v283_v17 = vld [vmem:[#allocation2 + $0x138] sm:$0xff] }
 0x1f3   :  { %8699 = vst [vmem:[#allocation99_spill] sm:$0xff] %v5573_v52  ;;  %v5576_v32 = vpop.permute.xlu1 %1232  ;;  %v282_v52 = vld [vmem:[#allocation2 + $0x128] sm:$0xff] }
 0x1f4   :  { %8700 = vst [vmem:[#allocation100_spill] sm:$0xff] %v5576_v32  ;;  %v5578_v13 = vpop.permute.xlu0 %1236 }
 0x1f5   :  { %8701 = vst [vmem:[#allocation101_spill] sm:$0xff] %v5578_v13  ;;  %v284_v13 = vld [vmem:[#allocation2 + $0x140] sm:$0xff] }
 0x1f8   :  { %1452 = vrot.lane.b32.xlu2 %v280_v47, %s4717_s15 }
 0x1f9   :  { %1450 = vrot.lane.b32.xlu1 %v279_v9, %s4717_s15 }
 0x1fa   :  { %v5582_v11 = vpop.permute.xlu2 %1258  ;;  %1454 = vrot.lane.b32.xlu0 %v281_v3, %s4717_s15  ;;  %v286_v3 = vld [vmem:[#allocation2 + $0x158] sm:$0xff] }
 0x1fb   :  { %8702 = vst [vmem:[#allocation102_spill] sm:$0xff] %v5582_v11  ;;  %v5585_v25 = vpop.permute.xlu1 %1238  ;;  %v285_v11 = vld [vmem:[#allocation2 + $0x150] sm:$0xff] }
 0x1fc   :  { %8703 = vst [vmem:[#allocation103_spill] sm:$0xff] %v5585_v25  ;;  %v5587_v24 = vpop.permute.xlu0 %1242 }
 0x1fd   :  { %8704 = vst [vmem:[#allocation104_spill] sm:$0xff] %v5587_v24  ;;  %v287_v24 = vld [vmem:[#allocation2 + $0x168] sm:$0xff] }
 0x200   :  { %1458 = vrot.lane.b32.xlu2 %v283_v17, %s4717_s15 }
 0x201   :  { %1456 = vrot.lane.b32.xlu1 %v282_v52, %s4717_s15 }
 0x202   :  { %v5591_v32 = vpop.permute.xlu2 %1264  ;;  %1460 = vrot.lane.b32.xlu0 %v284_v13, %s4717_s15  ;;  %v479_v13 = vld [vmem:[#allocation2 + $0x180] sm:$0xff] }
 0x203   :  { %8705 = vst [vmem:[#allocation105_spill] sm:$0xff] %v5591_v32  ;;  %v5594_v9 = vpop.permute.xlu1 %1244  ;;  %v480_v32 = vld [vmem:[#allocation2 + $0x188] sm:$0xff] }
 0x204   :  { %8706 = vst [vmem:[#allocation106_spill] sm:$0xff] %v5594_v9  ;;  %v5596_v47 = vpop.permute.xlu0 %1248  ;;  %v288_v9 = vld [vmem:[#allocation2 + $0x170] sm:$0xff] }
 0x205   :  { %8707 = vst [vmem:[#allocation107_spill] sm:$0xff] %v5596_v47 }
 0x208   :  { %1464 = vrot.lane.b32.xlu2 %v286_v3, %s4717_s15 }
 0x209   :  { %1462 = vrot.lane.b32.xlu1 %v285_v11, %s4717_s15 }
 0x20a   :  { %v5600_v25 = vpop.permute.xlu2 %1270  ;;  %1466 = vrot.lane.b32.xlu0 %v287_v24, %s4717_s15  ;;  %v292_v24 = vld [vmem:[#allocation2 + $0x1d0] sm:$0xff] }
 0x20b   :  { %8708 = vst [vmem:[#allocation108_spill] sm:$0xff] %v5600_v25  ;;  %v5603_v52 = vpop.permute.xlu1 %1250  ;;  %v291_v25 = vld [vmem:[#allocation2 + $0x1c8] sm:$0xff] }
 0x20c   :  { %8709 = vst [vmem:[#allocation109_spill] sm:$0xff] %v5603_v52  ;;  %v5605_v17 = vpop.permute.xlu0 %1254  ;;  %v297_v52 = vld [vmem:[#allocation2 + $0x210] sm:$0xff] }
 0x20d   :  { %8710 = vst [vmem:[#allocation110_spill] sm:$0xff] %v5605_v17  ;;  %v293_v17 = vld [vmem:[#allocation2 + $0x1e0] sm:$0xff] }
 0x210   :  { %1470 = vrot.lane.b32.xlu2 %v479_v13, %s4717_s15 }
 0x211   :  { %1468 = vrot.lane.b32.xlu1 %v288_v9, %s4717_s15 }
 0x212   :  { %v5609_v47 = vpop.permute.xlu2 %1276  ;;  %1472 = vrot.lane.b32.xlu0 %v480_v32, %s4717_s15  ;;  %v295_v32 = vld [vmem:[#allocation2 + $0x1f8] sm:$0xff] }
 0x213   :  { %8711 = vst [vmem:[#allocation111_spill] sm:$0xff] %v5609_v47  ;;  %v5612_v11 = vpop.permute.xlu1 %1256  ;;  %v294_v47 = vld [vmem:[#allocation2 + $0x1e8] sm:$0xff] }
 0x214   :  { %8712 = vst [vmem:[#allocation112_spill] sm:$0xff] %v5612_v11  ;;  %v5614_v3 = vpop.permute.xlu0 %1260 }
 0x215   :  { %8713 = vst [vmem:[#allocation113_spill] sm:$0xff] %v5614_v3  ;;  %v296_v3 = vld [vmem:[#allocation2 + $0x200] sm:$0xff] }
 0x218   :  { %1476 = vrot.lane.b32.xlu2 %v292_v24, %s4717_s15 }
 0x219   :  { %1474 = vrot.lane.b32.xlu1 %v291_v25, %s4717_s15 }
 0x21a   :  { %v5618_v35 = vpop.permute.xlu2 %1410  ;;  %1478 = vrot.lane.b32.xlu0 %v293_v17, %s4717_s15  ;;  %v298_v17 = vld [vmem:[#allocation2 + $0x218] sm:$0xff] }
 0x21b   :  { %v5621_v9 = vpop.permute.xlu1 %1262 }
 0x21c   :  { %8714 = vst [vmem:[#allocation114_spill] sm:$0xff] %v5621_v9  ;;  %v5623_v13 = vpop.permute.xlu0 %1266 }
 0x21d   :  { %8715 = vst [vmem:[#allocation115_spill] sm:$0xff] %v5623_v13  ;;  %v299_v13 = vld [vmem:[#allocation2 + $0x228] sm:$0xff] }
 0x220   :  { %1482 = vrot.lane.b32.xlu2 %v295_v32, %s4717_s15 }
 0x221   :  { %1480 = vrot.lane.b32.xlu1 %v294_v47, %s4717_s15 }
 0x222   :  { %v5627_v11 = vpop.permute.xlu2 %1416  ;;  %1484 = vrot.lane.b32.xlu0 %v296_v3, %s4717_s15  ;;  %v301_v3 = vld [vmem:[#allocation2 + $0x240] sm:$0xff] }
 0x223   :  { %v5630_v25 = vpop.permute.xlu1 %1268 }
 0x224   :  { %8716 = vst [vmem:[#allocation116_spill] sm:$0xff] %v5630_v25  ;;  %v5632_v24 = vpop.permute.xlu0 %1272 }
 0x225   :  { %8717 = vst [vmem:[#allocation117_spill] sm:$0xff] %v5632_v24  ;;  %v302_v24 = vld [vmem:[#allocation2 + $0x248] sm:$0xff] }
 0x228   :  { %1488 = vrot.lane.b32.xlu2 %v298_v17, %s4717_s15 }
 0x229   :  { %1486 = vrot.lane.b32.xlu1 %v297_v52, %s4717_s15 }
 0x22a   :  { %v5636_v9 = vpop.permute.xlu2 %1422  ;;  %1490 = vrot.lane.b32.xlu0 %v299_v13, %s4717_s15  ;;  %v304_v13 = vld [vmem:[#allocation2 + $0x260] sm:$0xff] }
 0x22b   :  { %8718 = vst [vmem:[#allocation118_spill] sm:$0xff] %v5636_v9  ;;  %v5639_v47 = vpop.permute.xlu1 %1274  ;;  %v620_v9 = vld [vmem:[#allocation2 + $0x24a] sm:$0xff] }
 0x22c   :  { %8719 = vst [vmem:[#allocation119_spill] sm:$0xff] %v5639_v47  ;;  %v5641_v32 = vpop.permute.xlu0 %1278 }
 0x22d   :  { %8720 = vst [vmem:[#allocation120_spill] sm:$0xff] %v5641_v32  ;;  %v305_v32 = vld [vmem:[#allocation2 + $0x270] sm:$0xff] }
 0x230   :  { %1494 = vrot.lane.b32.xlu2 %v301_v3, %s4717_s15 }
 0x231   :  { %1492 = vrot.lane.b32.xlu1 %v300_v58, %s4717_s15 }
 0x232   :  { %v5645_v25 = vpop.permute.xlu2 %1428  ;;  %1496 = vrot.lane.b32.xlu0 %v302_v24, %s4717_s15  ;;  %v307_v24 = vld [vmem:[#allocation2 + $0x288] sm:$0xff] }
 0x233   :  { %8721 = vst [vmem:[#allocation121_spill] sm:$0xff] %v5645_v25  ;;  %v5648_v52 = vpop.permute.xlu1 %1280 }
 0x234   :  { %8722 = vst [vmem:[#allocation122_spill] sm:$0xff] %v5648_v52  ;;  %v5650_v17 = vpop.permute.xlu0 %1412  ;;  %v190_v52 = vld [vmem:[%s8578_s0 + $0x1f0] sm:$0xff] }
 0x235   :  { %255 = vst.msk [vmem:[#allocation2 + $0x331] sm:$0xff] %vm18_vm0, %v190_v52 }
 0x238   :  { %1500 = vrot.lane.b32.xlu2 %v304_v13, %s4717_s15  ;;  %v308_v13 = vld [vmem:[#allocation2 + $0x290] sm:$0xff] }
 0x239   :  { %1498 = vrot.lane.b32.xlu1 %v303_v12, %s4717_s15  ;;  %v191_v12 = vld [vmem:[%s8578_s0 + $0x1f8] sm:$0xff]  ;;  %s4718_s0 = smov 16  }
 0x23a   :  { %v5654_v47 = vpop.permute.xlu2 %1434  ;;  %1502 = vrot.lane.b32.xlu0 %v305_v32, %s4717_s15  ;;  %256 = vst.msk [vmem:[#allocation2 + $0x339] sm:$0xff] %vm18_vm0, %v191_v12  ;;  %v313_v12 = vld [vmem:[#allocation2 + $0x2d0] sm:$0xff] }
 0x23b   :  { %8723 = vst [vmem:[#allocation123_spill] sm:$0xff] %v5654_v47  ;;  %v5657_v58 = vpop.permute.xlu1 %1414 }
 0x23c   :  { %v5659_v3 = vpop.permute.xlu0 %1418 }
 0x240   :  { %1506 = vrot.lane.b32.xlu2 %v307_v24, %s4717_s15 }
 0x241   :  { %1504 = vrot.lane.b32.xlu1 %v306_v0, %s4717_s15 }
 0x242   :  { %v5670_v32 = vpop.permute.xlu2 %1440  ;;  %1508 = vrot.lane.b32.xlu0 %v308_v13, %s4717_s15 }
 0x243   :  { %8724 = vst [vmem:[#allocation124_spill] sm:$0xff] %v5670_v32  ;;  %v5674_v24 = vpop.permute.xlu1 %1420  ;;  %v312_v32 = vld [vmem:[#allocation2 + $0x2c0] sm:$0xff] }
 0x244   :  { %8725 = vst [vmem:[#allocation125_spill] sm:$0xff] %v5674_v24  ;;  %v5676_v47 = vpop.permute.xlu0 %1424 }
 0x245   :  { %8726 = vst [vmem:[#allocation126_spill] sm:$0xff] %v5676_v47 }
 0x248   :  { %1512 = vrot.lane.b32.xlu2 %v310_v4, %s4717_s15 }
 0x249   :  { %1510 = vrot.lane.b32.xlu1 %v309_v37, %s4717_s15 }
 0x24a   :  { %v5680_v0 = vpop.permute.xlu2 %1446  ;;  %1514 = vrot.lane.b32.xlu0 %v311_v44, %s4717_s15  ;;  %v316_v44 = vld [vmem:[#allocation2 + $0x2f0] sm:$0xff] }
 0x24b   :  { %8727 = vst [vmem:[#allocation127_spill] sm:$0xff] %v5680_v0  ;;  %v5683_v52 = vpop.permute.xlu1 %1426  ;;  %v618_v0 = vld [vmem:[#allocation2 + $0x232] sm:$0xff] }
 0x24c   :  { %8728 = vst [vmem:[#allocation128_spill] sm:$0xff] %v5683_v52  ;;  %v5685_v13 = vpop.permute.xlu0 %1430  ;;  %v5946_v52 = vld [vmem:[#allocation2 + $0x7a] sm:$0xff] }
 0x24d   :  { %8729 = vst [vmem:[#allocation129_spill] sm:$0xff] %v5685_v13  ;;  %v516_v13 = vld [vmem:[#allocation2 + $0x39] sm:$0xff] }
 0x250   :  { %1518 = vrot.lane.b32.xlu2 %v313_v12, %s4717_s15 }
 0x251   :  { %1516 = vrot.lane.b32.xlu1 %v312_v32, %s4717_s15 }
 0x252   :  { %v5689_v50 = vpop.permute.xlu2 %1452  ;;  %1520 = vrot.lane.b32.xlu0 %v314_v29, %s4717_s15  ;;  %v319_v29 = vld [vmem:[#allocation2 + $0x318] sm:$0xff] }
 0x253   :  { %8730 = vst [vmem:[#allocation130_spill] sm:$0xff] %v5689_v50  ;;  %v5692_v4 = vpop.permute.xlu1 %1432  ;;  %v520_v50 = vld [vmem:[#allocation2 + $0x69] sm:$0xff] }
 0x254   :  { %8731 = vst [vmem:[#allocation131_spill] sm:$0xff] %v5692_v4  ;;  %v5694_v37 = vpop.permute.xlu0 %1436 }
 0x255   :  { %8732 = vst [vmem:[#allocation132_spill] sm:$0xff] %v5694_v37  ;;  %v320_v37 = vld [vmem:[#allocation2 + $0x320] sm:$0xff] }
 0x258   :  { %1524 = vrot.lane.b32.xlu2 %v316_v44, %s4717_s15 }
 0x259   :  { %1522 = vrot.lane.b32.xlu1 %v315_v7, %s4717_s15 }
 0x25a   :  { %v5698_v42 = vpop.permute.xlu2 %1458  ;;  %1526 = vrot.lane.b32.xlu0 %v317_v23, %s4717_s15  ;;  %v512_v23 = vld [vmem:[#allocation2 + $0x338] sm:$0xff] }
 0x25b   :  { %8733 = vst [vmem:[#allocation133_spill] sm:$0xff] %v5698_v42  ;;  %v5701_v32 = vpop.permute.xlu1 %1438  ;;  %v511_v42 = vld [vmem:[#allocation2 + $0x330] sm:$0xff] }
 0x25c   :  { %8734 = vst [vmem:[#allocation134_spill] sm:$0xff] %v5701_v32  ;;  %v5703_v12 = vpop.permute.xlu0 %1442  ;;  %v513_v32 = vld [vmem:[#allocation2 + $0x19] sm:$0xff] }
 0x260   :  { %1530 = vrot.lane.b32.xlu2 %v319_v29, %s4717_s15 }
 0x261   :  { %1528 = vrot.lane.b32.xlu1 %v318_v34, %s4717_s15 }
 0x262   :  { %v5707_v4 = vpop.permute.xlu2 %1464  ;;  %1532 = vrot.lane.b32.xlu0 %v320_v37, %s4717_s15  ;;  %v515_v37 = vld [vmem:[#allocation2 + $0x31] sm:$0xff] }
 0x263   :  { %8735 = vst [vmem:[#allocation135_spill] sm:$0xff] %v5707_v4  ;;  %v5710_v7 = vpop.permute.xlu1 %1444  ;;  %v514_v4 = vld [vmem:[#allocation2 + $0x21] sm:$0xff] }
 0x264   :  { %8736 = vst [vmem:[#allocation136_spill] sm:$0xff] %v5710_v7  ;;  %v5712_v44 = vpop.permute.xlu0 %1448  ;;  %v683_v7 = vld [vmem:[#allocation2 + $0x248] sm:$0xff] }
 0x265   :  { %8737 = vst [vmem:[#allocation137_spill] sm:$0xff] %v5712_v44  ;;  %v589_v44 = vld [vmem:[#allocation2 + $0xaa] sm:$0xff] }
 0x268   :  { %1536 = vrot.lane.b32.xlu2 %v512_v23, %s4717_s15 }
 0x269   :  { %1534 = vrot.lane.b32.xlu1 %v511_v42, %s4717_s15 }
 0x26a   :  { %v5716_v27 = vpop.permute.xlu2 %1470  ;;  %1666 = vrot.lane.b32.xlu0 %v513_v32, %s4718_s0  ;;  %v518_v32 = vld [vmem:[#allocation2 + $0x51] sm:$0xff] }
 0x26b   :  { %8738 = vst [vmem:[#allocation138_spill] sm:$0xff] %v5716_v27  ;;  %v5719_v34 = vpop.permute.xlu1 %1450  ;;  %v517_v27 = vld [vmem:[#allocation2 + $0x49] sm:$0xff] }
 0x26c   :  { %8739 = vst [vmem:[#allocation139_spill] sm:$0xff] %v5719_v34  ;;  %v5721_v29 = vpop.permute.xlu0 %1454 }
 0x26d   :  { %8740 = vst [vmem:[#allocation140_spill] sm:$0xff] %v5721_v29 }
 0x270   :  { %1670 = vrot.lane.b32.xlu2 %v515_v37, %s4718_s0 }
 0x271   :  { %1668 = vrot.lane.b32.xlu1 %v514_v4, %s4718_s0 }
 0x272   :  { %v5725_v5 = vpop.permute.xlu2 %1476  ;;  %1672 = vrot.lane.b32.xlu0 %v516_v13, %s4718_s0  ;;  %v521_v13 = vld [vmem:[#allocation2 + $0x79] sm:$0xff] }
 0x273   :  { %8741 = vst [vmem:[#allocation141_spill] sm:$0xff] %v5725_v5  ;;  %v5728_v42 = vpop.permute.xlu1 %1456  ;;  %v567_v5 = vld [vmem:[#allocation2 + $0x2d1] sm:$0xff] }
 0x274   :  { %8742 = vst [vmem:[#allocation142_spill] sm:$0xff] %v5728_v42  ;;  %v5730_v23 = vpop.permute.xlu0 %1460  ;;  %v522_v42 = vld [vmem:[#allocation2 + $0x81] sm:$0xff] }
 0x275   :  { %8743 = vst [vmem:[#allocation143_spill] sm:$0xff] %v5730_v23 }
 0x278   :  { %1676 = vrot.lane.b32.xlu2 %v518_v32, %s4718_s0 }
 0x279   :  { %1674 = vrot.lane.b32.xlu1 %v517_v27, %s4718_s0 }
 0x27a   :  { %v5734_v29 = vpop.permute.xlu2 %1482  ;;  %1678 = vrot.lane.b32.xlu0 %v519_v2, %s4718_s0  ;;  %v524_v2 = vld [vmem:[#allocation2 + $0x99] sm:$0xff] }
 0x27b   :  { %8744 = vst [vmem:[#allocation144_spill] sm:$0xff] %v5734_v29  ;;  %v5737_v4 = vpop.permute.xlu1 %1462  ;;  %v523_v29 = vld [vmem:[#allocation2 + $0x91] sm:$0xff] }
 0x27c   :  { %8745 = vst [vmem:[#allocation145_spill] sm:$0xff] %v5737_v4  ;;  %v5739_v37 = vpop.permute.xlu0 %1466  ;;  %v525_v4 = vld [vmem:[#allocation2 + $0xa9] sm:$0xff] }
 0x27d   :  { %8746 = vst [vmem:[#allocation146_spill] sm:$0xff] %v5739_v37 }
 0x280   :  { %1682 = vrot.lane.b32.xlu2 %v521_v13, %s4718_s0 }
 0x281   :  { %1680 = vrot.lane.b32.xlu1 %v520_v50, %s4718_s0 }
 0x282   :  { %v5743_v23 = vpop.permute.xlu2 %1488  ;;  %1684 = vrot.lane.b32.xlu0 %v522_v42, %s4718_s0  ;;  %v527_v42 = vld [vmem:[#allocation2 + $0xc1] sm:$0xff] }
 0x283   :  { %8747 = vst [vmem:[#allocation147_spill] sm:$0xff] %v5743_v23  ;;  %v5746_v27 = vpop.permute.xlu1 %1468  ;;  %v526_v23 = vld [vmem:[#allocation2 + $0xb1] sm:$0xff] }
 0x284   :  { %8748 = vst [vmem:[#allocation148_spill] sm:$0xff] %v5746_v27  ;;  %v5748_v32 = vpop.permute.xlu0 %1472  ;;  %v528_v27 = vld [vmem:[#allocation2 + $0xc9] sm:$0xff] }
 0x285   :  { %8749 = vst [vmem:[#allocation149_spill] sm:$0xff] %v5748_v32 }
 0x288   :  { %1688 = vrot.lane.b32.xlu2 %v524_v2, %s4718_s0 }
 0x289   :  { %1686 = vrot.lane.b32.xlu1 %v523_v29, %s4718_s0 }
 0x28a   :  { %v5752_v37 = vpop.permute.xlu2 %1494  ;;  %1690 = vrot.lane.b32.xlu0 %v525_v4, %s4718_s0  ;;  %v530_v4 = vld [vmem:[#allocation2 + $0xe1] sm:$0xff] }
 0x28b   :  { %8750 = vst [vmem:[#allocation150_spill] sm:$0xff] %v5752_v37  ;;  %v5755_v50 = vpop.permute.xlu1 %1474  ;;  %v529_v37 = vld [vmem:[#allocation2 + $0xd9] sm:$0xff] }
 0x28c   :  { %8751 = vst [vmem:[#allocation151_spill] sm:$0xff] %v5755_v50  ;;  %v5757_v13 = vpop.permute.xlu0 %1478 }
 0x28d   :  { %8752 = vst [vmem:[#allocation152_spill] sm:$0xff] %v5757_v13 }
 0x290   :  { %1694 = vrot.lane.b32.xlu2 %v527_v42, %s4718_s0 }
 0x291   :  { %1692 = vrot.lane.b32.xlu1 %v526_v23, %s4718_s0 }
 0x292   :  { %v5761_v32 = vpop.permute.xlu2 %1500  ;;  %1696 = vrot.lane.b32.xlu0 %v528_v27, %s4718_s0  ;;  %v533_v27 = vld [vmem:[#allocation2 + $0x109] sm:$0xff] }
 0x293   :  { %8753 = vst [vmem:[#allocation153_spill] sm:$0xff] %v5761_v32  ;;  %v5764_v29 = vpop.permute.xlu1 %1480  ;;  %v532_v32 = vld [vmem:[#allocation2 + $0xf9] sm:$0xff] }
 0x294   :  { %8754 = vst [vmem:[#allocation154_spill] sm:$0xff] %v5764_v29  ;;  %v5766_v2 = vpop.permute.xlu0 %1484  ;;  %v534_v29 = vld [vmem:[#allocation2 + $0x111] sm:$0xff] }
 0x295   :  { %8755 = vst [vmem:[#allocation155_spill] sm:$0xff] %v5766_v2 }
 0x298   :  { %1700 = vrot.lane.b32.xlu2 %v530_v4, %s4718_s0 }
 0x299   :  { %1698 = vrot.lane.b32.xlu1 %v529_v37, %s4718_s0 }
 0x29a   :  { %v5770_v13 = vpop.permute.xlu2 %1506  ;;  %1702 = vrot.lane.b32.xlu0 %v531_v41, %s4718_s0  ;;  %v536_v41 = vld [vmem:[#allocation2 + $0x129] sm:$0xff] }
 0x29b   :  { %8756 = vst [vmem:[#allocation156_spill] sm:$0xff] %v5770_v13  ;;  %v5773_v23 = vpop.permute.xlu1 %1486  ;;  %v535_v13 = vld [vmem:[#allocation2 + $0x121] sm:$0xff] }
 0x29c   :  { %8757 = vst [vmem:[#allocation157_spill] sm:$0xff] %v5773_v23  ;;  %v5775_v42 = vpop.permute.xlu0 %1490  ;;  %v537_v23 = vld [vmem:[#allocation2 + $0x139] sm:$0xff] }
 0x29d   :  { %8758 = vst [vmem:[#allocation158_spill] sm:$0xff] %v5775_v42 }
 0x2a0   :  { %1706 = vrot.lane.b32.xlu2 %v533_v27, %s4718_s0 }
 0x2a1   :  { %1704 = vrot.lane.b32.xlu1 %v532_v32, %s4718_s0 }
 0x2a2   :  { %v5779_v2 = vpop.permute.xlu2 %1512  ;;  %1708 = vrot.lane.b32.xlu0 %v534_v29, %s4718_s0  ;;  %v539_v29 = vld [vmem:[#allocation2 + $0x151] sm:$0xff] }
 0x2a3   :  { %8759 = vst [vmem:[#allocation159_spill] sm:$0xff] %v5779_v2  ;;  %v5782_v37 = vpop.permute.xlu1 %1492  ;;  %v538_v2 = vld [vmem:[#allocation2 + $0x141] sm:$0xff] }
 0x2a4   :  { %8760 = vst [vmem:[#allocation160_spill] sm:$0xff] %v5782_v37  ;;  %v5784_v4 = vpop.permute.xlu0 %1496  ;;  %v540_v37 = vld [vmem:[#allocation2 + $0x159] sm:$0xff] }
 0x2a5   :  { %8761 = vst [vmem:[#allocation161_spill] sm:$0xff] %v5784_v4 }
 0x2a8   :  { %1712 = vrot.lane.b32.xlu2 %v536_v41, %s4718_s0 }
 0x2a9   :  { %1710 = vrot.lane.b32.xlu1 %v535_v13, %s4718_s0 }
 0x2aa   :  { %v5788_v42 = vpop.permute.xlu2 %1518  ;;  %1714 = vrot.lane.b32.xlu0 %v537_v23, %s4718_s0  ;;  %v542_v23 = vld [vmem:[#allocation2 + $0x171] sm:$0xff] }
 0x2ab   :  { %8762 = vst [vmem:[#allocation162_spill] sm:$0xff] %v5788_v42  ;;  %v5791_v32 = vpop.permute.xlu1 %1498  ;;  %v541_v42 = vld [vmem:[#allocation2 + $0x169] sm:$0xff] }
 0x2ac   :  { %8763 = vst [vmem:[#allocation163_spill] sm:$0xff] %v5791_v32  ;;  %v5793_v27 = vpop.permute.xlu0 %1502  ;;  %v543_v32 = vld [vmem:[#allocation2 + $0x181] sm:$0xff] }
 0x2ad   :  { %8764 = vst [vmem:[#allocation164_spill] sm:$0xff] %v5793_v27 }
 0x2b0   :  { %1718 = vrot.lane.b32.xlu2 %v539_v29, %s4718_s0 }
 0x2b1   :  { %1716 = vrot.lane.b32.xlu1 %v538_v2, %s4718_s0 }
 0x2b2   :  { %v5797_v4 = vpop.permute.xlu2 %1524  ;;  %1720 = vrot.lane.b32.xlu0 %v540_v37, %s4718_s0  ;;  %v545_v37 = vld [vmem:[#allocation2 + $0x1c9] sm:$0xff] }
 0x2b3   :  { %8765 = vst [vmem:[#allocation165_spill] sm:$0xff] %v5797_v4  ;;  %v5800_v13 = vpop.permute.xlu1 %1504  ;;  %v544_v4 = vld [vmem:[#allocation2 + $0x189] sm:$0xff] }
 0x2b4   :  { %8766 = vst [vmem:[#allocation166_spill] sm:$0xff] %v5800_v13  ;;  %v5802_v41 = vpop.permute.xlu0 %1508  ;;  %v546_v13 = vld [vmem:[#allocation2 + $0x1d1] sm:$0xff] }
 0x2b5   :  { %8767 = vst [vmem:[#allocation167_spill] sm:$0xff] %v5802_v41 }
 0x2b8   :  { %1724 = vrot.lane.b32.xlu2 %v542_v23, %s4718_s0 }
 0x2b9   :  { %1722 = vrot.lane.b32.xlu1 %v541_v42, %s4718_s0 }
 0x2ba   :  { %v5806_v27 = vpop.permute.xlu2 %1530  ;;  %1726 = vrot.lane.b32.xlu0 %v543_v32, %s4718_s0  ;;  %v548_v32 = vld [vmem:[#allocation2 + $0x1e9] sm:$0xff] }
 0x2bb   :  { %8768 = vst [vmem:[#allocation168_spill] sm:$0xff] %v5806_v27  ;;  %v5809_v2 = vpop.permute.xlu1 %1510  ;;  %v547_v27 = vld [vmem:[#allocation2 + $0x1e1] sm:$0xff] }
 0x2bc   :  { %8769 = vst [vmem:[#allocation169_spill] sm:$0xff] %v5809_v2  ;;  %v5811_v29 = vpop.permute.xlu0 %1514  ;;  %v549_v2 = vld [vmem:[#allocation2 + $0x1f9] sm:$0xff] }
 0x2bd   :  { %8770 = vst [vmem:[#allocation170_spill] sm:$0xff] %v5811_v29 }
 0x2c0   :  { %1730 = vrot.lane.b32.xlu2 %v545_v37, %s4718_s0 }
 0x2c1   :  { %1728 = vrot.lane.b32.xlu1 %v544_v4, %s4718_s0 }
 0x2c2   :  { %v5815_v41 = vpop.permute.xlu2 %1536  ;;  %1732 = vrot.lane.b32.xlu0 %v546_v13, %s4718_s0  ;;  %v551_v13 = vld [vmem:[#allocation2 + $0x211] sm:$0xff] }
 0x2c3   :  { %8771 = vst [vmem:[#allocation171_spill] sm:$0xff] %v5815_v41  ;;  %v5818_v42 = vpop.permute.xlu1 %1516  ;;  %v550_v41 = vld [vmem:[#allocation2 + $0x201] sm:$0xff] }
 0x2c4   :  { %8772 = vst [vmem:[#allocation172_spill] sm:$0xff] %v5818_v42  ;;  %v5820_v23 = vpop.permute.xlu0 %1520  ;;  %v552_v42 = vld [vmem:[#allocation2 + $0x219] sm:$0xff] }
 0x2c5   :  { %8773 = vst [vmem:[#allocation173_spill] sm:$0xff] %v5820_v23 }
 0x2c8   :  { %1736 = vrot.lane.b32.xlu2 %v548_v32, %s4718_s0 }
 0x2c9   :  { %1734 = vrot.lane.b32.xlu1 %v547_v27, %s4718_s0 }
 0x2ca   :  { %v5824_v29 = vpop.permute.xlu2 %1670  ;;  %1738 = vrot.lane.b32.xlu0 %v549_v2, %s4718_s0  ;;  %v554_v2 = vld [vmem:[#allocation2 + $0x231] sm:$0xff] }
 0x2cb   :  { %v5827_v4 = vpop.permute.xlu1 %1522 }
 0x2cc   :  { %8774 = vst [vmem:[#allocation174_spill] sm:$0xff] %v5827_v4  ;;  %v5829_v37 = vpop.permute.xlu0 %1526  ;;  %v555_v4 = vld [vmem:[#allocation2 + $0x241] sm:$0xff] }
 0x2cd   :  { %8775 = vst [vmem:[#allocation175_spill] sm:$0xff] %v5829_v37 }
 0x2d0   :  { %1742 = vrot.lane.b32.xlu2 %v551_v13, %s4718_s0 }
 0x2d1   :  { %1740 = vrot.lane.b32.xlu1 %v550_v41, %s4718_s0 }
 0x2d2   :  { %v5833_v23 = vpop.permute.xlu2 %1676  ;;  %1744 = vrot.lane.b32.xlu0 %v552_v42, %s4718_s0  ;;  %v557_v42 = vld [vmem:[#allocation2 + $0x259] sm:$0xff] }
 0x2d3   :  { %8776 = vst [vmem:[#allocation176_spill] sm:$0xff] %v5833_v23  ;;  %v5836_v27 = vpop.permute.xlu1 %1528 }
 0x2d4   :  { %8777 = vst [vmem:[#allocation177_spill] sm:$0xff] %v5836_v27  ;;  %v5838_v32 = vpop.permute.xlu0 %1532  ;;  %v558_v27 = vld [vmem:[#allocation2 + $0x261] sm:$0xff] }
 0x2d5   :  { %8778 = vst [vmem:[#allocation178_spill] sm:$0xff] %v5838_v32 }
 0x2d8   :  { %1748 = vrot.lane.b32.xlu2 %v554_v2, %s4718_s0 }
 0x2d9   :  { %1746 = vrot.lane.b32.xlu1 %v553_v18, %s4718_s0 }
 0x2da   :  { %v5842_v37 = vpop.permute.xlu2 %1682  ;;  %1750 = vrot.lane.b32.xlu0 %v555_v4, %s4718_s0  ;;  %v560_v4 = vld [vmem:[#allocation2 + $0x279] sm:$0xff] }
 0x2db   :  { %8779 = vst [vmem:[#allocation179_spill] sm:$0xff] %v5842_v37  ;;  %v5845_v41 = vpop.permute.xlu1 %1534  ;;  %v5944_v37 = vld [vmem:[#allocation2 + $0x62] sm:$0xff] }
 0x2dc   :  { %8780 = vst [vmem:[#allocation180_spill] sm:$0xff] %v5845_v41  ;;  %v5847_v13 = vpop.permute.xlu0 %1666  ;;  %v561_v41 = vld [vmem:[#allocation2 + $0x289] sm:$0xff] }
 0x2e0   :  { %1754 = vrot.lane.b32.xlu2 %v557_v42, %s4718_s0 }
 0x2e1   :  { %1752 = vrot.lane.b32.xlu1 %v556_v63, %s4718_s0 }
 0x2e2   :  { %v5851_v32 = vpop.permute.xlu2 %1688  ;;  %1756 = vrot.lane.b32.xlu0 %v558_v27, %s4718_s0  ;;  %v563_v27 = vld [vmem:[#allocation2 + $0x2a1] sm:$0xff] }
 0x2e3   :  { %8781 = vst [vmem:[#allocation181_spill] sm:$0xff] %v5851_v32  ;;  %v5854_v18 = vpop.permute.xlu1 %1668  ;;  %v562_v32 = vld [vmem:[#allocation2 + $0x291] sm:$0xff] }
 0x2e4   :  { %v5856_v2 = vpop.permute.xlu0 %1672 }
 0x2e8   :  { %1760 = vrot.lane.b32.xlu2 %v560_v4, %s4718_s0 }
 0x2e9   :  { %1758 = vrot.lane.b32.xlu1 %v559_v22, %s4718_s0 }
 0x2ea   :  { %v5860_v25 = vpop.permute.xlu2 %1694  ;;  %1762 = vrot.lane.b32.xlu0 %v561_v41, %s4718_s0  ;;  %v566_v41 = vld [vmem:[#allocation2 + $0x2c1] sm:$0xff] }
 0x2eb   :  { %8782 = vst [vmem:[#allocation182_spill] sm:$0xff] %v5860_v25  ;;  %v5863_v63 = vpop.permute.xlu1 %1674  ;;  %v565_v25 = vld [vmem:[#allocation2 + $0x2b9] sm:$0xff] }
 0x2ec   :  { %v5865_v42 = vpop.permute.xlu0 %1678 }
 0x2ed   :  { %8783 = vst [vmem:[#allocation183_spill] sm:$0xff] %v5865_v42 }
 0x2f0   :  { %1766 = vrot.lane.b32.xlu2 %v563_v27, %s4718_s0 }
 0x2f1   :  { %1764 = vrot.lane.b32.xlu1 %v562_v32, %s4718_s0 }
 0x2f2   :  { %v5869_v61 = vpop.permute.xlu2 %1700  ;;  %1768 = vrot.lane.b32.xlu0 %v564_v30, %s4718_s0  ;;  %v569_v30 = vld [vmem:[#allocation2 + $0x2e9] sm:$0xff] }
 0x2f3   :  { %8784 = vst [vmem:[#allocation184_spill] sm:$0xff] %v5869_v61  ;;  %v5872_v22 = vpop.permute.xlu1 %1680  ;;  %v680_v61 = vld [vmem:[#allocation2 + $0x228] sm:$0xff] }
 0x2f4   :  { %8785 = vst [vmem:[#allocation185_spill] sm:$0xff] %v5872_v22  ;;  %v5874_v4 = vpop.permute.xlu0 %1684 }
 0x2f5   :  { %8786 = vst [vmem:[#allocation186_spill] sm:$0xff] %v5874_v4 }
 0x2f8   :  { %1772 = vrot.lane.b32.xlu2 %v566_v41, %s4718_s0 }
 0x2f9   :  { %1770 = vrot.lane.b32.xlu1 %v565_v25, %s4718_s0 }
 0x2fa   :  { %v5878_v34 = vpop.permute.xlu2 %1706  ;;  %1774 = vrot.lane.b32.xlu0 %v567_v5, %s4718_s0  ;;  %v572_v5 = vld [vmem:[#allocation2 + $0x309] sm:$0xff] }
 0x2fb   :  { %8787 = vst [vmem:[#allocation187_spill] sm:$0xff] %v5878_v34  ;;  %v5881_v32 = vpop.permute.xlu1 %1686  ;;  %v571_v34 = vld [vmem:[#allocation2 + $0x301] sm:$0xff] }
 0x2fc   :  { %8788 = vst [vmem:[#allocation188_spill] sm:$0xff] %v5881_v32  ;;  %v5883_v27 = vpop.permute.xlu0 %1690  ;;  %v573_v32 = vld [vmem:[#allocation2 + $0x319] sm:$0xff] }
 0x2fd   :  { %8789 = vst [vmem:[#allocation189_spill] sm:$0xff] %v5883_v27 }
 0x300   :  { %1778 = vrot.lane.b32.xlu2 %v569_v30, %s4718_s0 }
 0x301   :  { %1776 = vrot.lane.b32.xlu1 %v568_v8, %s4718_s0 }
 0x302   :  { %v5887_v4 = vpop.permute.xlu2 %1712  ;;  %1780 = vrot.lane.b32.xlu0 %v570_v49, %s4718_s0  ;;  %v575_v49 = vld [vmem:[#allocation2 + $0x331] sm:$0xff] }
 0x303   :  { %8790 = vst [vmem:[#allocation190_spill] sm:$0xff] %v5887_v4  ;;  %v5890_v25 = vpop.permute.xlu1 %1692  ;;  %v574_v4 = vld [vmem:[#allocation2 + $0x321] sm:$0xff] }
 0x304   :  { %8791 = vst [vmem:[#allocation191_spill] sm:$0xff] %v5890_v25  ;;  %v5892_v41 = vpop.permute.xlu0 %1696  ;;  %v576_v25 = vld [vmem:[#allocation2 + $0x339] sm:$0xff] }
 0x305   :  { %8792 = vst [vmem:[#allocation192_spill] sm:$0xff] %v5892_v41 }
 0x308   :  { %1784 = vrot.lane.b32.xlu2 %v572_v5, %s4718_s0 }
 0x309   :  { %1782 = vrot.lane.b32.xlu1 %v571_v34, %s4718_s0 }
 0x30a   :  { %v5896_v27 = vpop.permute.xlu2 %1718  ;;  %1786 = vrot.lane.b32.xlu0 %v573_v32, %s4718_s0  ;;  %v578_v32 = vld [vmem:[#allocation2 + $0x22] sm:$0xff] }
 0x30b   :  { %8793 = vst [vmem:[#allocation193_spill] sm:$0xff] %v5896_v27  ;;  %v5899_v8 = vpop.permute.xlu1 %1698  ;;  %v577_v27 = vld [vmem:[#allocation2 + $0x1a] sm:$0xff] }
 0x30c   :  { %v5901_v30 = vpop.permute.xlu0 %1702 }
 0x30d   :  { %8794 = vst [vmem:[#allocation194_spill] sm:$0xff] %v5901_v30  ;;  %v616_v30 = vld [vmem:[#allocation2 + $0x21a] sm:$0xff] }
 0x310   :  { %1790 = vrot.lane.b32.xlu2 %v575_v49, %s4718_s0 }
 0x311   :  { %1788 = vrot.lane.b32.xlu1 %v574_v4, %s4718_s0 }
 0x312   :  { %v5905_v41 = vpop.permute.xlu2 %1724  ;;  %1792 = vrot.lane.b32.xlu0 %v576_v25, %s4718_s0 }
 0x313   :  { %8795 = vst [vmem:[#allocation195_spill] sm:$0xff] %v5905_v41  ;;  %v5908_v34 = vpop.permute.xlu1 %1704  ;;  %v5924_v41 = vld [vmem:[#allocation2 + $0x4a] sm:$0xff] }
 0x314   :  { %8796 = vst [vmem:[#allocation196_spill] sm:$0xff] %v5908_v34  ;;  %v5910_v5 = vpop.permute.xlu0 %1708 }
 0x315   :  { %8797 = vst [vmem:[#allocation197_spill] sm:$0xff] %v5910_v5  ;;  %v5926_v5 = vld [vmem:[#allocation2 + $0x3a] sm:$0xff] }
 0x318   :  { %1924 = vrot.lane.b32.xlu2 %v578_v32, %s4719_s20 }
 0x319   :  { %1922 = vrot.lane.b32.xlu1 %v577_v27, %s4719_s20 }
 0x31a   :  { %v5916_v49 = vpop.permute.xlu2 %1730  ;;  %1926 = vrot.lane.b32.xlu0 %v5912_v55, %s4719_s20 }
 0x31b   :  { %8798 = vst [vmem:[#allocation198_spill] sm:$0xff] %v5916_v49  ;;  %v5920_v4 = vpop.permute.xlu1 %1710  ;;  %v588_v49 = vld [vmem:[#allocation2 + $0x9a] sm:$0xff] }
 0x31c   :  { %8799 = vst [vmem:[#allocation199_spill] sm:$0xff] %v5920_v4  ;;  %v5922_v25 = vpop.permute.xlu0 %1714  ;;  %v5942_v4 = vld [vmem:[#allocation2 + $0x6a] sm:$0xff] }
 0x31d   :  { %8800 = vst [vmem:[#allocation200_spill] sm:$0xff] %v5922_v25 }
 0x320   :  { %1930 = vrot.lane.b32.xlu2 %v5924_v41, %s4719_s20 }
 0x321   :  { %1928 = vrot.lane.b32.xlu1 %v5926_v5, %s4719_s20 }
 0x322   :  { %v5934_v27 = vpop.permute.xlu2 %1736  ;;  %1932 = vrot.lane.b32.xlu0 %v5928_v1, %s4719_s20 }
 0x323   :  { %8801 = vst [vmem:[#allocation201_spill] sm:$0xff] %v5934_v27  ;;  %v5938_v32 = vpop.permute.xlu1 %1716 }
 0x324   :  { %8802 = vst [vmem:[#allocation202_spill] sm:$0xff] %v5938_v32  ;;  %v5940_v25 = vpop.permute.xlu0 %1720 }
 0x325   :  { %8803 = vst [vmem:[#allocation203_spill] sm:$0xff] %v5940_v25 }
 0x328   :  { %1936 = vrot.lane.b32.xlu2 %v5942_v4, %s4719_s20 }
 0x329   :  { %1934 = vrot.lane.b32.xlu1 %v5944_v37, %s4719_s20 }
 0x32a   :  { %v5952_v27 = vpop.permute.xlu2 %1742  ;;  %1938 = vrot.lane.b32.xlu0 %v5946_v52, %s4719_s20 }
 0x32b   :  { %8804 = vst [vmem:[#allocation204_spill] sm:$0xff] %v5952_v27  ;;  %v5956_v32 = vpop.permute.xlu1 %1722 }
 0x32c   :  { %8805 = vst [vmem:[#allocation205_spill] sm:$0xff] %v5956_v32  ;;  %v5958_v25 = vpop.permute.xlu0 %1726  ;;  %v590_v32 = vld [vmem:[#allocation2 + $0xb2] sm:$0xff] }
 0x32d   :  { %8806 = vst [vmem:[#allocation206_spill] sm:$0xff] %v5958_v25  ;;  %v591_v25 = vld [vmem:[#allocation2 + $0xc2] sm:$0xff] }
 0x330   :  { %1942 = vrot.lane.b32.xlu2 %v587_v56, %s4719_s20 }
 0x331   :  { %1940 = vrot.lane.b32.xlu1 %v5960_v36, %s4719_s20 }
 0x332   :  { %v5965_v34 = vpop.permute.xlu2 %1748  ;;  %1944 = vrot.lane.b32.xlu0 %v588_v49, %s4719_s20  ;;  %v593_v49 = vld [vmem:[#allocation2 + $0xda] sm:$0xff] }
 0x333   :  { %8807 = vst [vmem:[#allocation207_spill] sm:$0xff] %v5965_v34  ;;  %v5968_v27 = vpop.permute.xlu1 %1728 }
 0x334   :  { %8808 = vst [vmem:[#allocation208_spill] sm:$0xff] %v5968_v27  ;;  %v5970_v50 = vpop.permute.xlu0 %1732  ;;  %v594_v27 = vld [vmem:[#allocation2 + $0xe2] sm:$0xff] }
 0x335   :  { %8809 = vst [vmem:[#allocation209_spill] sm:$0xff] %v5970_v50 }
 0x338   :  { %1948 = vrot.lane.b32.xlu2 %v590_v32, %s4719_s20 }
 0x339   :  { %1946 = vrot.lane.b32.xlu1 %v589_v44, %s4719_s20 }
 0x33a   :  { %v5974_v38 = vpop.permute.xlu2 %1754  ;;  %1950 = vrot.lane.b32.xlu0 %v591_v25, %s4719_s20  ;;  %v5990_v25 = vld [vmem:[#allocation2 + $0xfa] sm:$0xff] }
 0x33b   :  { %8810 = vst [vmem:[#allocation210_spill] sm:$0xff] %v5974_v38  ;;  %v5977_v56 = vpop.permute.xlu1 %1734  ;;  %v5992_v38 = vld [vmem:[#allocation2 + $0xf2] sm:$0xff] }
 0x33c   :  { %8811 = vst [vmem:[#allocation211_spill] sm:$0xff] %v5977_v56  ;;  %v5979_v34 = vpop.permute.xlu0 %1738  ;;  %v602_v56 = vld [vmem:[#allocation2 + $0x142] sm:$0xff] }
 0x33d   :  { %8812 = vst [vmem:[#allocation212_spill] sm:$0xff] %v5979_v34  ;;  %v5994_v34 = vld [vmem:[#allocation2 + $0x10a] sm:$0xff] }
 0x340   :  { %1954 = vrot.lane.b32.xlu2 %v593_v49, %s4719_s20 }
 0x341   :  { %1952 = vrot.lane.b32.xlu1 %v592_v20, %s4719_s20 }
 0x342   :  { %v5983_v50 = vpop.permute.xlu2 %1760  ;;  %1956 = vrot.lane.b32.xlu0 %v594_v27, %s4719_s20 }
 0x343   :  { %8813 = vst [vmem:[#allocation213_spill] sm:$0xff] %v5983_v50  ;;  %v5986_v44 = vpop.permute.xlu1 %1740  ;;  %v6008_v50 = vld [vmem:[#allocation2 + $0x122] sm:$0xff] }
 0x344   :  { %8814 = vst [vmem:[#allocation214_spill] sm:$0xff] %v5986_v44  ;;  %v5988_v32 = vpop.permute.xlu0 %1744  ;;  %v6012_v44 = vld [vmem:[#allocation2 + $0x12a] sm:$0xff] }
 0x345   :  { %8815 = vst [vmem:[#allocation215_spill] sm:$0xff] %v5988_v32  ;;  %v6010_v32 = vld [vmem:[#allocation2 + $0x112] sm:$0xff] }
 0x348   :  { %1960 = vrot.lane.b32.xlu2 %v5990_v25, %s4719_s20 }
 0x349   :  { %1958 = vrot.lane.b32.xlu1 %v5992_v38, %s4719_s20 }
 0x34a   :  { %v6000_v20 = vpop.permute.xlu2 %1766  ;;  %1962 = vrot.lane.b32.xlu0 %v5994_v34, %s4719_s20 }
 0x34b   :  { %8816 = vst [vmem:[#allocation216_spill] sm:$0xff] %v6000_v20  ;;  %v6004_v27 = vpop.permute.xlu1 %1746 }
 0x34c   :  { %8817 = vst [vmem:[#allocation217_spill] sm:$0xff] %v6004_v27  ;;  %v6006_v49 = vpop.permute.xlu0 %1750 }
 0x34d   :  { %8818 = vst [vmem:[#allocation218_spill] sm:$0xff] %v6006_v49 }
 0x350   :  { %1966 = vrot.lane.b32.xlu2 %v6008_v50, %s4719_s20 }
 0x351   :  { %1964 = vrot.lane.b32.xlu1 %v6010_v32, %s4719_s20 }
 0x352   :  { %v6018_v20 = vpop.permute.xlu2 %1772  ;;  %1968 = vrot.lane.b32.xlu0 %v6012_v44, %s4719_s20 }
 0x353   :  { %8819 = vst [vmem:[#allocation219_spill] sm:$0xff] %v6018_v20  ;;  %v6022_v27 = vpop.permute.xlu1 %1752 }
 0x354   :  { %8820 = vst [vmem:[#allocation220_spill] sm:$0xff] %v6022_v27  ;;  %v6024_v49 = vpop.permute.xlu0 %1756  ;;  %v606_v27 = vld [vmem:[#allocation2 + $0x172] sm:$0xff] }
 0x355   :  { %8821 = vst [vmem:[#allocation221_spill] sm:$0xff] %v6024_v49 }
 0x358   :  { %1972 = vrot.lane.b32.xlu2 %v602_v56, %s4719_s20 }
 0x359   :  { %1970 = vrot.lane.b32.xlu1 %v601_v26, %s4719_s20 }
 0x35a   :  { %v6028_v22 = vpop.permute.xlu2 %1778  ;;  %1974 = vrot.lane.b32.xlu0 %v603_v21, %s4719_s20  ;;  %v608_v21 = vld [vmem:[#allocation2 + $0x18a] sm:$0xff] }
 0x35b   :  { %8822 = vst [vmem:[#allocation222_spill] sm:$0xff] %v6028_v22  ;;  %v6031_v47 = vpop.permute.xlu1 %1758  ;;  %v607_v22 = vld [vmem:[#allocation2 + $0x182] sm:$0xff] }
 0x35c   :  { %8823 = vst [vmem:[#allocation223_spill] sm:$0xff] %v6031_v47  ;;  %v6033_v20 = vpop.permute.xlu0 %1762  ;;  %v609_v47 = vld [vmem:[#allocation2 + $0x1ca] sm:$0xff] }
 0x35d   :  { %8824 = vst [vmem:[#allocation224_spill] sm:$0xff] %v6033_v20 }
 0x360   :  { %1978 = vrot.lane.b32.xlu2 %v605_v31, %s4719_s20 }
 0x361   :  { %1976 = vrot.lane.b32.xlu1 %v604_v60, %s4719_s20 }
 0x362   :  { %v6037_v49 = vpop.permute.xlu2 %1784  ;;  %1980 = vrot.lane.b32.xlu0 %v606_v27, %s4719_s20  ;;  %v6053_v27 = vld [vmem:[#allocation2 + $0x1e2] sm:$0xff] }
 0x363   :  { %8825 = vst [vmem:[#allocation225_spill] sm:$0xff] %v6037_v49  ;;  %v6040_v26 = vpop.permute.xlu1 %1764  ;;  %v610_v49 = vld [vmem:[#allocation2 + $0x1d2] sm:$0xff] }
 0x364   :  { %8826 = vst [vmem:[#allocation226_spill] sm:$0xff] %v6040_v26  ;;  %v6042_v56 = vpop.permute.xlu0 %1768  ;;  %v6055_v26 = vld [vmem:[#allocation2 + $0x1ea] sm:$0xff] }
 0x365   :  { %8827 = vst [vmem:[#allocation227_spill] sm:$0xff] %v6042_v56  ;;  %v617_v56 = vld [vmem:[#allocation2 + $0x22a] sm:$0xff] }
 0x368   :  { %1984 = vrot.lane.b32.xlu2 %v608_v21, %s4719_s20 }
 0x369   :  { %1982 = vrot.lane.b32.xlu1 %v607_v22, %s4719_s20 }
 0x36a   :  { %v6046_v20 = vpop.permute.xlu2 %1790  ;;  %1986 = vrot.lane.b32.xlu0 %v609_v47, %s4719_s20 }
 0x36b   :  { %8828 = vst [vmem:[#allocation228_spill] sm:$0xff] %v6046_v20  ;;  %v6049_v60 = vpop.permute.xlu1 %1770  ;;  %v6068_v20 = vld [vmem:[#allocation2 + $0x202] sm:$0xff] }
 0x36c   :  { %8829 = vst [vmem:[#allocation229_spill] sm:$0xff] %v6049_v60  ;;  %v6051_v31 = vpop.permute.xlu0 %1774  ;;  %v6072_v60 = vld [vmem:[#allocation2 + $0x212] sm:$0xff] }
 0x36d   :  { %8830 = vst [vmem:[#allocation230_spill] sm:$0xff] %v6051_v31  ;;  %v6070_v31 = vld [vmem:[#allocation2 + $0x1fa] sm:$0xff] }
 0x370   :  { %1990 = vrot.lane.b32.xlu2 %v6053_v27, %s4719_s20 }
 0x371   :  { %1988 = vrot.lane.b32.xlu1 %v610_v49, %s4719_s20 }
 0x372   :  { %v6060_v21 = vpop.permute.xlu2 %1924  ;;  %1992 = vrot.lane.b32.xlu0 %v6055_v26, %s4719_s20 }
 0x373   :  { %v6064_v47 = vpop.permute.xlu1 %1776 }
 0x374   :  { %8831 = vst [vmem:[#allocation231_spill] sm:$0xff] %v6064_v47  ;;  %v6066_v22 = vpop.permute.xlu0 %1780 }
 0x375   :  { %8832 = vst [vmem:[#allocation232_spill] sm:$0xff] %v6066_v22 }
 0x378   :  { %1996 = vrot.lane.b32.xlu2 %v6068_v20, %s4719_s20 }
 0x379   :  { %1994 = vrot.lane.b32.xlu1 %v6070_v31, %s4719_s20 }
 0x37a   :  { %v6078_v49 = vpop.permute.xlu2 %1930  ;;  %1998 = vrot.lane.b32.xlu0 %v6072_v60, %s4719_s20 }
 0x37b   :  { %v6082_v47 = vpop.permute.xlu1 %1782 }
 0x37c   :  { %8833 = vst [vmem:[#allocation233_spill] sm:$0xff] %v6082_v47  ;;  %v6084_v22 = vpop.permute.xlu0 %1786  ;;  %v621_v47 = vld [vmem:[#allocation2 + $0x25a] sm:$0xff] }
 0x37d   :  { %8834 = vst [vmem:[#allocation234_spill] sm:$0xff] %v6084_v22 }
 0x380   :  { %2002 = vrot.lane.b32.xlu2 %v617_v56, %s4719_s20 }
 0x381   :  { %2000 = vrot.lane.b32.xlu1 %v616_v30, %s4719_s20 }
 0x382   :  { %v6088_v48 = vpop.permute.xlu2 %1936  ;;  %2004 = vrot.lane.b32.xlu0 %v618_v0, %s4719_s20  ;;  %v623_v0 = vld [vmem:[#allocation2 + $0x272] sm:$0xff] }
 0x383   :  { %8835 = vst [vmem:[#allocation235_spill] sm:$0xff] %v6088_v48  ;;  %v6091_v15 = vpop.permute.xlu1 %1788  ;;  %v622_v48 = vld [vmem:[#allocation2 + $0x262] sm:$0xff] }
 0x384   :  { %8836 = vst [vmem:[#allocation236_spill] sm:$0xff] %v6091_v15  ;;  %v6093_v42 = vpop.permute.xlu0 %1792  ;;  %v624_v15 = vld [vmem:[#allocation2 + $0x27a] sm:$0xff] }
 0x385   :  { %8837 = vst [vmem:[#allocation237_spill] sm:$0xff] %v6093_v42 }
 0x388   :  { %2008 = vrot.lane.b32.xlu2 %v620_v9, %s4719_s20 }
 0x389   :  { %2006 = vrot.lane.b32.xlu1 %v619_v51, %s4719_s20 }
 0x38a   :  { %v6097_v22 = vpop.permute.xlu2 %1942  ;;  %2010 = vrot.lane.b32.xlu0 %v621_v47, %s4719_s20  ;;  %v626_v47 = vld [vmem:[#allocation2 + $0x292] sm:$0xff] }
 0x38b   :  { %8838 = vst [vmem:[#allocation238_spill] sm:$0xff] %v6097_v22  ;;  %v6100_v30 = vpop.permute.xlu1 %1922  ;;  %v625_v22 = vld [vmem:[#allocation2 + $0x28a] sm:$0xff] }
 0x38c   :  { %v6102_v56 = vpop.permute.xlu0 %1926 }
 0x390   :  { %2014 = vrot.lane.b32.xlu2 %v623_v0, %s4719_s20  ;;  %v629_v0 = vld [vmem:[#allocation2 + $0x2ba] sm:$0xff] }
 0x391   :  { %2012 = vrot.lane.b32.xlu1 %v622_v48, %s4719_s20 }
 0x392   :  { %v6106_v42 = vpop.permute.xlu2 %1948  ;;  %2016 = vrot.lane.b32.xlu0 %v624_v15, %s4719_s20 }
 0x393   :  { %8839 = vst [vmem:[#allocation239_spill] sm:$0xff] %v6106_v42  ;;  %v6109_v51 = vpop.permute.xlu1 %1928  ;;  %v6125_v42 = vld [vmem:[#allocation2 + $0x2aa] sm:$0xff] }
 0x394   :  { %v6111_v9 = vpop.permute.xlu0 %1932  ;;  %8843 = vst [vmem:[#allocation243_spill] sm:$0xff] %v6125_v42 }
 0x395   :  { %8840 = vst [vmem:[#allocation240_spill] sm:$0xff] %v6111_v9  ;;  %v630_v9 = vld [vmem:[#allocation2 + $0x2c2] sm:$0xff] }
 0x398   :  { %2020 = vrot.lane.b32.xlu2 %v626_v47, %s4719_s20 }
 0x399   :  { %2018 = vrot.lane.b32.xlu1 %v625_v22, %s4719_s20 }
 0x39a   :  { %v6117_v23 = vpop.permute.xlu2 %1954  ;;  %2022 = vrot.lane.b32.xlu0 %v6113_v54, %s4719_s20 }
 0x39b   :  { %v6121_v48 = vpop.permute.xlu1 %1934 }
 0x39c   :  { %8841 = vst [vmem:[#allocation241_spill] sm:$0xff] %v6121_v48  ;;  %v6123_v15 = vpop.permute.xlu0 %1938  ;;  %v632_v48 = vld [vmem:[#allocation2 + $0x2da] sm:$0xff] }
 0x39d   :  { %8842 = vst [vmem:[#allocation242_spill] sm:$0xff] %v6123_v15  ;;  %v633_v15 = vld [vmem:[#allocation2 + $0x2ea] sm:$0xff] }
 0x3a0   :  { %2026 = vrot.lane.b32.xlu2 %v629_v0, %s4719_s20 }
 0x3a1   :  { %2024 = vrot.lane.b32.xlu1 %v6125_v42, %s4719_s20  ;;  %v634_v42 = vld [vmem:[#allocation2 + $0x2f2] sm:$0xff] }
 0x3a2   :  { %v6130_v47 = vpop.permute.xlu2 %1960  ;;  %2028 = vrot.lane.b32.xlu0 %v630_v9, %s4719_s20  ;;  %v635_v9 = vld [vmem:[#allocation2 + $0x302] sm:$0xff] }
 0x3a3   :  { %8844 = vst [vmem:[#allocation244_spill] sm:$0xff] %v6130_v47  ;;  %v6133_v22 = vpop.permute.xlu1 %1940 }
 0x3a4   :  { %8845 = vst [vmem:[#allocation245_spill] sm:$0xff] %v6133_v22  ;;  %v6135_v24 = vpop.permute.xlu0 %1944  ;;  %v636_v22 = vld [vmem:[#allocation2 + $0x30a] sm:$0xff] }
 0x3a5   :  { %8846 = vst [vmem:[#allocation246_spill] sm:$0xff] %v6135_v24 }
 0x3a8   :  { %2032 = vrot.lane.b32.xlu2 %v632_v48, %s4719_s20 }
 0x3a9   :  { %2030 = vrot.lane.b32.xlu1 %v631_v10, %s4719_s20 }
 0x3aa   :  { %v6139_v28 = vpop.permute.xlu2 %1966  ;;  %2034 = vrot.lane.b32.xlu0 %v633_v15, %s4719_s20  ;;  %v638_v15 = vld [vmem:[#allocation2 + $0x322] sm:$0xff] }
 0x3ab   :  { %8847 = vst [vmem:[#allocation247_spill] sm:$0xff] %v6139_v28  ;;  %v6142_v0 = vpop.permute.xlu1 %1946  ;;  %v637_v28 = vld [vmem:[#allocation2 + $0x31a] sm:$0xff] }
 0x3ac   :  { %8848 = vst [vmem:[#allocation248_spill] sm:$0xff] %v6142_v0  ;;  %v6144_v47 = vpop.permute.xlu0 %1950  ;;  %v639_v0 = vld [vmem:[#allocation2 + $0x332] sm:$0xff] }
 0x3ad   :  { %8849 = vst [vmem:[#allocation249_spill] sm:$0xff] %v6144_v47 }
 0x3b0   :  { %2038 = vrot.lane.b32.xlu2 %v635_v9, %s4719_s20 }
 0x3b1   :  { %2036 = vrot.lane.b32.xlu1 %v634_v42, %s4719_s20 }
 0x3b2   :  { %v6148_v24 = vpop.permute.xlu2 %1972  ;;  %2040 = vrot.lane.b32.xlu0 %v636_v22, %s4719_s20  ;;  %v642_v22 = vld [vmem:[#allocation2 + $0x30] sm:$0xff] }
 0x3b3   :  { %8850 = vst [vmem:[#allocation250_spill] sm:$0xff] %v6148_v24  ;;  %v6151_v10 = vpop.permute.xlu1 %1952  ;;  %v640_v24 = vld [vmem:[#allocation2 + $0x33a] sm:$0xff] }
 0x3b4   :  { %8851 = vst [vmem:[#allocation251_spill] sm:$0xff] %v6151_v10  ;;  %v6153_v48 = vpop.permute.xlu0 %1956  ;;  %v643_v10 = vld [vmem:[#allocation2 + $0x38] sm:$0xff] }
 0x3b5   :  { %8852 = vst [vmem:[#allocation252_spill] sm:$0xff] %v6153_v48 }
 0x3b8   :  { %2044 = vrot.lane.b32.xlu2 %v638_v15, %s4719_s20 }
 0x3b9   :  { %2042 = vrot.lane.b32.xlu1 %v637_v28, %s4719_s20 }
 0x3ba   :  { %v6157_v47 = vpop.permute.xlu2 %1978  ;;  %2046 = vrot.lane.b32.xlu0 %v639_v0, %s4719_s20  ;;  %v645_v0 = vld [vmem:[#allocation2 + $0x50] sm:$0xff] }
 0x3bb   :  { %8853 = vst [vmem:[#allocation253_spill] sm:$0xff] %v6157_v47  ;;  %v6160_v42 = vpop.permute.xlu1 %1958  ;;  %v644_v47 = vld [vmem:[#allocation2 + $0x48] sm:$0xff] }
 0x3bc   :  { %8854 = vst [vmem:[#allocation254_spill] sm:$0xff] %v6160_v42  ;;  %v6162_v9 = vpop.permute.xlu0 %1962  ;;  %v646_v42 = vld [vmem:[#allocation2 + $0x60] sm:$0xff] }
 0x3bd   :  { %8855 = vst [vmem:[#allocation255_spill] sm:$0xff] %v6162_v9 }
 0x3c0   :  { %2178 = vrot.lane.b32.xlu2 %v642_v22, %s4720_s21 }
 0x3c1   :  { %2048 = vrot.lane.b32.xlu1 %v640_v24, %s4719_s20 }
 0x3c2   :  { %v6166_v48 = vpop.permute.xlu2 %1984  ;;  %2180 = vrot.lane.b32.xlu0 %v643_v10, %s4720_s21  ;;  %v648_v10 = vld [vmem:[#allocation2 + $0x78] sm:$0xff] }
 0x3c3   :  { %8856 = vst [vmem:[#allocation256_spill] sm:$0xff] %v6166_v48  ;;  %v6169_v28 = vpop.permute.xlu1 %1964  ;;  %v647_v48 = vld [vmem:[#allocation2 + $0x68] sm:$0xff] }
 0x3c4   :  { %8857 = vst [vmem:[#allocation257_spill] sm:$0xff] %v6169_v28  ;;  %v6171_v15 = vpop.permute.xlu0 %1968  ;;  %v649_v28 = vld [vmem:[#allocation2 + $0x80] sm:$0xff] }
 0x3c5   :  { %8858 = vst [vmem:[#allocation258_spill] sm:$0xff] %v6171_v15 }
 0x3c8   :  { %2184 = vrot.lane.b32.xlu2 %v645_v0, %s4720_s21 }
 0x3c9   :  { %2182 = vrot.lane.b32.xlu1 %v644_v47, %s4720_s21 }
 0x3ca   :  { %v6175_v9 = vpop.permute.xlu2 %1990  ;;  %2186 = vrot.lane.b32.xlu0 %v646_v42, %s4720_s21  ;;  %v651_v42 = vld [vmem:[#allocation2 + $0x98] sm:$0xff] }
 0x3cb   :  { %8859 = vst [vmem:[#allocation259_spill] sm:$0xff] %v6175_v9  ;;  %v6178_v24 = vpop.permute.xlu1 %1970  ;;  %v650_v9 = vld [vmem:[#allocation2 + $0x90] sm:$0xff] }
 0x3cc   :  { %8860 = vst [vmem:[#allocation260_spill] sm:$0xff] %v6178_v24  ;;  %v6180_v22 = vpop.permute.xlu0 %1974  ;;  %v652_v24 = vld [vmem:[#allocation2 + $0xa8] sm:$0xff] }
 0x3cd   :  { %8861 = vst [vmem:[#allocation261_spill] sm:$0xff] %v6180_v22 }
 0x3d0   :  { %2190 = vrot.lane.b32.xlu2 %v648_v10, %s4720_s21 }
 0x3d1   :  { %2188 = vrot.lane.b32.xlu1 %v647_v48, %s4720_s21 }
 0x3d2   :  { %v6184_v15 = vpop.permute.xlu2 %1996  ;;  %2192 = vrot.lane.b32.xlu0 %v649_v28, %s4720_s21  ;;  %v654_v28 = vld [vmem:[#allocation2 + $0xc0] sm:$0xff] }
 0x3d3   :  { %8862 = vst [vmem:[#allocation262_spill] sm:$0xff] %v6184_v15  ;;  %v6187_v47 = vpop.permute.xlu1 %1976  ;;  %v653_v15 = vld [vmem:[#allocation2 + $0xb0] sm:$0xff] }
 0x3d4   :  { %8863 = vst [vmem:[#allocation263_spill] sm:$0xff] %v6187_v47  ;;  %v6189_v0 = vpop.permute.xlu0 %1980  ;;  %v655_v47 = vld [vmem:[#allocation2 + $0xc8] sm:$0xff] }
 0x3d5   :  { %8864 = vst [vmem:[#allocation264_spill] sm:$0xff] %v6189_v0 }
 0x3d8   :  { %2196 = vrot.lane.b32.xlu2 %v651_v42, %s4720_s21 }
 0x3d9   :  { %2194 = vrot.lane.b32.xlu1 %v650_v9, %s4720_s21 }
 0x3da   :  { %v6193_v22 = vpop.permute.xlu2 %2002  ;;  %2198 = vrot.lane.b32.xlu0 %v652_v24, %s4720_s21  ;;  %v657_v24 = vld [vmem:[#allocation2 + $0xe0] sm:$0xff] }
 0x3db   :  { %8865 = vst [vmem:[#allocation265_spill] sm:$0xff] %v6193_v22  ;;  %v6196_v48 = vpop.permute.xlu1 %1982  ;;  %v656_v22 = vld [vmem:[#allocation2 + $0xd8] sm:$0xff] }
 0x3dc   :  { %8866 = vst [vmem:[#allocation266_spill] sm:$0xff] %v6196_v48  ;;  %v6198_v10 = vpop.permute.xlu0 %1986  ;;  %v658_v48 = vld [vmem:[#allocation2 + $0xf0] sm:$0xff] }
 0x3dd   :  { %8867 = vst [vmem:[#allocation267_spill] sm:$0xff] %v6198_v10 }
 0x3e0   :  { %2202 = vrot.lane.b32.xlu2 %v654_v28, %s4720_s21 }
 0x3e1   :  { %2200 = vrot.lane.b32.xlu1 %v653_v15, %s4720_s21 }
 0x3e2   :  { %v6202_v0 = vpop.permute.xlu2 %2008  ;;  %2204 = vrot.lane.b32.xlu0 %v655_v47, %s4720_s21  ;;  %v660_v47 = vld [vmem:[#allocation2 + $0x108] sm:$0xff] }
 0x3e3   :  { %8868 = vst [vmem:[#allocation268_spill] sm:$0xff] %v6202_v0  ;;  %v6205_v9 = vpop.permute.xlu1 %1988  ;;  %v659_v0 = vld [vmem:[#allocation2 + $0xf8] sm:$0xff] }
 0x3e4   :  { %8869 = vst [vmem:[#allocation269_spill] sm:$0xff] %v6205_v9  ;;  %v6207_v42 = vpop.permute.xlu0 %1992  ;;  %v661_v9 = vld [vmem:[#allocation2 + $0x110] sm:$0xff] }
 0x3e5   :  { %8870 = vst [vmem:[#allocation270_spill] sm:$0xff] %v6207_v42 }
 0x3e8   :  { %2208 = vrot.lane.b32.xlu2 %v657_v24, %s4720_s21 }
 0x3e9   :  { %2206 = vrot.lane.b32.xlu1 %v656_v22, %s4720_s21 }
 0x3ea   :  { %v6211_v10 = vpop.permute.xlu2 %2014  ;;  %2210 = vrot.lane.b32.xlu0 %v658_v48, %s4720_s21  ;;  %v663_v48 = vld [vmem:[#allocation2 + $0x128] sm:$0xff] }
 0x3eb   :  { %8871 = vst [vmem:[#allocation271_spill] sm:$0xff] %v6211_v10  ;;  %v6214_v15 = vpop.permute.xlu1 %1994  ;;  %v662_v10 = vld [vmem:[#allocation2 + $0x120] sm:$0xff] }
 0x3ec   :  { %8872 = vst [vmem:[#allocation272_spill] sm:$0xff] %v6214_v15  ;;  %v6216_v28 = vpop.permute.xlu0 %1998  ;;  %v664_v15 = vld [vmem:[#allocation2 + $0x138] sm:$0xff] }
 0x3ed   :  { %8873 = vst [vmem:[#allocation273_spill] sm:$0xff] %v6216_v28 }
 0x3f0   :  { %2214 = vrot.lane.b32.xlu2 %v660_v47, %s4720_s21 }
 0x3f1   :  { %2212 = vrot.lane.b32.xlu1 %v659_v0, %s4720_s21 }
 0x3f2   :  { %v6220_v42 = vpop.permute.xlu2 %2020  ;;  %2216 = vrot.lane.b32.xlu0 %v661_v9, %s4720_s21  ;;  %v666_v9 = vld [vmem:[#allocation2 + $0x150] sm:$0xff] }
 0x3f3   :  { %8874 = vst [vmem:[#allocation274_spill] sm:$0xff] %v6220_v42  ;;  %v6223_v22 = vpop.permute.xlu1 %2000  ;;  %v665_v42 = vld [vmem:[#allocation2 + $0x140] sm:$0xff] }
 0x3f4   :  { %8875 = vst [vmem:[#allocation275_spill] sm:$0xff] %v6223_v22  ;;  %v6225_v24 = vpop.permute.xlu0 %2004  ;;  %v667_v22 = vld [vmem:[#allocation2 + $0x158] sm:$0xff] }
 0x3f5   :  { %8876 = vst [vmem:[#allocation276_spill] sm:$0xff] %v6225_v24 }
 0x3f8   :  { %2220 = vrot.lane.b32.xlu2 %v663_v48, %s4720_s21 }
 0x3f9   :  { %2218 = vrot.lane.b32.xlu1 %v662_v10, %s4720_s21 }
 0x3fa   :  { %v6229_v28 = vpop.permute.xlu2 %2026  ;;  %2222 = vrot.lane.b32.xlu0 %v664_v15, %s4720_s21  ;;  %v669_v15 = vld [vmem:[#allocation2 + $0x170] sm:$0xff] }
 0x3fb   :  { %8877 = vst [vmem:[#allocation277_spill] sm:$0xff] %v6229_v28  ;;  %v6232_v0 = vpop.permute.xlu1 %2006  ;;  %v668_v28 = vld [vmem:[#allocation2 + $0x168] sm:$0xff] }
 0x3fc   :  { %8878 = vst [vmem:[#allocation278_spill] sm:$0xff] %v6232_v0  ;;  %v6234_v47 = vpop.permute.xlu0 %2010  ;;  %v670_v0 = vld [vmem:[#allocation2 + $0x180] sm:$0xff] }
 0x3fd   :  { %8879 = vst [vmem:[#allocation279_spill] sm:$0xff] %v6234_v47 }
 0x400   :  { %2226 = vrot.lane.b32.xlu2 %v666_v9, %s4720_s21 }
 0x401   :  { %2224 = vrot.lane.b32.xlu1 %v665_v42, %s4720_s21 }
 0x402   :  { %v6238_v24 = vpop.permute.xlu2 %2032  ;;  %2228 = vrot.lane.b32.xlu0 %v667_v22, %s4720_s21  ;;  %v672_v22 = vld [vmem:[#allocation2 + $0x198] sm:$0xff] }
 0x403   :  { %8880 = vst [vmem:[#allocation280_spill] sm:$0xff] %v6238_v24  ;;  %v6241_v10 = vpop.permute.xlu1 %2012  ;;  %v671_v24 = vld [vmem:[#allocation2 + $0x188] sm:$0xff] }
 0x404   :  { %8881 = vst [vmem:[#allocation281_spill] sm:$0xff] %v6241_v10  ;;  %v6243_v48 = vpop.permute.xlu0 %2016  ;;  %v673_v10 = vld [vmem:[#allocation2 + $0x1a0] sm:$0xff] }
 0x405   :  { %8882 = vst [vmem:[#allocation282_spill] sm:$0xff] %v6243_v48 }
 0x408   :  { %2232 = vrot.lane.b32.xlu2 %v669_v15, %s4720_s21 }
 0x409   :  { %2230 = vrot.lane.b32.xlu1 %v668_v28, %s4720_s21 }
 0x40a   :  { %v6247_v47 = vpop.permute.xlu2 %2038  ;;  %2234 = vrot.lane.b32.xlu0 %v670_v0, %s4720_s21  ;;  %v675_v0 = vld [vmem:[#allocation2 + $0x1e8] sm:$0xff] }
 0x40b   :  { %8883 = vst [vmem:[#allocation283_spill] sm:$0xff] %v6247_v47  ;;  %v6250_v42 = vpop.permute.xlu1 %2018  ;;  %v674_v47 = vld [vmem:[#allocation2 + $0x1e0] sm:$0xff] }
 0x40c   :  { %8884 = vst [vmem:[#allocation284_spill] sm:$0xff] %v6250_v42  ;;  %v6252_v9 = vpop.permute.xlu0 %2022  ;;  %v676_v42 = vld [vmem:[#allocation2 + $0x1f8] sm:$0xff] }
 0x40d   :  { %8885 = vst [vmem:[#allocation285_spill] sm:$0xff] %v6252_v9 }
 0x410   :  { %2238 = vrot.lane.b32.xlu2 %v672_v22, %s4720_s21 }
 0x411   :  { %2236 = vrot.lane.b32.xlu1 %v671_v24, %s4720_s21 }
 0x412   :  { %v6256_v48 = vpop.permute.xlu2 %2044  ;;  %2240 = vrot.lane.b32.xlu0 %v673_v10, %s4720_s21  ;;  %v678_v10 = vld [vmem:[#allocation2 + $0x210] sm:$0xff] }
 0x413   :  { %8886 = vst [vmem:[#allocation286_spill] sm:$0xff] %v6256_v48  ;;  %v6259_v28 = vpop.permute.xlu1 %2024  ;;  %v677_v48 = vld [vmem:[#allocation2 + $0x200] sm:$0xff] }
 0x414   :  { %8887 = vst [vmem:[#allocation287_spill] sm:$0xff] %v6259_v28  ;;  %v6261_v15 = vpop.permute.xlu0 %2028  ;;  %v679_v28 = vld [vmem:[#allocation2 + $0x218] sm:$0xff] }
 0x415   :  { %8888 = vst [vmem:[#allocation288_spill] sm:$0xff] %v6261_v15 }
 0x418   :  { %2244 = vrot.lane.b32.xlu2 %v675_v0, %s4720_s21 }
 0x419   :  { %2242 = vrot.lane.b32.xlu1 %v674_v47, %s4720_s21 }
 0x41a   :  { %v6265_v9 = vpop.permute.xlu2 %2178  ;;  %2246 = vrot.lane.b32.xlu0 %v676_v42, %s4720_s21  ;;  %v681_v42 = vld [vmem:[#allocation2 + $0x230] sm:$0xff] }
 0x41b   :  { %v6268_v24 = vpop.permute.xlu1 %2030 }
 0x41c   :  { %8889 = vst [vmem:[#allocation289_spill] sm:$0xff] %v6268_v24  ;;  %v6270_v22 = vpop.permute.xlu0 %2034  ;;  %v682_v24 = vld [vmem:[#allocation2 + $0x240] sm:$0xff] }
 0x41d   :  { %8890 = vst [vmem:[#allocation290_spill] sm:$0xff] %v6270_v22 }
 0x420   :  { %2250 = vrot.lane.b32.xlu2 %v678_v10, %s4720_s21 }
 0x421   :  { %2248 = vrot.lane.b32.xlu1 %v677_v48, %s4720_s21 }
 0x422   :  { %v6274_v15 = vpop.permute.xlu2 %2184  ;;  %2252 = vrot.lane.b32.xlu0 %v679_v28, %s4720_s21  ;;  %v684_v28 = vld [vmem:[#allocation2 + $0x258] sm:$0xff] }
 0x423   :  { %v6277_v47 = vpop.permute.xlu1 %2036 }
 0x424   :  { %8891 = vst [vmem:[#allocation291_spill] sm:$0xff] %v6277_v47  ;;  %v6279_v0 = vpop.permute.xlu0 %2040  ;;  %v706_v47 = vld [vmem:[#allocation2 + $0x31] sm:$0xff] }
 0x425   :  { %8892 = vst [vmem:[#allocation292_spill] sm:$0xff] %v6279_v0 }
 0x428   :  { %2256 = vrot.lane.b32.xlu2 %v681_v42, %s4720_s21 }
 0x429   :  { %2254 = vrot.lane.b32.xlu1 %v680_v61, %s4720_s21 }
 0x42a   :  { %v6283_v22 = vpop.permute.xlu2 %2190  ;;  %2258 = vrot.lane.b32.xlu0 %v682_v24, %s4720_s21  ;;  %v707_v24 = vld [vmem:[#allocation2 + $0x39] sm:$0xff] }
 0x42b   :  { %v6286_v48 = vpop.permute.xlu1 %2042 }
 0x42c   :  { %8893 = vst [vmem:[#allocation293_spill] sm:$0xff] %v6286_v48  ;;  %v6288_v10 = vpop.permute.xlu0 %2046 }
 0x42d   :  { %8894 = vst [vmem:[#allocation294_spill] sm:$0xff] %v6288_v10 }
 0x430   :  { %2262 = vrot.lane.b32.xlu2 %v684_v28, %s4720_s21 }
 0x431   :  { %2260 = vrot.lane.b32.xlu1 %v683_v7, %s4720_s21 }
 0x432   :  { %v6292_v0 = vpop.permute.xlu2 %2196  ;;  %2434 = vrot.lane.b32.xlu0 %v706_v47, %s4721_s22  ;;  %v708_v47 = vld [vmem:[#allocation2 + $0x49] sm:$0xff] }
 0x433   :  { %8895 = vst [vmem:[#allocation295_spill] sm:$0xff] %v6292_v0  ;;  %v6295_v61 = vpop.permute.xlu1 %2048 }
 0x434   :  { %8896 = vst [vmem:[#allocation296_spill] sm:$0xff] %v6295_v61  ;;  %v6297_v42 = vpop.permute.xlu0 %2180  ;;  %v685_v61 = vld [vmem:[#allocation2 + $0x260] sm:$0xff] }
 0x438   :  { %2436 = vrot.lane.b32.xlu2 %v707_v24, %s4721_s22 }
 0x439   :  { %2690 = vrot.lane.b32.xlu1 %v5912_v55, %s4722_s23 }
 0x43a   :  { %v6302_v10 = vpop.permute.xlu2 %2202  ;;  %2692 = vrot.lane.b32.xlu0 %v5926_v5, %s4722_s23  ;;  %v709_v5 = vld [vmem:[#allocation2 + $0x51] sm:$0xff] }
 0x43b   :  { %8897 = vst [vmem:[#allocation297_spill] sm:$0xff] %v6302_v10  ;;  %v6306_v7 = vpop.permute.xlu1 %2182  ;;  %v686_v10 = vld [vmem:[#allocation2 + $0x270] sm:$0xff] }
 0x43c   :  { %v6308_v28 = vpop.permute.xlu0 %2186 }
 0x440   :  { %2438 = vrot.lane.b32.xlu2 %v708_v47, %s4721_s22 }
 0x441   :  { %2264 = vrot.lane.b32.xlu1 %v685_v61, %s4720_s21 }
 0x442   :  { %v6312_v24 = vpop.permute.xlu2 %2208  ;;  %2694 = vrot.lane.b32.xlu0 %v5924_v41, %s4722_s23  ;;  %v722_v41 = vld [vmem:[#allocation2 + $0xf1] sm:$0xff] }
 0x443   :  { %8898 = vst [vmem:[#allocation298_spill] sm:$0xff] %v6312_v24  ;;  %v6316_v55 = vpop.permute.xlu1 %2188  ;;  %v710_v24 = vld [vmem:[#allocation2 + $0x61] sm:$0xff] }
 0x444   :  { %v6318_v48 = vpop.permute.xlu0 %2192 }
 0x445   :  { %8899 = vst [vmem:[#allocation299_spill] sm:$0xff] %v6318_v48 }
 0x448   :  { %2440 = vrot.lane.b32.xlu2 %v709_v5, %s4721_s22 }
 0x449   :  { %2266 = vrot.lane.b32.xlu1 %v686_v10, %s4720_s21 }
 0x44a   :  { %v6322_v0 = vpop.permute.xlu2 %2214  ;;  %2696 = vrot.lane.b32.xlu0 %v5928_v1, %s4722_s23  ;;  %v711_v1 = vld [vmem:[#allocation2 + $0x69] sm:$0xff] }
 0x44b   :  { %8900 = vst [vmem:[#allocation300_spill] sm:$0xff] %v6322_v0  ;;  %v6326_v61 = vpop.permute.xlu1 %2194  ;;  %v723_v0 = vld [vmem:[#allocation2 + $0xf9] sm:$0xff] }
 0x44c   :  { %v6328_v47 = vpop.permute.xlu0 %2198 }
 0x44d   :  { %8901 = vst [vmem:[#allocation301_spill] sm:$0xff] %v6328_v47 }
 0x450   :  { %2466 = vrot.lane.b32.xlu2 %v722_v41, %s4721_s22 }
 0x451   :  { %2442 = vrot.lane.b32.xlu1 %v710_v24, %s4721_s22 }
 0x452   :  { %v6332_v48 = vpop.permute.xlu2 %2220  ;;  %2698 = vrot.lane.b32.xlu0 %v5944_v37, %s4722_s23  ;;  %v712_v37 = vld [vmem:[#allocation2 + $0x79] sm:$0xff] }
 0x453   :  { %v6336_v10 = vpop.permute.xlu1 %2200 }
 0x454   :  { %8902 = vst [vmem:[#allocation302_spill] sm:$0xff] %v6336_v10  ;;  %v6338_v5 = vpop.permute.xlu0 %2204 }
 0x455   :  { %8903 = vst [vmem:[#allocation303_spill] sm:$0xff] %v6338_v5 }
 0x458   :  { %2444 = vrot.lane.b32.xlu2 %v711_v1, %s4721_s22 }
 0x459   :  { %2722 = vrot.lane.b32.xlu1 %v5992_v38, %s4722_s23 }
 0x45a   :  { %v6343_v47 = vpop.permute.xlu2 %2226  ;;  %2468 = vrot.lane.b32.xlu0 %v723_v0, %s4721_s22  ;;  %v724_v0 = vld [vmem:[#allocation2 + $0x109] sm:$0xff] }
 0x45b   :  { %8904 = vst [vmem:[#allocation304_spill] sm:$0xff] %v6343_v47  ;;  %v6346_v24 = vpop.permute.xlu1 %2206  ;;  %v714_v47 = vld [vmem:[#allocation2 + $0x91] sm:$0xff] }
 0x45c   :  { %8905 = vst [vmem:[#allocation305_spill] sm:$0xff] %v6346_v24  ;;  %v6348_v41 = vpop.permute.xlu0 %2210 }
 0x460   :  { %2724 = vrot.lane.b32.xlu2 %v5990_v25, %s4722_s23 }
 0x461   :  { %2700 = vrot.lane.b32.xlu1 %v5942_v4, %s4722_s23 }
 0x462   :  { %v6354_v5 = vpop.permute.xlu2 %2232  ;;  %2446 = vrot.lane.b32.xlu0 %v712_v37, %s4721_s22  ;;  %v725_v37 = vld [vmem:[#allocation2 + $0x111] sm:$0xff] }
 0x463   :  { %8906 = vst [vmem:[#allocation306_spill] sm:$0xff] %v6354_v5  ;;  %v6357_v38 = vpop.permute.xlu1 %2212  ;;  %v713_v5 = vld [vmem:[#allocation2 + $0x81] sm:$0xff] }
 0x464   :  { %v6359_v1 = vpop.permute.xlu0 %2216 }
 0x468   :  { %2702 = vrot.lane.b32.xlu2 %v5946_v52, %s4722_s23 }
 0x469   :  { %2470 = vrot.lane.b32.xlu1 %v724_v0, %s4721_s22 }
 0x46a   :  { %v6364_v24 = vpop.permute.xlu2 %2238  ;;  %2726 = vrot.lane.b32.xlu0 %v5994_v34, %s4722_s23  ;;  %v738_v34 = vld [vmem:[#allocation2 + $0x1e1] sm:$0xff] }
 0x46b   :  { %8907 = vst [vmem:[#allocation307_spill] sm:$0xff] %v6364_v24  ;;  %v6368_v4 = vpop.permute.xlu1 %2218 }
 0x46c   :  { %v6370_v25 = vpop.permute.xlu0 %2222 }
 0x470   :  { %2472 = vrot.lane.b32.xlu2 %v725_v37, %s4721_s22 }
 0x471   :  { %2448 = vrot.lane.b32.xlu1 %v713_v5, %s4721_s22 }
 0x472   :  { %v6374_v10 = vpop.permute.xlu2 %2244  ;;  %2704 = vrot.lane.b32.xlu0 %v5960_v36, %s4722_s23  ;;  %v726_v36 = vld [vmem:[#allocation2 + $0x121] sm:$0xff] }
 0x473   :  { %v6378_v52 = vpop.permute.xlu1 %2224 }
 0x474   :  { %8908 = vst [vmem:[#allocation308_spill] sm:$0xff] %v6378_v52  ;;  %v6380_v0 = vpop.permute.xlu0 %2228  ;;  %v778_v52 = vld [vmem:[#allocation2 + $0x92] sm:$0xff] }
 0x475   :  { %8909 = vst [vmem:[#allocation309_spill] sm:$0xff] %v6380_v0 }
 0x478   :  { %2498 = vrot.lane.b32.xlu2 %v738_v34, %s4721_s22 }
 0x479   :  { %2728 = vrot.lane.b32.xlu1 %v6010_v32, %s4722_s23 }
 0x47a   :  { %v6385_v24 = vpop.permute.xlu2 %2250  ;;  %2754 = vrot.lane.b32.xlu0 %v6053_v27, %s4722_s23  ;;  %v3405_v27 = vld [vmem:[%s8579_s1 + $0x20] sm:$0xf] }
 0x47b   :  { %8910 = vst [vmem:[#allocation310_spill] sm:$0xff] %v6385_v24  ;;  %v6389_v5 = vpop.permute.xlu1 %2230  ;;  %4535 = vmatpush.msk.msra.mxu0 %vm3599_vm2, %v3405_v27  ;;  %4600 = vmatpush.msk.msra.mxu1 %vm3599_vm2, %v3405_v27  ;;  %v780_v24 = vld [vmem:[#allocation2 + $0xaa] sm:$0xff] }
 0x47c   :  { %8911 = vst [vmem:[#allocation311_spill] sm:$0xff] %v6389_v5  ;;  %v6391_v37 = vpop.permute.xlu0 %2234  ;;  %4601 = vmatpush.msk.msra.mxu2 %vm3599_vm2, %v3405_v27  ;;  %4602 = vmatpush.msk.msra.mxu3 %vm3599_vm2, %v3405_v27 }
 0x47d   :  { %8912 = vst [vmem:[#allocation312_spill] sm:$0xff] %v6391_v37  ;;  %v779_v37 = vld [vmem:[#allocation2 + $0x9a] sm:$0xff] }
 0x480   :  { %2474 = vrot.lane.b32.xlu2 %v726_v36, %s4721_s22  ;;  %v3404_v36 = vld [vmem:[%s8579_s1 + $0x18] sm:$0xff] }
 0x481   :  { %2450 = vrot.lane.b32.xlu1 %v714_v47, %s4721_s22  ;;  %v739_v47 = vld [vmem:[#allocation2 + $0x1e9] sm:$0xff]  ;;  %3615 = vmatpush.msra.mxu0 %v3404_v36 }
 0x482   :  { %v6395_v34 = vpop.permute.xlu2 %2256  ;;  %2706 = vrot.lane.b32.xlu0 %v778_v52, %s4722_s23  ;;  %v3403_v52 = vld [vmem:[%s8579_s1 + $0x10] sm:$0xff]  ;;  %4603 = vmatpush.msra.mxu1 %v3404_v36 }
 0x483   :  { %8913 = vst [vmem:[#allocation313_spill] sm:$0xff] %v6395_v34  ;;  %v6398_v32 = vpop.permute.xlu1 %2236  ;;  %4604 = vmatpush.msra.mxu2 %v3404_v36  ;;  %4605 = vmatpush.msra.mxu3 %v3404_v36  ;;  %v3401_v36 = vld [vmem:[%s8579_s1] sm:$0xff] }
 0x484   :  { %8914 = vst [vmem:[#allocation314_spill] sm:$0xff] %v6398_v32  ;;  %v6403_v5 = vpop.permute.xlu0 %2240  ;;  %3616 = vmatpush.msra.mxu0 %v3403_v52  ;;  %4606 = vmatpush.msra.mxu1 %v3403_v52 }
 0x485   :  { %8915 = vst [vmem:[#allocation315_spill] sm:$0xff] %v6403_v5  ;;  %v3402_v5 = vld [vmem:[%s8579_s1 + $0x8] sm:$0xff]  ;;  %4607 = vmatpush.msra.mxu2 %v3403_v52  ;;  %4608 = vmatpush.msra.mxu3 %v3403_v52  ;;  %v740_v52 = vld [vmem:[#allocation2 + $0x1f9] sm:$0xff] }
 0x486   :  { %3617 = vmatpush.msra.mxu0 %v3402_v5  ;;  %4609 = vmatpush.msra.mxu1 %v3402_v5 }
 0x487   :  { %4610 = vmatpush.msra.mxu2 %v3402_v5  ;;  %4611 = vmatpush.msra.mxu3 %v3402_v5 }
 0x488   :  { %2500 = vrot.lane.b32.xlu2 %v739_v47, %s4721_s22  ;;  %3618 = vmatpush.msra.mxu0 %v3401_v36  ;;  %v727_v47 = vld [vmem:[#allocation2 + $0x129] sm:$0xff] }
 0x489   :  { %2730 = vrot.lane.b32.xlu1 %v6008_v50, %s4722_s23  ;;  %4612 = vmatpush.msra.mxu1 %v3401_v36 }
 0x48a   :  { %v6417_v32 = vpop.permute.xlu2 %2262  ;;  %2756 = vrot.lane.b32.xlu0 %v6055_v26, %s4722_s23  ;;  %4613 = vmatpush.msra.mxu2 %v3401_v36 }
 0x48b   :  { %8916 = vst [vmem:[#allocation316_spill] sm:$0xff] %v6417_v32  ;;  %v6421_v27 = vpop.permute.xlu1 %2242  ;;  %v715_v32 = vld [vmem:[#allocation2 + $0x99] sm:$0xff]  ;;  %4614 = vmatpush.msra.mxu3 %v3401_v36 }
 0x48c   :  { %v6426_v50 = vpop.permute.xlu0 %2246 }
 0x490   :  { %2476 = vrot.lane.b32.xlu2 %v727_v47, %s4721_s22  ;;  %v716_v47 = vld [vmem:[#allocation2 + $0xa9] sm:$0xff] }
 0x491   :  { %2452 = vrot.lane.b32.xlu1 %v715_v32, %s4721_s22 }
 0x492   :  { %v2437_v26 = vpop.permute.xlu2 %2436  ;;  %2708 = vrot.lane.b32.xlu0 %v779_v37, %s4722_s23  ;;  %v728_v37 = vld [vmem:[#allocation2 + $0x139] sm:$0xff] }
 0x493   :  { %v6431_v34 = vpop.permute.xlu1 %2248 }
 0x494   :  { %8917 = vst [vmem:[#allocation317_spill] sm:$0xff] %v6431_v34  ;;  %v6433_v0 = vpop.permute.xlu0 %2252  ;;  %v257_v34 = vld [vmem:[#allocation2] sm:$0xff] }
 0x495   :  { %8918 = vst [vmem:[#allocation318_spill] sm:$0xff] %v6433_v0 }
 0x498   :  { %2502 = vrot.lane.b32.xlu2 %v740_v52, %s4721_s22 }
 0x499   :  { %2732 = vrot.lane.b32.xlu1 %v6012_v44, %s4722_s23  ;;  %v2882_v44 = vsel %vm18_vm0, %v257_v34, %v5214_v33  ;;  %v258_v34 = vld [vmem:[#allocation2 + $0x8] sm:$0xff] }
 0x49a   :  { %v6438_v5 = vpop.permute.xlu2 %2438  ;;  %2758 = vrot.lane.b32.xlu0 %v6070_v31, %s4722_s23 }
 0x49b   :  { %v6442_v36 = vpop.permute.xlu1 %2254 }
 0x49c   :  { %8919 = vst [vmem:[#allocation319_spill] sm:$0xff] %v6442_v36  ;;  %v6444_v32 = vpop.permute.xlu0 %2258 }
 0x49d   :  { %8920 = vst [vmem:[#allocation320_spill] sm:$0xff] %v6444_v32  ;;  %v2947_v32 = vsel %vm2946_vm4, %v2882_v44, %v5451_v40  ;;  %v729_v44 = vld [vmem:[#allocation2 + $0x141] sm:$0xff] }
 0x4a0   :  { %2478 = vrot.lane.b32.xlu2 %v728_v37, %s4721_s22  ;;  %v3012_v37 = vsel %vm3011_vm3, %v2947_v32, %v5618_v35 }
 0x4a1   :  { %2454 = vrot.lane.b32.xlu1 %v716_v47, %s4721_s22  ;;  %v741_v47 = vld [vmem:[#allocation2 + $0x201] sm:$0xff]  ;;  %v3077_v0 = vsel %vm3076_vm5, %v3012_v37, %v5847_v13  ;;  %v2883_v13 = vsel %vm18_vm0, %v258_v34, %v5247_v45 }
 0x4a2   :  { %v6448_v52 = vpop.permute.xlu2 %2440  ;;  %2710 = vrot.lane.b32.xlu0 %v780_v24, %s4722_s23  ;;  %v792_v24 = vld [vmem:[#allocation2 + $0x13a] sm:$0xff]  ;;  %v3142_v33 = vsel %vm3141_vm7, %v3077_v0, %v6100_v30 }
 0x4a3   :  { %v6453_v31 = vpop.permute.xlu1 %2260  ;;  %v690_v37 = vld [vmem:[#allocation2 + $0x2a0] sm:$0xff] }
 0x4a4   :  { %8921 = vst [vmem:[#allocation321_spill] sm:$0xff] %v6453_v31  ;;  %v2435_v36 = vpop.permute.xlu0 %2434  ;;  %v3207_v31 = vsel %vm3206_vm6, %v3142_v33, %v6265_v9  ;;  %v2948_v9 = vsel %vm2946_vm4, %v2883_v13, %v5421_v16 }
 0x4a5   :  { %v3272_v35 = vsel %vm3271_vm8, %v3207_v31, %v2435_v36  ;;  %v3013_v36 = vsel %vm3011_vm3, %v2948_v9, %v5650_v17 }
 0x4a6   :  { %v3078_v31 = vsel %vm3076_vm5, %v3013_v36, %v5854_v18  ;;  %v4628_v18 = vld [vmem:[#allocation2 + $0x18] sm:$0xff] }
 0x4a7   :  { %v3143_v45 = vsel %vm3141_vm7, %v3078_v31, %v6060_v21  ;;  %v2884_v21 = vsel %vm18_vm0, %v4628_v18, %v5241_v43  ;;  %v742_v43 = vld [vmem:[#allocation2 + $0x211] sm:$0xff] }
 0x4a8   :  { %2504 = vrot.lane.b32.xlu2 %v741_v47, %s4721_s22  ;;  %v3208_v16 = vsel %vm3206_vm6, %v3143_v45, %v6297_v42  ;;  %v2949_v42 = vsel %vm2946_vm4, %v2884_v21, %v5453_v6  ;;  %v730_v18 = vld [vmem:[#allocation2 + $0x151] sm:$0xff]  ;;  %v718_v21 = vld [vmem:[#allocation2 + $0xc1] sm:$0xff] }
 0x4a9   :  { %2734 = vrot.lane.b32.xlu1 %v792_v24, %s4722_s23  ;;  %v3273_v47 = vsel %vm3271_vm8, %v3208_v16, %v2437_v26  ;;  %v3014_v26 = vsel %vm3011_vm3, %v2949_v42, %v5657_v58 }
 0x4aa   :  { %v6468_v40 = vpop.permute.xlu2 %2466  ;;  %2760 = vrot.lane.b32.xlu0 %v6068_v20, %s4722_s23  ;;  %v717_v20 = vld [vmem:[#allocation2 + $0xb1] sm:$0xff]  ;;  %v3079_v13 = vsel %vm3076_vm5, %v3014_v26, %v5824_v29  ;;  %v4629_v29 = vld [vmem:[#allocation2 + $0x20] sm:$0xff] }
 0x4ab   :  { %v2691_v30 = vpop.permute.xlu1 %2690  ;;  %v3144_v9 = vsel %vm3141_vm7, %v3079_v13, %v6102_v56  ;;  %v2885_v56 = vsel %vm18_vm0, %v4629_v29, %v5267_v53  ;;  %v8925_v29 = vld [vmem:[#allocation252_spill] sm:$0xff] }
 0x4ac   :  { %v3337_v0 = vsel %vm3336_vm9, %v3272_v35, %v2691_v30  ;;  %v2693_v32 = vpop.permute.xlu0 %2692  ;;  %v793_v35 = vld [vmem:[#allocation2 + $0x142] sm:$0xff]  ;;  %v781_v30 = vld [vmem:[#allocation2 + $0xb2] sm:$0xff] }
 0x4ad   :  { %4536 = vmatmul.msk.f32.vlgmr.msra.gmra.mxu0 %vm3406_vm10, %v3337_v0  ;;  %v3338_v24 = vsel %vm3336_vm9, %v3273_v47, %v2693_v32  ;;  %v3209_v0 = vsel %vm3206_vm6, %v3144_v9, %v6306_v7  ;;  %v2950_v7 = vsel %vm2946_vm4, %v2885_v56, %v5460_v62  ;;  %v4631_v47 = vld [vmem:[#allocation2 + $0xc0] sm:$0xff]  ;;  %v8923_v9 = vld [vmem:[#allocation184_spill] sm:$0xff] }
 0x4ae   :  { %v3274_v6 = vsel %vm3271_vm8, %v3209_v0, %v6438_v5  ;;  %v3015_v5 = vsel %vm3011_vm3, %v2950_v7, %v5627_v11  ;;  %v794_v7 = vld [vmem:[#allocation2 + $0x152] sm:$0xff] }
 0x4af   :  { %v3080_v31 = vsel %vm3076_vm5, %v3015_v5, %v5856_v2  ;;  %v4630_v2 = vld [vmem:[#allocation2 + $0x30] sm:$0xff] }
 0x4b0   :  { %2480 = vrot.lane.b32.xlu2 %v729_v44, %s4721_s22  ;;  %v3145_v45 = vsel %vm3141_vm7, %v3080_v31, %v6109_v51  ;;  %v2886_v51 = vsel %vm18_vm0, %v4630_v2, %v5180_v19  ;;  %v782_v31 = vld [vmem:[#allocation2 + $0xc2] sm:$0xff] }
 0x4b1   :  { %2456 = vrot.lane.b32.xlu1 %v717_v20, %s4721_s22  ;;  %v754_v20 = vld [vmem:[#allocation2 + $0x2a1] sm:$0xff]  ;;  %v3210_v53 = vsel %vm3206_vm6, %v3145_v45, %v6274_v15 }
 0x4b2   :  { %v6489_v17 = vpop.permute.xlu2 %2444  ;;  %2274 = vrot.lane.b32.xlu0 %v690_v37, %s4720_s21  ;;  %v3275_v62 = vsel %vm3271_vm8, %v3210_v53, %v6448_v52  ;;  %v2898_v52 = vsel %vm18_vm0, %v4631_v47, %v5307_v14  ;;  %v691_v14 = vld [vmem:[#allocation2 + $0x2a8] sm:$0xff] }
 0x4b3   :  { %v6495_v33 = vpop.permute.xlu1 %2264 }
 0x4b4   :  { %v2695_v34 = vpop.permute.xlu0 %2694 }
 0x4b5   :  { %4537 = vmatmul.msk.f32.gmra.mxu0 %vm3406_vm10, %v3338_v24  ;;  %v3339_v32 = vsel %vm3336_vm9, %v3274_v6, %v2695_v34  ;;  %v8924_v6 = vld [vmem:[#allocation7_spill] sm:$0xff] }
 0x4b8   :  { %2736 = vrot.lane.b32.xlu2 %v793_v35, %s4722_s23 }
 0x4b9   :  { %2712 = vrot.lane.b32.xlu1 %v781_v30, %s4722_s23 }
 0x4ba   :  { %v6512_v58 = vpop.permute.xlu2 %2724  ;;  %2506 = vrot.lane.b32.xlu0 %v742_v43, %s4721_s22 }
 0x4bb   :  { %v6518_v36 = vpop.permute.xlu1 %2266 }
 0x4bc   :  { %v2697_v44 = vpop.permute.xlu0 %2696 }
 0x4bd   :  { %4538 = vmatmul.msk.f32.gmra.mxu0 %vm3406_vm10, %v3339_v32  ;;  %v3340_v37 = vsel %vm3336_vm9, %v3275_v62, %v2697_v44  ;;  %v743_v62 = vld [vmem:[#allocation2 + $0x219] sm:$0xff] }
 0x4c0   :  { %2762 = vrot.lane.b32.xlu2 %v6072_v60, %s4722_s23  ;;  %v2951_v60 = vsel %vm2946_vm4, %v2886_v51, %v5430_v57  ;;  %v4634_v51 = vld [vmem:[#allocation2 + $0x48] sm:$0xff] }
 0x4c1   :  { %2530 = vrot.lane.b32.xlu1 %v754_v20, %s4721_s22  ;;  %v3016_v24 = vsel %vm3011_vm3, %v2951_v60, %v5659_v3  ;;  %v8927_v20 = vld [vmem:[#allocation125_spill] sm:$0xff] }
 0x4c2   :  { %v6536_v11 = vpop.permute.xlu2 %2702  ;;  %2786 = vrot.lane.b32.xlu0 %v6113_v54, %s4722_s23  ;;  %v2963_v54 = vsel %vm2946_vm4, %v2898_v52, %v5466_v46  ;;  %v3081_v19 = vsel %vm3076_vm5, %v3016_v24, %v5863_v63  ;;  %v4632_v46 = vld [vmem:[#allocation2 + $0xc8] sm:$0xff] }
 0x4c3   :  { %v2443_v15 = vpop.permute.xlu1 %2442  ;;  %v3028_v57 = vsel %vm3011_vm3, %v2963_v54, %v5703_v12  ;;  %v3146_v42 = vsel %vm3141_vm7, %v3081_v19, %v6078_v49  ;;  %v2899_v63 = vsel %vm18_vm0, %v4632_v46, %v5277_v59  ;;  %v8922_v59 = vld [vmem:[#allocation136_spill] sm:$0xff]  ;;  %v8932_v19 = vld [vmem:[#allocation118_spill] sm:$0xff]  ;;  %v8934_v46 = vld [vmem:[#allocation241_spill] sm:$0xff] }
 0x4c4   :  { %v2699_v16 = vpop.permute.xlu0 %2698  ;;  %v3093_v3 = vsel %vm3076_vm5, %v3028_v57, %v5899_v8  ;;  %v3211_v34 = vsel %vm3206_vm6, %v3146_v42, %v6308_v28  ;;  %v2964_v49 = vsel %vm2946_vm4, %v2899_v63, %v5498_v39 }
 0x4c5   :  { %4539 = vmatmul.msk.f32.gmra.mxu0 %vm3406_vm10, %v3340_v37  ;;  %v3158_v26 = vsel %vm3141_vm7, %v3093_v3, %v6117_v23  ;;  %v3276_v12 = vsel %vm3271_vm8, %v3211_v34, %v2443_v15  ;;  %v3029_v13 = vsel %vm3011_vm3, %v2964_v49, %v8922_v59  ;;  %v8928_v37 = vld [vmem:[#allocation176_spill] sm:$0xff]  ;;  %v8929_v15 = vld [vmem:[#allocation11_spill] sm:$0xff] }
 0x4c6   :  { %v3223_v8 = vsel %vm3206_vm6, %v3158_v26, %v6348_v41  ;;  %v3341_v35 = vsel %vm3336_vm9, %v3276_v12, %v2699_v16  ;;  %v3094_v43 = vsel %vm3076_vm5, %v3029_v13, %v8923_v9  ;;  %v4633_v41 = vld [vmem:[#allocation2 + $0x38] sm:$0xff]  ;;  %v2888_v60 = vsel %vm18_vm0, %v4634_v51, %v8929_v15  ;;  %v8930_v16 = vld [vmem:[#allocation240_spill] sm:$0xff]  ;;  %v8935_v12 = vld [vmem:[#allocation21_spill] sm:$0xff] }
 0x4c7   :  { %v3288_v23 = vsel %vm3271_vm8, %v3223_v8, %v6468_v40  ;;  %v2887_v32 = vsel %vm18_vm0, %v4633_v41, %v8924_v6  ;;  %v3159_v56 = vsel %vm3141_vm7, %v3094_v43, %v8925_v29  ;;  %v8926_v40 = vld [vmem:[#allocation67_spill] sm:$0xff]  ;;  %v4635_v26 = vld [vmem:[#allocation2 + $0xd8] sm:$0xff]  ;;  %v755_v8 = vld [vmem:[#allocation2 + $0x2a9] sm:$0xff] }
 0x4c8   :  { %2482 = vrot.lane.b32.xlu2 %v730_v18, %s4721_s22  ;;  %v2952_v44 = vsel %vm2946_vm4, %v2887_v32, %v8926_v40  ;;  %v3224_v5 = vsel %vm3206_vm6, %v3159_v56, %v6357_v38  ;;  %v8931_v38 = vld [vmem:[#allocation68_spill] sm:$0xff]  ;;  %v2900_v49 = vsel %vm18_vm0, %v4635_v26, %v8935_v12  ;;  %v8938_v9 = vld [vmem:[#allocation194_spill] sm:$0xff]  ;;  %v8940_v6 = vld [vmem:[#allocation243_spill] sm:$0xff] }
 0x4c9   :  { %2458 = vrot.lane.b32.xlu1 %v718_v21, %s4721_s22  ;;  %v3017_v45 = vsel %vm3011_vm3, %v2952_v44, %v8927_v20  ;;  %v2953_v52 = vsel %vm2946_vm4, %v2888_v60, %v8931_v38  ;;  %v8941_v32 = vld [vmem:[#allocation300_spill] sm:$0xff]  ;;  %v731_v44 = vld [vmem:[#allocation2 + $0x159] sm:$0xff]  ;;  %v8945_v15 = vld [vmem:[#allocation185_spill] sm:$0xff] }
 0x4ca   :  { %v6573_v28 = vpop.permute.xlu2 %2472  ;;  %2276 = vrot.lane.b32.xlu0 %v691_v14, %s4720_s21  ;;  %v3082_v2 = vsel %vm3076_vm5, %v3017_v45, %v8928_v37  ;;  %v3018_v21 = vsel %vm3011_vm3, %v2953_v52, %v8932_v19  ;;  %v8933_v14 = vld [vmem:[#allocation183_spill] sm:$0xff]  ;;  %v8942_v20 = vld [vmem:[#allocation12_spill] sm:$0xff]  ;;  %v692_v37 = vld [vmem:[#allocation2 + $0x2b8] sm:$0xff] }
 0x4cb   :  { %v2723_v30 = vpop.permute.xlu1 %2722  ;;  %v3147_v47 = vsel %vm3141_vm7, %v3082_v2, %v8930_v16  ;;  %v3083_v3 = vsel %vm3076_vm5, %v3018_v21, %v8933_v14  ;;  %v8944_v2 = vld [vmem:[#allocation126_spill] sm:$0xff]  ;;  %v8946_v16 = vld [vmem:[#allocation235_spill] sm:$0xff]  ;;  %v289_v52 = vld [vmem:[#allocation2 + $0x1b0] sm:$0xff] }
 0x4cc   :  { %v3353_v39 = vsel %vm3336_vm9, %v3288_v23, %v2723_v30  ;;  %v2469_v0 = vpop.permute.xlu0 %2468  ;;  %v3212_v24 = vsel %vm3206_vm6, %v3147_v47, %v6316_v55  ;;  %v3148_v63 = vsel %vm3141_vm7, %v3083_v3, %v8934_v46  ;;  %v8937_v23 = vld [vmem:[#allocation127_spill] sm:$0xff]  ;;  %v8949_v46 = vld [vmem:[#allocation25_spill] sm:$0xff] }
 0x4cd   :  { %4540 = vmatmul.msk.f32.gmra.mxu0 %vm3406_vm10, %v3341_v35  ;;  %4552 = vmatmul.msk.f32.vlgmr.msra.gmra.mxu1 %vm3406_vm10, %v3353_v39  ;;  %v3289_v53 = vsel %vm3271_vm8, %v3224_v5, %v2469_v0  ;;  %v3277_v57 = vsel %vm3271_vm8, %v3212_v24, %v6489_v17  ;;  %v3213_v17 = vsel %vm3206_vm6, %v3148_v63, %v6283_v22  ;;  %v8936_v35 = vld [vmem:[#allocation79_spill] sm:$0xff]  ;;  %v8939_v39 = vld [vmem:[#allocation254_spill] sm:$0xff]  ;;  %v783_v12 = vld [vmem:[#allocation2 + $0xca] sm:$0xff] }
 0x4ce   :  { %v3354_v54 = vsel %vm3336_vm9, %v3289_v53, %v6512_v58  ;;  %v807_v58 = vld [vmem:[#allocation2 + $0x21a] sm:$0xff]  ;;  %v2965_v59 = vsel %vm2946_vm4, %v2900_v49, %v8936_v35  ;;  %v2914_v63 = vsel %vm18_vm0, %v289_v52, %v8949_v46  ;;  %v8951_v49 = vld [vmem:[#allocation92_spill] sm:$0xff] }
 0x4cf   :  { %v3030_v30 = vsel %vm3011_vm3, %v2965_v59, %v8937_v23  ;;  %v8943_v53 = vld [vmem:[#allocation62_spill] sm:$0xff]  ;;  %v8947_v24 = vld [vmem:[#allocation299_spill] sm:$0xff]  ;;  %v744_v59 = vld [vmem:[#allocation2 + $0x229] sm:$0xff] }
 0x4d0   :  { %2738 = vrot.lane.b32.xlu2 %v794_v7, %s4722_s23  ;;  %v3095_v43 = vsel %vm3076_vm5, %v3030_v30, %v8938_v9  ;;  %v8948_v14 = vld [vmem:[#allocation23_spill] sm:$0xff]  ;;  %v8954_v30 = vld [vmem:[#allocation196_spill] sm:$0xff] }
 0x4d1   :  { %2714 = vrot.lane.b32.xlu1 %v782_v31, %s4722_s23  ;;  %v3160_v0 = vsel %vm3141_vm7, %v3095_v43, %v8939_v39  ;;  %v4636_v31 = vld [vmem:[#allocation2 + $0x50] sm:$0xff]  ;;  %v8955_v43 = vld [vmem:[#allocation198_spill] sm:$0xff]  ;;  %v8964_v46 = vld [vmem:[#allocation36_spill] sm:$0xff] }
 0x4d2   :  { %v6609_v18 = vpop.permute.xlu2 %2498  ;;  %2508 = vrot.lane.b32.xlu0 %v743_v62, %s4721_s22  ;;  %v3225_v29 = vsel %vm3206_vm6, %v3160_v0, %v8941_v32  ;;  %v2889_v45 = vsel %vm18_vm0, %v4636_v31, %v8942_v20  ;;  %v8956_v0 = vld [vmem:[#allocation244_spill] sm:$0xff] }
 0x4d3   :  { %v2701_v42 = vpop.permute.xlu1 %2700  ;;  %v2954_v62 = vsel %vm2946_vm4, %v2889_v45, %v8943_v53  ;;  %v8958_v53 = vld [vmem:[#allocation8_spill] sm:$0xff] }
 0x4d4   :  { %v3342_v34 = vsel %vm3336_vm9, %v3277_v57, %v2701_v42  ;;  %v2447_v55 = vpop.permute.xlu0 %2446  ;;  %v3019_v51 = vsel %vm3011_vm3, %v2954_v62, %v8944_v2  ;;  %v4637_v42 = vld [vmem:[#allocation2 + $0xe0] sm:$0xff] }
 0x4d5   :  { %4541 = vmatmul.msk.f32.gmra.mxu0 %vm3406_vm10, %v3342_v34  ;;  %4553 = vmatmul.msk.f32.gmra.mxu1 %vm3406_vm10, %v3354_v54  ;;  %v3278_v13 = vsel %vm3271_vm8, %v3213_v17, %v2447_v55  ;;  %v3084_v60 = vsel %vm3076_vm5, %v3019_v51, %v8945_v15  ;;  %v2901_v3 = vsel %vm18_vm0, %v4637_v42, %v8948_v14  ;;  %v795_v34 = vld [vmem:[#allocation2 + $0x15a] sm:$0xff]  ;;  %v4639_v42 = vld [vmem:[#allocation2 + $0xf0] sm:$0xff] }
 0x4d6   :  { %v3343_v41 = vsel %vm3336_vm9, %v3278_v13, %v6536_v11  ;;  %v719_v11 = vld [vmem:[#allocation2 + $0xc9] sm:$0xff]  ;;  %v3149_v47 = vsel %vm3141_vm7, %v3084_v60, %v8946_v16  ;;  %v2979_v17 = vsel %vm2946_vm4, %v2914_v63, %v8951_v49  ;;  %v8953_v13 = vld [vmem:[#allocation151_spill] sm:$0xff]  ;;  %v8962_v16 = vld [vmem:[#allocation242_spill] sm:$0xff] }
 0x4d7   :  { %v3214_v54 = vsel %vm3206_vm6, %v3149_v47, %v8947_v24  ;;  %v3044_v23 = vsel %vm3011_vm3, %v2979_v17, %v8953_v13  ;;  %v820_v2 = vld [vmem:[#allocation2 + $0x2ba] sm:$0xff] }
 0x4d8   :  { %2764 = vrot.lane.b32.xlu2 %v807_v58, %s4722_s23  ;;  %v8950_v58 = vld [vmem:[#allocation70_spill] sm:$0xff]  ;;  %v3109_v39 = vsel %vm3076_vm5, %v3044_v23, %v8955_v43  ;;  %v8961_v15 = vld [vmem:[#allocation179_spill] sm:$0xff] }
 0x4d9   :  { %2532 = vrot.lane.b32.xlu1 %v755_v8, %s4721_s22  ;;  %v2966_v26 = vsel %vm2946_vm4, %v2901_v3, %v8950_v58  ;;  %v8952_v8 = vld [vmem:[#allocation137_spill] sm:$0xff]  ;;  %v290_v24 = vld [vmem:[#allocation2 + $0x1b8] sm:$0xff]  ;;  %v8965_v58 = vld [vmem:[#allocation80_spill] sm:$0xff] }
 0x4da   :  { %v6640_v22 = vpop.permute.xlu2 %2474  ;;  %2788 = vrot.lane.b32.xlu0 %v8940_v6, %s4722_s23  ;;  %v3031_v35 = vsel %vm3011_vm3, %v2966_v26, %v8952_v8  ;;  %v8957_v6 = vld [vmem:[#allocation267_spill] sm:$0xff]  ;;  %v8963_v14 = vld [vmem:[#allocation14_spill] sm:$0xff]  ;;  %v2915_v63 = vsel %vm18_vm0, %v290_v24, %v8964_v46 }
 0x4db   :  { %v2471_v56 = vpop.permute.xlu1 %2470  ;;  %v3096_v9 = vsel %vm3076_vm5, %v3031_v35, %v8954_v30  ;;  %v3174_v32 = vsel %vm3141_vm7, %v3109_v39, %v8957_v6  ;;  %v2902_v3 = vsel %vm18_vm0, %v4639_v42, %v8963_v14  ;;  %v8967_v17 = vld [vmem:[#allocation139_spill] sm:$0xff]  ;;  %v809_v42 = vld [vmem:[#allocation2 + $0x232] sm:$0xff] }
 0x4dc   :  { %v3290_v7 = vsel %vm3271_vm8, %v3225_v29, %v2471_v56  ;;  %v2727_v40 = vpop.permute.xlu0 %2726  ;;  %v2967_v26 = vsel %vm2946_vm4, %v2902_v3, %v8965_v58  ;;  %v693_v35 = vld [vmem:[#allocation2 + $0x2c0] sm:$0xff]  ;;  %v4642_v3 = vld [vmem:[#allocation2 + $0x1c8] sm:$0xff]  ;;  %v8981_v46 = vld [vmem:[#allocation82_spill] sm:$0xff] }
 0x4dd   :  { %4542 = vmatmul.msk.f32.gmra.mxu0 %vm3406_vm10, %v3343_v41  ;;  %v3355_v5 = vsel %vm3336_vm9, %v3290_v7, %v2727_v40  ;;  %v3161_v41 = vsel %vm3141_vm7, %v3096_v9, %v8956_v0  ;;  %v3239_v7 = vsel %vm3206_vm6, %v3174_v32, %v6421_v27  ;;  %v756_v27 = vld [vmem:[#allocation2 + $0x2b9] sm:$0xff]  ;;  %v3032_v8 = vsel %vm3011_vm3, %v2967_v26, %v8967_v17  ;;  %v8970_v9 = vld [vmem:[#allocation209_spill] sm:$0xff]  ;;  %v757_v58 = vld [vmem:[#allocation2 + $0x2c1] sm:$0xff] }
 0x4de   :  { %4554 = vmatmul.msk.f32.gmra.mxu1 %vm3406_vm10, %v3355_v5  ;;  %v3226_v29 = vsel %vm3206_vm6, %v3161_v41, %v6359_v1  ;;  %v3304_v5 = vsel %vm3271_vm8, %v3239_v7, %v6609_v18  ;;  %v808_v1 = vld [vmem:[#allocation2 + $0x22a] sm:$0xff]  ;;  %v8969_v23 = vld [vmem:[#allocation187_spill] sm:$0xff] }
 0x4df   :  { %v3291_v40 = vsel %vm3271_vm8, %v3226_v29, %v6573_v28  ;;  %v8959_v28 = vld [vmem:[#allocation69_spill] sm:$0xff]  ;;  %v8960_v18 = vld [vmem:[#allocation128_spill] sm:$0xff]  ;;  %v3097_v30 = vsel %vm3076_vm5, %v3032_v8, %v8969_v23  ;;  %v8971_v39 = vld [vmem:[#allocation255_spill] sm:$0xff] }
 0x4e0   :  { %2484 = vrot.lane.b32.xlu2 %v731_v44, %s4721_s22  ;;  %v3162_v0 = vsel %vm3141_vm7, %v3097_v30, %v8971_v39  ;;  %v8972_v41 = vld [vmem:[#allocation269_spill] sm:$0xff]  ;;  %v8982_v26 = vld [vmem:[#allocation84_spill] sm:$0xff]  ;;  %v8986_v23 = vld [vmem:[#allocation211_spill] sm:$0xff] }
 0x4e1   :  { %2460 = vrot.lane.b32.xlu1 %v719_v11, %s4721_s22  ;;  %v4638_v11 = vld [vmem:[#allocation2 + $0x60] sm:$0xff]  ;;  %v3227_v32 = vsel %vm3206_vm6, %v3162_v0, %v6368_v4  ;;  %v796_v4 = vld [vmem:[#allocation2 + $0x16a] sm:$0xff] }
 0x4e2   :  { %v6664_v38 = vpop.permute.xlu2 %2500  ;;  %2278 = vrot.lane.b32.xlu0 %v692_v37, %s4720_s21  ;;  %v2890_v62 = vsel %vm18_vm0, %v4638_v11, %v8958_v53  ;;  %v8973_v11 = vld [vmem:[#allocation13_spill] sm:$0xff]  ;;  %v821_v17 = vld [vmem:[#allocation2 + $0x2c2] sm:$0xff] }
 0x4e3   :  { %v2449_v19 = vpop.permute.xlu1 %2448  ;;  %v2955_v37 = vsel %vm2946_vm4, %v2890_v62, %v8959_v28  ;;  %v8984_v8 = vld [vmem:[#allocation152_spill] sm:$0xff]  ;;  %v8988_v39 = vld [vmem:[#allocation259_spill] sm:$0xff] }
 0x4e4   :  { %v3279_v21 = vsel %vm3271_vm8, %v3214_v54, %v2449_v19  ;;  %v2705_v57 = vpop.permute.xlu0 %2704  ;;  %v3020_v51 = vsel %vm3011_vm3, %v2955_v37, %v8960_v18  ;;  %v8976_v37 = vld [vmem:[#allocation186_spill] sm:$0xff]  ;;  %v8977_v18 = vld [vmem:[#allocation245_spill] sm:$0xff] }
 0x4e5   :  { %v3344_v55 = vsel %vm3336_vm9, %v3279_v21, %v2705_v57  ;;  %v3085_v60 = vsel %vm3076_vm5, %v3020_v51, %v8961_v15 }
 0x4e6   :  { %4543 = vmatmul.msk.f32.gmra.mxu0 %vm3406_vm10, %v3344_v55  ;;  %v3150_v47 = vsel %vm3141_vm7, %v3085_v60, %v8962_v16  ;;  %v8978_v60 = vld [vmem:[#allocation295_spill] sm:$0xff] }
 0x4e7   :  { %v3215_v54 = vsel %vm3206_vm6, %v3150_v47, %v6326_v61  ;;  %v8966_v61 = vld [vmem:[#allocation94_spill] sm:$0xff] }
 0x4e8   :  { %2740 = vrot.lane.b32.xlu2 %v795_v34, %s4722_s23  ;;  %v732_v34 = vld [vmem:[#allocation2 + $0x169] sm:$0xff]  ;;  %v2980_v49 = vsel %vm2946_vm4, %v2915_v63, %v8966_v61  ;;  %v8983_v61 = vld [vmem:[#allocation130_spill] sm:$0xff] }
 0x4e9   :  { %2716 = vrot.lane.b32.xlu1 %v783_v12, %s4722_s23  ;;  %v720_v12 = vld [vmem:[#allocation2 + $0xd9] sm:$0xff] }
 0x4ea   :  { %v6696_v56 = vpop.permute.xlu2 %2476  ;;  %2510 = vrot.lane.b32.xlu0 %v744_v59, %s4721_s22  ;;  %v8968_v59 = vld [vmem:[#allocation141_spill] sm:$0xff] }
 0x4eb   :  { %v2729_v44 = vpop.permute.xlu1 %2728  ;;  %v3045_v13 = vsel %vm3011_vm3, %v2980_v49, %v8968_v59  ;;  %v8985_v59 = vld [vmem:[#allocation197_spill] sm:$0xff] }
 0x4ec   :  { %v3356_v31 = vsel %vm3336_vm9, %v3291_v40, %v2729_v44  ;;  %v2755_v20 = vpop.permute.xlu0 %2754  ;;  %v3110_v43 = vsel %vm3076_vm5, %v3045_v13, %v8970_v9  ;;  %v3292_v40 = vsel %vm3271_vm8, %v3227_v32, %v6640_v22  ;;  %v8974_v22 = vld [vmem:[#allocation71_spill] sm:$0xff]  ;;  %v8987_v9 = vld [vmem:[#allocation257_spill] sm:$0xff] }
 0x4ed   :  { %4555 = vmatmul.msk.f32.gmra.mxu1 %vm3406_vm10, %v3356_v31  ;;  %v3369_v45 = vsel %vm3336_vm9, %v3304_v5, %v2755_v20  ;;  %v3175_v6 = vsel %vm3141_vm7, %v3110_v43, %v8972_v41 }
 0x4ee   :  { %4568 = vmatmul.msk.f32.vlgmr.msra.gmra.mxu2 %vm3406_vm10, %v3369_v45  ;;  %v3240_v7 = vsel %vm3206_vm6, %v3175_v6, %v6374_v10  ;;  %v4640_v45 = vld [vmem:[#allocation2 + $0x68] sm:$0xff]  ;;  %v784_v10 = vld [vmem:[#allocation2 + $0xda] sm:$0xff] }
 0x4ef   :  { %v3305_v5 = vsel %vm3271_vm8, %v3240_v7, %v6664_v38  ;;  %v2891_v53 = vsel %vm18_vm0, %v4640_v45, %v8973_v11  ;;  %v8975_v38 = vld [vmem:[#allocation121_spill] sm:$0xff] }
 0x4f0   :  { %2766 = vrot.lane.b32.xlu2 %v808_v1, %s4722_s23  ;;  %v2956_v62 = vsel %vm2946_vm4, %v2891_v53, %v8974_v22  ;;  %v694_v53 = vld [vmem:[#allocation2 + $0x2d0] sm:$0xff]  ;;  %v8992_v22 = vld [vmem:[#allocation188_spill] sm:$0xff] }
 0x4f1   :  { %2534 = vrot.lane.b32.xlu1 %v756_v27, %s4721_s22  ;;  %v745_v27 = vld [vmem:[#allocation2 + $0x231] sm:$0xff]  ;;  %v3021_v28 = vsel %vm3011_vm3, %v2956_v62, %v8975_v38 }
 0x4f2   :  { %v6721_v52 = vpop.permute.xlu2 %2502  ;;  %2790 = vrot.lane.b32.xlu0 %v820_v2, %s4722_s23  ;;  %v3086_v2 = vsel %vm3076_vm5, %v3021_v28, %v8976_v37  ;;  %v8994_v37 = vld [vmem:[#allocation301_spill] sm:$0xff] }
 0x4f3   :  { %v2451_v19 = vpop.permute.xlu1 %2450  ;;  %v3151_v51 = vsel %vm3141_vm7, %v3086_v2, %v8977_v18 }
 0x4f4   :  { %v3280_v21 = vsel %vm3271_vm8, %v3215_v54, %v2451_v19  ;;  %v2707_v57 = vpop.permute.xlu0 %2706  ;;  %v3216_v16 = vsel %vm3206_vm6, %v3151_v51, %v8978_v60  ;;  %v4641_v19 = vld [vmem:[#allocation2 + $0xf8] sm:$0xff] }
 0x4f5   :  { %v3345_v55 = vsel %vm3336_vm9, %v3280_v21, %v2707_v57  ;;  %v8979_v21 = vld [vmem:[#allocation24_spill] sm:$0xff] }
 0x4f6   :  { %4544 = vmatmul.msk.f32.gmra.mxu0 %vm3406_vm10, %v3345_v55  ;;  %v2903_v57 = vsel %vm18_vm0, %v4641_v19, %v8979_v21  ;;  %v4645_v21 = vld [vmem:[#allocation2 + $0x1d0] sm:$0xff] }
 0x4f7   :  { %v2968_v63 = vsel %vm2946_vm4, %v2903_v57, %v8981_v46  ;;  %v8996_v57 = vld [vmem:[#allocation28_spill] sm:$0xff] }
 0x4f8   :  { %2486 = vrot.lane.b32.xlu2 %v732_v34, %s4721_s22  ;;  %v8980_v34 = vld [vmem:[#allocation38_spill] sm:$0xff]  ;;  %v3033_v49 = vsel %vm3011_vm3, %v2968_v63, %v8983_v61  ;;  %v8999_v63 = vld [vmem:[#allocation140_spill] sm:$0xff] }
 0x4f9   :  { %2462 = vrot.lane.b32.xlu1 %v720_v12, %s4721_s22  ;;  %v2916_v55 = vsel %vm18_vm0, %v4642_v3, %v8980_v34  ;;  %v3098_v13 = vsel %vm3076_vm5, %v3033_v49, %v8985_v59  ;;  %v785_v34 = vld [vmem:[#allocation2 + $0xe2] sm:$0xff] }
 0x4fa   :  { %v6753_v29 = vpop.permute.xlu2 %2478  ;;  %2280 = vrot.lane.b32.xlu0 %v693_v35, %s4720_s21  ;;  %v2981_v12 = vsel %vm2946_vm4, %v2916_v55, %v8982_v26  ;;  %v3163_v43 = vsel %vm3141_vm7, %v3098_v13, %v8987_v9  ;;  %v8998_v55 = vld [vmem:[#allocation95_spill] sm:$0xff] }
 0x4fb   :  { %v2731_v44 = vpop.permute.xlu1 %2730  ;;  %v3046_v35 = vsel %vm3011_vm3, %v2981_v12, %v8984_v8  ;;  %v3228_v41 = vsel %vm3206_vm6, %v3163_v43, %v6332_v48  ;;  %v733_v48 = vld [vmem:[#allocation2 + $0x171] sm:$0xff]  ;;  %v746_v26 = vld [vmem:[#allocation2 + $0x241] sm:$0xff] }
 0x4fc   :  { %v3357_v31 = vsel %vm3336_vm9, %v3292_v40, %v2731_v44  ;;  %v2757_v20 = vpop.permute.xlu0 %2756  ;;  %v3111_v30 = vsel %vm3076_vm5, %v3046_v35, %v8986_v23  ;;  %v3293_v7 = vsel %vm3271_vm8, %v3228_v41, %v6696_v56  ;;  %v8990_v56 = vld [vmem:[#allocation65_spill] sm:$0xff]  ;;  %v9000_v12 = vld [vmem:[#allocation154_spill] sm:$0xff]  ;;  %v9001_v49 = vld [vmem:[#allocation199_spill] sm:$0xff] }
 0x4fd   :  { %4556 = vmatmul.msk.f32.gmra.mxu1 %vm3406_vm10, %v3357_v31  ;;  %v3370_v1 = vsel %vm3336_vm9, %v3305_v5, %v2757_v20  ;;  %v3176_v0 = vsel %vm3141_vm7, %v3111_v30, %v8988_v39  ;;  %v9002_v8 = vld [vmem:[#allocation201_spill] sm:$0xff]  ;;  %v9003_v59 = vld [vmem:[#allocation247_spill] sm:$0xff]  ;;  %v9004_v23 = vld [vmem:[#allocation270_spill] sm:$0xff] }
 0x4fe   :  { %4569 = vmatmul.msk.f32.gmra.mxu2 %vm3406_vm10, %v3370_v1  ;;  %v3241_v32 = vsel %vm3206_vm6, %v3176_v0, %v6426_v50  ;;  %v8989_v1 = vld [vmem:[#allocation15_spill] sm:$0xff]  ;;  %v9005_v39 = vld [vmem:[#allocation317_spill] sm:$0xff] }
 0x4ff   :  { %v3306_v44 = vsel %vm3271_vm8, %v3241_v32, %v6721_v52  ;;  %v721_v50 = vld [vmem:[#allocation2 + $0xe1] sm:$0xff]  ;;  %v8991_v52 = vld [vmem:[#allocation129_spill] sm:$0xff] }
 0x500   :  { %2742 = vrot.lane.b32.xlu2 %v796_v4, %s4722_s23  ;;  %v4643_v4 = vld [vmem:[#allocation2 + $0x78] sm:$0xff] }
 0x501   :  { %2718 = vrot.lane.b32.xlu1 %v784_v10, %s4722_s23  ;;  %v2892_v45 = vsel %vm18_vm0, %v4643_v4, %v8989_v1  ;;  %v9007_v4 = vld [vmem:[#allocation83_spill] sm:$0xff] }
 0x502   :  { %v6778_v15 = vpop.permute.xlu2 %2504  ;;  %2512 = vrot.lane.b32.xlu0 %v745_v27, %s4721_s22  ;;  %v2957_v11 = vsel %vm2946_vm4, %v2892_v45, %v8990_v56  ;;  %v8993_v27 = vld [vmem:[#allocation238_spill] sm:$0xff] }
 0x503   :  { %v2453_v47 = vpop.permute.xlu1 %2452  ;;  %v3022_v10 = vsel %vm3011_vm3, %v2957_v11, %v8991_v52  ;;  %v9008_v45 = vld [vmem:[#allocation142_spill] sm:$0xff] }
 0x504   :  { %v3281_v24 = vsel %vm3271_vm8, %v3216_v16, %v2453_v47  ;;  %v2709_v54 = vpop.permute.xlu0 %2708  ;;  %v3087_v62 = vsel %vm3076_vm5, %v3022_v10, %v8992_v22  ;;  %v4644_v16 = vld [vmem:[#allocation2 + $0x108] sm:$0xff]  ;;  %v8995_v47 = vld [vmem:[#allocation26_spill] sm:$0xff] }
 0x505   :  { %v3346_v14 = vsel %vm3336_vm9, %v3281_v24, %v2709_v54  ;;  %v3152_v38 = vsel %vm3141_vm7, %v3087_v62, %v8993_v27  ;;  %v2904_v24 = vsel %vm18_vm0, %v4644_v16, %v8995_v47  ;;  %v797_v54 = vld [vmem:[#allocation2 + $0x172] sm:$0xff]  ;;  %v9011_v10 = vld [vmem:[#allocation308_spill] sm:$0xff]  ;;  %v4648_v16 = vld [vmem:[#allocation2 + $0x80] sm:$0xff] }
 0x506   :  { %4545 = vmatmul.msk.f32.gmra.mxu0 %vm3406_vm10, %v3346_v14  ;;  %v3217_v2 = vsel %vm3206_vm6, %v3152_v38, %v8994_v37  ;;  %v8997_v14 = vld [vmem:[#allocation73_spill] sm:$0xff]  ;;  %v9009_v56 = vld [vmem:[#allocation190_spill] sm:$0xff]  ;;  %v4647_v37 = vld [vmem:[#allocation2 + $0x120] sm:$0xff] }
 0x507   :  { %v2969_v3 = vsel %vm2946_vm4, %v2904_v24, %v8997_v14  ;;  %v9013_v47 = vld [vmem:[#allocation9_spill] sm:$0xff] }
 0x508   :  { %2768 = vrot.lane.b32.xlu2 %v809_v42, %s4722_s23  ;;  %v2917_v42 = vsel %vm18_vm0, %v4645_v21, %v8996_v57  ;;  %v2893_v24 = vsel %vm18_vm0, %v4648_v16, %v9013_v47  ;;  %v695_v21 = vld [vmem:[#allocation2 + $0x2d8] sm:$0xff]  ;;  %v9015_v57 = vld [vmem:[#allocation72_spill] sm:$0xff] }
 0x509   :  { %2536 = vrot.lane.b32.xlu1 %v757_v58, %s4721_s22  ;;  %v2982_v46 = vsel %vm2946_vm4, %v2917_v42, %v8998_v55  ;;  %v3034_v58 = vsel %vm3011_vm3, %v2969_v3, %v8999_v63  ;;  %v9016_v42 = vld [vmem:[#allocation133_spill] sm:$0xff]  ;;  %v734_v3 = vld [vmem:[#allocation2 + $0x181] sm:$0xff] }
 0x50a   :  { %v6810_v6 = vpop.permute.xlu2 %2480  ;;  %2792 = vrot.lane.b32.xlu0 %v821_v17, %s4722_s23  ;;  %v3047_v61 = vsel %vm3011_vm3, %v2982_v46, %v9000_v12  ;;  %v3099_v17 = vsel %vm3076_vm5, %v3034_v58, %v9001_v49  ;;  %v9018_v46 = vld [vmem:[#allocation131_spill] sm:$0xff]  ;;  %v9019_v58 = vld [vmem:[#allocation200_spill] sm:$0xff] }
 0x50b   :  { %v2733_v40 = vpop.permute.xlu1 %2732  ;;  %v3112_v35 = vsel %vm3076_vm5, %v3047_v61, %v9002_v8  ;;  %v3164_v13 = vsel %vm3141_vm7, %v3099_v17, %v9003_v59  ;;  %v798_v12 = vld [vmem:[#allocation2 + $0x182] sm:$0xff]  ;;  %v9020_v61 = vld [vmem:[#allocation97_spill] sm:$0xff] }
 0x50c   :  { %v3358_v5 = vsel %vm3336_vm9, %v3293_v7, %v2733_v40  ;;  %v2759_v31 = vpop.permute.xlu0 %2758  ;;  %v3177_v30 = vsel %vm3141_vm7, %v3112_v35, %v9004_v23  ;;  %v3229_v9 = vsel %vm3206_vm6, %v3164_v13, %v6370_v25  ;;  %v9021_v17 = vld [vmem:[#allocation181_spill] sm:$0xff]  ;;  %v9022_v35 = vld [vmem:[#allocation260_spill] sm:$0xff] }
 0x50d   :  { %4557 = vmatmul.msk.f32.gmra.mxu1 %vm3406_vm10, %v3358_v5  ;;  %v3371_v20 = vsel %vm3336_vm9, %v3306_v44, %v2759_v31  ;;  %v3242_v0 = vsel %vm3206_vm6, %v3177_v30, %v9005_v39  ;;  %v3294_v41 = vsel %vm3271_vm8, %v3229_v9, %v6753_v29  ;;  %v4646_v5 = vld [vmem:[#allocation2 + $0x110] sm:$0xff]  ;;  %v9023_v13 = vld [vmem:[#allocation144_spill] sm:$0xff]  ;;  %v9024_v30 = vld [vmem:[#allocation246_spill] sm:$0xff] }
 0x50e   :  { %4570 = vmatmul.msk.f32.gmra.mxu2 %vm3406_vm10, %v3371_v20  ;;  %v3307_v7 = vsel %vm3271_vm8, %v3242_v0, %v6778_v15  ;;  %v9006_v31 = vld [vmem:[#allocation17_spill] sm:$0xff]  ;;  %v9025_v39 = vld [vmem:[#allocation304_spill] sm:$0xff] }
 0x50f   :  { %v2905_v25 = vsel %vm18_vm0, %v4646_v5, %v9006_v31  ;;  %v758_v29 = vld [vmem:[#allocation2 + $0x2d1] sm:$0xff]  ;;  %v9028_v31 = vld [vmem:[#allocation272_spill] sm:$0xff] }
 0x510   :  { %2488 = vrot.lane.b32.xlu2 %v733_v48, %s4721_s22  ;;  %v810_v48 = vld [vmem:[#allocation2 + $0x242] sm:$0xff]  ;;  %v2970_v1 = vsel %vm2946_vm4, %v2905_v25, %v9007_v4 }
 0x511   :  { %2464 = vrot.lane.b32.xlu1 %v721_v50, %s4721_s22  ;;  %v3035_v15 = vsel %vm3011_vm3, %v2970_v1, %v9008_v45  ;;  %v822_v50 = vld [vmem:[#allocation2 + $0x2d2] sm:$0xff]  ;;  %v9034_v16 = vld [vmem:[#allocation284_spill] sm:$0xff] }
 0x512   :  { %v2737_v28 = vpop.permute.xlu2 %2736  ;;  %2282 = vrot.lane.b32.xlu0 %v694_v53, %s4720_s21  ;;  %v3100_v11 = vsel %vm3076_vm5, %v3035_v15, %v9009_v56  ;;  %v9010_v53 = vld [vmem:[#allocation258_spill] sm:$0xff] }
 0x513   :  { %v2455_v18 = vpop.permute.xlu1 %2454  ;;  %v3165_v52 = vsel %vm3141_vm7, %v3100_v11, %v9010_v53  ;;  %v9029_v1 = vld [vmem:[#allocation310_spill] sm:$0xff]  ;;  %v4650_v11 = vld [vmem:[#allocation2 + $0x270] sm:$0xff]  ;;  %v9030_v53 = vld [vmem:[#allocation51_spill] sm:$0xff] }
 0x514   :  { %v3282_v51 = vsel %vm3271_vm8, %v3217_v2, %v2455_v18  ;;  %v2711_v60 = vpop.permute.xlu0 %2710  ;;  %v3230_v22 = vsel %vm3206_vm6, %v3165_v52, %v9011_v10  ;;  %v9012_v2 = vld [vmem:[#allocation27_spill] sm:$0xff]  ;;  %v2930_v52 = vsel %vm18_vm0, %v4650_v11, %v9030_v53  ;;  %v747_v10 = vld [vmem:[#allocation2 + $0x249] sm:$0xff] }
 0x515   :  { %v3347_v19 = vsel %vm3336_vm9, %v3282_v51, %v2711_v60  ;;  %v3295_v27 = vsel %vm3271_vm8, %v3230_v22, %v6810_v6  ;;  %v2906_v18 = vsel %vm18_vm0, %v4647_v37, %v9012_v2  ;;  %v2958_v6 = vsel %vm2946_vm4, %v2893_v24, %v9015_v57  ;;  %v9032_v37 = vld [vmem:[#allocation156_spill] sm:$0xff]  ;;  %v9050_v11 = vld [vmem:[#allocation297_spill] sm:$0xff] }
 0x516   :  { %4546 = vmatmul.msk.f32.gmra.mxu0 %vm3406_vm10, %v3347_v19  ;;  %v3360_v51 = vsel %vm3336_vm9, %v3295_v27, %v2737_v28  ;;  %v9017_v28 = vld [vmem:[#allocation39_spill] sm:$0xff]  ;;  %v3023_v63 = vsel %vm3011_vm3, %v2958_v6, %v9018_v46  ;;  %v735_v57 = vld [vmem:[#allocation2 + $0x189] sm:$0xff] }
 0x517   :  { %v3088_v8 = vsel %vm3076_vm5, %v3023_v63, %v9021_v17  ;;  %v4652_v63 = vld [vmem:[#allocation2 + $0x90] sm:$0xff]  ;;  %v9038_v17 = vld [vmem:[#allocation74_spill] sm:$0xff] }
 0x518   :  { %2744 = vrot.lane.b32.xlu2 %v797_v54, %s4722_s23  ;;  %v9014_v54 = vld [vmem:[#allocation85_spill] sm:$0xff]  ;;  %v3153_v9 = vsel %vm3141_vm7, %v3088_v8, %v9024_v30 }
 0x519   :  { %2720 = vrot.lane.b32.xlu1 %v785_v34, %s4722_s23  ;;  %v2971_v19 = vsel %vm2946_vm4, %v2906_v18, %v9014_v54  ;;  %v4649_v34 = vld [vmem:[#allocation2 + $0x1e0] sm:$0xff]  ;;  %v9033_v18 = vld [vmem:[#allocation224_spill] sm:$0xff]  ;;  %v9040_v30 = vld [vmem:[#allocation41_spill] sm:$0xff] }
 0x51a   :  { %v6865_v43 = vpop.permute.xlu2 %2762  ;;  %2514 = vrot.lane.b32.xlu0 %v746_v26, %s4721_s22  ;;  %v3036_v14 = vsel %vm3011_vm3, %v2971_v19, %v9016_v42  ;;  %v2918_v55 = vsel %vm18_vm0, %v4649_v34, %v9017_v28  ;;  %v823_v42 = vld [vmem:[#allocation2 + $0x2da] sm:$0xff]  ;;  %v9035_v28 = vld [vmem:[#allocation29_spill] sm:$0xff] }
 0x51b   :  { %v2735_v32 = vpop.permute.xlu1 %2734  ;;  %v3101_v26 = vsel %vm3076_vm5, %v3036_v14, %v9019_v58  ;;  %v2983_v49 = vsel %vm2946_vm4, %v2918_v55, %v9020_v61  ;;  %v696_v14 = vld [vmem:[#allocation2 + $0x2e8] sm:$0xff] }
 0x51c   :  { %v3359_v40 = vsel %vm3336_vm9, %v3294_v41, %v2735_v32  ;;  %v2761_v44 = vpop.permute.xlu0 %2760  ;;  %v3166_v59 = vsel %vm3141_vm7, %v3101_v26, %v9022_v35  ;;  %v3048_v23 = vsel %vm3011_vm3, %v2983_v49, %v9023_v13  ;;  %v9026_v41 = vld [vmem:[#allocation212_spill] sm:$0xff]  ;;  %v748_v49 = vld [vmem:[#allocation2 + $0x259] sm:$0xff] }
 0x51d   :  { %4558 = vmatmul.msk.f32.gmra.mxu1 %vm3406_vm10, %v3359_v40  ;;  %v3372_v20 = vsel %vm3336_vm9, %v3307_v7, %v2761_v44  ;;  %v3231_v0 = vsel %vm3206_vm6, %v3166_v59, %v9025_v39  ;;  %v3113_v32 = vsel %vm3076_vm5, %v3048_v23, %v9026_v41  ;;  %v9027_v7 = vld [vmem:[#allocation302_spill] sm:$0xff]  ;;  %v9036_v58 = vld [vmem:[#allocation16_spill] sm:$0xff]  ;;  %v9039_v35 = vld [vmem:[#allocation143_spill] sm:$0xff] }
 0x51e   :  { %4571 = vmatmul.msk.f32.gmra.mxu2 %vm3406_vm10, %v3372_v20  ;;  %v3218_v40 = vsel %vm3206_vm6, %v3153_v9, %v9027_v7  ;;  %v3178_v25 = vsel %vm3141_vm7, %v3113_v32, %v9028_v31  ;;  %v2894_v26 = vsel %vm18_vm0, %v4652_v63, %v9036_v58  ;;  %v799_v13 = vld [vmem:[#allocation2 + $0x18a] sm:$0xff]  ;;  %v9041_v39 = vld [vmem:[#allocation123_spill] sm:$0xff]  ;;  %v9042_v41 = vld [vmem:[#allocation202_spill] sm:$0xff] }
 0x51f   :  { %v2959_v8 = vsel %vm2946_vm4, %v2894_v26, %v9038_v17  ;;  %v4653_v23 = vld [vmem:[#allocation2 + $0x1e8] sm:$0xff]  ;;  %v9057_v63 = vld [vmem:[#allocation274_spill] sm:$0xff] }
 0x520   :  { %2770 = vrot.lane.b32.xlu2 %v810_v48, %s4722_s23  ;;  %v2919_v9 = vsel %vm18_vm0, %v4653_v23, %v9040_v30  ;;  %v760_v7 = vld [vmem:[#allocation2 + $0x2e9] sm:$0xff]  ;;  %v800_v17 = vld [vmem:[#allocation2 + $0x19a] sm:$0xff] }
 0x521   :  { %2538 = vrot.lane.b32.xlu1 %v758_v29, %s4721_s22  ;;  %v3243_v29 = vsel %vm3206_vm6, %v3178_v25, %v9029_v1  ;;  %v9045_v25 = vld [vmem:[#allocation250_spill] sm:$0xff]  ;;  %v9047_v1 = vld [vmem:[#allocation248_spill] sm:$0xff] }
 0x522   :  { %v2483_v62 = vpop.permute.xlu2 %2482  ;;  %2794 = vrot.lane.b32.xlu0 %v822_v50, %s4722_s23  ;;  %v759_v50 = vld [vmem:[#allocation2 + $0x2d9] sm:$0xff] }
 0x523   :  { %v2457_v38 = vpop.permute.xlu1 %2456  ;;  %v3296_v44 = vsel %vm3271_vm8, %v3231_v0, %v2483_v62  ;;  %v9031_v62 = vld [vmem:[#allocation109_spill] sm:$0xff]  ;;  %v3024_v0 = vsel %vm3011_vm3, %v2959_v8, %v9041_v39  ;;  %v4655_v30 = vld [vmem:[#allocation2 + $0x98] sm:$0xff] }
 0x524   :  { %v2275_v60 = vpop.permute.xlu0 %2274  ;;  %v3283_v48 = vsel %vm3271_vm8, %v3218_v40, %v2457_v38  ;;  %v2995_v27 = vsel %vm2946_vm4, %v2930_v52, %v9031_v62  ;;  %v811_v38 = vld [vmem:[#allocation2 + $0x24a] sm:$0xff]  ;;  %v9043_v40 = vld [vmem:[#allocation87_spill] sm:$0xff] }
 0x525   :  { %4559 = vmatmul.msk.f32.gmra.mxu1 %vm3406_vm10, %v3360_v51  ;;  %v3060_v2 = vsel %vm3011_vm3, %v2995_v27, %v9032_v37 }
 0x526   :  { %v3125_v51 = vsel %vm3076_vm5, %v3060_v2, %v9033_v18  ;;  %v9052_v2 = vld [vmem:[#allocation318_spill] sm:$0xff] }
 0x527   :  { %v3190_v47 = vsel %vm3141_vm7, %v3125_v51, %v9034_v16 }
 0x528   :  { %2284 = vrot.lane.b32.xlu2 %v695_v21, %s4720_s21  ;;  %v3255_v24 = vsel %vm3206_vm6, %v3190_v47, %v2275_v60  ;;  %v4651_v60 = vld [vmem:[#allocation2 + $0x128] sm:$0xff] }
 0x529   :  { %2490 = vrot.lane.b32.xlu1 %v734_v3, %s4721_s22  ;;  %v2907_v55 = vsel %vm18_vm0, %v4651_v60, %v9035_v28  ;;  %v824_v47 = vld [vmem:[#allocation2 + $0x2ea] sm:$0xff]  ;;  %v9056_v28 = vld [vmem:[#allocation226_spill] sm:$0xff] }
 0x52a   :  { %v2739_v5 = vpop.permute.xlu2 %2738  ;;  %2746 = vrot.lane.b32.xlu0 %v798_v12, %s4722_s23  ;;  %v9037_v12 = vld [vmem:[#allocation76_spill] sm:$0xff] }
 0x52b   :  { %v2713_v20 = vpop.permute.xlu1 %2712  ;;  %v3361_v4 = vsel %vm3336_vm9, %v3296_v44, %v2739_v5  ;;  %v2972_v61 = vsel %vm2946_vm4, %v2907_v55, %v9037_v12  ;;  %v2984_v44 = vsel %vm2946_vm4, %v2919_v9, %v9043_v40  ;;  %v9044_v5 = vld [vmem:[#allocation189_spill] sm:$0xff]  ;;  %v9058_v9 = vld [vmem:[#allocation18_spill] sm:$0xff] }
 0x52c   :  { %v3348_v45 = vsel %vm3336_vm9, %v3283_v48, %v2713_v20  ;;  %v2507_v15 = vpop.permute.xlu0 %2506  ;;  %v3037_v59 = vsel %vm3011_vm3, %v2972_v61, %v9039_v35  ;;  %v3089_v31 = vsel %vm3076_vm5, %v3024_v0, %v9044_v5  ;;  %v9046_v20 = vld [vmem:[#allocation155_spill] sm:$0xff]  ;;  %v697_v35 = vld [vmem:[#allocation2 + $0x2f0] sm:$0xff]  ;;  %v2895_v39 = vsel %vm18_vm0, %v4655_v30, %v9058_v9  ;;  %v4656_v0 = vld [vmem:[#allocation2 + $0x138] sm:$0xff] }
 0x52d   :  { %4547 = vmatmul.msk.f32.gmra.mxu0 %vm3406_vm10, %v3348_v45  ;;  %4560 = vmatmul.msk.f32.gmra.mxu1 %vm3406_vm10, %v3361_v4  ;;  %v3308_v56 = vsel %vm3271_vm8, %v3243_v29, %v2507_v15  ;;  %v3102_v32 = vsel %vm3076_vm5, %v3037_v59, %v9042_v41  ;;  %v3049_v4 = vsel %vm3011_vm3, %v2984_v44, %v9046_v20  ;;  %v9048_v45 = vld [vmem:[#allocation309_spill] sm:$0xff]  ;;  %v749_v59 = vld [vmem:[#allocation2 + $0x261] sm:$0xff]  ;;  %v9060_v40 = vld [vmem:[#allocation66_spill] sm:$0xff] }
 0x52e   :  { %v3373_v22 = vsel %vm3336_vm9, %v3308_v56, %v6865_v43  ;;  %v3167_v48 = vsel %vm3141_vm7, %v3102_v32, %v9045_v25  ;;  %v3154_v29 = vsel %vm3141_vm7, %v3089_v31, %v9047_v1  ;;  %v9059_v41 = vld [vmem:[#allocation20_spill] sm:$0xff]  ;;  %v2960_v44 = vsel %vm2946_vm4, %v2895_v39, %v9060_v40  ;;  %v9061_v5 = vld [vmem:[#allocation86_spill] sm:$0xff]  ;;  %v9062_v20 = vld [vmem:[#allocation31_spill] sm:$0xff] }
 0x52f   :  { %4572 = vmatmul.msk.f32.gmra.mxu2 %vm3406_vm10, %v3373_v22  ;;  %v3232_v15 = vsel %vm3206_vm6, %v3167_v48, %v9048_v45  ;;  %v3219_v53 = vsel %vm3206_vm6, %v3154_v29, %v9050_v11  ;;  %v9051_v22 = vld [vmem:[#allocation262_spill] sm:$0xff]  ;;  %v2908_v32 = vsel %vm18_vm0, %v4656_v0, %v9059_v41  ;;  %v9063_v1 = vld [vmem:[#allocation132_spill] sm:$0xff]  ;;  %v9064_v45 = vld [vmem:[#allocation145_spill] sm:$0xff] }
 0x530   :  { %2540 = vrot.lane.b32.xlu2 %v759_v50, %s4721_s22  ;;  %v9049_v50 = vld [vmem:[#allocation214_spill] sm:$0xff]  ;;  %v2973_v31 = vsel %vm2946_vm4, %v2908_v32, %v9061_v5  ;;  %v3025_v29 = vsel %vm3011_vm3, %v2960_v44, %v9063_v1  ;;  %v9079_v9 = vld [vmem:[#allocation216_spill] sm:$0xff]  ;;  %v9080_v0 = vld [vmem:[#allocation285_spill] sm:$0xff] }
 0x531   :  { %2516 = vrot.lane.b32.xlu1 %v747_v10, %s4721_s22  ;;  %v3114_v56 = vsel %vm3076_vm5, %v3049_v4, %v9049_v50  ;;  %v761_v25 = vld [vmem:[#allocation2 + $0x2f1] sm:$0xff]  ;;  %v762_v5 = vld [vmem:[#allocation2 + $0x301] sm:$0xff] }
 0x532   :  { %v2765_v43 = vpop.permute.xlu2 %2764  ;;  %2772 = vrot.lane.b32.xlu0 %v811_v38, %s4722_s23  ;;  %v3179_v62 = vsel %vm3141_vm7, %v3114_v56, %v9051_v22  ;;  %v4657_v48 = vld [vmem:[#allocation2 + $0x1f8] sm:$0xff]  ;;  %v4659_v1 = vld [vmem:[#allocation2 + $0xa8] sm:$0xff] }
 0x533   :  { %v2531_v54 = vpop.permute.xlu1 %2530  ;;  %v3244_v18 = vsel %vm3206_vm6, %v3179_v62, %v9052_v2  ;;  %v2920_v4 = vsel %vm18_vm0, %v4657_v48, %v9062_v20  ;;  %v825_v50 = vld [vmem:[#allocation2 + $0x2f2] sm:$0xff] }
 0x534   :  { %v3320_v19 = vsel %vm3271_vm8, %v3255_v24, %v2531_v54  ;;  %v2787_v21 = vpop.permute.xlu0 %2786  ;;  %v4654_v54 = vld [vmem:[#allocation2 + $0x278] sm:$0xff]  ;;  %v9068_v62 = vld [vmem:[#allocation157_spill] sm:$0xff] }
 0x535   :  { %v3385_v6 = vsel %vm3336_vm9, %v3320_v19, %v2787_v21  ;;  %v9053_v19 = vld [vmem:[#allocation53_spill] sm:$0xff]  ;;  %v9065_v56 = vld [vmem:[#allocation98_spill] sm:$0xff] }
 0x536   :  { %4584 = vmatmul.msk.f32.vlgmr.msra.gmra.mxu3 %vm3406_vm10, %v3385_v6  ;;  %v2931_v21 = vsel %vm18_vm0, %v4654_v54, %v9053_v19  ;;  %v2985_v11 = vsel %vm2946_vm4, %v2920_v4, %v9065_v56  ;;  %v9070_v2 = vld [vmem:[#allocation261_spill] sm:$0xff]  ;;  %v9073_v54 = vld [vmem:[#allocation311_spill] sm:$0xff] }
 0x537   :  { %v814_v48 = vld [vmem:[#allocation2 + $0x272] sm:$0xff] }
 0x538   :  { %2492 = vrot.lane.b32.xlu2 %v735_v57, %s4721_s22  ;;  %v812_v57 = vld [vmem:[#allocation2 + $0x25a] sm:$0xff] }
 0x539   :  { %2796 = vrot.lane.b32.xlu1 %v823_v42, %s4722_s23  ;;  %v9054_v42 = vld [vmem:[#allocation99_spill] sm:$0xff] }
 0x53a   :  { %v2485_v3 = vpop.permute.xlu2 %2484  ;;  %2286 = vrot.lane.b32.xlu0 %v696_v14, %s4720_s21  ;;  %v2996_v14 = vsel %vm2946_vm4, %v2931_v21, %v9054_v42  ;;  %v9074_v21 = vld [vmem:[#allocation273_spill] sm:$0xff] }
 0x53b   :  { %v2459_v34 = vpop.permute.xlu1 %2458  ;;  %v3297_v52 = vsel %vm3271_vm8, %v3232_v15, %v2485_v3  ;;  %v736_v3 = vld [vmem:[#allocation2 + $0x199] sm:$0xff]  ;;  %v3038_v15 = vsel %vm3011_vm3, %v2973_v31, %v9064_v45 }
 0x53c   :  { %v2277_v46 = vpop.permute.xlu0 %2276  ;;  %v3284_v27 = vsel %vm3271_vm8, %v3219_v53, %v2459_v34  ;;  %v9055_v34 = vld [vmem:[#allocation167_spill] sm:$0xff] }
 0x53d   :  { %v3061_v60 = vsel %vm3011_vm3, %v2996_v14, %v9055_v34  ;;  %v9066_v53 = vld [vmem:[#allocation191_spill] sm:$0xff] }
 0x53e   :  { %v3126_v55 = vsel %vm3076_vm5, %v3061_v60, %v9056_v28  ;;  %v9075_v34 = vld [vmem:[#allocation319_spill] sm:$0xff] }
 0x53f   :  { %v3191_v58 = vsel %vm3141_vm7, %v3126_v55, %v9057_v63 }
 0x540   :  { %2518 = vrot.lane.b32.xlu2 %v748_v49, %s4721_s22 }
 0x541   :  { %2748 = vrot.lane.b32.xlu1 %v799_v13, %s4722_s23 }
 0x542   :  { %v2741_v10 = vpop.permute.xlu2 %2740  ;;  %2542 = vrot.lane.b32.xlu0 %v760_v7, %s4721_s22  ;;  %v813_v7 = vld [vmem:[#allocation2 + $0x262] sm:$0xff] }
 0x543   :  { %v2715_v38 = vpop.permute.xlu1 %2714  ;;  %v3362_v37 = vsel %vm3336_vm9, %v3297_v52, %v2741_v10  ;;  %v3090_v52 = vsel %vm3076_vm5, %v3025_v29, %v9066_v53  ;;  %v9067_v10 = vld [vmem:[#allocation193_spill] sm:$0xff]  ;;  %v9081_v29 = vld [vmem:[#allocation10_spill] sm:$0xff]  ;;  %v9083_v53 = vld [vmem:[#allocation75_spill] sm:$0xff] }
 0x544   :  { %v3349_v51 = vsel %vm3336_vm9, %v3284_v27, %v2715_v38  ;;  %4561 = vmatmul.msk.f32.gmra.mxu1 %vm3406_vm10, %v3362_v37  ;;  %v2509_v16 = vpop.permute.xlu0 %2508  ;;  %v3103_v22 = vsel %vm3076_vm5, %v3038_v15, %v9067_v10  ;;  %v3050_v27 = vsel %vm3011_vm3, %v2985_v11, %v9068_v62  ;;  %v9069_v38 = vld [vmem:[#allocation239_spill] sm:$0xff]  ;;  %v2896_v45 = vsel %vm18_vm0, %v4659_v1, %v9081_v29  ;;  %v687_v11 = vld [vmem:[#allocation2 + $0x278] sm:$0xff]  ;;  %v9084_v10 = vld [vmem:[#allocation88_spill] sm:$0xff] }
 0x545   :  { %4548 = vmatmul.msk.f32.gmra.mxu0 %vm3406_vm10, %v3349_v51  ;;  %v3309_v24 = vsel %vm3271_vm8, %v3244_v18, %v2509_v16  ;;  %v3155_v37 = vsel %vm3141_vm7, %v3090_v52, %v9069_v38  ;;  %v3168_v18 = vsel %vm3141_vm7, %v3103_v22, %v9070_v2  ;;  %v9071_v51 = vld [vmem:[#allocation204_spill] sm:$0xff]  ;;  %v4660_v15 = vld [vmem:[#allocation2 + $0x140] sm:$0xff]  ;;  %v2961_v52 = vsel %vm2946_vm4, %v2896_v45, %v9083_v53  ;;  %v9085_v38 = vld [vmem:[#allocation42_spill] sm:$0xff] }
 0x546   :  { %v3374_v6 = vsel %vm3336_vm9, %v3309_v24, %v2765_v43  ;;  %v3256_v43 = vsel %vm3206_vm6, %v3191_v58, %v2277_v46  ;;  %v3115_v16 = vsel %vm3076_vm5, %v3050_v27, %v9071_v51  ;;  %v3233_v19 = vsel %vm3206_vm6, %v3168_v18, %v9073_v54  ;;  %v698_v58 = vld [vmem:[#allocation2 + $0x300] sm:$0xff]  ;;  %v9086_v2 = vld [vmem:[#allocation134_spill] sm:$0xff] }
 0x547   :  { %4573 = vmatmul.msk.f32.gmra.mxu2 %vm3406_vm10, %v3374_v6  ;;  %v826_v62 = vld [vmem:[#allocation2 + $0x302] sm:$0xff]  ;;  %v3026_v18 = vsel %vm3011_vm3, %v2961_v52, %v9086_v2  ;;  %v4663_v2 = vld [vmem:[#allocation2 + $0xb0] sm:$0xff] }
 0x548   :  { %2798 = vrot.lane.b32.xlu2 %v824_v47, %s4722_s23  ;;  %v9072_v47 = vld [vmem:[#allocation303_spill] sm:$0xff] }
 0x549   :  { %2774 = vrot.lane.b32.xlu1 %v812_v57, %s4722_s23  ;;  %v3220_v24 = vsel %vm3206_vm6, %v3155_v37, %v9072_v47  ;;  %v3180_v57 = vsel %vm3141_vm7, %v3115_v16, %v9074_v21  ;;  %v4661_v27 = vld [vmem:[#allocation2 + $0x200] sm:$0xff]  ;;  %v699_v47 = vld [vmem:[#allocation2 + $0x308] sm:$0xff] }
 0x54a   :  { %2494 = vrot.lane.b32.xlu0 %v736_v3, %s4721_s22  ;;  %v2767_v26 = vpop.permute.xlu2 %2766  ;;  %v3245_v60 = vsel %vm3206_vm6, %v3180_v57, %v9075_v34  ;;  %v2921_v37 = vsel %vm18_vm0, %v4661_v27, %v9085_v38  ;;  %v9087_v51 = vld [vmem:[#allocation135_spill] sm:$0xff]  ;;  %v700_v27 = vld [vmem:[#allocation2 + $0x318] sm:$0xff] }
 0x54b   :  { %v2533_v12 = vpop.permute.xlu1 %2532  ;;  %v9090_v57 = vld [vmem:[#allocation203_spill] sm:$0xff] }
 0x54c   :  { %v3321_v61 = vsel %vm3271_vm8, %v3256_v43, %v2533_v12  ;;  %v2789_v49 = vpop.permute.xlu0 %2788  ;;  %v4658_v12 = vld [vmem:[#allocation2 + $0x288] sm:$0xff]  ;;  %v9102_v29 = vld [vmem:[#allocation227_spill] sm:$0xff] }
 0x54d   :  { %v3386_v8 = vsel %vm3336_vm9, %v3321_v61, %v2789_v49  ;;  %v9076_v61 = vld [vmem:[#allocation43_spill] sm:$0xff] }
 0x54e   :  { %4585 = vmatmul.msk.f32.gmra.mxu3 %vm3406_vm10, %v3386_v8  ;;  %v2932_v49 = vsel %vm18_vm0, %v4658_v12, %v9076_v61  ;;  %v9096_v12 = vld [vmem:[#allocation306_spill] sm:$0xff] }
 0x550   :  { %2750 = vrot.lane.b32.xlu2 %v800_v17, %s4722_s23  ;;  %v737_v17 = vld [vmem:[#allocation2 + $0x1a1] sm:$0xff] }
 0x551   :  { %2288 = vrot.lane.b32.xlu1 %v697_v35, %s4720_s21  ;;  %v9077_v35 = vld [vmem:[#allocation110_spill] sm:$0xff] }
 0x552   :  { %2520 = vrot.lane.b32.xlu0 %v749_v59, %s4721_s22  ;;  %v2487_v13 = vpop.permute.xlu2 %2486  ;;  %v2997_v59 = vsel %vm2946_vm4, %v2932_v49, %v9077_v35  ;;  %v9097_v49 = vld [vmem:[#allocation275_spill] sm:$0xff] }
 0x553   :  { %v2461_v46 = vpop.permute.xlu1 %2460  ;;  %v3298_v6 = vsel %vm3271_vm8, %v3233_v19, %v2487_v13  ;;  %v801_v13 = vld [vmem:[#allocation2 + $0x1a2] sm:$0xff]  ;;  %v9089_v19 = vld [vmem:[#allocation182_spill] sm:$0xff] }
 0x554   :  { %v2279_v23 = vpop.permute.xlu0 %2278  ;;  %v3285_v42 = vsel %vm3271_vm8, %v3220_v24, %v2461_v46  ;;  %v9078_v46 = vld [vmem:[#allocation169_spill] sm:$0xff]  ;;  %v9088_v24 = vld [vmem:[#allocation100_spill] sm:$0xff]  ;;  %v3091_v21 = vsel %vm3076_vm5, %v3026_v18, %v9089_v19  ;;  %v9104_v18 = vld [vmem:[#allocation19_spill] sm:$0xff] }
 0x555   :  { %v3062_v30 = vsel %vm3011_vm3, %v2997_v59, %v9078_v46  ;;  %v2986_v54 = vsel %vm2946_vm4, %v2921_v37, %v9088_v24  ;;  %v9098_v46 = vld [vmem:[#allocation313_spill] sm:$0xff] }
 0x556   :  { %v3127_v39 = vsel %vm3076_vm5, %v3062_v30, %v9079_v9  ;;  %v4664_v19 = vld [vmem:[#allocation2 + $0x210] sm:$0xff] }
 0x557   :  { %v3192_v41 = vsel %vm3141_vm7, %v3127_v39, %v9080_v0 }
 0x558   :  { %2776 = vrot.lane.b32.xlu2 %v813_v7, %s4722_s23 }
 0x559   :  { %2544 = vrot.lane.b32.xlu1 %v761_v25, %s4721_s22  ;;  %v750_v25 = vld [vmem:[#allocation2 + $0x271] sm:$0xff] }
 0x55a   :  { %2800 = vrot.lane.b32.xlu0 %v825_v50, %s4722_s23  ;;  %v2743_v14 = vpop.permute.xlu2 %2742  ;;  %v9082_v50 = vld [vmem:[#allocation30_spill] sm:$0xff] }
 0x55b   :  { %v2717_v3 = vpop.permute.xlu1 %2716  ;;  %v3363_v55 = vsel %vm3336_vm9, %v3298_v6, %v2743_v14  ;;  %v2909_v56 = vsel %vm18_vm0, %v4660_v15, %v9082_v50  ;;  %v9103_v15 = vld [vmem:[#allocation287_spill] sm:$0xff] }
 0x55c   :  { %v3350_v28 = vsel %vm3336_vm9, %v3285_v42, %v2717_v3  ;;  %v2511_v63 = vpop.permute.xlu0 %2510  ;;  %4562 = vmatmul.msk.f32.gmra.mxu1 %vm3406_vm10, %v3363_v55  ;;  %v2974_v22 = vsel %vm2946_vm4, %v2909_v56, %v9084_v10  ;;  %v9091_v42 = vld [vmem:[#allocation147_spill] sm:$0xff]  ;;  %v9092_v3 = vld [vmem:[#allocation249_spill] sm:$0xff]  ;;  %v688_v10 = vld [vmem:[#allocation2 + $0x288] sm:$0xff] }
 0x55d   :  { %4549 = vmatmul.msk.f32.gmra.mxu0 %vm3406_vm10, %v3350_v28  ;;  %v3310_v43 = vsel %vm3271_vm8, %v3245_v60, %v2511_v63  ;;  %v3039_v16 = vsel %vm3011_vm3, %v2974_v22, %v9087_v51  ;;  %v3051_v14 = vsel %vm3011_vm3, %v2986_v54, %v9091_v42  ;;  %v3156_v34 = vsel %vm3141_vm7, %v3091_v21, %v9092_v3  ;;  %v9093_v60 = vld [vmem:[#allocation263_spill] sm:$0xff]  ;;  %v752_v54 = vld [vmem:[#allocation2 + $0x289] sm:$0xff]  ;;  %v9108_v3 = vld [vmem:[#allocation90_spill] sm:$0xff] }
 0x55e   :  { %v3375_v8 = vsel %vm3336_vm9, %v3310_v43, %v2767_v26  ;;  %v3257_v26 = vsel %vm3206_vm6, %v3192_v41, %v2279_v23  ;;  %v3104_v6 = vsel %vm3076_vm5, %v3039_v16, %v9090_v57  ;;  %v9094_v55 = vld [vmem:[#allocation215_spill] sm:$0xff]  ;;  %v763_v41 = vld [vmem:[#allocation2 + $0x309] sm:$0xff]  ;;  %v2897_v51 = vsel %vm18_vm0, %v4663_v2, %v9104_v18  ;;  %v753_v18 = vld [vmem:[#allocation2 + $0x291] sm:$0xff] }
 0x55f   :  { %4574 = vmatmul.msk.f32.gmra.mxu2 %vm3406_vm10, %v3375_v8  ;;  %v3169_v28 = vsel %vm3141_vm7, %v3104_v6, %v9093_v60  ;;  %v3116_v63 = vsel %vm3076_vm5, %v3051_v14, %v9094_v55  ;;  %v764_v16 = vld [vmem:[#allocation2 + $0x319] sm:$0xff]  ;;  %v9106_v21 = vld [vmem:[#allocation44_spill] sm:$0xff] }
 0x560   :  { %2290 = vrot.lane.b32.xlu2 %v698_v58, %s4720_s21  ;;  %v9095_v58 = vld [vmem:[#allocation305_spill] sm:$0xff]  ;;  %v3234_v61 = vsel %vm3206_vm6, %v3169_v28, %v9096_v12  ;;  %v2922_v57 = vsel %vm18_vm0, %v4664_v19, %v9106_v21  ;;  %v9107_v6 = vld [vmem:[#allocation124_spill] sm:$0xff]  ;;  %v9110_v55 = vld [vmem:[#allocation158_spill] sm:$0xff] }
 0x561   :  { %2496 = vrot.lane.b32.xlu1 %v737_v17, %s4721_s22  ;;  %v3221_v43 = vsel %vm3206_vm6, %v3156_v34, %v9095_v58  ;;  %v3181_v17 = vsel %vm3141_vm7, %v3116_v63, %v9097_v49  ;;  %v816_v14 = vld [vmem:[#allocation2 + $0x28a] sm:$0xff]  ;;  %v2987_v34 = vsel %vm2946_vm4, %v2922_v57, %v9108_v3  ;;  %v9111_v58 = vld [vmem:[#allocation251_spill] sm:$0xff]  ;;  %v9113_v49 = vld [vmem:[#allocation298_spill] sm:$0xff] }
 0x562   :  { %2752 = vrot.lane.b32.xlu0 %v801_v13, %s4722_s23  ;;  %v2769_v32 = vpop.permute.xlu2 %2768  ;;  %v3246_v30 = vsel %vm3206_vm6, %v3181_v17, %v9098_v46  ;;  %v9109_v60 = vld [vmem:[#allocation192_spill] sm:$0xff]  ;;  %v3052_v63 = vsel %vm3011_vm3, %v2987_v34, %v9110_v55  ;;  %v9112_v12 = vld [vmem:[#allocation217_spill] sm:$0xff] }
 0x563   :  { %v2535_v7 = vpop.permute.xlu1 %2534  ;;  %v9125_v21 = vld [vmem:[#allocation253_spill] sm:$0xff] }
 0x564   :  { %v3322_v40 = vsel %vm3271_vm8, %v3257_v26, %v2535_v7  ;;  %v2791_v44 = vpop.permute.xlu0 %2790  ;;  %v4662_v7 = vld [vmem:[#allocation2 + $0x290] sm:$0xff] }
 0x565   :  { %v3387_v31 = vsel %vm3336_vm9, %v3322_v40, %v2791_v44  ;;  %v9099_v40 = vld [vmem:[#allocation54_spill] sm:$0xff]  ;;  %v702_v55 = vld [vmem:[#allocation2 + $0x330] sm:$0xff] }
 0x566   :  { %4586 = vmatmul.msk.f32.gmra.mxu3 %vm3406_vm10, %v3387_v31  ;;  %v2933_v44 = vsel %vm18_vm0, %v4662_v7, %v9099_v40  ;;  %v4665_v7 = vld [vmem:[#allocation2 + $0x2a0] sm:$0xff]  ;;  %v9116_v40 = vld [vmem:[#allocation56_spill] sm:$0xff] }
 0x568   :  { %2546 = vrot.lane.b32.xlu2 %v762_v5, %s4721_s22  ;;  %v751_v5 = vld [vmem:[#allocation2 + $0x279] sm:$0xff] }
 0x569   :  { %2522 = vrot.lane.b32.xlu1 %v750_v25, %s4721_s22  ;;  %v9100_v25 = vld [vmem:[#allocation112_spill] sm:$0xff] }
 0x56a   :  { %2778 = vrot.lane.b32.xlu0 %v814_v48, %s4722_s23  ;;  %v2489_v20 = vpop.permute.xlu2 %2488  ;;  %v2998_v48 = vsel %vm2946_vm4, %v2933_v44, %v9100_v25  ;;  %v2934_v44 = vsel %vm18_vm0, %v4665_v7, %v9116_v40  ;;  %v9117_v25 = vld [vmem:[#allocation102_spill] sm:$0xff] }
 0x56b   :  { %v2463_v23 = vpop.permute.xlu1 %2462  ;;  %v3299_v8 = vsel %vm3271_vm8, %v3234_v61, %v2489_v20  ;;  %v815_v20 = vld [vmem:[#allocation2 + $0x27a] sm:$0xff]  ;;  %v3117_v61 = vsel %vm3076_vm5, %v3052_v63, %v9112_v12 }
 0x56c   :  { %v2281_v4 = vpop.permute.xlu0 %2280  ;;  %v3286_v35 = vsel %vm3271_vm8, %v3221_v43, %v2463_v23  ;;  %v9101_v23 = vld [vmem:[#allocation159_spill] sm:$0xff] }
 0x56d   :  { %v3063_v1 = vsel %vm3011_vm3, %v2998_v48, %v9101_v23  ;;  %v2999_v48 = vsel %vm2946_vm4, %v2934_v44, %v9117_v25  ;;  %v9118_v23 = vld [vmem:[#allocation170_spill] sm:$0xff] }
 0x56e   :  { %v3128_v45 = vsel %vm3076_vm5, %v3063_v1, %v9102_v29  ;;  %v3064_v1 = vsel %vm3011_vm3, %v2999_v48, %v9118_v23  ;;  %v9119_v29 = vld [vmem:[#allocation229_spill] sm:$0xff]  ;;  %v703_v48 = vld [vmem:[#allocation2 + $0x338] sm:$0xff] }
 0x56f   :  { %v3193_v50 = vsel %vm3141_vm7, %v3128_v45, %v9103_v15  ;;  %v3129_v45 = vsel %vm3076_vm5, %v3064_v1, %v9119_v29  ;;  %v9120_v15 = vld [vmem:[#allocation277_spill] sm:$0xff] }
 0x570   :  { %2268 = vrot.lane.b32.xlu2 %v687_v11, %s4720_s21  ;;  %v9134_v23 = vld [vmem:[#allocation113_spill] sm:$0xff] }
 0x571   :  { %2802 = vrot.lane.b32.xlu1 %v826_v62, %s4722_s23  ;;  %v827_v62 = vld [vmem:[#allocation2 + $0x30a] sm:$0xff]  ;;  %v830_v29 = vld [vmem:[#allocation2 + $0x332] sm:$0xff] }
 0x572   :  { %2292 = vrot.lane.b32.xlu0 %v699_v47, %s4720_s21  ;;  %v2745_v59 = vpop.permute.xlu2 %2744  ;;  %v9105_v47 = vld [vmem:[#allocation77_spill] sm:$0xff] }
 0x573   :  { %v2719_v13 = vpop.permute.xlu1 %2718  ;;  %v3364_v39 = vsel %vm3336_vm9, %v3299_v8, %v2745_v59  ;;  %v2962_v24 = vsel %vm2946_vm4, %v2897_v51, %v9105_v47  ;;  %v9114_v8 = vld [vmem:[#allocation265_spill] sm:$0xff]  ;;  %v9122_v51 = vld [vmem:[#allocation78_spill] sm:$0xff] }
 0x574   :  { %v3351_v9 = vsel %vm3336_vm9, %v3286_v35, %v2719_v13  ;;  %v2513_v0 = vpop.permute.xlu0 %2512  ;;  %4563 = vmatmul.msk.f32.gmra.mxu1 %vm3406_vm10, %v3364_v39  ;;  %v3027_v42 = vsel %vm3011_vm3, %v2962_v24, %v9107_v6  ;;  %v3182_v35 = vsel %vm3141_vm7, %v3117_v61, %v9114_v8  ;;  %v9123_v47 = vld [vmem:[#allocation146_spill] sm:$0xff]  ;;  %v9126_v6 = vld [vmem:[#allocation312_spill] sm:$0xff] }
 0x575   :  { %4550 = vmatmul.msk.f32.gmra.mxu0 %vm3406_vm10, %v3351_v9  ;;  %v3311_v26 = vsel %vm3271_vm8, %v3246_v30, %v2513_v0  ;;  %v3092_v28 = vsel %vm3076_vm5, %v3027_v42, %v9109_v60  ;;  %v9115_v30 = vld [vmem:[#allocation320_spill] sm:$0xff]  ;;  %v766_v8 = vld [vmem:[#allocation2 + $0x331] sm:$0xff] }
 0x576   :  { %v3376_v31 = vsel %vm3336_vm9, %v3311_v26, %v2769_v32  ;;  %v3258_v32 = vsel %vm3206_vm6, %v3193_v50, %v2281_v4  ;;  %v3157_v43 = vsel %vm3141_vm7, %v3092_v28, %v9111_v58  ;;  %v3247_v9 = vsel %vm3206_vm6, %v3182_v35, %v9115_v30  ;;  %v4667_v58 = vld [vmem:[#allocation2 + $0x218] sm:$0xff]  ;;  %v829_v61 = vld [vmem:[#allocation2 + $0x322] sm:$0xff] }
 0x577   :  { %4575 = vmatmul.msk.f32.gmra.mxu2 %vm3406_vm10, %v3376_v31  ;;  %v3222_v17 = vsel %vm3206_vm6, %v3157_v43, %v9113_v49  ;;  %v3194_v50 = vsel %vm3141_vm7, %v3129_v45, %v9120_v15  ;;  %v9127_v43 = vld [vmem:[#allocation34_spill] sm:$0xff]  ;;  %v9128_v49 = vld [vmem:[#allocation101_spill] sm:$0xff]  ;;  %v9129_v35 = vld [vmem:[#allocation160_spill] sm:$0xff] }
 0x578   :  { %2548 = vrot.lane.b32.xlu2 %v763_v41, %s4721_s22  ;;  %v689_v41 = vld [vmem:[#allocation2 + $0x290] sm:$0xff]  ;;  %v2923_v12 = vsel %vm18_vm0, %v4667_v58, %v9127_v43  ;;  %v9135_v45 = vld [vmem:[#allocation172_spill] sm:$0xff]  ;;  %v9144_v58 = vld [vmem:[#allocation162_spill] sm:$0xff] }
 0x579   :  { %2524 = vrot.lane.b32.xlu1 %v751_v5, %s4721_s22  ;;  %v828_v5 = vld [vmem:[#allocation2 + $0x31a] sm:$0xff] }
 0x57a   :  { %2780 = vrot.lane.b32.xlu0 %v815_v20, %s4722_s23  ;;  %v2771_v56 = vpop.permute.xlu2 %2770  ;;  %v701_v20 = vld [vmem:[#allocation2 + $0x320] sm:$0xff] }
 0x57b   :  { %v2537_v11 = vpop.permute.xlu1 %2536 }
 0x57c   :  { %v3323_v53 = vsel %vm3271_vm8, %v3258_v32, %v2537_v11  ;;  %v2793_v52 = vpop.permute.xlu0 %2792  ;;  %v7219_v32 = vpop.f32.mrf.mxu0 }
 0x57d   :  { %v3388_v22 = vsel %vm3336_vm9, %v3323_v53, %v2793_v52 }
 0x57e   :  { %4587 = vmatmul.msk.f32.gmra.mxu3 %vm3406_vm10, %v3388_v22  ;;  %v765_v22 = vld [vmem:[#allocation2 + $0x321] sm:$0xff] }
 0x580   :  { %2270 = vrot.lane.b32.xlu2 %v688_v10, %s4720_s21 }
 0x581   :  { %2804 = vrot.lane.b32.xlu1 %v827_v62, %s4722_s23 }
 0x582   :  { %2294 = vrot.lane.b32.xlu0 %v700_v27, %s4720_s21  ;;  %v7170_v38 = vpop.permute.xlu2 %2284  ;;  %v4666_v27 = vld [vmem:[#allocation2 + $0x150] sm:$0xff] }
 0x583   :  { %v2465_v4 = vpop.permute.xlu1 %2464 }
 0x584   :  { %v2283_v37 = vpop.permute.xlu0 %2282  ;;  %v3287_v59 = vsel %vm3271_vm8, %v3222_v17, %v2465_v4  ;;  %v9121_v4 = vld [vmem:[#allocation32_spill] sm:$0xff]  ;;  %v7246_v28 = vpop.f32.mrf.mxu0  ;;  %v2988_v17 = vsel %vm2946_vm4, %v2923_v12, %v9128_v49 }
 0x585   :  { %v2910_v2 = vsel %vm18_vm0, %v4666_v27, %v9121_v4  ;;  %v9145_v12 = vld [vmem:[#allocation264_spill] sm:$0xff] }
 0x588   :  { %2550 = vrot.lane.b32.xlu2 %v764_v16, %s4721_s22  ;;  %v2975_v16 = vsel %vm2946_vm4, %v2910_v2, %v9122_v51 }
 0x589   :  { %2526 = vrot.lane.b32.xlu1 %v752_v54, %s4721_s22  ;;  %v3040_v24 = vsel %vm3011_vm3, %v2975_v16, %v9123_v47  ;;  %v9124_v54 = vld [vmem:[#allocation205_spill] sm:$0xff]  ;;  %v4669_v16 = vld [vmem:[#allocation2 + $0x158] sm:$0xff] }
 0x58a   :  { %2782 = vrot.lane.b32.xlu0 %v816_v14, %s4722_s23  ;;  %v7198_v13 = vpop.permute.xlu2 %2540  ;;  %v3105_v19 = vsel %vm3076_vm5, %v3040_v24, %v9124_v54  ;;  %v704_v24 = vld [vmem:[#allocation2 + $0x348] sm:$0xff]  ;;  %v9139_v54 = vld [vmem:[#allocation89_spill] sm:$0xff] }
 0x58b   :  { %v2721_v46 = vpop.permute.xlu1 %2720  ;;  %v3170_v57 = vsel %vm3141_vm7, %v3105_v19, %v9125_v21  ;;  %v831_v19 = vld [vmem:[#allocation2 + $0x33a] sm:$0xff] }
 0x58c   :  { %v3352_v39 = vsel %vm3336_vm9, %v3287_v59, %v2721_v46  ;;  %v2515_v0 = vpop.permute.xlu0 %2514  ;;  %v3235_v42 = vsel %vm3206_vm6, %v3170_v57, %v9126_v6  ;;  %v3053_v59 = vsel %vm3011_vm3, %v2988_v17, %v9129_v35  ;;  %v9130_v46 = vld [vmem:[#allocation207_spill] sm:$0xff]  ;;  %v4670_v21 = vld [vmem:[#allocation2 + $0x2b8] sm:$0xff]  ;;  %v9140_v57 = vld [vmem:[#allocation57_spill] sm:$0xff] }
 0x58d   :  { %4551 = vmatmul.msk.f32.gmra.mxu0 %vm3406_vm10, %v3352_v39  ;;  %v3312_v26 = vsel %vm3271_vm8, %v3247_v9, %v2515_v0  ;;  %v3118_v30 = vsel %vm3076_vm5, %v3053_v59, %v9130_v46  ;;  %v9131_v9 = vld [vmem:[#allocation276_spill] sm:$0xff]  ;;  %v9132_v0 = vld [vmem:[#allocation321_spill] sm:$0xff]  ;;  %v9146_v17 = vld [vmem:[#allocation230_spill] sm:$0xff] }
 0x58e   :  { %v3377_v31 = vsel %vm3336_vm9, %v3312_v26, %v2771_v56  ;;  %v3259_v56 = vsel %vm3206_vm6, %v3194_v50, %v2283_v37  ;;  %v817_v37 = vld [vmem:[#allocation2 + $0x292] sm:$0xff]  ;;  %v3183_v39 = vsel %vm3141_vm7, %v3118_v30, %v9131_v9  ;;  %v7274_v50 = vpop.f32.mrf.mxu0  ;;  %v9141_v6 = vld [vmem:[#allocation148_spill] sm:$0xff] }
 0x58f   :  { %4576 = vmatmul.msk.f32.gmra.mxu2 %vm3406_vm10, %v3377_v31  ;;  %v9133_v31 = vld [vmem:[#allocation46_spill] sm:$0xff]  ;;  %v9148_v46 = vld [vmem:[#allocation289_spill] sm:$0xff] }
 0x590   :  { %2272 = vrot.lane.b32.xlu2 %v689_v41, %s4720_s21  ;;  %v3248_v41 = vsel %vm3206_vm6, %v3183_v39, %v9132_v0  ;;  %v9147_v35 = vld [vmem:[#allocation314_spill] sm:$0xff] }
 0x591   :  { %2806 = vrot.lane.b32.xlu1 %v828_v5, %s4722_s23  ;;  %v4668_v5 = vld [vmem:[#allocation2 + $0x2a8] sm:$0xff] }
 0x592   :  { %2296 = vrot.lane.b32.xlu0 %v701_v20, %s4720_s21  ;;  %v7223_v11 = vpop.permute.xlu2 %2492  ;;  %v2935_v25 = vsel %vm18_vm0, %v4668_v5, %v9133_v31 }
 0x593   :  { %v2539_v53 = vpop.permute.xlu1 %2538  ;;  %v3000_v1 = vsel %vm2946_vm4, %v2935_v25, %v9134_v23  ;;  %v705_v25 = vld [vmem:[#allocation2 + $0x350] sm:$0xff] }
 0x594   :  { %v3324_v52 = vsel %vm3271_vm8, %v3259_v56, %v2539_v53  ;;  %v2795_v10 = vpop.permute.xlu0 %2794  ;;  %v3065_v15 = vsel %vm3011_vm3, %v3000_v1, %v9135_v45  ;;  %v767_v56 = vld [vmem:[#allocation2 + $0x339] sm:$0xff]  ;;  %v9151_v45 = vld [vmem:[#allocation33_spill] sm:$0xff] }
 0x595   :  { %v3389_v62 = vsel %vm3336_vm9, %v3324_v52, %v2795_v10  ;;  %v9136_v53 = vld [vmem:[#allocation219_spill] sm:$0xff]  ;;  %v9137_v10 = vld [vmem:[#allocation288_spill] sm:$0xff] }
 0x596   :  { %4588 = vmatmul.msk.f32.gmra.mxu3 %vm3406_vm10, %v3389_v62  ;;  %v3130_v52 = vsel %vm3076_vm5, %v3065_v15, %v9136_v53  ;;  %v7308_v49 = vpop.f32.mrf.mxu0 }
 0x598   :  { %2552 = vrot.lane.b32.xlu2 %v765_v22, %s4721_s22  ;;  %v3195_v22 = vsel %vm3141_vm7, %v3130_v52, %v9137_v10  ;;  %v769_v52 = vld [vmem:[#allocation2 + $0x351] sm:$0xff]  ;;  %v9153_v10 = vld [vmem:[#allocation91_spill] sm:$0xff] }
 0x599   :  { %2528 = vrot.lane.b32.xlu1 %v753_v18, %s4721_s22  ;;  %v3260_v62 = vsel %vm3206_vm6, %v3195_v22, %v7170_v38 }
 0x59a   :  { %2784 = vrot.lane.b32.xlu0 %v817_v37, %s4722_s23  ;;  %v7243_v14 = vpop.permute.xlu2 %2518  ;;  %v3325_v27 = vsel %vm3271_vm8, %v3260_v62, %v7198_v13  ;;  %v9138_v37 = vld [vmem:[#allocation22_spill] sm:$0xff]  ;;  %v2936_v13 = vsel %vm18_vm0, %v4670_v21, %v9140_v57 }
 0x59b   :  { %v2491_v3 = vpop.permute.xlu1 %2490  ;;  %v2911_v47 = vsel %vm18_vm0, %v4669_v16, %v9138_v37  ;;  %v9154_v62 = vld [vmem:[#allocation218_spill] sm:$0xff] }
 0x59c   :  { %v3300_v34 = vsel %vm3271_vm8, %v3235_v42, %v2491_v3  ;;  %v2747_v60 = vpop.permute.xlu0 %2746  ;;  %v2976_v38 = vsel %vm2946_vm4, %v2911_v47, %v9139_v54  ;;  %v768_v3 = vld [vmem:[#allocation2 + $0x349] sm:$0xff]  ;;  %v9157_v16 = vld [vmem:[#allocation206_spill] sm:$0xff] }
 0x59d   :  { %v3365_v63 = vsel %vm3336_vm9, %v3300_v34, %v2747_v60  ;;  %v3041_v42 = vsel %vm3011_vm3, %v2976_v38, %v9141_v6  ;;  %v9142_v34 = vld [vmem:[#allocation114_spill] sm:$0xff]  ;;  %v9158_v47 = vld [vmem:[#allocation316_spill] sm:$0xff] }
 0x59e   :  { %4564 = vmatmul.msk.f32.gmra.mxu1 %vm3406_vm10, %v3365_v63  ;;  %v3001_v60 = vsel %vm2946_vm4, %v2936_v13, %v9142_v34  ;;  %v9159_v54 = vld [vmem:[#allocation266_spill] sm:$0xff]  ;;  %v9160_v13 = vld [vmem:[#allocation307_spill] sm:$0xff] }
 0x59f   :  { %v3066_v43 = vsel %vm3011_vm3, %v3001_v60, %v9144_v58  ;;  %v833_v60 = vld [vmem:[#allocation2 + $0x352] sm:$0xff]  ;;  %v9161_v58 = vld [vmem:[#allocation47_spill] sm:$0xff] }
 0x5a0   :  { %2298 = vrot.lane.b32.xlu2 %v702_v55, %s4720_s21  ;;  %v9143_v55 = vld [vmem:[#allocation195_spill] sm:$0xff] }
 0x5a1   :  { %2808 = vrot.lane.b32.xlu1 %v829_v61, %s4722_s23  ;;  %v3106_v63 = vsel %vm3076_vm5, %v3041_v42, %v9143_v55 }
 0x5a2   :  { %2554 = vrot.lane.b32.xlu0 %v766_v8, %s4721_s22  ;;  %v2799_v26 = vpop.permute.xlu2 %2798  ;;  %v3171_v61 = vsel %vm3141_vm7, %v3106_v63, %v9145_v12  ;;  %v3131_v8 = vsel %vm3076_vm5, %v3066_v43, %v9146_v17  ;;  %v4673_v63 = vld [vmem:[#allocation2 + $0x230] sm:$0xff] }
 0x5a3   :  { %v2517_v7 = vpop.permute.xlu1 %2516  ;;  %v3236_v59 = vsel %vm3206_vm6, %v3171_v61, %v9147_v35  ;;  %v3196_v30 = vsel %vm3141_vm7, %v3131_v8, %v9148_v46  ;;  %v2925_v43 = vsel %vm18_vm0, %v4673_v63, %v9161_v58  ;;  %v9162_v12 = vld [vmem:[#allocation93_spill] sm:$0xff]  ;;  %v9164_v35 = vld [vmem:[#allocation220_spill] sm:$0xff] }
 0x5a4   :  { %v3313_v40 = vsel %vm3271_vm8, %v3248_v41, %v2517_v7  ;;  %v2773_v44 = vpop.permute.xlu0 %2772  ;;  %v3301_v9 = vsel %vm3271_vm8, %v3236_v59, %v7223_v11  ;;  %v832_v11 = vld [vmem:[#allocation2 + $0x34a] sm:$0xff]  ;;  %v2990_v61 = vsel %vm2946_vm4, %v2925_v43, %v9162_v12  ;;  %v9179_v12 = vld [vmem:[#allocation163_spill] sm:$0xff] }
 0x5a5   :  { %v3378_v20 = vsel %vm3336_vm9, %v3313_v40, %v2773_v44  ;;  %v4671_v40 = vld [vmem:[#allocation2 + $0x228] sm:$0xff]  ;;  %v9149_v44 = vld [vmem:[#allocation45_spill] sm:$0xff] }
 0x5a6   :  { %4577 = vmatmul.msk.f32.gmra.mxu2 %vm3406_vm10, %v3378_v20  ;;  %v2924_v5 = vsel %vm18_vm0, %v4671_v40, %v9149_v44  ;;  %v9150_v20 = vld [vmem:[#allocation103_spill] sm:$0xff]  ;;  %v9163_v17 = vld [vmem:[#allocation161_spill] sm:$0xff]  ;;  %v9166_v40 = vld [vmem:[#allocation58_spill] sm:$0xff] }
 0x5a7   :  { %v2989_v23 = vsel %vm2946_vm4, %v2924_v5, %v9150_v20  ;;  %v3055_v8 = vsel %vm3011_vm3, %v2990_v61, %v9163_v17  ;;  %v9168_v20 = vld [vmem:[#allocation173_spill] sm:$0xff]  ;;  %v9178_v63 = vld [vmem:[#allocation104_spill] sm:$0xff]  ;;  %v9180_v17 = vld [vmem:[#allocation210_spill] sm:$0xff] }
 0x5a8   :  { %2300 = vrot.lane.b32.xlu2 %v703_v48, %s4720_s21  ;;  %v3120_v59 = vsel %vm3076_vm5, %v3055_v8, %v9164_v35  ;;  %v9181_v35 = vld [vmem:[#allocation279_spill] sm:$0xff] }
 0x5a9   :  { %2810 = vrot.lane.b32.xlu1 %v830_v29, %s4722_s23  ;;  %v4672_v29 = vld [vmem:[#allocation2 + $0x168] sm:$0xff] }
 0x5aa   :  { %2556 = vrot.lane.b32.xlu0 %v767_v56, %s4721_s22  ;;  %v7287_v4 = vpop.permute.xlu2 %2750  ;;  %v2912_v15 = vsel %vm18_vm0, %v4672_v29, %v9151_v45  ;;  %v9152_v56 = vld [vmem:[#allocation150_spill] sm:$0xff]  ;;  %v9170_v29 = vld [vmem:[#allocation280_spill] sm:$0xff] }
 0x5ab   :  { %v2797_v2 = vpop.permute.xlu1 %2796  ;;  %v3054_v53 = vsel %vm3011_vm3, %v2989_v23, %v9152_v56  ;;  %v2977_v22 = vsel %vm2946_vm4, %v2912_v15, %v9153_v10  ;;  %v4675_v10 = vld [vmem:[#allocation2 + $0x170] sm:$0xff] }
 0x5ac   :  { %v3390_v18 = vsel %vm3336_vm9, %v3325_v27, %v2797_v2  ;;  %v2287_v51 = vpop.permute.xlu0 %2286  ;;  %v3119_v27 = vsel %vm3076_vm5, %v3054_v53, %v9154_v62  ;;  %v9155_v2 = vld [vmem:[#allocation138_spill] sm:$0xff] }
 0x5ad   :  { %4589 = vmatmul.msk.f32.gmra.mxu3 %vm3406_vm10, %v3390_v18  ;;  %v3261_v0 = vsel %vm3206_vm6, %v3196_v30, %v2287_v51  ;;  %v9156_v18 = vld [vmem:[#allocation278_spill] sm:$0xff] }
 0x5ae   :  { %v3184_v51 = vsel %vm3141_vm7, %v3119_v27, %v9156_v18  ;;  %v9172_v27 = vld [vmem:[#allocation81_spill] sm:$0xff] }
 0x5af   :  { %v9173_v18 = vld [vmem:[#allocation149_spill] sm:$0xff] }
 0x5b0   :  { %2302 = vrot.lane.b32.xlu2 %v704_v24, %s4720_s21  ;;  %v3249_v24 = vsel %vm3206_vm6, %v3184_v51, %v9158_v47  ;;  %v9175_v47 = vld [vmem:[#allocation256_spill] sm:$0xff] }
 0x5b1   :  { %2812 = vrot.lane.b32.xlu1 %v831_v19, %s4722_s23  ;;  %v7351_v19 = vpop.f32.mrf.mxu0  ;;  %v3314_v21 = vsel %vm3271_vm8, %v3249_v24, %v7243_v14 }
 0x5b2   :  { %2558 = vrot.lane.b32.xlu0 %v768_v3, %s4721_s22  ;;  %v2777_v31 = vpop.permute.xlu2 %2776 }
 0x5b3   :  { %v2749_v39 = vpop.permute.xlu1 %2748 }
 0x5b4   :  { %v3366_v41 = vsel %vm3336_vm9, %v3301_v9, %v2749_v39  ;;  %v2543_v7 = vpop.permute.xlu0 %2542 }
 0x5b5   :  { %4565 = vmatmul.msk.f32.gmra.mxu1 %vm3406_vm10, %v3366_v41  ;;  %v3326_v48 = vsel %vm3271_vm8, %v3261_v0, %v2543_v7  ;;  %v4674_v7 = vld [vmem:[#allocation2 + $0x2c0] sm:$0xff] }
 0x5b6   :  { %v3391_v1 = vsel %vm3336_vm9, %v3326_v48, %v2799_v26  ;;  %v3042_v26 = vsel %vm3011_vm3, %v2977_v22, %v9155_v2  ;;  %v2937_v44 = vsel %vm18_vm0, %v4674_v7, %v9166_v40  ;;  %v9171_v22 = vld [vmem:[#allocation35_spill] sm:$0xff]  ;;  %v9182_v7 = vld [vmem:[#allocation49_spill] sm:$0xff] }
 0x5b7   :  { %4590 = vmatmul.msk.f32.gmra.mxu3 %vm3406_vm10, %v3391_v1  ;;  %v3107_v37 = vsel %vm3076_vm5, %v3042_v26, %v9157_v16  ;;  %v2913_v62 = vsel %vm18_vm0, %v4675_v10, %v9171_v22  ;;  %v9174_v16 = vld [vmem:[#allocation208_spill] sm:$0xff] }
 0x5b8   :  { %2304 = vrot.lane.b32.xlu2 %v705_v25, %s4720_s21  ;;  %v3172_v38 = vsel %vm3141_vm7, %v3107_v37, %v9159_v54  ;;  %v9167_v25 = vld [vmem:[#allocation105_spill] sm:$0xff]  ;;  %v2978_v2 = vsel %vm2946_vm4, %v2913_v62, %v9172_v27  ;;  %v7409_v54 = vpop.f32.mrf.mxu1  ;;  %v4678_v22 = vld [vmem:[#allocation2 + $0x248] sm:$0xff] }
 0x5b9   :  { %2814 = vrot.lane.b32.xlu1 %v832_v11, %s4722_s23  ;;  %v3237_v6 = vsel %vm3206_vm6, %v3172_v38, %v9160_v13  ;;  %v7378_v0 = vpop.f32.mrf.mxu0  ;;  %v3002_v48 = vsel %vm2946_vm4, %v2937_v44, %v9167_v25  ;;  %v3043_v51 = vsel %vm3011_vm3, %v2978_v2, %v9173_v18  ;;  %v9176_v38 = vld [vmem:[#allocation315_spill] sm:$0xff]  ;;  %v9187_v62 = vld [vmem:[#allocation48_spill] sm:$0xff]  ;;  %v9188_v2 = vld [vmem:[#allocation106_spill] sm:$0xff] }
 0x5ba   :  { %2560 = vrot.lane.b32.xlu0 %v769_v52, %s4721_s22  ;;  %v7364_v14 = vpop.permute.xlu2 %2290  ;;  %v3067_v23 = vsel %vm3011_vm3, %v3002_v48, %v9168_v20  ;;  %v3108_v37 = vsel %vm3076_vm5, %v3043_v51, %v9174_v16  ;;  %v9183_v25 = vld [vmem:[#allocation115_spill] sm:$0xff]  ;;  %v9184_v20 = vld [vmem:[#allocation174_spill] sm:$0xff]  ;;  %v2927_v27 = vsel %vm18_vm0, %v4678_v22, %v9187_v62  ;;  %v9189_v16 = vld [vmem:[#allocation153_spill] sm:$0xff] }
 0x5bb   :  { %v2775_v57 = vpop.permute.xlu1 %2774  ;;  %v3173_v24 = vsel %vm3141_vm7, %v3108_v37, %v9175_v47  ;;  %v2992_v18 = vsel %vm2946_vm4, %v2927_v27, %v9188_v2  ;;  %v9190_v37 = vld [vmem:[#allocation221_spill] sm:$0xff] }
 0x5bc   :  { %v3379_v42 = vsel %vm3336_vm9, %v3314_v21, %v2775_v57  ;;  %v2495_v3 = vpop.permute.xlu0 %2494  ;;  %v3238_v21 = vsel %vm3206_vm6, %v3173_v24, %v9176_v38  ;;  %v9191_v24 = vld [vmem:[#allocation281_spill] sm:$0xff] }
 0x5bd   :  { %4578 = vmatmul.msk.f32.gmra.mxu2 %vm3406_vm10, %v3379_v42  ;;  %v3302_v34 = vsel %vm3271_vm8, %v3237_v6, %v2495_v3 }
 0x5be   :  { %v3367_v55 = vsel %vm3336_vm9, %v3302_v34, %v7287_v4  ;;  %v9165_v4 = vld [vmem:[#allocation268_spill] sm:$0xff]  ;;  %v4676_v34 = vld [vmem:[#allocation2 + $0x240] sm:$0xff] }
 0x5bf   :  { %4566 = vmatmul.msk.f32.gmra.mxu1 %vm3406_vm10, %v3367_v55  ;;  %v3185_v46 = vsel %vm3141_vm7, %v3120_v59, %v9165_v4 }
 0x5c0   :  { %v3250_v9 = vsel %vm3206_vm6, %v3185_v46, %v6495_v33  ;;  %v9169_v33 = vld [vmem:[#allocation231_spill] sm:$0xff] }
 0x5c1   :  { %2816 = vrot.lane.b32.xlu1 %v833_v60, %s4722_s23  ;;  %v3132_v11 = vsel %vm3076_vm5, %v3067_v23, %v9169_v33  ;;  %v7401_v26 = vpop.f32.mrf.mxu0  ;;  %v9177_v60 = vld [vmem:[#allocation37_spill] sm:$0xff]  ;;  %v9185_v33 = vld [vmem:[#allocation222_spill] sm:$0xff] }
 0x5c2   :  { %v2547_v1 = vpop.permute.xlu2 %2546  ;;  %v3197_v45 = vsel %vm3141_vm7, %v3132_v11, %v9170_v29  ;;  %v2926_v55 = vsel %vm18_vm0, %v4676_v34, %v9177_v60  ;;  %v9186_v29 = vld [vmem:[#allocation290_spill] sm:$0xff]  ;;  %v9193_v34 = vld [vmem:[#allocation116_spill] sm:$0xff] }
 0x5c3   :  { %v2289_v30 = vpop.permute.xlu1 %2288  ;;  %v2991_v58 = vsel %vm2946_vm4, %v2926_v55, %v9178_v63 }
 0x5c4   :  { %v2521_v39 = vpop.permute.xlu0 %2520  ;;  %v3262_v15 = vsel %vm3206_vm6, %v3197_v45, %v2289_v30  ;;  %v3056_v61 = vsel %vm3011_vm3, %v2991_v58, %v9179_v12  ;;  %v7430_v30 = vpop.f32.mrf.mxu1  ;;  %v9194_v58 = vld [vmem:[#allocation165_spill] sm:$0xff] }
 0x5c5   :  { %v3315_v41 = vsel %vm3271_vm8, %v3250_v9, %v2521_v39  ;;  %v3121_v8 = vsel %vm3076_vm5, %v3056_v61, %v9180_v17  ;;  %v9195_v17 = vld [vmem:[#allocation232_spill] sm:$0xff] }
 0x5c6   :  { %v3380_v5 = vsel %vm3336_vm9, %v3315_v41, %v2777_v31  ;;  %v3186_v59 = vsel %vm3141_vm7, %v3121_v8, %v9181_v35  ;;  %v4677_v41 = vld [vmem:[#allocation2 + $0x2d0] sm:$0xff] }
 0x5c7   :  { %4579 = vmatmul.msk.f32.gmra.mxu2 %vm3406_vm10, %v3380_v5  ;;  %v3251_v4 = vsel %vm3206_vm6, %v3186_v59, %v6518_v36  ;;  %v2938_v40 = vsel %vm18_vm0, %v4677_v41, %v9182_v7 }
 0x5c8   :  { %v3003_v48 = vsel %vm2946_vm4, %v2938_v40, %v9183_v25  ;;  %v9197_v25 = vld [vmem:[#allocation50_spill] sm:$0xff] }
 0x5c9   :  { %v7420_v43 = vpop.f32.mrf.mxu0  ;;  %v3068_v36 = vsel %vm3011_vm3, %v3003_v48, %v9184_v20 }
 0x5ca   :  { %v2269_v57 = vpop.permute.xlu2 %2268  ;;  %v3133_v11 = vsel %vm3076_vm5, %v3068_v36, %v9185_v33  ;;  %v9198_v36 = vld [vmem:[#allocation96_spill] sm:$0xff] }
 0x5cb   :  { %v2545_v56 = vpop.permute.xlu1 %2544  ;;  %v3198_v45 = vsel %vm3141_vm7, %v3133_v11, %v9186_v29  ;;  %v9199_v29 = vld [vmem:[#allocation164_spill] sm:$0xff] }
 0x5cc   :  { %v3327_v31 = vsel %vm3271_vm8, %v3262_v15, %v2545_v56  ;;  %v2801_v53 = vpop.permute.xlu0 %2800  ;;  %v3263_v15 = vsel %vm3206_vm6, %v3198_v45, %v7364_v14 }
 0x5cd   :  { %v3392_v52 = vsel %vm3336_vm9, %v3327_v31, %v2801_v53  ;;  %v3328_v56 = vsel %vm3271_vm8, %v3263_v15, %v2547_v1  ;;  %v7450_v53 = vpop.f32.mrf.mxu1  ;;  %v3057_v1 = vsel %vm3011_vm3, %v2992_v18, %v9189_v16  ;;  %v9203_v18 = vld [vmem:[#allocation108_spill] sm:$0xff] }
 0x5ce   :  { %4591 = vmatmul.msk.f32.gmra.mxu3 %vm3406_vm10, %v3392_v52  ;;  %v3122_v47 = vsel %vm3076_vm5, %v3057_v1, %v9190_v37 }
 0x5cf   :  { %v3187_v38 = vsel %vm3141_vm7, %v3122_v47, %v9191_v24  ;;  %v9204_v47 = vld [vmem:[#allocation175_spill] sm:$0xff] }
 0x5d1   :  { %v7441_v23 = vpop.f32.mrf.mxu0 }
 0x5d2   :  { %v2549_v44 = vpop.permute.xlu2 %2548 }
 0x5d3   :  { %v2497_v13 = vpop.permute.xlu1 %2496 }
 0x5d4   :  { %v3303_v6 = vsel %vm3271_vm8, %v3238_v21, %v2497_v13  ;;  %v2753_v42 = vpop.permute.xlu0 %2752  ;;  %v4679_v21 = vld [vmem:[#allocation2 + $0x2d8] sm:$0xff]  ;;  %v9192_v13 = vld [vmem:[#allocation59_spill] sm:$0xff] }
 0x5d5   :  { %v3368_v3 = vsel %vm3336_vm9, %v3303_v6, %v2753_v42  ;;  %v2939_v6 = vsel %vm18_vm0, %v4679_v21, %v9192_v13  ;;  %v3252_v42 = vsel %vm3206_vm6, %v3187_v38, %v2269_v57  ;;  %v7477_v35 = vpop.f32.mrf.mxu1  ;;  %v9196_v57 = vld [vmem:[#allocation291_spill] sm:$0xff]  ;;  %v9205_v21 = vld [vmem:[#allocation233_spill] sm:$0xff] }
 0x5d6   :  { %4567 = vmatmul.msk.f32.gmra.mxu1 %vm3406_vm10, %v3368_v3  ;;  %v3004_v60 = vsel %vm2946_vm4, %v2939_v6, %v9193_v34  ;;  %v3946_v6 = vmul.f32 %v7246_v28, %v7246_v28  ;;  %v3945_v34 = vmul.f32 %v7219_v32, %v7219_v32 }
 0x5d7   :  { %v3069_v12 = vsel %vm3011_vm3, %v3004_v60, %v9194_v58 }
 0x5d8   :  { %v3134_v8 = vsel %vm3076_vm5, %v3069_v12, %v9195_v17  ;;  %v3812_v12 = vsel %vm2946_vm4, %v7219_v32, 0.0  ;;  %v3815_v17 = vsel %vm2946_vm4, %v7274_v50, 0.0 }
 0x5d9   :  { %v7458_v51 = vpop.f32.mrf.mxu0  ;;  %v3199_v59 = vsel %vm3141_vm7, %v3134_v8, %v9196_v57  ;;  %v3948_v8 = vmul.f32 %v7308_v49, %v7308_v49  ;;  %v4009_v57 = vsel %vm2946_vm4, %v3945_v34, 0.0  ;;  %v9212_v34 = vld [vmem:[#allocation282_spill] sm:$0xff] }
 0x5da   :  { %v2271_v14 = vpop.permute.xlu2 %2270 }
 0x5db   :  { %v2523_v46 = vpop.permute.xlu1 %2522 }
 0x5dc   :  { %v3316_v9 = vsel %vm3271_vm8, %v3251_v4, %v2523_v46  ;;  %v2779_v39 = vpop.permute.xlu0 %2778 }
 0x5dd   :  { %v3381_v5 = vsel %vm3336_vm9, %v3316_v9, %v2779_v39  ;;  %v7490_v20 = vpop.f32.mrf.mxu1 }
 0x5de   :  { %4580 = vmatmul.msk.f32.gmra.mxu2 %vm3406_vm10, %v3381_v5  ;;  %v4680_v5 = vld [vmem:[#allocation2 + $0x258] sm:$0xff] }
 0x5df   :  { %v2928_v48 = vsel %vm18_vm0, %v4680_v5, %v9197_v25 }
 0x5e0   :  { %v2993_v33 = vsel %vm2946_vm4, %v2928_v48, %v9198_v36 }
 0x5e1   :  { %v7482_v4 = vpop.f32.mrf.mxu0  ;;  %v3058_v45 = vsel %vm3011_vm3, %v2993_v33, %v9199_v29  ;;  %v4682_v29 = vld [vmem:[#allocation2 + $0x260] sm:$0xff] }
 0x5e2   :  { %v2551_v9 = vpop.permute.xlu2 %2550 }
 0x5e3   :  { %v2803_v31 = vpop.permute.xlu1 %2802 }
 0x5e4   :  { %v3393_v52 = vsel %vm3336_vm9, %v3328_v56, %v2803_v31  ;;  %v2293_v10 = vpop.permute.xlu0 %2292  ;;  %v9201_v56 = vld [vmem:[#allocation271_spill] sm:$0xff] }
 0x5e5   :  { %4592 = vmatmul.msk.f32.gmra.mxu3 %vm3406_vm10, %v3393_v52  ;;  %v3264_v46 = vsel %vm3206_vm6, %v3199_v59, %v2293_v10  ;;  %v4681_v52 = vld [vmem:[#allocation2 + $0x2e8] sm:$0xff] }
 0x5e6   :  { %v3329_v41 = vsel %vm3271_vm8, %v3264_v46, %v2549_v44  ;;  %v9200_v44 = vld [vmem:[#allocation223_spill] sm:$0xff]  ;;  %v9202_v10 = vld [vmem:[#allocation60_spill] sm:$0xff] }
 0x5e7   :  { %v3123_v15 = vsel %vm3076_vm5, %v3058_v45, %v9200_v44  ;;  %v2940_v22 = vsel %vm18_vm0, %v4681_v52, %v9202_v10  ;;  %v9207_v45 = vld [vmem:[#allocation40_spill] sm:$0xff]  ;;  %v4014_v44 = vsel %vm2946_vm4, %v3948_v8, 0.0  ;;  %v9208_v52 = vld [vmem:[#allocation107_spill] sm:$0xff] }
 0x5e8   :  { %v3188_v31 = vsel %vm3141_vm7, %v3123_v15, %v9201_v56  ;;  %v3005_v16 = vsel %vm2946_vm4, %v2940_v22, %v9203_v18  ;;  %v3819_v15 = vsel %vm2946_vm4, %v7351_v19, 0.0  ;;  %v3950_v56 = vmul.f32 %v7378_v0, %v7378_v0  ;;  %v9209_v18 = vld [vmem:[#allocation166_spill] sm:$0xff] }
 0x5e9   :  { %v7494_v11 = vpop.f32.mrf.mxu0  ;;  %v3253_v62 = vsel %vm3206_vm6, %v3188_v31, %v2271_v14  ;;  %v3070_v24 = vsel %vm3011_vm3, %v3005_v16, %v9204_v47  ;;  %v7515_v14 = vpop.f32.mrf.mxu1  ;;  %v3951_v47 = vmul.f32 %v7401_v26, %v7401_v26 }
 0x5ea   :  { %v2273_v27 = vpop.permute.xlu2 %2272  ;;  %v3135_v13 = vsel %vm3076_vm5, %v3070_v24, %v9205_v21  ;;  %v4683_v24 = vld [vmem:[#allocation2 + $0x2f0] sm:$0xff] }
 0x5eb   :  { %v2525_v3 = vpop.permute.xlu1 %2524 }
 0x5ec   :  { %v3317_v55 = vsel %vm3271_vm8, %v3252_v42, %v2525_v3  ;;  %v2781_v63 = vpop.permute.xlu0 %2780  ;;  %v9206_v42 = vld [vmem:[#allocation283_spill] sm:$0xff] }
 0x5ed   :  { %v3382_v61 = vsel %vm3336_vm9, %v3317_v55, %v2781_v63  ;;  %v3200_v3 = vsel %vm3141_vm7, %v3135_v13, %v9206_v42  ;;  %v3813_v55 = vsel %vm2946_vm4, %v7246_v28, 0.0  ;;  %v3947_v63 = vmul.f32 %v7274_v50, %v7274_v50  ;;  %v9211_v13 = vld [vmem:[#allocation213_spill] sm:$0xff] }
 0x5ee   :  { %4581 = vmatmul.msk.f32.gmra.mxu2 %vm3406_vm10, %v3382_v61  ;;  %v4010_v61 = vsel %vm2946_vm4, %v3946_v6, 0.0  ;;  %v3814_v59 = vadd.f32 %v3813_v55, %v3812_v12  ;;  %v3952_v12 = vmul.f32 %v7420_v43, %v7420_v43 }
 0x5ef   :  { %v4011_v48 = vadd.f32 %v4010_v61, %v4009_v57  ;;  %v9213_v61 = vld [vmem:[#allocation117_spill] sm:$0xff] }
 0x5f0   :  { %v3816_v36 = vadd.f32 %v3815_v17, %v3814_v59 }
 0x5f1   :  { %v7522_v60 = vpop.f32.mrf.mxu0  ;;  %v7554_v31 = vpop.f32.mrf.mxu1 }
 0x5f2   :  { %v7544_v33 = vpop.permute.xlu2 %2552 }
 0x5f3   :  { %v2805_v39 = vpop.permute.xlu1 %2804 }
 0x5f4   :  { %v3394_v7 = vsel %vm3336_vm9, %v3329_v41, %v2805_v39  ;;  %v2295_v40 = vpop.permute.xlu0 %2294  ;;  %v4012_v41 = vsel %vm2946_vm4, %v3947_v63, 0.0  ;;  %v4018_v63 = vsel %vm2946_vm4, %v3950_v56, 0.0  ;;  %v3827_v56 = vsel %vm2946_vm4, %v7441_v23, 0.0 }
 0x5f5   :  { %4593 = vmatmul.msk.f32.gmra.mxu3 %vm3406_vm10, %v3394_v7  ;;  %v3265_v58 = vsel %vm3206_vm6, %v3200_v3, %v2295_v40  ;;  %v3817_v7 = vsel %vm2946_vm4, %v7308_v49, 0.0  ;;  %v3949_v40 = vmul.f32 %v7351_v19, %v7351_v19  ;;  %v4013_v22 = vadd.f32 %v4012_v41, %v4011_v48  ;;  %v9214_v48 = vld [vmem:[#allocation177_spill] sm:$0xff] }
 0x5f6   :  { %v3330_v39 = vsel %vm3271_vm8, %v3265_v58, %v2551_v9  ;;  %v2929_v9 = vsel %vm18_vm0, %v4682_v29, %v9207_v45  ;;  %v3823_v58 = vsel %vm2946_vm4, %v7401_v26, 0.0  ;;  %v3825_v41 = vsel %vm2946_vm4, %v7420_v43, 0.0 }
 0x5f7   :  { %v2994_v10 = vsel %vm2946_vm4, %v2929_v9, %v9208_v52  ;;  %v4015_v42 = vadd.f32 %v4014_v44, %v4013_v22  ;;  %v3954_v52 = vmul.f32 %v7458_v51, %v7458_v51 }
 0x5f8   :  { %v3059_v16 = vsel %vm3011_vm3, %v2994_v10, %v9209_v18  ;;  %v9216_v10 = vld [vmem:[#allocation292_spill] sm:$0xff] }
 0x5f9   :  { %v3124_v6 = vsel %vm3076_vm5, %v3059_v16, %v9211_v13 }
 0x5fa   :  { %v3189_v55 = vsel %vm3141_vm7, %v3124_v6, %v9212_v34 }
 0x5fb   :  { %v2527_v2 = vpop.permute.xlu1 %2526  ;;  %v3254_v59 = vsel %vm3206_vm6, %v3189_v55, %v2273_v27  ;;  %v9215_v27 = vld [vmem:[#allocation225_spill] sm:$0xff]  ;;  %v4026_v55 = vsel %vm2946_vm4, %v3954_v52, 0.0 }
 0x5fc   :  { %v3318_v1 = vsel %vm3271_vm8, %v3253_v62, %v2527_v2  ;;  %v2783_v37 = vpop.permute.xlu0 %2782  ;;  %v3818_v62 = vadd.f32 %v3817_v7, %v3816_v36  ;;  %v7558_v2 = vpop.f32.mrf.mxu0  ;;  %v3953_v7 = vmul.f32 %v7441_v23, %v7441_v23 }
 0x5fd   :  { %v3383_v38 = vsel %vm3336_vm9, %v3318_v1, %v2783_v37  ;;  %v4016_v1 = vsel %vm2946_vm4, %v3949_v40, 0.0  ;;  %v3821_v37 = vsel %vm2946_vm4, %v7378_v0, 0.0 }
 0x5fe   :  { %4582 = vmatmul.msk.f32.gmra.mxu2 %vm3406_vm10, %v3383_v38  ;;  %v9210_v38 = vld [vmem:[#allocation52_spill] sm:$0xff]  ;;  %v3820_v3 = vadd.f32 %v3819_v15, %v3818_v62  ;;  %v4017_v8 = vadd.f32 %v4016_v1, %v4015_v42  ;;  %v4022_v15 = vsel %vm2946_vm4, %v3952_v12, 0.0  ;;  %v2299_v1 = vpop.permute.xlu2 %2298  ;;  %v4684_v42 = vld [vmem:[#allocation2 + $0x300] sm:$0xff] }
 0x5ff   :  { %v2941_v21 = vsel %vm18_vm0, %v4683_v24, %v9210_v38  ;;  %v3955_v24 = vmul.f32 %v7482_v4, %v7482_v4  ;;  %v7607_v38 = vpop.f32.mrf.mxu1  ;;  %v9218_v12 = vld [vmem:[#allocation119_spill] sm:$0xff] }
 0x600   :  { %v3006_v17 = vsel %vm2946_vm4, %v2941_v21, %v9213_v61  ;;  %v3822_v57 = vadd.f32 %v3821_v37, %v3820_v3  ;;  %v4019_v29 = vadd.f32 %v4018_v63, %v4017_v8  ;;  %v4024_v37 = vsel %vm2946_vm4, %v3953_v7, 0.0  ;;  %v9217_v3 = vld [vmem:[#allocation61_spill] sm:$0xff] }
 0x601   :  { %v3071_v36 = vsel %vm3011_vm3, %v3006_v17, %v9214_v48  ;;  %v2942_v34 = vsel %vm18_vm0, %v4684_v42, %v9217_v3  ;;  %v3831_v63 = vsel %vm2946_vm4, %v7482_v4, 0.0 }
 0x602   :  { %v3824_v45 = vadd.f32 %v3823_v58, %v3822_v57  ;;  %v3136_v44 = vsel %vm3076_vm5, %v3071_v36, %v9215_v27  ;;  %v3956_v58 = vmul.f32 %v7494_v11, %v7494_v11  ;;  %v3007_v61 = vsel %vm2946_vm4, %v2942_v34, %v9218_v12 }
 0x603   :  { %v2807_v46 = vpop.permute.xlu1 %2806  ;;  %v3201_v22 = vsel %vm3141_vm7, %v3136_v44, %v9216_v10  ;;  %v3958_v27 = vmul.f32 %v7558_v2, %v7558_v2  ;;  %v9221_v44 = vld [vmem:[#allocation293_spill] sm:$0xff] }
 0x604   :  { %v3395_v5 = vsel %vm3336_vm9, %v3330_v39, %v2807_v46  ;;  %v2297_v25 = vpop.permute.xlu0 %2296  ;;  %v4020_v39 = vsel %vm2946_vm4, %v3951_v47, 0.0  ;;  %v3826_v18 = vadd.f32 %v3825_v41, %v3824_v45  ;;  %v7600_v16 = vpop.f32.mrf.mxu0  ;;  %v3829_v47 = vsel %vm2946_vm4, %v7458_v51, 0.0 }
 0x605   :  { %4594 = vmatmul.msk.f32.gmra.mxu3 %vm3406_vm10, %v3395_v5  ;;  %v4021_v62 = vadd.f32 %v4020_v39, %v4019_v29  ;;  %v3266_v21 = vsel %vm3206_vm6, %v3201_v22, %v2297_v25  ;;  %v3957_v39 = vmul.f32 %v7522_v60, %v7522_v60  ;;  %v9220_v29 = vld [vmem:[#allocation234_spill] sm:$0xff]  ;;  %v4030_v45 = vsel %vm2946_vm4, %v3956_v58, 0.0  ;;  %v9222_v58 = vld [vmem:[#allocation63_spill] sm:$0xff] }
 0x606   :  { %v3828_v6 = vadd.f32 %v3827_v56, %v3826_v18  ;;  %v3331_v57 = vsel %vm3271_vm8, %v3266_v21, %v7544_v33  ;;  %v3959_v18 = vmul.f32 %v7600_v16, %v7600_v16  ;;  %v4034_v3 = vsel %vm2946_vm4, %v3958_v27, 0.0 }
 0x607   :  { %v4023_v13 = vadd.f32 %v4022_v15, %v4021_v62  ;;  %v4032_v22 = vsel %vm2946_vm4, %v3957_v39, 0.0  ;;  %v3837_v62 = vsel %vm2946_vm4, %v7558_v2, 0.0  ;;  %v7650_v42 = vpop.f32.mrf.mxu1  ;;  %v3839_v34 = vsel %vm2946_vm4, %v7600_v16, 0.0 }
 0x608   :  { %v3830_v8 = vadd.f32 %v3829_v47, %v3828_v6  ;;  %v7647_v47 = vpop.f32.mrf.mxu2 }
 0x609   :  { %v4025_v17 = vadd.f32 %v4024_v37, %v4023_v13  ;;  %v2301_v13 = vpop.permute.xlu2 %2300 }
 0x60a   :  { %v3832_v36 = vadd.f32 %v3831_v63, %v3830_v8  ;;  %v4685_v63 = vld [vmem:[#allocation2 + $0x308] sm:$0xff]  ;;  %v9223_v8 = vld [vmem:[#allocation111_spill] sm:$0xff] }
 0x60b   :  { %v2529_v46 = vpop.permute.xlu1 %2528  ;;  %v4027_v48 = vadd.f32 %v4026_v55, %v4025_v17 }
 0x60c   :  { %v3319_v40 = vsel %vm3271_vm8, %v3254_v59, %v2529_v46  ;;  %v2785_v5 = vpop.permute.xlu0 %2784  ;;  %v4028_v59 = vsel %vm2946_vm4, %v3955_v24, 0.0  ;;  %v3833_v46 = vsel %vm2946_vm4, %v7494_v11, 0.0  ;;  %v7639_v10 = vpop.f32.mrf.mxu0 }
 0x60d   :  { %v3384_v9 = vsel %vm3336_vm9, %v3319_v40, %v2785_v5  ;;  %v9219_v40 = vld [vmem:[#allocation168_spill] sm:$0xff]  ;;  %v4029_v56 = vadd.f32 %v4028_v59, %v4027_v48  ;;  %v3834_v52 = vadd.f32 %v3833_v46, %v3832_v36  ;;  %v3960_v55 = vmul.f32 %v7639_v10, %v7639_v10 }
 0x60e   :  { %4583 = vmatmul.msk.f32.gmra.mxu2 %vm3406_vm10, %v3384_v9  ;;  %v3072_v5 = vsel %vm3011_vm3, %v3007_v61, %v9219_v40  ;;  %v3835_v9 = vsel %vm2946_vm4, %v7522_v60, 0.0  ;;  %v3841_v59 = vsel %vm2946_vm4, %v7639_v10, 0.0  ;;  %v9225_v48 = vld [vmem:[#allocation236_spill] sm:$0xff] }
 0x60f   :  { %v3137_v33 = vsel %vm3076_vm5, %v3072_v5, %v9220_v29  ;;  %v4031_v24 = vadd.f32 %v4030_v45, %v4029_v56  ;;  %v3836_v21 = vadd.f32 %v3835_v9, %v3834_v52  ;;  %v4038_v29 = vsel %vm2946_vm4, %v3960_v55, 0.0  ;;  %v9228_v55 = vld [vmem:[#allocation120_spill] sm:$0xff] }
 0x610   :  { %v3202_v15 = vsel %vm3141_vm7, %v3137_v33, %v9221_v44  ;;  %v9226_v33 = vld [vmem:[#allocation286_spill] sm:$0xff]  ;;  %v3961_v44 = vmul.f32 %v7409_v54, %v7409_v54  ;;  %v7676_v56 = vpop.f32.mrf.mxu2 }
 0x611   :  { %v3267_v37 = vsel %vm3206_vm6, %v3202_v15, %v2299_v1  ;;  %v2943_v1 = vsel %vm18_vm0, %v4685_v63, %v9222_v58  ;;  %v4033_v12 = vadd.f32 %v4032_v22, %v4031_v24  ;;  %v3838_v61 = vadd.f32 %v3837_v62, %v3836_v21  ;;  %v9227_v24 = vld [vmem:[#allocation55_spill] sm:$0xff] }
 0x612   :  { %v3843_v62 = vsel %vm2946_vm4, %v7409_v54, 0.0  ;;  %v4040_v63 = vsel %vm2946_vm4, %v3961_v44, 0.0  ;;  %v3962_v58 = vmul.f32 %v7430_v30, %v7430_v30 }
 0x613   :  { %v2809_v25 = vpop.permute.xlu1 %2808  ;;  %v4035_v40 = vadd.f32 %v4034_v3, %v4033_v12  ;;  %v3840_v5 = vadd.f32 %v3839_v34, %v3838_v61  ;;  %v2303_v3 = vpop.permute.xlu2 %2302  ;;  %v9229_v61 = vld [vmem:[#allocation180_spill] sm:$0xff] }
 0x614   :  { %v3396_v41 = vsel %vm3336_vm9, %v3331_v57, %v2809_v25  ;;  %v2555_v7 = vpop.permute.xlu0 %2554  ;;  %v3008_v25 = vsel %vm2946_vm4, %v2943_v1, %v9223_v8  ;;  %v4036_v57 = vsel %vm2946_vm4, %v3959_v18, 0.0  ;;  %v7681_v18 = vpop.f32.mrf.mxu1 }
 0x615   :  { %4595 = vmatmul.msk.f32.gmra.mxu3 %vm3406_vm10, %v3396_v41  ;;  %v3332_v6 = vsel %vm3271_vm8, %v3267_v37, %v2555_v7  ;;  %v9224_v41 = vld [vmem:[#allocation178_spill] sm:$0xff]  ;;  %v4037_v9 = vadd.f32 %v4036_v57, %v4035_v40  ;;  %v3842_v27 = vadd.f32 %v3841_v59, %v3840_v5  ;;  %v3845_v59 = vsel %vm2946_vm4, %v7430_v30, 0.0 }
 0x616   :  { %v3073_v7 = vsel %vm3011_vm3, %v3008_v25, %v9224_v41  ;;  %v4686_v37 = vld [vmem:[#allocation2 + $0x318] sm:$0xff]  ;;  %v9230_v25 = vld [vmem:[#allocation228_spill] sm:$0xff]  ;;  %v3963_v40 = vmul.f32 %v7450_v53, %v7450_v53 }
 0x617   :  { %v3138_v36 = vsel %vm3076_vm5, %v3073_v7, %v9225_v48  ;;  %v4039_v52 = vadd.f32 %v4038_v29, %v4037_v9  ;;  %v2944_v21 = vsel %vm18_vm0, %v4686_v37, %v9227_v24  ;;  %v4042_v7 = vsel %vm2946_vm4, %v3962_v58, 0.0  ;;  %v9232_v9 = vld [vmem:[#allocation64_spill] sm:$0xff] }
 0x618   :  { %v3203_v45 = vsel %vm3141_vm7, %v3138_v36, %v9226_v33  ;;  %v7704_v48 = vpop.f32.mrf.mxu2  ;;  %v3847_v33 = vsel %vm2946_vm4, %v7450_v53, 0.0  ;;  %v4044_v37 = vsel %vm2946_vm4, %v3963_v40, 0.0  ;;  %v3964_v24 = vmul.f32 %v7477_v35, %v7477_v35 }
 0x619   :  { %v3268_v15 = vsel %vm3206_vm6, %v3203_v45, %v2301_v13  ;;  %v3009_v13 = vsel %vm2946_vm4, %v2944_v21, %v9228_v55  ;;  %v4041_v8 = vadd.f32 %v4040_v63, %v4039_v52  ;;  %v4687_v45 = vld [vmem:[#allocation2 + $0x320] sm:$0xff]  ;;  %v3849_v58 = vsel %vm2946_vm4, %v7477_v35, 0.0 }
 0x61b   :  { %v2811_v17 = vpop.permute.xlu1 %2810  ;;  %v4043_v36 = vadd.f32 %v4042_v7, %v4041_v8  ;;  %v2305_v55 = vpop.permute.xlu2 %2304  ;;  %v4046_v8 = vsel %vm2946_vm4, %v3964_v24, 0.0 }
 0x61c   :  { %v3397_v46 = vsel %vm3336_vm9, %v3332_v6, %v2811_v17  ;;  %v2557_v39 = vpop.permute.xlu0 %2556  ;;  %v3844_v6 = vadd.f32 %v3843_v62, %v3842_v27  ;;  %v3074_v17 = vsel %vm3011_vm3, %v3009_v13, %v9229_v61  ;;  %v2945_v27 = vsel %vm18_vm0, %v4687_v45, %v9232_v9  ;;  %v7711_v44 = vpop.f32.mrf.mxu1  ;;  %v9235_v13 = vld [vmem:[#allocation237_spill] sm:$0xff] }
 0x61d   :  { %4596 = vmatmul.msk.f32.gmra.mxu3 %vm3406_vm10, %v3397_v46  ;;  %v3333_v22 = vsel %vm3271_vm8, %v3268_v15, %v2557_v39  ;;  %v3139_v57 = vsel %vm3076_vm5, %v3074_v17, %v9230_v25  ;;  %v9231_v46 = vld [vmem:[#allocation294_spill] sm:$0xff]  ;;  %v3965_v25 = vmul.f32 %v7490_v20, %v7490_v20  ;;  %v3853_v9 = vsel %vm2946_vm4, %v7515_v14, 0.0 }
 0x61e   :  { %v3204_v39 = vsel %vm3141_vm7, %v3139_v57, %v9231_v46  ;;  %v3846_v41 = vadd.f32 %v3845_v59, %v3844_v6  ;;  %v9234_v6 = vld [vmem:[#allocation171_spill] sm:$0xff] }
 0x61f   :  { %v3269_v5 = vsel %vm3206_vm6, %v3204_v39, %v2303_v3 }
 0x620   :  { %v3848_v15 = vadd.f32 %v3847_v33, %v3846_v41  ;;  %v7732_v59 = vpop.f32.mrf.mxu2  ;;  %v3851_v41 = vsel %vm2946_vm4, %v7490_v20, 0.0 }
 0x621   :  { %9237 = vst [vmem:[#allocation136_spill] sm:$0xff] %v7732_v59 }
 0x622   :  { %v3850_v17 = vadd.f32 %v3849_v58, %v3848_v15  ;;  %v3969_v58 = vmul.f32 %v7650_v42, %v7650_v42 }
 0x623   :  { %v2813_v34 = vpop.permute.xlu1 %2812 }
 0x624   :  { %v3398_v1 = vsel %vm3336_vm9, %v3333_v22, %v2813_v34  ;;  %v2559_v12 = vpop.permute.xlu0 %2558  ;;  %v9233_v22 = vld [vmem:[#allocation122_spill] sm:$0xff]  ;;  %v4045_v34 = vadd.f32 %v4044_v37, %v4043_v36  ;;  %v7737_v7 = vpop.f32.mrf.mxu1  ;;  %v3852_v40 = vadd.f32 %v3851_v41, %v3850_v17  ;;  %v4048_v36 = vsel %vm2946_vm4, %v3965_v25, 0.0 }
 0x625   :  { %4597 = vmatmul.msk.f32.gmra.mxu3 %vm3406_vm10, %v3398_v1  ;;  %v3334_v29 = vsel %vm3271_vm8, %v3269_v5, %v2559_v12  ;;  %v3010_v62 = vsel %vm2946_vm4, %v2945_v27, %v9233_v22  ;;  %v9236_v12 = vld [vmem:[#allocation296_spill] sm:$0xff]  ;;  %v3855_v37 = vsel %vm2946_vm4, %v7554_v31, 0.0  ;;  %v3859_v17 = vsel %vm2946_vm4, %v7650_v42, 0.0 }
 0x626   :  { %v3075_v3 = vsel %vm3011_vm3, %v3010_v62, %v9234_v6  ;;  %v4047_v46 = vadd.f32 %v4046_v8, %v4045_v34  ;;  %v3854_v27 = vadd.f32 %v3853_v9, %v3852_v40  ;;  %v3861_v41 = vsel %vm2946_vm4, %v7681_v18, 0.0 }
 0x627   :  { %v3140_v63 = vsel %vm3076_vm5, %v3075_v3, %v9235_v13  ;;  %v3968_v3 = vmul.f32 %v7607_v38, %v7607_v38  ;;  %v3863_v9 = vsel %vm2946_vm4, %v7711_v44, 0.0 }
 0x628   :  { %v3205_v61 = vsel %vm3141_vm7, %v3140_v63, %v9236_v12  ;;  %v4049_v45 = vadd.f32 %v4048_v36, %v4047_v46  ;;  %v7749_v22 = vpop.f32.mrf.mxu2  ;;  %v3970_v46 = vmul.f32 %v7681_v18, %v7681_v18 }
 0x629   :  { %v3270_v57 = vsel %vm3206_vm6, %v3205_v61, %v2305_v55  ;;  %9238 = vst [vmem:[#allocation184_spill] sm:$0xff] %v7749_v22  ;;  %v3857_v55 = vsel %vm2946_vm4, %v7607_v38, 0.0  ;;  %v4054_v63 = vsel %vm2946_vm4, %v3968_v3, 0.0 }
 0x62b   :  { %v2815_v52 = vpop.permute.xlu1 %2814 }
 0x62c   :  { %v3399_v21 = vsel %vm3336_vm9, %v3334_v29, %v2815_v52  ;;  %v2561_v1 = vpop.permute.xlu0 %2560  ;;  %v3966_v29 = vmul.f32 %v7515_v14, %v7515_v14  ;;  %v3967_v52 = vmul.f32 %v7554_v31, %v7554_v31  ;;  %v7753_v24 = vpop.f32.mrf.mxu1 }
 0x62d   :  { %4598 = vmatmul.msk.f32.gmra.mxu3 %vm3406_vm10, %v3399_v21  ;;  %v3335_v39 = vsel %vm3271_vm8, %v3270_v57, %v2561_v1  ;;  %v3856_v21 = vadd.f32 %v3855_v37, %v3854_v27  ;;  %v7763_v1 = vpop.f32.mrf.mxu3  ;;  %v4056_v57 = vsel %vm2946_vm4, %v3969_v58, 0.0 }
 0x62e   :  { %v4050_v15 = vsel %vm2946_vm4, %v3966_v29, 0.0  ;;  %v4052_v6 = vsel %vm2946_vm4, %v3967_v52, 0.0  ;;  %9239 = vst [vmem:[#allocation7_spill] sm:$0xff] %v7763_v1  ;;  %v3971_v29 = vmul.f32 %v7711_v44, %v7711_v44 }
 0x62f   :  { %v4051_v62 = vadd.f32 %v4050_v15, %v4049_v45  ;;  %v3858_v13 = vadd.f32 %v3857_v55, %v3856_v21  ;;  %v3865_v21 = vsel %vm2946_vm4, %v7737_v7, 0.0  ;;  %v3973_v55 = vmul.f32 %v7753_v24, %v7753_v24 }
 0x630   :  { %v7765_v12 = vpop.f32.mrf.mxu2  ;;  %v4060_v52 = vsel %vm2946_vm4, %v3971_v29, 0.0 }
 0x631   :  { %v4053_v34 = vadd.f32 %v4052_v6, %v4051_v62  ;;  %9240 = vst [vmem:[#allocation252_spill] sm:$0xff] %v7765_v12  ;;  %v3860_v8 = vadd.f32 %v3859_v17, %v3858_v13  ;;  %v3972_v62 = vmul.f32 %v7737_v7, %v7737_v7 }
 0x633   :  { %v2817_v5 = vpop.permute.xlu1 %2816  ;;  %v4055_v61 = vadd.f32 %v4054_v63, %v4053_v34  ;;  %v3862_v40 = vadd.f32 %v3861_v41, %v3860_v8  ;;  %v4062_v34 = vsel %vm2946_vm4, %v3972_v62, 0.0 }
 0x634   :  { %v3400_v33 = vsel %vm3336_vm9, %v3335_v39, %v2817_v5  ;;  %v7769_v25 = vpop.f32.mrf.mxu1  ;;  %v4058_v5 = vsel %vm2946_vm4, %v3970_v46, 0.0 }
 0x635   :  { %4599 = vmatmul.msk.f32.gmra.mxu3 %vm3406_vm10, %v3400_v33  ;;  %v4057_v39 = vadd.f32 %v4056_v57, %v4055_v61  ;;  %v7777_v36 = vpop.f32.mrf.mxu3  ;;  %v3864_v27 = vadd.f32 %v3863_v9, %v3862_v40  ;;  %v3974_v13 = vmul.f32 %v7769_v25, %v7769_v25  ;;  %v3867_v61 = vsel %vm2946_vm4, %v7753_v24, 0.0 }
 0x636   :  { %9241 = vst [vmem:[#allocation67_spill] sm:$0xff] %v7777_v36  ;;  %v3869_v17 = vsel %vm2946_vm4, %v7769_v25, 0.0 }
 0x637   :  { %v4059_v45 = vadd.f32 %v4058_v5, %v4057_v39  ;;  %v3866_v6 = vadd.f32 %v3865_v21, %v3864_v27  ;;  %v4064_v39 = vsel %vm2946_vm4, %v3973_v55, 0.0  ;;  %v4066_v41 = vsel %vm2946_vm4, %v3974_v13, 0.0 }
 0x638   :  { %v7781_v33 = vpop.f32.mrf.mxu2  ;;  %v3977_v13 = vmul.f32 %v7647_v47, %v7647_v47 }
 0x639   :  { %9242 = vst [vmem:[#allocation125_spill] sm:$0xff] %v7781_v33  ;;  %v4061_v37 = vadd.f32 %v4060_v52, %v4059_v45  ;;  %v3868_v57 = vadd.f32 %v3867_v61, %v3866_v6  ;;  %v3875_v61 = vsel %vm2946_vm4, %v7647_v47, 0.0 }
 0x63b   :  { %v4063_v58 = vadd.f32 %v4062_v34, %v4061_v37  ;;  %v3870_v45 = vadd.f32 %v3869_v17, %v3868_v57  ;;  %v3978_v57 = vmul.f32 %v7676_v56, %v7676_v56 }
 0x63c   :  { %v7785_v15 = vpop.f32.mrf.mxu1 }
 0x63d   :  { %v7792_v3 = vpop.f32.mrf.mxu3  ;;  %v3975_v8 = vmul.f32 %v7785_v15, %v7785_v15  ;;  %v3871_v40 = vsel %vm2946_vm4, %v7785_v15, 0.0  ;;  %v4065_v29 = vadd.f32 %v4064_v39, %v4063_v58 }
 0x63e   :  { %9243 = vst [vmem:[#allocation176_spill] sm:$0xff] %v7792_v3  ;;  %v3872_v62 = vadd.f32 %v3871_v40, %v3870_v45  ;;  %v4074_v45 = vsel %vm2946_vm4, %v3978_v57, 0.0  ;;  %v3981_v57 = vmul.f32 %v7749_v22, %v7749_v22 }
 0x63f   :  { %v4068_v9 = vsel %vm2946_vm4, %v3975_v8, 0.0  ;;  %v4067_v52 = vadd.f32 %v4066_v41, %v4065_v29  ;;  %v4072_v8 = vsel %vm2946_vm4, %v3977_v13, 0.0  ;;  %v3877_v41 = vsel %vm2946_vm4, %v7676_v56, 0.0 }
 0x640   :  { %v7799_v63 = vpop.f32.mrf.mxu2  ;;  %v3881_v13 = vsel %vm2946_vm4, %v7732_v59, 0.0 }
 0x641   :  { %9244 = vst [vmem:[#allocation11_spill] sm:$0xff] %v7799_v63  ;;  %v4069_v34 = vadd.f32 %v4068_v9, %v4067_v52  ;;  %v3979_v9 = vmul.f32 %v7704_v48, %v7704_v48  ;;  %v3879_v52 = vsel %vm2946_vm4, %v7704_v48, 0.0 }
 0x645   :  { %v7818_v37 = vpop.f32.mrf.mxu3 }
 0x646   :  { %9245 = vst [vmem:[#allocation240_spill] sm:$0xff] %v7818_v37 }
 0x648   :  { %v7821_v6 = vpop.f32.mrf.mxu2 }
 0x649   :  { %9246 = vst [vmem:[#allocation68_spill] sm:$0xff] %v7821_v6 }
 0x64d   :  { %v7832_v40 = vpop.f32.mrf.mxu3 }
 0x64e   :  { %9247 = vst [vmem:[#allocation118_spill] sm:$0xff] %v7832_v40 }
 0x653   :  { %v7807_v46 = vpop.f32.mrf.mxu1 }
 0x654   :  { %v3976_v5 = vmul.f32 %v7807_v46, %v7807_v46  ;;  %v3873_v27 = vsel %vm2946_vm4, %v7807_v46, 0.0 }
 0x655   :  { %v3874_v55 = vadd.f32 %v3873_v27, %v3872_v62 }
 0x656   :  { %v4070_v21 = vsel %vm2946_vm4, %v3976_v5, 0.0  ;;  %v7834_v5 = vpop.f32.mrf.mxu2 }
 0x657   :  { %v4071_v58 = vadd.f32 %v4070_v21, %v4069_v34  ;;  %v3876_v17 = vadd.f32 %v3875_v61, %v3874_v55  ;;  %9248 = vst [vmem:[#allocation183_spill] sm:$0xff] %v7834_v5  ;;  %v4076_v21 = vsel %vm2946_vm4, %v3979_v9, 0.0  ;;  %v3980_v34 = vmul.f32 %v7732_v59, %v7732_v59 }
 0x658   :  { %v3982_v9 = vmul.f32 %v7765_v12, %v7765_v12 }
 0x659   :  { %v4073_v39 = vadd.f32 %v4072_v8, %v4071_v58  ;;  %v3878_v29 = vadd.f32 %v3877_v41, %v3876_v17  ;;  %v7846_v58 = vpop.f32.mrf.mxu3  ;;  %v4078_v8 = vsel %vm2946_vm4, %v3980_v34, 0.0  ;;  %v3883_v41 = vsel %vm2946_vm4, %v7749_v22, 0.0 }
 0x65a   :  { %9249 = vst [vmem:[#allocation241_spill] sm:$0xff] %v7846_v58 }
 0x65b   :  { %v4075_v27 = vadd.f32 %v4074_v45, %v4073_v39  ;;  %v3880_v62 = vadd.f32 %v3879_v52, %v3878_v29  ;;  %v4080_v45 = vsel %vm2946_vm4, %v3981_v57, 0.0  ;;  %v3885_v52 = vsel %vm2946_vm4, %v7765_v12, 0.0 }
 0x65c   :  { %v3889_v12 = vsel %vm2946_vm4, %v7799_v63, 0.0 }
 0x65d   :  { %v4077_v55 = vadd.f32 %v4076_v21, %v4075_v27  ;;  %v3882_v17 = vadd.f32 %v3881_v13, %v3880_v62  ;;  %v3983_v13 = vmul.f32 %v7781_v33, %v7781_v33 }
 0x65e   :  { %v7848_v61 = vpop.f32.mrf.mxu2 }
 0x65f   :  { %9250 = vst [vmem:[#allocation21_spill] sm:$0xff] %v7848_v61  ;;  %v4079_v39 = vadd.f32 %v4078_v8, %v4077_v55  ;;  %v3884_v29 = vadd.f32 %v3883_v41, %v3882_v17  ;;  %v4082_v55 = vsel %vm2946_vm4, %v3982_v9, 0.0  ;;  %v3887_v8 = vsel %vm2946_vm4, %v7781_v33, 0.0 }
 0x660   :  { %v3984_v41 = vmul.f32 %v7799_v63, %v7799_v63  ;;  %v3893_v33 = vsel %vm2946_vm4, %v7834_v5, 0.0 }
 0x661   :  { %v4081_v27 = vadd.f32 %v4080_v45, %v4079_v39  ;;  %v7860_v62 = vpop.f32.mrf.mxu3  ;;  %v3886_v34 = vadd.f32 %v3885_v52, %v3884_v29  ;;  %v4084_v39 = vsel %vm2946_vm4, %v3983_v13, 0.0  ;;  %v3891_v13 = vsel %vm2946_vm4, %v7821_v6, 0.0 }
 0x662   :  { %9251 = vst [vmem:[#allocation79_spill] sm:$0xff] %v7860_v62 }
 0x663   :  { %v4083_v17 = vadd.f32 %v4082_v55, %v4081_v27  ;;  %v3888_v57 = vadd.f32 %v3887_v8, %v3886_v34  ;;  %v4086_v27 = vsel %vm2946_vm4, %v3984_v41, 0.0  ;;  %v3985_v55 = vmul.f32 %v7821_v6, %v7821_v6 }
 0x665   :  { %v4085_v45 = vadd.f32 %v4084_v39, %v4083_v17  ;;  %v3890_v52 = vadd.f32 %v3889_v12, %v3888_v57  ;;  %v4088_v17 = vsel %vm2946_vm4, %v3985_v55, 0.0  ;;  %v3986_v39 = vmul.f32 %v7834_v5, %v7834_v5 }
 0x666   :  { %v7862_v21 = vpop.f32.mrf.mxu2  ;;  %v3895_v55 = vsel %vm2946_vm4, %v7848_v61, 0.0 }
 0x667   :  { %9252 = vst [vmem:[#allocation127_spill] sm:$0xff] %v7862_v21  ;;  %v4087_v34 = vadd.f32 %v4086_v27, %v4085_v45  ;;  %v3892_v8 = vadd.f32 %v3891_v13, %v3890_v52  ;;  %v4090_v45 = vsel %vm2946_vm4, %v3986_v39, 0.0  ;;  %v3987_v27 = vmul.f32 %v7848_v61, %v7848_v61 }
 0x669   :  { %v7874_v29 = vpop.f32.mrf.mxu3  ;;  %v4089_v63 = vadd.f32 %v4088_v17, %v4087_v34  ;;  %v3894_v57 = vadd.f32 %v3893_v33, %v3892_v8  ;;  %v4092_v34 = vsel %vm2946_vm4, %v3987_v27, 0.0  ;;  %v3988_v17 = vmul.f32 %v7862_v21, %v7862_v21 }
 0x66a   :  { %9253 = vst [vmem:[#allocation194_spill] sm:$0xff] %v7874_v29  ;;  %v3897_v33 = vsel %vm2946_vm4, %v7862_v21, 0.0 }
 0x66b   :  { %v4091_v52 = vadd.f32 %v4090_v45, %v4089_v63  ;;  %v3896_v13 = vadd.f32 %v3895_v55, %v3894_v57  ;;  %v4094_v63 = vsel %vm2946_vm4, %v3988_v17, 0.0 }
 0x66d   :  { %v4093_v5 = vadd.f32 %v4092_v34, %v4091_v52  ;;  %v3898_v39 = vadd.f32 %v3897_v33, %v3896_v13 }
 0x66e   :  { %v7876_v9 = vpop.f32.mrf.mxu2 }
 0x66f   :  { %9254 = vst [vmem:[#allocation254_spill] sm:$0xff] %v7876_v9  ;;  %v3989_v45 = vmul.f32 %v7876_v9, %v7876_v9  ;;  %v4095_v27 = vadd.f32 %v4094_v63, %v4093_v5  ;;  %v3899_v52 = vsel %vm2946_vm4, %v7876_v9, 0.0 }
 0x670   :  { %v3900_v34 = vadd.f32 %v3899_v52, %v3898_v39  ;;  %v3993_v39 = vmul.f32 %v7763_v1, %v7763_v1 }
 0x671   :  { %v7888_v12 = vpop.f32.mrf.mxu3  ;;  %v4096_v33 = vsel %vm2946_vm4, %v3989_v45, 0.0 }
 0x672   :  { %9255 = vst [vmem:[#allocation243_spill] sm:$0xff] %v7888_v12  ;;  %v4097_v61 = vadd.f32 %v4096_v33, %v4095_v27  ;;  %v3909_v33 = vsel %vm2946_vm4, %v7777_v36, 0.0 }
 0x676   :  { %v7890_v41 = vpop.f32.mrf.mxu2 }
 0x677   :  { %9256 = vst [vmem:[#allocation300_spill] sm:$0xff] %v7890_v41  ;;  %v3990_v57 = vmul.f32 %v7890_v41, %v7890_v41  ;;  %v3901_v55 = vsel %vm2946_vm4, %v7890_v41, 0.0 }
 0x678   :  { %v3902_v22 = vadd.f32 %v3901_v55, %v3900_v34  ;;  %v3907_v55 = vsel %vm2946_vm4, %v7763_v1, 0.0  ;;  %v4104_v34 = vsel %vm2946_vm4, %v3993_v39, 0.0 }
 0x679   :  { %v7902_v8 = vpop.f32.mrf.mxu3  ;;  %v4098_v17 = vsel %vm2946_vm4, %v3990_v57, 0.0 }
 0x67a   :  { %9257 = vst [vmem:[#allocation12_spill] sm:$0xff] %v7902_v8  ;;  %v4099_v9 = vadd.f32 %v4098_v17, %v4097_v61  ;;  %v3994_v61 = vmul.f32 %v7777_v36, %v7777_v36  ;;  %v3995_v17 = vmul.f32 %v7792_v3, %v7792_v3 }
 0x681   :  { %v7904_v6 = vpop.f32.mrf.mxu2 }
 0x682   :  { %v3991_v13 = vmul.f32 %v7904_v6, %v7904_v6  ;;  %v3903_v21 = vsel %vm2946_vm4, %v7904_v6, 0.0 }
 0x683   :  { %v3904_v59 = vadd.f32 %v3903_v21, %v3902_v22 }
 0x684   :  { %v4100_v5 = vsel %vm2946_vm4, %v3991_v13, 0.0 }
 0x685   :  { %v4101_v52 = vadd.f32 %v4100_v5, %v4099_v9  ;;  %v4106_v5 = vsel %vm2946_vm4, %v3994_v61, 0.0 }
 0x688   :  { %v7922_v63 = vpop.f32.mrf.mxu3 }
 0x689   :  { %9258 = vst [vmem:[#allocation62_spill] sm:$0xff] %v7922_v63 }
 0x691   :  { %v7924_v41 = vpop.f32.mrf.mxu2 }
 0x692   :  { %v3905_v45 = vsel %vm2946_vm4, %v7924_v41, 0.0  ;;  %v3992_v57 = vmul.f32 %v7924_v41, %v7924_v41 }
 0x693   :  { %v3906_v27 = vadd.f32 %v3905_v45, %v3904_v59  ;;  %v3911_v45 = vsel %vm2946_vm4, %v7792_v3, 0.0  ;;  %v3998_v3 = vmul.f32 %v7846_v58, %v7846_v58 }
 0x694   :  { %v4102_v22 = vsel %vm2946_vm4, %v3992_v57, 0.0  ;;  %v3996_v57 = vmul.f32 %v7818_v37, %v7818_v37 }
 0x695   :  { %v3908_v21 = vadd.f32 %v3907_v55, %v3906_v27  ;;  %v4103_v13 = vadd.f32 %v4102_v22, %v4101_v52  ;;  %v4108_v55 = vsel %vm2946_vm4, %v3995_v17, 0.0  ;;  %v3913_v22 = vsel %vm2946_vm4, %v7818_v37, 0.0 }
 0x697   :  { %v3910_v9 = vadd.f32 %v3909_v33, %v3908_v21  ;;  %v4105_v59 = vadd.f32 %v4104_v34, %v4103_v13  ;;  %v3997_v21 = vmul.f32 %v7832_v40, %v7832_v40  ;;  %v4110_v34 = vsel %vm2946_vm4, %v3996_v57, 0.0 }
 0x698   :  { %v7947_v27 = vpop.f32.mrf.mxu3  ;;  %v3915_v33 = vsel %vm2946_vm4, %v7832_v40, 0.0  ;;  %v4114_v57 = vsel %vm2946_vm4, %v3998_v3, 0.0 }
 0x699   :  { %9259 = vst [vmem:[#allocation126_spill] sm:$0xff] %v7947_v27  ;;  %v3912_v52 = vadd.f32 %v3911_v45, %v3910_v9  ;;  %v4107_v39 = vadd.f32 %v4106_v5, %v4105_v59  ;;  %v4112_v17 = vsel %vm2946_vm4, %v3997_v21, 0.0  ;;  %v3917_v5 = vsel %vm2946_vm4, %v7846_v58, 0.0 }
 0x69a   :  { %v3999_v45 = vmul.f32 %v7860_v62, %v7860_v62 }
 0x69b   :  { %v3914_v13 = vadd.f32 %v3913_v22, %v3912_v52  ;;  %v4109_v61 = vadd.f32 %v4108_v55, %v4107_v39  ;;  %v3919_v55 = vsel %vm2946_vm4, %v7860_v62, 0.0  ;;  %v4000_v22 = vmul.f32 %v7874_v29, %v7874_v29 }
 0x69c   :  { %v4002_v62 = vmul.f32 %v7902_v8, %v7902_v8 }
 0x69d   :  { %v3916_v9 = vadd.f32 %v3915_v33, %v3914_v13  ;;  %v4111_v59 = vadd.f32 %v4110_v34, %v4109_v61  ;;  %v4116_v34 = vsel %vm2946_vm4, %v3999_v45, 0.0  ;;  %v3921_v33 = vsel %vm2946_vm4, %v7874_v29, 0.0 }
 0x69f   :  { %v3918_v52 = vadd.f32 %v3917_v5, %v3916_v9  ;;  %v4113_v39 = vadd.f32 %v4112_v17, %v4111_v59  ;;  %v4001_v9 = vmul.f32 %v7888_v12, %v7888_v12  ;;  %v4118_v17 = vsel %vm2946_vm4, %v4000_v22, 0.0 }
 0x6a0   :  { %v7969_v13 = vpop.f32.mrf.mxu3  ;;  %v3923_v5 = vsel %vm2946_vm4, %v7888_v12, 0.0  ;;  %v4122_v22 = vsel %vm2946_vm4, %v4002_v62, 0.0 }
 0x6a1   :  { %v4115_v61 = vadd.f32 %v4114_v57, %v4113_v39  ;;  %v3920_v21 = vadd.f32 %v3919_v55, %v3918_v52  ;;  %v4120_v45 = vsel %vm2946_vm4, %v4001_v9, 0.0  ;;  %v3925_v57 = vsel %vm2946_vm4, %v7902_v8, 0.0 }
 0x6a2   :  { %v4003_v55 = vmul.f32 %v7922_v63, %v7922_v63  ;;  %v4005_v62 = vmul.f32 %v7969_v13, %v7969_v13 }
 0x6a3   :  { %v3922_v59 = vadd.f32 %v3921_v33, %v3920_v21  ;;  %v4117_v3 = vadd.f32 %v4116_v34, %v4115_v61  ;;  %v3927_v34 = vsel %vm2946_vm4, %v7922_v63, 0.0  ;;  %v4004_v33 = vmul.f32 %v7947_v27, %v7947_v27 }
 0x6a5   :  { %v3924_v39 = vadd.f32 %v3923_v5, %v3922_v59  ;;  %v4119_v52 = vadd.f32 %v4118_v17, %v4117_v3  ;;  %v4124_v17 = vsel %vm2946_vm4, %v4003_v55, 0.0  ;;  %v3929_v5 = vsel %vm2946_vm4, %v7947_v27, 0.0 }
 0x6a7   :  { %v3926_v21 = vadd.f32 %v3925_v57, %v3924_v39  ;;  %v4121_v61 = vadd.f32 %v4120_v45, %v4119_v52  ;;  %v4126_v52 = vsel %vm2946_vm4, %v4004_v33, 0.0  ;;  %v3931_v57 = vsel %vm2946_vm4, %v7969_v13, 0.0 }
 0x6a8   :  { %v7991_v59 = vpop.f32.mrf.mxu3 }
 0x6a9   :  { %v3928_v3 = vadd.f32 %v3927_v34, %v3926_v21  ;;  %v4123_v9 = vadd.f32 %v4122_v22, %v4121_v61  ;;  %v4128_v21 = vsel %vm2946_vm4, %v4005_v62, 0.0  ;;  %v4006_v55 = vmul.f32 %v7991_v59, %v7991_v59 }
 0x6aa   :  { %v3933_v34 = vsel %vm2946_vm4, %v7991_v59, 0.0 }
 0x6ab   :  { %v3930_v8 = vadd.f32 %v3929_v5, %v3928_v3  ;;  %v4125_v39 = vadd.f32 %v4124_v17, %v4123_v9  ;;  %v4130_v9 = vsel %vm2946_vm4, %v4006_v55, 0.0 }
 0x6ad   :  { %v4127_v45 = vadd.f32 %v4126_v52, %v4125_v39  ;;  %v3932_v63 = vadd.f32 %v3931_v57, %v3930_v8 }
 0x6af   :  { %v4129_v61 = vadd.f32 %v4128_v21, %v4127_v45  ;;  %v3934_v3 = vadd.f32 %v3933_v34, %v3932_v63 }
 0x6b0   :  { %v3806_v22 = vpop.f32.mrf.mxu3 }
 0x6b1   :  { %v4007_v17 = vmul.f32 %v3806_v22, %v3806_v22  ;;  %v4131_v33 = vadd.f32 %v4130_v9, %v4129_v61  ;;  %v3935_v5 = vsel %vm2946_vm4, %v3806_v22, 0.0 }
 0x6b2   :  { %v3936_v39 = vadd.f32 %v3935_v5, %v3934_v3 }
 0x6b3   :  { %v4132_v8 = vsel %vm2946_vm4, %v4007_v17, 0.0 }
 0x6b4   :  { %v4133_v52 = vadd.f32 %v4132_v8, %v4131_v33 }
 0x6b8   :  { %v3809_v62 = vpop.f32.mrf.mxu3 }
 0x6b9   :  { %v3937_v57 = vsel %vm2946_vm4, %v3809_v62, 0.0  ;;  %v4008_v27 = vmul.f32 %v3809_v62, %v3809_v62 }
 0x6ba   :  { %v3938_v45 = vadd.f32 %v3937_v57, %v3936_v39 }
 0x6bb   :  { %v4134_v21 = vsel %vm2946_vm4, %v4008_v27, 0.0 }
 0x6bc   :  { %v3939_v12 = vrot.slane %v3938_v45, 4  ;;  %v4135_v29 = vadd.f32 %v4134_v21, %v4133_v52 }
 0x6be   :  { %v3940_v63 = vadd.f32 %v3939_v12, %v3938_v45  ;;  %v4136_v34 = vrot.slane %v4135_v29, 4 }
 0x6c0   :  { %v3941_v55 = vrot.slane %v3940_v63, 2  ;;  %v4137_v58 = vadd.f32 %v4136_v34, %v4135_v29 }
 0x6c2   :  { %v3942_v61 = vadd.f32 %v3941_v55, %v3940_v63  ;;  %v4138_v9 = vrot.slane %v4137_v58, 2 }
 0x6c4   :  { %v3943_v40 = vrot.slane %v3942_v61, 1  ;;  %v4139_v3 = vadd.f32 %v4138_v9, %v4137_v58 }
 0x6c6   :  { %v3944_v5 = vadd.f32 %v3943_v40, %v3942_v61  ;;  %v4140_v17 = vrot.slane %v4139_v3, 1  ;;  %v4157_v40 = vld [vmem:[%s8580_s2] sm:$0x1]  ;;  %s4723_s2 = smov [#allocation4]  }
 0x6c8   :  { %v4141_v33 = vadd.f32 %v4140_v17, %v4139_v3  ;;  %v4142_v8 = vmul.f32 0.001953125, %v3944_v5 }
 0x6ca   :  { %v4143_v37 = vmul.f32 0.001953125, %v4141_v33  ;;  %v4144_v36 = vmul.f32 %v4142_v8, %v4142_v8 }
 0x6cc   :  { %v4145_v1 = vsub.f32 %v4143_v37, %v4144_v36 }
 0x6ce   :  { %v4146_v39 = vadd.f32 1e-05, %v4145_v1  ;;  %v4159_v1 = vld [vmem:[%s8581_s3] sm:$0x1]  ;;  %s4521_s3 = sshll.u32 %s4723_s2, 4  ;;  %s4522_s3 = int_to_ptr.vmem [resolvable:$true] %s4521_s3 }
 0x6d0   :  { %4626 = vrsqrt.f32 %v4146_v39  ;;  %vm4153_vm12 = vweird.f32 %v4146_v39 }
 0x6d6   :  { %v4627_v27 = vpop.eup %4626 }
 0x6d7   :  { %v4148_v57 = vmul.f32 %v4627_v27, %v4146_v39  ;;  %vm4154_vm11 = vweird.f32 %v4627_v27 }
 0x6d8   :  { %vm4155_vm13 = vmor %vm4153_vm12, %vm4154_vm11 }
 0x6d9   :  { %v4149_v52 = vmul.f32 %v4627_v27, %v4148_v57 }
 0x6db   :  { %v4150_v12 = vmul.f32 0.5, %v4149_v52 }
 0x6dd   :  { %v4151_v45 = vsub.f32 1.5, %v4150_v12 }
 0x6df   :  { %v4152_v29 = vmul.f32 %v4627_v27, %v4151_v45 }
 0x6e1   :  { %v4156_v58 = vsel %vm4155_vm13, %v4627_v27, %v4152_v29 }
 0x6e2   :  { %v4158_v21 = vmul.f32 %v4157_v40, %v4156_v58 }
 0x6e4   :  { %v4160_v36 = vmul.f32 %v4158_v21, %v4142_v8  ;;  %v8017_v37 = vperm.slane %v4158_v21, 0 }
 0x6e6   :  { %v4161_v63 = vsub.f32 %v4159_v1, %v4160_v36  ;;  %v4223_v34 = vmul.f32 %v8017_v37, %v7969_v13  ;;  %v4224_v55 = vmul.f32 %v8017_v37, %v7991_v59  ;;  %v4225_v61 = vmul.f32 %v8017_v37, %v3806_v22 }
 0x6e7   :  { %v4226_v9 = vmul.f32 %v8017_v37, %v3809_v62  ;;  %v8035_v22 = vmul.f32 %v8017_v37, %v7219_v32  ;;  %v8039_v62 = vmul.f32 %v8017_v37, %v7246_v28  ;;  %v8043_v12 = vmul.f32 %v8017_v37, %v7274_v50 }
 0x6e8   :  { %v8025_v3 = vperm.slane %v4161_v63, 0  ;;  %v8047_v45 = vmul.f32 %v8017_v37, %v7308_v49  ;;  %v8051_v29 = vmul.f32 %v8017_v37, %v7351_v19  ;;  %v8055_v32 = vmul.f32 %v8017_v37, %v7378_v0 }
 0x6e9   :  { %v8059_v28 = vmul.f32 %v8017_v37, %v7401_v26  ;;  %v8063_v50 = vmul.f32 %v8017_v37, %v7420_v43  ;;  %v8067_v49 = vmul.f32 %v8017_v37, %v7441_v23  ;;  %v8071_v19 = vmul.f32 %v8017_v37, %v7458_v51 }
 0x6ea   :  { %v4290_v5 = vadd.f32 %v8025_v3, %v4223_v34  ;;  %v4291_v17 = vadd.f32 %v8025_v3, %v4224_v55  ;;  %v4292_v33 = vadd.f32 %v8025_v3, %v4225_v61  ;;  %v4293_v8 = vadd.f32 %v8025_v3, %v4226_v9  ;;  %v9264_v55 = vld [vmem:[#allocation11_spill] sm:$0xff]  ;;  %v9266_v61 = vld [vmem:[#allocation68_spill] sm:$0xff] }
 0x6eb   :  { %v8075_v0 = vmul.f32 %v8017_v37, %v7482_v4  ;;  %v8079_v26 = vmul.f32 %v8017_v37, %v7494_v11  ;;  %v8083_v43 = vmul.f32 %v8017_v37, %v7522_v60  ;;  %v8087_v23 = vmul.f32 %v8017_v37, %v7558_v2 }
 0x6ec   :  { %v4354_v39 = vmax.f32 %v4290_v5, 0.0  ;;  %v4355_v27 = vmax.f32 %v4291_v17, 0.0  ;;  %v4356_v13 = vmax.f32 %v4292_v33, 0.0  ;;  %v4357_v57 = vmax.f32 %v4293_v8, 0.0  ;;  %v9268_v5 = vld [vmem:[#allocation183_spill] sm:$0xff]  ;;  %v9270_v33 = vld [vmem:[#allocation21_spill] sm:$0xff] }
 0x6ed   :  { %v8091_v51 = vmul.f32 %v8017_v37, %v7600_v16  ;;  %v8095_v4 = vmul.f32 %v8017_v37, %v7639_v10  ;;  %v8099_v11 = vmul.f32 %v8017_v37, %v7409_v54  ;;  %v8103_v60 = vmul.f32 %v8017_v37, %v7430_v30 }
 0x6ee   :  { %v4388_v52 = vmax.f32 %v4354_v39, %v4356_v13  ;;  %v4389_v59 = vmax.f32 %v4355_v27, %v4357_v57  ;;  %v8107_v2 = vmul.f32 %v8017_v37, %v7450_v53  ;;  %v8111_v16 = vmul.f32 %v8017_v37, %v7477_v35  ;;  %v9272_v39 = vld [vmem:[#allocation127_spill] sm:$0xff]  ;;  %v9274_v13 = vld [vmem:[#allocation254_spill] sm:$0xff] }
 0x6ef   :  { %v8115_v10 = vmul.f32 %v8017_v37, %v7490_v20  ;;  %v8119_v54 = vmul.f32 %v8017_v37, %v7515_v14  ;;  %v8123_v30 = vmul.f32 %v8017_v37, %v7554_v31  ;;  %v8127_v53 = vmul.f32 %v8017_v37, %v7607_v38 }
 0x6f0   :  { %4420 = vst.msk [vmem:[#allocation3 + $0xf0] sm:$0xff] %vm2946_vm4, %v4388_v52  ;;  %v8131_v35 = vmul.f32 %v8017_v37, %v7650_v42  ;;  %v8135_v20 = vmul.f32 %v8017_v37, %v7681_v18  ;;  %v8139_v14 = vmul.f32 %v8017_v37, %v7711_v44  ;;  %v8143_v21 = vmul.f32 %v8017_v37, %v7737_v7  ;;  %v9275_v52 = vld [vmem:[#allocation300_spill] sm:$0xff] }
 0x6f1   :  { %4421 = vst.msk [vmem:[#allocation3 + $0xf8] sm:$0xff] %vm2946_vm4, %v4389_v59  ;;  %v8147_v38 = vmul.f32 %v8017_v37, %v7753_v24  ;;  %v8151_v42 = vmul.f32 %v8017_v37, %v7769_v25  ;;  %v8155_v18 = vmul.f32 %v8017_v37, %v7785_v15  ;;  %v8159_v44 = vmul.f32 %v8017_v37, %v7807_v46  ;;  %v9260_v15 = vld [vmem:[#allocation136_spill] sm:$0xff] }
 0x6f2   :  { %v8163_v7 = vmul.f32 %v8017_v37, %v7647_v47  ;;  %v8167_v24 = vmul.f32 %v8017_v37, %v7676_v56  ;;  %v8172_v25 = vmul.f32 %v8017_v37, %v7704_v48  ;;  %v8176_v1 = vmul.f32 %v8017_v37, %v9260_v15  ;;  %v9261_v46 = vld [vmem:[#allocation184_spill] sm:$0xff]  ;;  %v9263_v56 = vld [vmem:[#allocation125_spill] sm:$0xff] }
 0x6f3   :  { %v8180_v36 = vmul.f32 %v8017_v37, %v9261_v46  ;;  %v9262_v47 = vld [vmem:[#allocation252_spill] sm:$0xff]  ;;  %v8188_v34 = vmul.f32 %v8017_v37, %v9263_v56  ;;  %v8192_v48 = vmul.f32 %v8017_v37, %v9264_v55  ;;  %v8196_v9 = vmul.f32 %v8017_v37, %v9266_v61  ;;  %v9277_v46 = vld [vmem:[#allocation67_spill] sm:$0xff] }
 0x6f4   :  { %v8184_v63 = vmul.f32 %v8017_v37, %v9262_v47  ;;  %v8200_v17 = vmul.f32 %v8017_v37, %v9268_v5  ;;  %v8204_v8 = vmul.f32 %v8017_v37, %v9270_v33  ;;  %v8208_v27 = vmul.f32 %v8017_v37, %v9272_v39  ;;  %v9278_v56 = vld [vmem:[#allocation176_spill] sm:$0xff]  ;;  %v9280_v33 = vld [vmem:[#allocation118_spill] sm:$0xff] }
 0x6f5   :  { %9265 = vst [vmem:[#allocation185_spill] sm:$0xff] %v8192_v48  ;;  %v4207_v57 = vmul.f32 %v8017_v37, %v9274_v13  ;;  %v4208_v59 = vmul.f32 %v8017_v37, %v9275_v52  ;;  %v4212_v47 = vmul.f32 %v8017_v37, %v9277_v46  ;;  %v4213_v55 = vmul.f32 %v8017_v37, %v9278_v56  ;;  %v9279_v61 = vld [vmem:[#allocation240_spill] sm:$0xff]  ;;  %v9281_v13 = vld [vmem:[#allocation241_spill] sm:$0xff]  ;;  %v9282_v52 = vld [vmem:[#allocation79_spill] sm:$0xff] }
 0x6f6   :  { %9267 = vst [vmem:[#allocation235_spill] sm:$0xff] %v8196_v9  ;;  %v4214_v5 = vmul.f32 %v8017_v37, %v9279_v61  ;;  %v4215_v39 = vmul.f32 %v8017_v37, %v9280_v33  ;;  %v9286_v9 = vld [vmem:[#allocation62_spill] sm:$0xff] }
 0x6f7   :  { %9269 = vst [vmem:[#allocation299_spill] sm:$0xff] %v8200_v17  ;;  %v9285_v17 = vld [vmem:[#allocation12_spill] sm:$0xff]  ;;  %v4221_v61 = vmul.f32 %v8017_v37, %v9286_v9  ;;  %v9287_v48 = vld [vmem:[#allocation126_spill] sm:$0xff]  ;;  %v8260_v9 = vadd.f32 %v8025_v3, %v8051_v29  ;;  %v8284_v29 = vadd.f32 %v8025_v3, %v8075_v0  ;;  %v8305_v0 = vadd.f32 %v8025_v3, %v4213_v55 }
 0x6f8   :  { %v4452_v40 = vld [vmem:[#allocation3 + $0xf0] ss:$2 sm:$0xff]  ;;  %v4484_v58 = vld [vmem:[#allocation3 + $0xf1] ss:$2 sm:$0xff]  ;;  %9271 = vst [vmem:[#allocation23_spill] sm:$0xff] %v8204_v8  ;;  %v9284_v8 = vld [vmem:[#allocation243_spill] sm:$0xff]  ;;  %v4220_v56 = vmul.f32 %v8017_v37, %v9285_v17  ;;  %v4222_v33 = vmul.f32 %v8017_v37, %v9287_v48  ;;  %v8256_v17 = vadd.f32 %v8025_v3, %v8047_v45  ;;  %v8280_v45 = vadd.f32 %v8025_v3, %v8071_v19 }
 0x6f9   :  { %v4500_v31 = vmax.f32 %v4452_v40, %v4484_v58  ;;  %9273 = vst [vmem:[#allocation25_spill] sm:$0xff] %v8208_v27  ;;  %v4209_v40 = vmul.f32 %v8017_v37, %v7904_v6  ;;  %v4210_v58 = vmul.f32 %v8017_v37, %v7924_v41  ;;  %v4216_v6 = vmul.f32 %v8017_v37, %v9281_v13  ;;  %v9283_v27 = vld [vmem:[#allocation194_spill] sm:$0xff] }
 0x6fa   :  { %v4217_v41 = vmul.f32 %v8017_v37, %v9282_v52  ;;  %v4219_v46 = vmul.f32 %v8017_v37, %v9284_v8  ;;  %v8244_v13 = vadd.f32 %v8025_v3, %v8035_v22  ;;  %v8248_v52 = vadd.f32 %v8025_v3, %v8039_v62 }
 0x6fb   :  { %4516 = vst.msk [vmem:[#allocation4 + $0x78] sm:$0xff] %vm2946_vm4, %v4500_v31  ;;  %v9276_v31 = vld [vmem:[#allocation7_spill] sm:$0xff]  ;;  %v8252_v8 = vadd.f32 %v8025_v3, %v8043_v12  ;;  %v8268_v22 = vadd.f32 %v8025_v3, %v8059_v28  ;;  %v8272_v62 = vadd.f32 %v8025_v3, %v8063_v50  ;;  %v8276_v12 = vadd.f32 %v8025_v3, %v8067_v49 }
 0x6fc   :  { %v4211_v15 = vmul.f32 %v8017_v37, %v9276_v31  ;;  %v4218_v31 = vmul.f32 %v8017_v37, %v9283_v27  ;;  %v8264_v37 = vadd.f32 %v8025_v3, %v8055_v32  ;;  %v8287_v32 = vadd.f32 %v8025_v3, %v4207_v57 }
 0x6fd   :  { %v8290_v28 = vadd.f32 %v8025_v3, %v4208_v59  ;;  %v8293_v50 = vadd.f32 %v8025_v3, %v4209_v40  ;;  %v8296_v49 = vadd.f32 %v8025_v3, %v4210_v58  ;;  %v8302_v19 = vadd.f32 %v8025_v3, %v4212_v47 }
 0x6fe   :  { %v8299_v48 = vadd.f32 %v8025_v3, %v4211_v15  ;;  %v8308_v27 = vadd.f32 %v8025_v3, %v4214_v5  ;;  %v8311_v57 = vadd.f32 %v8025_v3, %v4215_v39  ;;  %v8314_v59 = vadd.f32 %v8025_v3, %v4216_v6 }
 0x6ff   :  { %v8317_v40 = vadd.f32 %v8025_v3, %v4217_v41  ;;  %v8320_v58 = vadd.f32 %v8025_v3, %v4218_v31  ;;  %v8323_v15 = vadd.f32 %v8025_v3, %v4219_v46  ;;  %v8326_v47 = vadd.f32 %v8025_v3, %v4220_v56  ;;  %v9293_v56 = vld [vmem:[#allocation185_spill] sm:$0xff] }
 0x700   :  { %v8329_v55 = vadd.f32 %v8025_v3, %v4221_v61  ;;  %v8333_v5 = vadd.f32 %v8025_v3, %v8079_v26  ;;  %v8337_v39 = vadd.f32 %v8025_v3, %v8083_v43  ;;  %v8341_v6 = vadd.f32 %v8025_v3, %v8087_v23 }
 0x701   :  { %v8344_v41 = vadd.f32 %v8025_v3, %v4222_v33  ;;  %v8348_v31 = vadd.f32 %v8025_v3, %v8091_v51  ;;  %v8352_v46 = vadd.f32 %v8025_v3, %v8095_v4  ;;  %v8356_v26 = vadd.f32 %v8025_v3, %v8099_v11 }
 0x702   :  { %v8360_v43 = vadd.f32 %v8025_v3, %v8103_v60  ;;  %v8364_v23 = vadd.f32 %v8025_v3, %v8107_v2  ;;  %v8368_v51 = vadd.f32 %v8025_v3, %v8111_v16  ;;  %v8372_v4 = vadd.f32 %v8025_v3, %v8115_v10 }
 0x703   :  { %v8376_v11 = vadd.f32 %v8025_v3, %v8119_v54  ;;  %v8380_v60 = vadd.f32 %v8025_v3, %v8123_v30  ;;  %v8384_v2 = vadd.f32 %v8025_v3, %v8127_v53  ;;  %v8388_v16 = vadd.f32 %v8025_v3, %v8131_v35 }
 0x704   :  { %v8392_v10 = vadd.f32 %v8025_v3, %v8135_v20  ;;  %v8396_v54 = vadd.f32 %v8025_v3, %v8139_v14  ;;  %v8400_v30 = vadd.f32 %v8025_v3, %v8143_v21  ;;  %v8404_v53 = vadd.f32 %v8025_v3, %v8147_v38 }
 0x705   :  { %v8408_v35 = vadd.f32 %v8025_v3, %v8151_v42  ;;  %v8412_v20 = vadd.f32 %v8025_v3, %v8155_v18  ;;  %v8416_v14 = vadd.f32 %v8025_v3, %v8159_v44  ;;  %v8420_v21 = vadd.f32 %v8025_v3, %v8163_v7 }
 0x706   :  { %v8424_v38 = vadd.f32 %v8025_v3, %v8167_v24  ;;  %v8428_v42 = vadd.f32 %v8025_v3, %v8172_v25  ;;  %v8432_v18 = vadd.f32 %v8025_v3, %v8176_v1  ;;  %v8436_v44 = vadd.f32 %v8025_v3, %v8180_v36 }
 0x707   :  { %v8440_v7 = vadd.f32 %v8025_v3, %v8184_v63  ;;  %v8444_v24 = vadd.f32 %v8025_v3, %v8188_v34  ;;  %v8448_v25 = vadd.f32 %v8025_v3, %v9293_v56  ;;  %v4294_v61 = vmax.f32 %v8244_v13, 0.0 }
 0x708   :  { %9288 = vst [vmem:[#allocation70_spill] sm:$0xff] %v8424_v38  ;;  %v4295_v1 = vmax.f32 %v8248_v52, 0.0  ;;  %v4296_v33 = vmax.f32 %v8252_v8, 0.0  ;;  %v4297_v36 = vmax.f32 %v8256_v17, 0.0  ;;  %v4299_v63 = vmax.f32 %v8264_v37, 0.0 }
 0x709   :  { %9289 = vst [vmem:[#allocation92_spill] sm:$0xff] %v8432_v18  ;;  %v4301_v34 = vmax.f32 %v8272_v62, 0.0  ;;  %v4303_v56 = vmax.f32 %v8280_v45, 0.0  ;;  %v4304_v13 = vmax.f32 %v8284_v29, 0.0  ;;  %v4305_v52 = vmax.f32 %v8333_v5, 0.0 }
 0x70a   :  { %9290 = vst [vmem:[#allocation137_spill] sm:$0xff] %v8436_v44  ;;  %v4298_v44 = vmax.f32 %v8260_v9, 0.0  ;;  %v4306_v8 = vmax.f32 %v8337_v39, 0.0  ;;  %v4307_v17 = vmax.f32 %v8341_v6, 0.0  ;;  %v4308_v9 = vmax.f32 %v8348_v31, 0.0 }
 0x70b   :  { %9291 = vst [vmem:[#allocation151_spill] sm:$0xff] %v8440_v7  ;;  %v4300_v7 = vmax.f32 %v8268_v22, 0.0  ;;  %v4309_v37 = vmax.f32 %v8352_v46, 0.0  ;;  %v4310_v22 = vmax.f32 %v8356_v26, 0.0  ;;  %v4311_v62 = vmax.f32 %v8360_v43, 0.0 }
 0x70c   :  { %9292 = vst [vmem:[#allocation196_spill] sm:$0xff] %v8444_v24  ;;  %v4302_v24 = vmax.f32 %v8276_v12, 0.0  ;;  %v4312_v12 = vmax.f32 %v8364_v23, 0.0  ;;  %v4313_v45 = vmax.f32 %v8368_v51, 0.0  ;;  %v4314_v29 = vmax.f32 %v8372_v4, 0.0 }
 0x70d   :  { %9294 = vst [vmem:[#allocation198_spill] sm:$0xff] %v8448_v25  ;;  %v4315_v5 = vmax.f32 %v8376_v11, 0.0  ;;  %v4316_v39 = vmax.f32 %v8380_v60, 0.0  ;;  %v4317_v6 = vmax.f32 %v8384_v2, 0.0  ;;  %v4338_v31 = vmax.f32 %v8287_v32, 0.0 }
 0x70e   :  { %v4339_v46 = vmax.f32 %v8290_v28, 0.0  ;;  %v4340_v26 = vmax.f32 %v8293_v50, 0.0  ;;  %v4341_v43 = vmax.f32 %v8296_v49, 0.0  ;;  %v4342_v23 = vmax.f32 %v8299_v48, 0.0 }
 0x70f   :  { %v4343_v51 = vmax.f32 %v8302_v19, 0.0  ;;  %v4344_v4 = vmax.f32 %v8305_v0, 0.0  ;;  %v4358_v25 = vmax.f32 %v4294_v61, %v4296_v33  ;;  %v4359_v11 = vmax.f32 %v4295_v1, %v4297_v36 }
 0x710   :  { %v4360_v18 = vmax.f32 %v4298_v44, %v4300_v7  ;;  %v4345_v60 = vmax.f32 %v8308_v27, 0.0  ;;  %v4346_v2 = vmax.f32 %v8311_v57, 0.0  ;;  %v4347_v32 = vmax.f32 %v8314_v59, 0.0 }
 0x711   :  { %v4361_v28 = vmax.f32 %v4299_v63, %v4301_v34  ;;  %v4348_v50 = vmax.f32 %v8317_v40, 0.0  ;;  %v4349_v49 = vmax.f32 %v8320_v58, 0.0  ;;  %v4350_v48 = vmax.f32 %v8323_v15, 0.0  ;;  %4390 = vst.msk [vmem:[#allocation3] sm:$0xff] %vm2946_vm4, %v4358_v25 }
 0x712   :  { %v4362_v38 = vmax.f32 %v4302_v24, %v4304_v13  ;;  %v4351_v19 = vmax.f32 %v8326_v47, 0.0  ;;  %v4352_v0 = vmax.f32 %v8329_v55, 0.0  ;;  %v4353_v27 = vmax.f32 %v8344_v41, 0.0  ;;  %4391 = vst.msk [vmem:[#allocation3 + $0x8] sm:$0xff] %vm2946_vm4, %v4359_v11 }
 0x713   :  { %v4363_v44 = vmax.f32 %v4303_v56, %v4305_v52  ;;  %v4318_v57 = vmax.f32 %v8388_v16, 0.0  ;;  %v4319_v59 = vmax.f32 %v8392_v10, 0.0  ;;  %v4320_v40 = vmax.f32 %v8396_v54, 0.0  ;;  %4392 = vst.msk [vmem:[#allocation3 + $0x10] sm:$0xff] %vm2946_vm4, %v4360_v18 }
 0x714   :  { %v4364_v58 = vmax.f32 %v4306_v8, %v4308_v9  ;;  %v4321_v15 = vmax.f32 %v8400_v30, 0.0  ;;  %v4365_v7 = vmax.f32 %v4307_v17, %v4309_v37  ;;  %v4366_v47 = vmax.f32 %v4310_v22, %v4312_v12  ;;  %4393 = vst.msk [vmem:[#allocation3 + $0x18] sm:$0xff] %vm2946_vm4, %v4361_v28  ;;  %v9295_v30 = vld [vmem:[#allocation235_spill] sm:$0xff]  ;;  %v9298_v37 = vld [vmem:[#allocation25_spill] sm:$0xff]  ;;  %v9300_v12 = vld [vmem:[#allocation92_spill] sm:$0xff] }
 0x715   :  { %v4380_v24 = vmax.f32 %v4338_v31, %v4340_v26  ;;  %v4381_v55 = vmax.f32 %v4339_v46, %v4341_v43  ;;  %v4382_v41 = vmax.f32 %v4342_v23, %v4344_v4  ;;  %v8498_v25 = vmax.f32 %v4343_v51, %v4345_v60  ;;  %4394 = vst.msk [vmem:[#allocation3 + $0x20] sm:$0xff] %vm2946_vm4, %v4362_v38  ;;  %v9296_v38 = vld [vmem:[#allocation299_spill] sm:$0xff]  ;;  %v9304_v46 = vld [vmem:[#allocation198_spill] sm:$0xff] }
 0x716   :  { %v8500_v61 = vmax.f32 %v4346_v2, %v4348_v50  ;;  %v4367_v16 = vmax.f32 %v4311_v62, %v4313_v45  ;;  %v8503_v10 = vmax.f32 %v4347_v32, %v4349_v49  ;;  %v8505_v54 = vmax.f32 %v4350_v48, %v4352_v0  ;;  %4395 = vst.msk [vmem:[#allocation3 + $0x28] sm:$0xff] %vm2946_vm4, %v4363_v44  ;;  %v9297_v8 = vld [vmem:[#allocation23_spill] sm:$0xff]  ;;  %v9299_v62 = vld [vmem:[#allocation70_spill] sm:$0xff] }
 0x717   :  { %v8507_v18 = vmax.f32 %v4351_v19, %v4353_v27  ;;  %v4270_v1 = vadd.f32 %v8025_v3, %v9295_v30  ;;  %v4322_v33 = vmax.f32 %v8404_v53, 0.0  ;;  %v4324_v36 = vmax.f32 %v8412_v20, 0.0  ;;  %4396 = vst.msk [vmem:[#allocation3 + $0x30] sm:$0xff] %vm2946_vm4, %v4364_v58 }
 0x718   :  { %v4368_v63 = vmax.f32 %v4314_v29, %v4316_v39  ;;  %v4271_v34 = vadd.f32 %v8025_v3, %v9296_v38  ;;  %v4323_v56 = vmax.f32 %v8408_v35, 0.0  ;;  %v4325_v13 = vmax.f32 %v8416_v14, 0.0  ;;  %4397 = vst.msk [vmem:[#allocation3 + $0x38] sm:$0xff] %vm2946_vm4, %v4365_v7  ;;  %v9301_v29 = vld [vmem:[#allocation137_spill] sm:$0xff]  ;;  %v9302_v39 = vld [vmem:[#allocation196_spill] sm:$0xff] }
 0x719   :  { %v4369_v52 = vmax.f32 %v4315_v5, %v4317_v6  ;;  %v4272_v17 = vadd.f32 %v8025_v3, %v9297_v8  ;;  %v4326_v53 = vmax.f32 %v8420_v21, 0.0  ;;  %v4328_v20 = vmax.f32 %v8428_v42, 0.0  ;;  %4398 = vst.msk [vmem:[#allocation3 + $0x40] sm:$0xff] %vm2946_vm4, %v4366_v47  ;;  %v9303_v42 = vld [vmem:[#allocation151_spill] sm:$0xff] }
 0x71a   :  { %v4370_v9 = vmax.f32 %v4318_v57, %v4320_v40  ;;  %v4273_v22 = vadd.f32 %v8025_v3, %v9298_v37  ;;  %v4327_v35 = vmax.f32 %v9299_v62, 0.0  ;;  %v4329_v14 = vmax.f32 %v9300_v12, 0.0  ;;  %4399 = vst.msk [vmem:[#allocation3 + $0x48] sm:$0xff] %vm2946_vm4, %v4367_v16  ;;  %v4422_v49 = vld [vmem:[#allocation3] ss:$2 sm:$0xff] }
 0x71b   :  { %v4371_v45 = vmax.f32 %v4319_v59, %v4321_v15  ;;  %v4330_v5 = vmax.f32 %v9301_v29, 0.0  ;;  %v4332_v6 = vmax.f32 %v9302_v39, 0.0  ;;  %v4372_v21 = vmax.f32 %v4322_v33, %v4324_v36  ;;  %4400 = vst.msk [vmem:[#allocation3 + $0x50] sm:$0xff] %vm2946_vm4, %v4368_v63  ;;  %v4454_v48 = vld [vmem:[#allocation3 + $0x1] ss:$2 sm:$0xff] }
 0x71c   :  { %v4331_v31 = vmax.f32 %v9303_v42, 0.0  ;;  %v4333_v26 = vmax.f32 %v9304_v46, 0.0  ;;  %v4373_v43 = vmax.f32 %v4323_v56, %v4325_v13  ;;  %4401 = vst.msk [vmem:[#allocation3 + $0x58] sm:$0xff] %vm2946_vm4, %v4369_v52  ;;  %v4334_v3 = vmax.f32 %v4270_v1, 0.0  ;;  %v4424_v19 = vld [vmem:[#allocation3 + $0x10] ss:$2 sm:$0xff] }
 0x71d   :  { %v4336_v23 = vmax.f32 %v4272_v17, 0.0  ;;  %v4374_v51 = vmax.f32 %v4326_v53, %v4328_v20  ;;  %4402 = vst.msk [vmem:[#allocation3 + $0x60] sm:$0xff] %vm2946_vm4, %v4370_v9  ;;  %v4335_v4 = vmax.f32 %v4271_v34, 0.0  ;;  %v4337_v11 = vmax.f32 %v4273_v22, 0.0  ;;  %v4456_v0 = vld [vmem:[#allocation3 + $0x11] ss:$2 sm:$0xff] }
 0x71e   :  { %v4375_v60 = vmax.f32 %v4327_v35, %v4329_v14  ;;  %4403 = vst.msk [vmem:[#allocation3 + $0x68] sm:$0xff] %vm2946_vm4, %v4371_v45  ;;  %v4376_v2 = vmax.f32 %v4330_v5, %v4332_v6  ;;  %v4377_v32 = vmax.f32 %v4331_v31, %v4333_v26  ;;  %v4426_v27 = vld [vmem:[#allocation3 + $0x20] ss:$2 sm:$0xff]  ;;  %v4458_v44 = vld [vmem:[#allocation3 + $0x21] ss:$2 sm:$0xff]  ;;  %v4485_v40 = vmax.f32 %v4422_v49, %v4454_v48 }
 0x71f   :  { %4404 = vst.msk [vmem:[#allocation3 + $0x70] sm:$0xff] %vm2946_vm4, %v4372_v21  ;;  %v4378_v28 = vmax.f32 %v4334_v3, %v4336_v23  ;;  %v4379_v50 = vmax.f32 %v4335_v4, %v4337_v11  ;;  %v4428_v57 = vld [vmem:[#allocation3 + $0x30] ss:$2 sm:$0xff]  ;;  %v4460_v59 = vld [vmem:[#allocation3 + $0x31] ss:$2 sm:$0xff]  ;;  %v4486_v7 = vmax.f32 %v4424_v19, %v4456_v0 }
 0x720   :  { %4405 = vst.msk [vmem:[#allocation3 + $0x78] sm:$0xff] %vm2946_vm4, %v4373_v43 }
 0x721   :  { %4406 = vst.msk [vmem:[#allocation3 + $0x80] sm:$0xff] %vm2946_vm4, %v4374_v51  ;;  %v4430_v58 = vld [vmem:[#allocation3 + $0x40] ss:$2 sm:$0xff]  ;;  %v4462_v15 = vld [vmem:[#allocation3 + $0x41] ss:$2 sm:$0xff] }
 0x722   :  { %4407 = vst.msk [vmem:[#allocation3 + $0x88] sm:$0xff] %vm2946_vm4, %v4375_v60  ;;  %v4489_v1 = vmax.f32 %v4430_v58, %v4462_v15 }
 0x723   :  { %4408 = vst.msk [vmem:[#allocation3 + $0x90] sm:$0xff] %vm2946_vm4, %v4376_v2  ;;  %v4432_v47 = vld [vmem:[#allocation3 + $0x50] ss:$2 sm:$0xff] }
 0x724   :  { %4409 = vst.msk [vmem:[#allocation3 + $0x98] sm:$0xff] %vm2946_vm4, %v4377_v32 }
 0x725   :  { %4410 = vst.msk [vmem:[#allocation3 + $0xa0] sm:$0xff] %vm2946_vm4, %v4378_v28 }
 0x726   :  { %4411 = vst.msk [vmem:[#allocation3 + $0xa8] sm:$0xff] %vm2946_vm4, %v4379_v50 }
 0x727   :  { %4412 = vst.msk [vmem:[#allocation3 + $0xb0] sm:$0xff] %vm2946_vm4, %v4380_v24  ;;  %v4464_v24 = vld [vmem:[#allocation3 + $0x51] ss:$2 sm:$0xff]  ;;  %v4436_v16 = vld [vmem:[#allocation3 + $0x70] ss:$2 sm:$0xff] }
 0x728   :  { %4413 = vst.msk [vmem:[#allocation3 + $0xb8] sm:$0xff] %vm2946_vm4, %v4381_v55  ;;  %v4487_v55 = vmax.f32 %v4426_v27, %v4458_v44  ;;  %v4468_v30 = vld [vmem:[#allocation3 + $0x71] ss:$2 sm:$0xff]  ;;  %v4490_v36 = vmax.f32 %v4432_v47, %v4464_v24 }
 0x729   :  { %4414 = vst.msk [vmem:[#allocation3 + $0xc0] sm:$0xff] %vm2946_vm4, %v4382_v41  ;;  %v4434_v41 = vld [vmem:[#allocation3 + $0x60] ss:$2 sm:$0xff]  ;;  %v4470_v33 = vld [vmem:[#allocation3 + $0x81] ss:$2 sm:$0xff]  ;;  %v4492_v56 = vmax.f32 %v4436_v16, %v4468_v30 }
 0x72a   :  { %4415 = vst.msk [vmem:[#allocation3 + $0xc8] sm:$0xff] %vm2946_vm4, %v8498_v25  ;;  %v4466_v25 = vld [vmem:[#allocation3 + $0x61] ss:$2 sm:$0xff] }
 0x72b   :  { %4416 = vst.msk [vmem:[#allocation3 + $0xd0] sm:$0xff] %vm2946_vm4, %v8500_v61  ;;  %v4488_v61 = vmax.f32 %v4428_v57, %v4460_v59  ;;  %v4472_v63 = vld [vmem:[#allocation3 + $0x91] ss:$2 sm:$0xff]  ;;  %v4491_v38 = vmax.f32 %v4434_v41, %v4466_v25 }
 0x72c   :  { %4417 = vst.msk [vmem:[#allocation3 + $0xd8] sm:$0xff] %vm2946_vm4, %v8503_v10  ;;  %v4438_v10 = vld [vmem:[#allocation3 + $0x80] ss:$2 sm:$0xff] }
 0x72d   :  { %4418 = vst.msk [vmem:[#allocation3 + $0xe0] sm:$0xff] %vm2946_vm4, %v8505_v54  ;;  %v4440_v54 = vld [vmem:[#allocation3 + $0x90] ss:$2 sm:$0xff]  ;;  %v4442_v34 = vld [vmem:[#allocation3 + $0xa0] ss:$2 sm:$0xff]  ;;  %v4493_v8 = vmax.f32 %v4438_v10, %v4470_v33 }
 0x72e   :  { %4419 = vst.msk [vmem:[#allocation3 + $0xe8] sm:$0xff] %vm2946_vm4, %v8507_v18  ;;  %v4474_v18 = vld [vmem:[#allocation3 + $0xa1] ss:$2 sm:$0xff]  ;;  %v4494_v20 = vmax.f32 %v4440_v54, %v4472_v63 }
 0x72f   :  { %4501 = vst.msk [vmem:[#allocation4] sm:$0xff] %vm2946_vm4, %v4485_v40  ;;  %v4444_v13 = vld [vmem:[#allocation3 + $0xb0] ss:$2 sm:$0xff]  ;;  %v4476_v52 = vld [vmem:[#allocation3 + $0xb1] ss:$2 sm:$0xff]  ;;  %v4495_v22 = vmax.f32 %v4442_v34, %v4474_v18 }
 0x730   :  { %4502 = vst.msk [vmem:[#allocation4 + $0x8] sm:$0xff] %vm2946_vm4, %v4486_v7  ;;  %v4496_v12 = vmax.f32 %v4444_v13, %v4476_v52 }
 0x731   :  { %4503 = vst.msk [vmem:[#allocation4 + $0x10] sm:$0xff] %vm2946_vm4, %v4487_v55  ;;  %v4446_v17 = vld [vmem:[#allocation3 + $0xc0] ss:$2 sm:$0xff]  ;;  %v4478_v53 = vld [vmem:[#allocation3 + $0xc1] ss:$2 sm:$0xff] }
 0x732   :  { %4504 = vst.msk [vmem:[#allocation4 + $0x18] sm:$0xff] %vm2946_vm4, %v4488_v61  ;;  %v4497_v14 = vmax.f32 %v4446_v17, %v4478_v53 }
 0x733   :  { %4505 = vst.msk [vmem:[#allocation4 + $0x20] sm:$0xff] %vm2946_vm4, %v4489_v1  ;;  %v4448_v9 = vld [vmem:[#allocation3 + $0xd0] ss:$2 sm:$0xff]  ;;  %v4480_v37 = vld [vmem:[#allocation3 + $0xd1] ss:$2 sm:$0xff] }
 0x734   :  { %4506 = vst.msk [vmem:[#allocation4 + $0x28] sm:$0xff] %vm2946_vm4, %v4490_v36  ;;  %v4498_v45 = vmax.f32 %v4448_v9, %v4480_v37 }
 0x735   :  { %4507 = vst.msk [vmem:[#allocation4 + $0x30] sm:$0xff] %vm2946_vm4, %v4491_v38  ;;  %v4450_v62 = vld [vmem:[#allocation3 + $0xe0] ss:$2 sm:$0xff]  ;;  %v4482_v35 = vld [vmem:[#allocation3 + $0xe1] ss:$2 sm:$0xff] }
 0x736   :  { %4508 = vst.msk [vmem:[#allocation4 + $0x38] sm:$0xff] %vm2946_vm4, %v4492_v56  ;;  %v4499_v29 = vmax.f32 %v4450_v62, %v4482_v35 }
 0x737   :  { %4509 = vst.msk [vmem:[#allocation4 + $0x40] sm:$0xff] %vm2946_vm4, %v4493_v8 }
 0x738   :  { %4510 = vst.msk [vmem:[#allocation4 + $0x48] sm:$0xff] %vm2946_vm4, %v4494_v20 }
 0x739   :  { %4511 = vst.msk [vmem:[#allocation4 + $0x50] sm:$0xff] %vm2946_vm4, %v4495_v22 }
 0x73a   :  { %4512 = vst.msk [vmem:[#allocation4 + $0x58] sm:$0xff] %vm2946_vm4, %v4496_v12 }
 0x73b   :  { %4513 = vst.msk [vmem:[#allocation4 + $0x60] sm:$0xff] %vm2946_vm4, %v4497_v14 }
 0x73c   :  { %4514 = vst.msk [vmem:[#allocation4 + $0x68] sm:$0xff] %vm2946_vm4, %v4498_v45 }
 0x73d   :  { %4515 = vst.msk [vmem:[#allocation4 + $0x70] sm:$0xff] %vm2946_vm4, %v4499_v29 }
 0x73e   :  { %4529 = dma.vmem_to_hbm [thread:$0]  %s4522_s3, 2048, %s4524_s13, [#allocation5], %s4724_s14, %s4724_s14, %s4716_s10  }
 0x73f   :  { %4712 = dma.done.wait [#allocation5], 2048  }
 0x740   :  { %4713 = vsyncadd [#allocation5], 4294965248 }
 0x741   :  { %4534 = vsyncpa [#allocation5], 1 }

</bundles_post_ra>
